<compile_context>
chip_gen: v6e
topology: v6e:2x2x1
jax: 0.10.0
libtpu: 0.0.40
codegen_flags: <defaults>
</compile_context>

<pallas_src>
import jax
import jax.numpy as jnp
from jax import lax
from jax.experimental import pallas as pl
from jax.experimental.pallas import tpu as pltpu


# ---------------------------------------------------------------------------
# Kernels
# ---------------------------------------------------------------------------

def _conv_gemm_pool_kernel(p00_ref, p01_ref, p10_ref, p11_ref, w_ref, b_ref,
                           o_ref):
    """Fused conv-as-GEMM + bias + ReLU + 2x2 max-pool for one column tile.

    p{dh}{dw}_ref : (K, TC) bf16    im2col patches of pooling quadrant (dh, dw)
    w_ref         : (Cout, K) bf16  conv weight, K ordered (kh, kw, cin)
    b_ref         : (Cout, 1) f32   conv bias
    o_ref         : (Cout, TC)      pooled activations (lane-dense columns)
    """
    w = w_ref[...]
    y = jnp.dot(w, p00_ref[...], preferred_element_type=jnp.float32)
    y = jnp.maximum(y, jnp.dot(w, p01_ref[...], preferred_element_type=jnp.float32))
    y = jnp.maximum(y, jnp.dot(w, p10_ref[...], preferred_element_type=jnp.float32))
    y = jnp.maximum(y, jnp.dot(w, p11_ref[...], preferred_element_type=jnp.float32))
    # max-pool commutes with the per-channel bias add and the monotone ReLU.
    o_ref[...] = jnp.maximum(y + b_ref[...], 0.0).astype(o_ref.dtype)


def _mlp_head_kernel(x_ref, w1_ref, b1_ref, w2_ref, b2_ref, o_ref, acc_ref):
    """fc1 (K-tiled, f32 accumulation) + ReLU + fc2. Grid axis 0 walks K."""
    k = pl.program_id(0)

    @pl.when(k == 0)
    def _init():
        acc_ref[...] = jnp.zeros_like(acc_ref)

    acc_ref[...] += jnp.dot(x_ref[...], w1_ref[...],
                            preferred_element_type=jnp.float32)

    @pl.when(k == pl.num_programs(0) - 1)
    def _finalize():
        h = jnp.maximum(acc_ref[...] + b1_ref[...], 0.0)
        # TODO(synk): nn.Dropout(p=0.3) is the identity at inference time;
        # training-mode stochastic masking (pltpu.prng_*) is not implemented.
        logits = jnp.dot(h.astype(w2_ref.dtype), w2_ref[...],
                         preferred_element_type=jnp.float32) + b2_ref[...]
        o_ref[...] = logits.astype(o_ref.dtype)


# ---------------------------------------------------------------------------
# pallas_call wrappers
# ---------------------------------------------------------------------------

def _pick_col_tile(cols, cap=2048):
    for t in (2048, 1024, 512, 256, 128):
        if t <= cap and cols % t == 0:
            return t
    return cols            # full extent (always a legal block dim)


def _conv_gemm_pool(p00, p01, p10, p11, w_mat, bias):
    k_dim, cols = p00.shape
    cout = w_mat.shape[0]
    tc = _pick_col_tile(cols)
    grid = (cols // tc,)

    p_spec = pl.BlockSpec((k_dim, tc), lambda i: (0, i))
    flops = 4 * 2 * cols * k_dim * cout + 4 * cols * cout
    bytes_accessed = (4 * cols * k_dim + k_dim * cout) * 2 + cout * 4 + cols * cout * 2

    return pl.pallas_call(
        _conv_gemm_pool_kernel,
        out_shape=jax.ShapeDtypeStruct((cout, cols), jnp.bfloat16),
        grid=grid,
        in_specs=[p_spec, p_spec, p_spec, p_spec,
                  pl.BlockSpec((cout, k_dim), lambda i: (0, 0)),
                  pl.BlockSpec((cout, 1), lambda i: (0, 0))],
        out_specs=pl.BlockSpec((cout, tc), lambda i: (0, i)),
        compiler_params=pltpu.CompilerParams(
            dimension_semantics=("parallel",)),
        cost_estimate=pl.CostEstimate(flops=int(flops), transcendentals=0,
                                      bytes_accessed=int(bytes_accessed)),
    )(p00, p01, p10, p11, w_mat, bias)


def _pick_k_tile(k, cap=8192):
    for t in (cap, 4096, 2048, 1024, 512, 256, 128):
        if t <= cap and k % t == 0:
            return t
    return k


def _mlp_head(x2, w1_t, b1, w2_t, b2):
    bsz, k_dim = x2.shape
    hid = w1_t.shape[1]
    nc = w2_t.shape[1]
    tk = _pick_k_tile(k_dim)
    grid = (k_dim // tk,)

    flops = 2 * bsz * k_dim * hid + 2 * bsz * hid * nc
    bytes_accessed = (bsz * k_dim + k_dim * hid + hid * nc) * 2 + (hid + nc) * 4 + bsz * nc * 4

    return pl.pallas_call(
        _mlp_head_kernel,
        out_shape=jax.ShapeDtypeStruct((bsz, nc), jnp.float32),
        grid=grid,
        in_specs=[
            pl.BlockSpec((bsz, tk), lambda k: (0, k)),
            pl.BlockSpec((tk, hid), lambda k: (k, 0)),
            pl.BlockSpec((1, hid), lambda k: (0, 0)),
            pl.BlockSpec((hid, nc), lambda k: (0, 0)),
            pl.BlockSpec((1, nc), lambda k: (0, 0)),
        ],
        out_specs=pl.BlockSpec((bsz, nc), lambda k: (0, 0)),
        scratch_shapes=[pltpu.VMEM((bsz, hid), jnp.float32)],
        compiler_params=pltpu.CompilerParams(
            dimension_semantics=("arbitrary",)),
        cost_estimate=pl.CostEstimate(flops=int(flops), transcendentals=0,
                                      bytes_accessed=int(bytes_accessed)),
    )(x2, w1_t, b1, w2_t, b2)


# ---------------------------------------------------------------------------
# Wrapper glue (im2col, layout prep) + full forward
# ---------------------------------------------------------------------------

def _im2col_pool_quadrants(x_cbhw, dtype=jnp.bfloat16):
    """3x3/pad-1 im2col (channel-major) split into the four 2x2-pool quadrants.

    x_cbhw : (C, B, H, W).
    Returns ([P00, P01, P10, P11], (H//2, W//2)); each P is (9*C, B*(H//2)*(W//2))
    with columns in (b, ph, pw) row-major order and the K axis ordered
    (kh, kw, cin) -- matching _conv_weight_to_gemm.
    """
    c, b, h, w = x_cbhw.shape
    ph, pw = h // 2, w // 2
    xp = jnp.pad(x_cbhw.astype(dtype), ((0, 0), (0, 0), (1, 1), (1, 1)))
    quads = []
    for dh in (0, 1):
        for dw in (0, 1):
            taps = []
            for kh in range(3):
                for kw in range(3):
                    r0, c0 = dh + kh, dw + kw
                    taps.append(xp[:, :, r0:r0 + 2 * ph:2, c0:c0 + 2 * pw:2])
            patches = jnp.concatenate(taps, axis=0)          # (9c, b, ph, pw)
            quads.append(patches.reshape(9 * c, b * ph * pw))
    return quads, (ph, pw)


def _conv_weight_to_gemm(w_oihw):
    """(Cout, Cin, kh, kw) -> (Cout, 9*Cin) with K ordered (kh, kw, cin)."""
    cout, cin, kh, kw = w_oihw.shape
    return jnp.transpose(w_oihw, (0, 2, 3, 1)).reshape(cout, kh * kw * cin)


def prepare_params(params):
    """One-time layout / dtype prep, hoisted out of the per-call path."""
    w1c, b1c, w2c, b2c, wf1, bf1, wf2, bf2 = params
    return (
        _conv_weight_to_gemm(w1c).astype(jnp.bfloat16),   # (16, 27)
        b1c.reshape(-1, 1).astype(jnp.float32),           # (16, 1)
        _conv_weight_to_gemm(w2c).astype(jnp.bfloat16),   # (32, 144)
        b2c.reshape(-1, 1).astype(jnp.float32),           # (32, 1)
        jnp.transpose(wf1).astype(jnp.bfloat16),          # (32768, 128), K in (c,h,w) order
        bf1.reshape(1, -1).astype(jnp.float32),           # (1, 128)
        jnp.transpose(wf2).astype(jnp.bfloat16),          # (128, nc)
        bf2.reshape(1, -1).astype(jnp.float32),           # (1, nc)
    )


def fedavg_cnn2_light_forward(x, prepped):
    """x: anything reshapeable to (B, 3, 128, 128). Returns (B, num_classes) logits."""
    (w1m, b1m, w2m, b2m, wf1t, bf1m, wf2t, bf2m) = prepped
    batch = x.shape[0]
    x = x.reshape(batch, 3, 128, 128)                 # x.view(B, 3, 128, 128)  (NCHW)
    x = jnp.transpose(x, (1, 0, 2, 3))                # (C, B, H, W) channel-major

    # conv1 + ReLU + maxpool2  -> (16, B*64*64)
    quads1, (h1, w1) = _im2col_pool_quadrants(x)
    y1 = _conv_gemm_pool(*quads1, w1m, b1m)

    # conv2 + ReLU + maxpool2  -> (32, B*32*32)
    quads2, (h2, w2) = _im2col_pool_quadrants(y1.reshape(16, batch, h1, w1))
    y2 = _conv_gemm_pool(*quads2, w2m, b2m)

    # flatten in PyTorch's per-batch (c, h, w) order (leading-dim permute only),
    # then fc1+ReLU+(dropout=id)+fc2.
    feat = jnp.transpose(y2.reshape(32, batch, h2 * w2), (1, 0, 2)).reshape(batch, -1)
    return _mlp_head(feat, wf1t, bf1m, wf2t, bf2m)


# ---------------------------------------------------------------------------
# Params, pure-JAX reference, self-test
# ---------------------------------------------------------------------------

def init_params(key, in_features=3, num_classes=10):
    """PyTorch-default-style U(-1/sqrt(fan_in), 1/sqrt(fan_in)) init."""
    ks = jax.random.split(key, 8)

    def u(k, shape, fan_in):
        bnd = 1.0 / (fan_in ** 0.5)
        return jax.random.uniform(k, shape, jnp.float32, -bnd, bnd)

    out_size = 32 * 32 * 32   # matches _get_conv_output_size(128, 128)
    return (
        u(ks[0], (16, in_features, 3, 3), in_features * 9),   # conv1.weight
        u(ks[1], (16,), in_features * 9),                     # conv1.bias
        u(ks[2], (32, 16, 3, 3), 16 * 9),                     # conv2.weight
        u(ks[3], (32,), 16 * 9),                              # conv2.bias
        u(ks[4], (128, out_size), out_size),                  # fc1.weight
        u(ks[5], (128,), out_size),                           # fc1.bias
        u(ks[6], (num_classes, 128), 128),                    # fc2.weight
        u(ks[7], (num_classes,), 128),                        # fc2.bias
    )


def reference_forward(x, params):
    """Pure-JAX f32 emulation of the PyTorch module (eval mode)."""
    w1c, b1c, w2c, b2c, wf1, bf1, wf2, bf2 = params

    def conv3x3(h, w, b):
        y = lax.conv_general_dilated(
            h, w, window_strides=(1, 1), padding=((1, 1), (1, 1)),
            dimension_numbers=("NCHW", "OIHW", "NCHW"),
            precision=lax.Precision.HIGHEST)
        return y + b[None, :, None, None]

    def maxpool2(h):
        return lax.reduce_window(h, -jnp.inf, lax.max,
                                 (1, 1, 2, 2), (1, 1, 2, 2), "VALID")

    batch = x.shape[0]
    h = x.reshape(batch, 3, 128, 128)
    h = maxpool2(jax.nn.relu(conv3x3(h, w1c, b1c)))
    h = maxpool2(jax.nn.relu(conv3x3(h, w2c, b2c)))
    h = h.reshape(batch, -1)
    h = jax.nn.relu(jnp.dot(h, wf1.T, precision=lax.Precision.HIGHEST) + bf1)
    return jnp.dot(h, wf2.T, precision=lax.Precision.HIGHEST) + bf2


if __name__ == "__main__":
    key = jax.random.PRNGKey(0)
    kx, kp = jax.random.split(key)

    B, num_classes = 2, 10
    x = jax.random.normal(kx, (B, 3, 128, 128), jnp.float32)

    params = init_params(kp, in_features=3, num_classes=num_classes)
    prepped = prepare_params(params)

    forward = jax.jit(fedavg_cnn2_light_forward)
    out = jax.block_until_ready(forward(x, prepped))

    ref = reference_forward(x, params)
    assert out.shape == (B, num_classes)
    # bf16 GEMM operands with f32 accumulation -> ~1e-3 abs error on O(0.1) logits.
    assert bool(jnp.allclose(out, ref, atol=3e-2, rtol=3e-2)), (
        float(jnp.max(jnp.abs(out - ref))))

    print("KERNEL_OK")
</pallas_src>

<mosaic_0001>
module attributes {stable_mosaic.version = 11 : i64} {
  func.func @_conv_gemm_pool_kernel(%arg0: i32, %arg1: memref<27x2048xbf16, #tpu.memory_space<vmem>>, %arg2: memref<27x2048xbf16, #tpu.memory_space<vmem>>, %arg3: memref<27x2048xbf16, #tpu.memory_space<vmem>>, %arg4: memref<27x2048xbf16, #tpu.memory_space<vmem>>, %arg5: memref<16x27xbf16, #tpu.memory_space<vmem>>, %arg6: memref<16x1xf32, #tpu.memory_space<vmem>>, %arg7: memref<16x2048xbf16, #tpu.memory_space<vmem>>) attributes {dimension_semantics = [#tpu.dimension_semantics<parallel>], iteration_bounds = array<i64: 4>, scalar_prefetch = 0 : i64, scratch_operands = 0 : i64, tpu.core_type = #tpu.core_type<tc>, window_params = [{transform_indices = @transform_0, window_bounds = array<i64: 27, 2048>}, {transform_indices = @transform_1, window_bounds = array<i64: 27, 2048>}, {transform_indices = @transform_2, window_bounds = array<i64: 27, 2048>}, {transform_indices = @transform_3, window_bounds = array<i64: 27, 2048>}, {pipeline_mode = #tpu.pipeline_mode<synchronous>, transform_indices = @transform_4, window_bounds = array<i64: 16, 27>}, {pipeline_mode = #tpu.pipeline_mode<synchronous>, transform_indices = @transform_5, window_bounds = array<i64: 16, 1>}, {transform_indices = @transform_6, window_bounds = array<i64: 16, 2048>}]} {
    %c0 = arith.constant 0 : index
    %c0_0 = arith.constant 0 : index
    %0 = vector.load %arg5[%c0, %c0_0] : memref<16x27xbf16, #tpu.memory_space<vmem>>, vector<16x27xbf16>
    %c0_1 = arith.constant 0 : index
    %c0_2 = arith.constant 0 : index
    %1 = vector.load %arg1[%c0_1, %c0_2] : memref<27x2048xbf16, #tpu.memory_space<vmem>>, vector<27x2048xbf16>
    %cst = arith.constant dense<0.000000e+00> : vector<16x2048xf32>
    %2 = tpu.matmul %0, %1, %cst {dimension_numbers = #tpu.dot_dimension_numbers<[1], [0], [0], [1], [0, 0, 1, 1], [], []>} : vector<16x27xbf16>, vector<27x2048xbf16>, vector<16x2048xf32> -> vector<16x2048xf32>
    %c0_3 = arith.constant 0 : index
    %c0_4 = arith.constant 0 : index
    %3 = vector.load %arg2[%c0_3, %c0_4] : memref<27x2048xbf16, #tpu.memory_space<vmem>>, vector<27x2048xbf16>
    %cst_5 = arith.constant dense<0.000000e+00> : vector<16x2048xf32>
    %4 = tpu.matmul %0, %3, %cst_5 {dimension_numbers = #tpu.dot_dimension_numbers<[1], [0], [0], [1], [0, 0, 1, 1], [], []>} : vector<16x27xbf16>, vector<27x2048xbf16>, vector<16x2048xf32> -> vector<16x2048xf32>
    %5 = arith.maximumf %2, %4 : vector<16x2048xf32>
    %c0_6 = arith.constant 0 : index
    %c0_7 = arith.constant 0 : index
    %6 = vector.load %arg3[%c0_6, %c0_7] : memref<27x2048xbf16, #tpu.memory_space<vmem>>, vector<27x2048xbf16>
    %cst_8 = arith.constant dense<0.000000e+00> : vector<16x2048xf32>
    %7 = tpu.matmul %0, %6, %cst_8 {dimension_numbers = #tpu.dot_dimension_numbers<[1], [0], [0], [1], [0, 0, 1, 1], [], []>} : vector<16x27xbf16>, vector<27x2048xbf16>, vector<16x2048xf32> -> vector<16x2048xf32>
    %8 = arith.maximumf %5, %7 : vector<16x2048xf32>
    %c0_9 = arith.constant 0 : index
    %c0_10 = arith.constant 0 : index
    %9 = vector.load %arg4[%c0_9, %c0_10] : memref<27x2048xbf16, #tpu.memory_space<vmem>>, vector<27x2048xbf16>
    %cst_11 = arith.constant dense<0.000000e+00> : vector<16x2048xf32>
    %10 = tpu.matmul %0, %9, %cst_11 {dimension_numbers = #tpu.dot_dimension_numbers<[1], [0], [0], [1], [0, 0, 1, 1], [], []>} : vector<16x27xbf16>, vector<27x2048xbf16>, vector<16x2048xf32> -> vector<16x2048xf32>
    %11 = arith.maximumf %8, %10 : vector<16x2048xf32>
    %c0_12 = arith.constant 0 : index
    %c0_13 = arith.constant 0 : index
    %12 = vector.load %arg6[%c0_12, %c0_13] : memref<16x1xf32, #tpu.memory_space<vmem>>, vector<16x1xf32>
    %13 = vector.broadcast %12 : vector<16x1xf32> to vector<16x2048xf32>
    %14 = arith.addf %11, %13 : vector<16x2048xf32>
    %cst_14 = arith.constant 0.000000e+00 : f32
    %15 = vector.broadcast %cst_14 : f32 to vector<16x2048xf32>
    %16 = arith.maximumf %14, %15 : vector<16x2048xf32>
    %17 = arith.truncf %16 : vector<16x2048xf32> to vector<16x2048xbf16>
    %c0_15 = arith.constant 0 : index
    %c0_16 = arith.constant 0 : index
    %18 = vector.load %arg7[%c0_15, %c0_16] : memref<16x2048xbf16, #tpu.memory_space<vmem>>, vector<16x2048xbf16>
    tpu.vector_store %arg7[%c0_15, %c0_16], %17 {strides = array<i32>} : memref<16x2048xbf16, #tpu.memory_space<vmem>>, vector<16x2048xbf16>,
    return
  }
  func.func @transform_0(%arg0: i32) -> (i32, i32) {
    %c0_i32 = arith.constant 0 : i32
    %c0_i32_0 = arith.constant 0 : i32
    return %c0_i32, %arg0 : i32, i32
  }
  func.func @transform_1(%arg0: i32) -> (i32, i32) {
    %c0_i32 = arith.constant 0 : i32
    %c0_i32_0 = arith.constant 0 : i32
    return %c0_i32, %arg0 : i32, i32
  }
  func.func @transform_2(%arg0: i32) -> (i32, i32) {
    %c0_i32 = arith.constant 0 : i32
    %c0_i32_0 = arith.constant 0 : i32
    return %c0_i32, %arg0 : i32, i32
  }
  func.func @transform_3(%arg0: i32) -> (i32, i32) {
    %c0_i32 = arith.constant 0 : i32
    %c0_i32_0 = arith.constant 0 : i32
    return %c0_i32, %arg0 : i32, i32
  }
  func.func @transform_4(%arg0: i32) -> (i32, i32) {
    %c0_i32 = arith.constant 0 : i32
    %c0_i32_0 = arith.constant 0 : i32
    %c0_i32_1 = arith.constant 0 : i32
    return %c0_i32, %c0_i32_0 : i32, i32
  }
  func.func @transform_5(%arg0: i32) -> (i32, i32) {
    %c0_i32 = arith.constant 0 : i32
    %c0_i32_0 = arith.constant 0 : i32
    %c0_i32_1 = arith.constant 0 : i32
    return %c0_i32, %c0_i32_0 : i32, i32
  }
  func.func @transform_6(%arg0: i32) -> (i32, i32) {
    %c0_i32 = arith.constant 0 : i32
    %c0_i32_0 = arith.constant 0 : i32
    return %c0_i32, %arg0 : i32, i32
  }
}

module attributes {stable_mosaic.version = 11 : i64} {
  func.func @_conv_gemm_pool_kernel(%arg0: i32, %arg1: memref<144x2048xbf16, #tpu.memory_space<vmem>>, %arg2: memref<144x2048xbf16, #tpu.memory_space<vmem>>, %arg3: memref<144x2048xbf16, #tpu.memory_space<vmem>>, %arg4: memref<144x2048xbf16, #tpu.memory_space<vmem>>, %arg5: memref<32x144xbf16, #tpu.memory_space<vmem>>, %arg6: memref<32x1xf32, #tpu.memory_space<vmem>>, %arg7: memref<32x2048xbf16, #tpu.memory_space<vmem>>) attributes {dimension_semantics = [#tpu.dimension_semantics<parallel>], iteration_bounds = array<i64: 1>, scalar_prefetch = 0 : i64, scratch_operands = 0 : i64, tpu.core_type = #tpu.core_type<tc>, window_params = [{transform_indices = @transform_0, window_bounds = array<i64: 144, 2048>}, {transform_indices = @transform_1, window_bounds = array<i64: 144, 2048>}, {transform_indices = @transform_2, window_bounds = array<i64: 144, 2048>}, {transform_indices = @transform_3, window_bounds = array<i64: 144, 2048>}, {pipeline_mode = #tpu.pipeline_mode<synchronous>, transform_indices = @transform_4, window_bounds = array<i64: 32, 144>}, {pipeline_mode = #tpu.pipeline_mode<synchronous>, transform_indices = @transform_5, window_bounds = array<i64: 32, 1>}, {transform_indices = @transform_6, window_bounds = array<i64: 32, 2048>}]} {
    %c0 = arith.constant 0 : index
    %c0_0 = arith.constant 0 : index
    %0 = vector.load %arg5[%c0, %c0_0] : memref<32x144xbf16, #tpu.memory_space<vmem>>, vector<32x144xbf16>
    %c0_1 = arith.constant 0 : index
    %c0_2 = arith.constant 0 : index
    %1 = vector.load %arg1[%c0_1, %c0_2] : memref<144x2048xbf16, #tpu.memory_space<vmem>>, vector<144x2048xbf16>
    %cst = arith.constant dense<0.000000e+00> : vector<32x2048xf32>
    %2 = tpu.matmul %0, %1, %cst {dimension_numbers = #tpu.dot_dimension_numbers<[1], [0], [0], [1], [0, 0, 1, 1], [], []>} : vector<32x144xbf16>, vector<144x2048xbf16>, vector<32x2048xf32> -> vector<32x2048xf32>
    %c0_3 = arith.constant 0 : index
    %c0_4 = arith.constant 0 : index
    %3 = vector.load %arg2[%c0_3, %c0_4] : memref<144x2048xbf16, #tpu.memory_space<vmem>>, vector<144x2048xbf16>
    %cst_5 = arith.constant dense<0.000000e+00> : vector<32x2048xf32>
    %4 = tpu.matmul %0, %3, %cst_5 {dimension_numbers = #tpu.dot_dimension_numbers<[1], [0], [0], [1], [0, 0, 1, 1], [], []>} : vector<32x144xbf16>, vector<144x2048xbf16>, vector<32x2048xf32> -> vector<32x2048xf32>
    %5 = arith.maximumf %2, %4 : vector<32x2048xf32>
    %c0_6 = arith.constant 0 : index
    %c0_7 = arith.constant 0 : index
    %6 = vector.load %arg3[%c0_6, %c0_7] : memref<144x2048xbf16, #tpu.memory_space<vmem>>, vector<144x2048xbf16>
    %cst_8 = arith.constant dense<0.000000e+00> : vector<32x2048xf32>
    %7 = tpu.matmul %0, %6, %cst_8 {dimension_numbers = #tpu.dot_dimension_numbers<[1], [0], [0], [1], [0, 0, 1, 1], [], []>} : vector<32x144xbf16>, vector<144x2048xbf16>, vector<32x2048xf32> -> vector<32x2048xf32>
    %8 = arith.maximumf %5, %7 : vector<32x2048xf32>
    %c0_9 = arith.constant 0 : index
    %c0_10 = arith.constant 0 : index
    %9 = vector.load %arg4[%c0_9, %c0_10] : memref<144x2048xbf16, #tpu.memory_space<vmem>>, vector<144x2048xbf16>
    %cst_11 = arith.constant dense<0.000000e+00> : vector<32x2048xf32>
    %10 = tpu.matmul %0, %9, %cst_11 {dimension_numbers = #tpu.dot_dimension_numbers<[1], [0], [0], [1], [0, 0, 1, 1], [], []>} : vector<32x144xbf16>, vector<144x2048xbf16>, vector<32x2048xf32> -> vector<32x2048xf32>
    %11 = arith.maximumf %8, %10 : vector<32x2048xf32>
    %c0_12 = arith.constant 0 : index
    %c0_13 = arith.constant 0 : index
    %12 = vector.load %arg6[%c0_12, %c0_13] : memref<32x1xf32, #tpu.memory_space<vmem>>, vector<32x1xf32>
    %13 = vector.broadcast %12 : vector<32x1xf32> to vector<32x2048xf32>
    %14 = arith.addf %11, %13 : vector<32x2048xf32>
    %cst_14 = arith.constant 0.000000e+00 : f32
    %15 = vector.broadcast %cst_14 : f32 to vector<32x2048xf32>
    %16 = arith.maximumf %14, %15 : vector<32x2048xf32>
    %17 = arith.truncf %16 : vector<32x2048xf32> to vector<32x2048xbf16>
    %c0_15 = arith.constant 0 : index
    %c0_16 = arith.constant 0 : index
    %18 = vector.load %arg7[%c0_15, %c0_16] : memref<32x2048xbf16, #tpu.memory_space<vmem>>, vector<32x2048xbf16>
    tpu.vector_store %arg7[%c0_15, %c0_16], %17 {strides = array<i32>} : memref<32x2048xbf16, #tpu.memory_space<vmem>>, vector<32x2048xbf16>,
    return
  }
  func.func @transform_0(%arg0: i32) -> (i32, i32) {
    %c0_i32 = arith.constant 0 : i32
    %c0_i32_0 = arith.constant 0 : i32
    return %c0_i32, %arg0 : i32, i32
  }
  func.func @transform_1(%arg0: i32) -> (i32, i32) {
    %c0_i32 = arith.constant 0 : i32
    %c0_i32_0 = arith.constant 0 : i32
    return %c0_i32, %arg0 : i32, i32
  }
  func.func @transform_2(%arg0: i32) -> (i32, i32) {
    %c0_i32 = arith.constant 0 : i32
    %c0_i32_0 = arith.constant 0 : i32
    return %c0_i32, %arg0 : i32, i32
  }
  func.func @transform_3(%arg0: i32) -> (i32, i32) {
    %c0_i32 = arith.constant 0 : i32
    %c0_i32_0 = arith.constant 0 : i32
    return %c0_i32, %arg0 : i32, i32
  }
  func.func @transform_4(%arg0: i32) -> (i32, i32) {
    %c0_i32 = arith.constant 0 : i32
    %c0_i32_0 = arith.constant 0 : i32
    %c0_i32_1 = arith.constant 0 : i32
    return %c0_i32, %c0_i32_0 : i32, i32
  }
  func.func @transform_5(%arg0: i32) -> (i32, i32) {
    %c0_i32 = arith.constant 0 : i32
    %c0_i32_0 = arith.constant 0 : i32
    %c0_i32_1 = arith.constant 0 : i32
    return %c0_i32, %c0_i32_0 : i32, i32
  }
  func.func @transform_6(%arg0: i32) -> (i32, i32) {
    %c0_i32 = arith.constant 0 : i32
    %c0_i32_0 = arith.constant 0 : i32
    return %c0_i32, %arg0 : i32, i32
  }
}

module attributes {stable_mosaic.version = 11 : i64} {
  func.func @_mlp_head_kernel(%arg0: i32, %arg1: memref<2x8192xbf16, #tpu.memory_space<vmem>>, %arg2: memref<8192x128xbf16, #tpu.memory_space<vmem>>, %arg3: memref<1x128xf32, #tpu.memory_space<vmem>>, %arg4: memref<128x10xbf16, #tpu.memory_space<vmem>>, %arg5: memref<1x10xf32, #tpu.memory_space<vmem>>, %arg6: memref<2x10xf32, #tpu.memory_space<vmem>>, %arg7: memref<2x128xf32, #tpu.memory_space<vmem>>) attributes {dimension_semantics = [#tpu.dimension_semantics<arbitrary>], iteration_bounds = array<i64: 4>, scalar_prefetch = 0 : i64, scratch_operands = 1 : i64, tpu.core_type = #tpu.core_type<tc>, window_params = [{transform_indices = @transform_0, window_bounds = array<i64: 2, 8192>}, {transform_indices = @transform_1, window_bounds = array<i64: 8192, 128>}, {pipeline_mode = #tpu.pipeline_mode<synchronous>, transform_indices = @transform_2, window_bounds = array<i64: 1, 128>}, {pipeline_mode = #tpu.pipeline_mode<synchronous>, transform_indices = @transform_3, window_bounds = array<i64: 128, 10>}, {pipeline_mode = #tpu.pipeline_mode<synchronous>, transform_indices = @transform_4, window_bounds = array<i64: 1, 10>}, {pipeline_mode = #tpu.pipeline_mode<synchronous>, transform_indices = @transform_5, window_bounds = array<i64: 2, 10>}]} {
    %c0_i32 = arith.constant 0 : i32
    %0 = arith.cmpi eq, %arg0, %c0_i32 : i32
    %1 = arith.extui %0 : i1 to i32
    %c0_i32_0 = arith.constant 0 : i32
    %2 = arith.cmpi ne, %1, %c0_i32_0 : i32
    scf.if %2 {
      %cst_9 = arith.constant 0.000000e+00 : f32
      %12 = vector.broadcast %cst_9 : f32 to vector<2x128xf32>
      %c0_10 = arith.constant 0 : index
      %c0_11 = arith.constant 0 : index
      %13 = vector.load %arg7[%c0_10, %c0_11] : memref<2x128xf32, #tpu.memory_space<vmem>>, vector<2x128xf32>
      tpu.vector_store %arg7[%c0_10, %c0_11], %12 {strides = array<i32>} : memref<2x128xf32, #tpu.memory_space<vmem>>, vector<2x128xf32>,
    } else {
    }
    %c0 = arith.constant 0 : index
    %c0_1 = arith.constant 0 : index
    %3 = vector.load %arg7[%c0, %c0_1] : memref<2x128xf32, #tpu.memory_space<vmem>>, vector<2x128xf32>
    %c0_2 = arith.constant 0 : index
    %c0_3 = arith.constant 0 : index
    %4 = vector.load %arg1[%c0_2, %c0_3] : memref<2x8192xbf16, #tpu.memory_space<vmem>>, vector<2x8192xbf16>
    %c0_4 = arith.constant 0 : index
    %c0_5 = arith.constant 0 : index
    %5 = vector.load %arg2[%c0_4, %c0_5] : memref<8192x128xbf16, #tpu.memory_space<vmem>>, vector<8192x128xbf16>
    %cst = arith.constant dense<0.000000e+00> : vector<2x128xf32>
    %6 = tpu.matmul %4, %5, %cst {dimension_numbers = #tpu.dot_dimension_numbers<[1], [0], [0], [1], [0, 0, 1, 1], [], []>} : vector<2x8192xbf16>, vector<8192x128xbf16>, vector<2x128xf32> -> vector<2x128xf32>
    %7 = arith.addf %3, %6 : vector<2x128xf32>
    %c0_6 = arith.constant 0 : index
    %c0_7 = arith.constant 0 : index
    %8 = vector.load %arg7[%c0_6, %c0_7] : memref<2x128xf32, #tpu.memory_space<vmem>>, vector<2x128xf32>
    tpu.vector_store %arg7[%c0_6, %c0_7], %7 {strides = array<i32>} : memref<2x128xf32, #tpu.memory_space<vmem>>, vector<2x128xf32>,
    %c3_i32 = arith.constant 3 : i32
    %9 = arith.cmpi eq, %arg0, %c3_i32 : i32
    %10 = arith.extui %9 : i1 to i32
    %c0_i32_8 = arith.constant 0 : i32
    %11 = arith.cmpi ne, %10, %c0_i32_8 : i32
    scf.if %11 {
      %c0_9 = arith.constant 0 : index
      %c0_10 = arith.constant 0 : index
      %12 = vector.load %arg7[%c0_9, %c0_10] : memref<2x128xf32, #tpu.memory_space<vmem>>, vector<2x128xf32>
      %c0_11 = arith.constant 0 : index
      %c0_12 = arith.constant 0 : index
      %13 = vector.load %arg3[%c0_11, %c0_12] : memref<1x128xf32, #tpu.memory_space<vmem>>, vector<1x128xf32>
      %14 = vector.broadcast %13 : vector<1x128xf32> to vector<2x128xf32>
      %15 = arith.addf %12, %14 : vector<2x128xf32>
      %cst_13 = arith.constant 0.000000e+00 : f32
      %16 = vector.broadcast %cst_13 : f32 to vector<2x128xf32>
      %17 = arith.maximumf %15, %16 : vector<2x128xf32>
      %18 = arith.truncf %17 : vector<2x128xf32> to vector<2x128xbf16>
      %c0_14 = arith.constant 0 : index
      %c0_15 = arith.constant 0 : index
      %19 = vector.load %arg4[%c0_14, %c0_15] : memref<128x10xbf16, #tpu.memory_space<vmem>>, vector<128x10xbf16>
      %cst_16 = arith.constant dense<0.000000e+00> : vector<2x10xf32>
      %20 = tpu.matmul %18, %19, %cst_16 {dimension_numbers = #tpu.dot_dimension_numbers<[1], [0], [0], [1], [0, 0, 1, 1], [], []>} : vector<2x128xbf16>, vector<128x10xbf16>, vector<2x10xf32> -> vector<2x10xf32>
      %c0_17 = arith.constant 0 : index
      %c0_18 = arith.constant 0 : index
      %21 = vector.load %arg5[%c0_17, %c0_18] : memref<1x10xf32, #tpu.memory_space<vmem>>, vector<1x10xf32>
      %22 = vector.broadcast %21 : vector<1x10xf32> to vector<2x10xf32>
      %23 = arith.addf %20, %22 : vector<2x10xf32>
      %c0_19 = arith.constant 0 : index
      %c0_20 = arith.constant 0 : index
      %24 = vector.load %arg6[%c0_19, %c0_20] : memref<2x10xf32, #tpu.memory_space<vmem>>, vector<2x10xf32>
      tpu.vector_store %arg6[%c0_19, %c0_20], %23 {strides = array<i32>} : memref<2x10xf32, #tpu.memory_space<vmem>>, vector<2x10xf32>,
    } else {
    }
    return
  }
  func.func @transform_0(%arg0: i32) -> (i32, i32) {
    %c0_i32 = arith.constant 0 : i32
    %c0_i32_0 = arith.constant 0 : i32
    return %c0_i32, %arg0 : i32, i32
  }
  func.func @transform_1(%arg0: i32) -> (i32, i32) {
    %c0_i32 = arith.constant 0 : i32
    %c0_i32_0 = arith.constant 0 : i32
    return %arg0, %c0_i32 : i32, i32
  }
  func.func @transform_2(%arg0: i32) -> (i32, i32) {
    %c0_i32 = arith.constant 0 : i32
    %c0_i32_0 = arith.constant 0 : i32
    %c0_i32_1 = arith.constant 0 : i32
    return %c0_i32, %c0_i32_0 : i32, i32
  }
  func.func @transform_3(%arg0: i32) -> (i32, i32) {
    %c0_i32 = arith.constant 0 : i32
    %c0_i32_0 = arith.constant 0 : i32
    %c0_i32_1 = arith.constant 0 : i32
    return %c0_i32, %c0_i32_0 : i32, i32
  }
  func.func @transform_4(%arg0: i32) -> (i32, i32) {
    %c0_i32 = arith.constant 0 : i32
    %c0_i32_0 = arith.constant 0 : i32
    %c0_i32_1 = arith.constant 0 : i32
    return %c0_i32, %c0_i32_0 : i32, i32
  }
  func.func @transform_5(%arg0: i32) -> (i32, i32) {
    %c0_i32 = arith.constant 0 : i32
    %c0_i32_0 = arith.constant 0 : i32
    %c0_i32_1 = arith.constant 0 : i32
    return %c0_i32, %c0_i32_0 : i32, i32
  }
}

</mosaic_0001>

<bundles_post_ra>
// kernel: fedavg_cnn2_light_forward.3
= control target key start
LH: loop header
LB: loop body
LE: loop exit
PB: predicated region body
PF: predicated region fallthrough
CT: control target
= control target key end

     0   :  { %s3692_s21 = smov 0   ;;  %s3694_s22 = smov 0   ;;  %s4922_s0 = inlined_call_operand.vmem [shape: bf16[27,8192], index: 0, kind: input, shape index: {}]   ;;  %s4923_s1 = inlined_call_operand.vmem [shape: bf16[27,8192], index: 1, kind: input, shape index: {}]   ;;  %s4924_s2 = inlined_call_operand.vmem [shape: bf16[27,8192], index: 2, kind: input, shape index: {}]   ;;  %s4925_s3 = inlined_call_operand.vmem [shape: bf16[27,8192], index: 3, kind: input, shape index: {}]   ;;  %s4926_s4 = inlined_call_operand.vmem [shape: bf16[16,27], index: 4, kind: input, shape index: {}]   ;;  %s4927_s5 = inlined_call_operand.vmem [shape: f32[16,1], index: 5, kind: input, shape index: {}]   ;;  %s4928_s6 = inlined_call_operand.vmem [shape: bf16[16,8192], index: 6, kind: output, shape index: {}]  }
   0x1   :  { %s3696_s23 = smov 0  }
   0x2 LB: > { %s3378_s24 = sadd.s32 4294967295, %s3653_s23   ;;  %s3709_s25 = sadd.s32 1, %s3653_s23   ;;  %s3653_s23 = sphi %s3696_s23, %s5036_s23   ;;  %s3649_s22 = sphi %s3694_s22, %s5035_s22   ;;  %s3645_s21 = sphi %s3692_s21, %s5034_s21  }
   0x3   : > { %s20_s26 = ssub.s32 %s3653_s23, %s3709_s25  ;;  %s23_s27 = sadd.s32 1, %s3649_s22 }
   0x4   : > { %p21_p0 = scmp.eq.s32.totalorder %s20_s26, 0  ;;  %p30_p1 = scmp.ne.s32.totalorder %s3649_s22, %s3645_s21 }
   0x5   : > { %p31_p2 = scmp.eq.s32.totalorder %s3653_s23, 0  ;;  %p180_p3 = scmp.eq.s32.totalorder %s3378_s24, 3 }
   0x6   : > { %s3720_s28 = scalar_select %p21_p0, %s3649_s22, %s23_s27  }
   0x7   : > { %p3722_p4 = por %p31_p2, %p30_p1  ;;  %p3726_p5 = por %p180_p3, %p30_p1 }
   0x8   : > { %p3381_p6 = scmp.ge.s32.totalorder %s3653_s23, 4 }
   0xa   : > { %208 = sbr.rel (%p3381_p6) target bundleno = 95 (0x5f), region = 24 }
   0xf   : > { %211 = sbr.rel (!%p3722_p4) target bundleno = 35 (0x23), region = 28  ;;  %s213_s7 = sand.u32 (%p3722_p4), 1, %s3649_s22  }
  0x10   : > { %s3582_s8 = sshll.u32 (%p3722_p4), %s3653_s23, 6  ;;  %s3382_s9 = sshll.u32 (%p3722_p4), %s213_s7, 8 }
  0x11   : > { %s3738_s12 = scalar_lea.vmem (%p3722_p4), %s4922_s0, %s3582_s8  ;;  %s3743_s13 = scalar_lea.vmem (%p3722_p4), [#allocation2], %s3382_s9 }
  0x12   : > { %v231_v0 = vld [vmem:[%s3738_s12] sm:$0xff] (%p3722_p4)  ;;  %v233_v1 = vld [vmem:[%s3738_s12 + $0x8] sm:$0xff] (%p3722_p4)  ;;  %v235_v2 = vld [vmem:[%s3738_s12 + $0x10] sm:$0xff] (%p3722_p4) }
  0x13   : > { %232 = vst [vmem:[%s3743_s13] sm:$0xff] (%p3722_p4), %v231_v0  ;;  %234 = vst [vmem:[%s3743_s13 + $0x8] sm:$0xff] (%p3722_p4), %v233_v1  ;;  %v237_v3 = vld [vmem:[%s3738_s12 + $0x18] sm:$0xff] (%p3722_p4)  ;;  %v239_v4 = vld [vmem:[%s3738_s12 + $0x20] sm:$0xff] (%p3722_p4) }
  0x14   : > { %236 = vst [vmem:[%s3743_s13 + $0x10] sm:$0xff] %v235_v2  ;;  %v241_v5 = vld [vmem:[%s3738_s12 + $0x28] sm:$0xff]  ;;  %238 = vst [vmem:[%s3743_s13 + $0x18] sm:$0xff] %v237_v3  ;;  %v243_v6 = vld [vmem:[%s3738_s12 + $0x30] sm:$0xff] }
  0x15   : > { %240 = vst [vmem:[%s3743_s13 + $0x20] sm:$0xff] %v239_v4  ;;  %242 = vst [vmem:[%s3743_s13 + $0x28] sm:$0xff] %v241_v5  ;;  %v245_v7 = vld [vmem:[%s3738_s12 + $0x38] sm:$0xff]  ;;  %v247_v8 = vld [vmem:[%s3738_s12 + $0x100] sm:$0xff] }
  0x16   : > { %244 = vst [vmem:[%s3743_s13 + $0x30] sm:$0xff] %v243_v6  ;;  %246 = vst [vmem:[%s3743_s13 + $0x38] sm:$0xff] %v245_v7  ;;  %v249_v9 = vld [vmem:[%s3738_s12 + $0x108] sm:$0xff]  ;;  %v251_v10 = vld [vmem:[%s3738_s12 + $0x110] sm:$0xff] }
  0x17   : > { %248 = vst [vmem:[%s3743_s13 + $0x40] sm:$0xff] %v247_v8  ;;  %v253_v11 = vld [vmem:[%s3738_s12 + $0x118] sm:$0xff]  ;;  %250 = vst [vmem:[%s3743_s13 + $0x48] sm:$0xff] %v249_v9  ;;  %v255_v12 = vld [vmem:[%s3738_s12 + $0x120] sm:$0xff] }
  0x18   : > { %252 = vst [vmem:[%s3743_s13 + $0x50] sm:$0xff] %v251_v10  ;;  %254 = vst [vmem:[%s3743_s13 + $0x58] sm:$0xff] %v253_v11  ;;  %v257_v13 = vld [vmem:[%s3738_s12 + $0x128] sm:$0xff]  ;;  %v259_v14 = vld [vmem:[%s3738_s12 + $0x130] sm:$0xff] }
  0x19   : > { %256 = vst [vmem:[%s3743_s13 + $0x60] sm:$0xff] %v255_v12  ;;  %258 = vst [vmem:[%s3743_s13 + $0x68] sm:$0xff] %v257_v13  ;;  %v261_v15 = vld [vmem:[%s3738_s12 + $0x138] sm:$0xff]  ;;  %v263_v16 = vld [vmem:[%s3738_s12 + $0x200] sm:$0xff] }
  0x1a   : > { %260 = vst [vmem:[%s3743_s13 + $0x70] sm:$0xff] %v259_v14  ;;  %v265_v17 = vld [vmem:[%s3738_s12 + $0x208] sm:$0xff]  ;;  %262 = vst [vmem:[%s3743_s13 + $0x78] sm:$0xff] %v261_v15  ;;  %v267_v18 = vld [vmem:[%s3738_s12 + $0x210] sm:$0xff] }
  0x1b   : > { %264 = vst [vmem:[%s3743_s13 + $0x80] sm:$0xff] %v263_v16  ;;  %266 = vst [vmem:[%s3743_s13 + $0x88] sm:$0xff] %v265_v17  ;;  %v269_v19 = vld [vmem:[%s3738_s12 + $0x218] sm:$0xff]  ;;  %v271_v20 = vld [vmem:[%s3738_s12 + $0x220] sm:$0xff] }
  0x1c   : > { %268 = vst [vmem:[%s3743_s13 + $0x90] sm:$0xff] %v267_v18  ;;  %270 = vst [vmem:[%s3743_s13 + $0x98] sm:$0xff] %v269_v19  ;;  %v273_v21 = vld [vmem:[%s3738_s12 + $0x228] sm:$0xff]  ;;  %v275_v22 = vld [vmem:[%s3738_s12 + $0x230] sm:$0xff] }
  0x1d   : > { %272 = vst [vmem:[%s3743_s13 + $0xa0] sm:$0xff] %v271_v20  ;;  %v277_v23 = vld [vmem:[%s3738_s12 + $0x238] sm:$0xff]  ;;  %274 = vst [vmem:[%s3743_s13 + $0xa8] sm:$0xff] %v273_v21  ;;  %v279_v24 = vld [vmem:[%s3738_s12 + $0x300] sm:$0xff] }
  0x1e   : > { %276 = vst [vmem:[%s3743_s13 + $0xb0] sm:$0xff] %v275_v22  ;;  %278 = vst [vmem:[%s3743_s13 + $0xb8] sm:$0xff] %v277_v23  ;;  %v281_v25 = vld [vmem:[%s3738_s12 + $0x308] sm:$0xff]  ;;  %v283_v26 = vld [vmem:[%s3738_s12 + $0x310] sm:$0xff] }
  0x1f   : > { %280 = vst [vmem:[%s3743_s13 + $0xc0] sm:$0xff] %v279_v24  ;;  %282 = vst [vmem:[%s3743_s13 + $0xc8] sm:$0xff] %v281_v25  ;;  %v285_v27 = vld [vmem:[%s3738_s12 + $0x318] sm:$0xff]  ;;  %v287_v28 = vld [vmem:[%s3738_s12 + $0x320] sm:$0xff] }
  0x20   : > { %284 = vst [vmem:[%s3743_s13 + $0xd0] sm:$0xff] %v283_v26  ;;  %v289_v29 = vld [vmem:[%s3738_s12 + $0x328] sm:$0xff]  ;;  %286 = vst [vmem:[%s3743_s13 + $0xd8] sm:$0xff] %v285_v27  ;;  %v291_v30 = vld [vmem:[%s3738_s12 + $0x330] sm:$0xff] }
  0x21   : > { %288 = vst [vmem:[%s3743_s13 + $0xe0] sm:$0xff] %v287_v28  ;;  %290 = vst [vmem:[%s3743_s13 + $0xe8] sm:$0xff] %v289_v29  ;;  %v293_v31 = vld [vmem:[%s3738_s12 + $0x338] sm:$0xff] }
  0x22   : > { %292 = vst [vmem:[%s3743_s13 + $0xf0] sm:$0xff] %v291_v30  ;;  %294 = vst [vmem:[%s3743_s13 + $0xf8] sm:$0xff] %v293_v31 }
  0x23 PF: > { %300 = sbr.rel (!%p3722_p4) target bundleno = 55 (0x37), region = 51  ;;  %s302_s14 = sand.u32 (%p3722_p4), 1, %s3649_s22  }
  0x24   : > { %s3583_s15 = sshll.u32 (%p3722_p4), %s3653_s23, 6  ;;  %s3385_s16 = sshll.u32 (%p3722_p4), %s302_s14, 8 }
  0x25   : > { %s3813_s19 = scalar_lea.vmem (%p3722_p4), %s4923_s1, %s3583_s15  ;;  %s3818_s20 = scalar_lea.vmem (%p3722_p4), [#allocation3], %s3385_s16 }
  0x26   : > { %v320_v32 = vld [vmem:[%s3813_s19] sm:$0xff] (%p3722_p4)  ;;  %v322_v33 = vld [vmem:[%s3813_s19 + $0x8] sm:$0xff] (%p3722_p4)  ;;  %v324_v34 = vld [vmem:[%s3813_s19 + $0x10] sm:$0xff] (%p3722_p4) }
  0x27   : > { %321 = vst [vmem:[%s3818_s20] sm:$0xff] (%p3722_p4), %v320_v32  ;;  %323 = vst [vmem:[%s3818_s20 + $0x8] sm:$0xff] (%p3722_p4), %v322_v33  ;;  %v326_v35 = vld [vmem:[%s3813_s19 + $0x18] sm:$0xff] (%p3722_p4)  ;;  %v328_v36 = vld [vmem:[%s3813_s19 + $0x20] sm:$0xff] (%p3722_p4) }
  0x28   : > { %325 = vst [vmem:[%s3818_s20 + $0x10] sm:$0xff] %v324_v34  ;;  %v330_v37 = vld [vmem:[%s3813_s19 + $0x28] sm:$0xff]  ;;  %327 = vst [vmem:[%s3818_s20 + $0x18] sm:$0xff] %v326_v35  ;;  %v332_v38 = vld [vmem:[%s3813_s19 + $0x30] sm:$0xff] }
  0x29   : > { %329 = vst [vmem:[%s3818_s20 + $0x20] sm:$0xff] %v328_v36  ;;  %331 = vst [vmem:[%s3818_s20 + $0x28] sm:$0xff] %v330_v37  ;;  %v334_v39 = vld [vmem:[%s3813_s19 + $0x38] sm:$0xff]  ;;  %v336_v40 = vld [vmem:[%s3813_s19 + $0x100] sm:$0xff] }
  0x2a   : > { %333 = vst [vmem:[%s3818_s20 + $0x30] sm:$0xff] %v332_v38  ;;  %335 = vst [vmem:[%s3818_s20 + $0x38] sm:$0xff] %v334_v39  ;;  %v338_v41 = vld [vmem:[%s3813_s19 + $0x108] sm:$0xff]  ;;  %v340_v42 = vld [vmem:[%s3813_s19 + $0x110] sm:$0xff] }
  0x2b   : > { %337 = vst [vmem:[%s3818_s20 + $0x40] sm:$0xff] %v336_v40  ;;  %v342_v43 = vld [vmem:[%s3813_s19 + $0x118] sm:$0xff]  ;;  %339 = vst [vmem:[%s3818_s20 + $0x48] sm:$0xff] %v338_v41  ;;  %v344_v44 = vld [vmem:[%s3813_s19 + $0x120] sm:$0xff] }
  0x2c   : > { %341 = vst [vmem:[%s3818_s20 + $0x50] sm:$0xff] %v340_v42  ;;  %343 = vst [vmem:[%s3818_s20 + $0x58] sm:$0xff] %v342_v43  ;;  %v346_v45 = vld [vmem:[%s3813_s19 + $0x128] sm:$0xff]  ;;  %v348_v46 = vld [vmem:[%s3813_s19 + $0x130] sm:$0xff] }
  0x2d   : > { %345 = vst [vmem:[%s3818_s20 + $0x60] sm:$0xff] %v344_v44  ;;  %347 = vst [vmem:[%s3818_s20 + $0x68] sm:$0xff] %v346_v45  ;;  %v350_v47 = vld [vmem:[%s3813_s19 + $0x138] sm:$0xff]  ;;  %v352_v48 = vld [vmem:[%s3813_s19 + $0x200] sm:$0xff] }
  0x2e   : > { %349 = vst [vmem:[%s3818_s20 + $0x70] sm:$0xff] %v348_v46  ;;  %v354_v49 = vld [vmem:[%s3813_s19 + $0x208] sm:$0xff]  ;;  %351 = vst [vmem:[%s3818_s20 + $0x78] sm:$0xff] %v350_v47  ;;  %v356_v50 = vld [vmem:[%s3813_s19 + $0x210] sm:$0xff] }
  0x2f   : > { %353 = vst [vmem:[%s3818_s20 + $0x80] sm:$0xff] %v352_v48  ;;  %355 = vst [vmem:[%s3818_s20 + $0x88] sm:$0xff] %v354_v49  ;;  %v358_v51 = vld [vmem:[%s3813_s19 + $0x218] sm:$0xff]  ;;  %v360_v52 = vld [vmem:[%s3813_s19 + $0x220] sm:$0xff] }
  0x30   : > { %357 = vst [vmem:[%s3818_s20 + $0x90] sm:$0xff] %v356_v50  ;;  %359 = vst [vmem:[%s3818_s20 + $0x98] sm:$0xff] %v358_v51  ;;  %v362_v53 = vld [vmem:[%s3813_s19 + $0x228] sm:$0xff]  ;;  %v364_v54 = vld [vmem:[%s3813_s19 + $0x230] sm:$0xff] }
  0x31   : > { %361 = vst [vmem:[%s3818_s20 + $0xa0] sm:$0xff] %v360_v52  ;;  %v366_v55 = vld [vmem:[%s3813_s19 + $0x238] sm:$0xff]  ;;  %363 = vst [vmem:[%s3818_s20 + $0xa8] sm:$0xff] %v362_v53  ;;  %v368_v56 = vld [vmem:[%s3813_s19 + $0x300] sm:$0xff] }
  0x32   : > { %365 = vst [vmem:[%s3818_s20 + $0xb0] sm:$0xff] %v364_v54  ;;  %367 = vst [vmem:[%s3818_s20 + $0xb8] sm:$0xff] %v366_v55  ;;  %v370_v57 = vld [vmem:[%s3813_s19 + $0x308] sm:$0xff]  ;;  %v372_v58 = vld [vmem:[%s3813_s19 + $0x310] sm:$0xff] }
  0x33   : > { %369 = vst [vmem:[%s3818_s20 + $0xc0] sm:$0xff] %v368_v56  ;;  %371 = vst [vmem:[%s3818_s20 + $0xc8] sm:$0xff] %v370_v57  ;;  %v374_v59 = vld [vmem:[%s3813_s19 + $0x318] sm:$0xff]  ;;  %v376_v60 = vld [vmem:[%s3813_s19 + $0x320] sm:$0xff] }
  0x34   : > { %373 = vst [vmem:[%s3818_s20 + $0xd0] sm:$0xff] %v372_v58  ;;  %v378_v61 = vld [vmem:[%s3813_s19 + $0x328] sm:$0xff]  ;;  %375 = vst [vmem:[%s3818_s20 + $0xd8] sm:$0xff] %v374_v59  ;;  %v380_v62 = vld [vmem:[%s3813_s19 + $0x330] sm:$0xff] }
  0x35   : > { %377 = vst [vmem:[%s3818_s20 + $0xe0] sm:$0xff] %v376_v60  ;;  %379 = vst [vmem:[%s3818_s20 + $0xe8] sm:$0xff] %v378_v61  ;;  %v382_v63 = vld [vmem:[%s3813_s19 + $0x338] sm:$0xff] }
  0x36   : > { %381 = vst [vmem:[%s3818_s20 + $0xf0] sm:$0xff] %v380_v62  ;;  %383 = vst [vmem:[%s3818_s20 + $0xf8] sm:$0xff] %v382_v63 }
  0x37 PF: > { %389 = sbr.rel (!%p3722_p4) target bundleno = 75 (0x4b), region = 74  ;;  %s391_s26 = sand.u32 (%p3722_p4), 1, %s3649_s22  }
  0x38   : > { %s3584_s27 = sshll.u32 (%p3722_p4), %s3653_s23, 6  ;;  %s3388_s7 = sshll.u32 (%p3722_p4), %s391_s26, 8 }
  0x39   : > { %s3888_s10 = scalar_lea.vmem (%p3722_p4), %s4924_s2, %s3584_s27  ;;  %s3893_s11 = scalar_lea.vmem (%p3722_p4), [#allocation4], %s3388_s7 }
  0x3a   : > { %v409_v0 = vld [vmem:[%s3888_s10] sm:$0xff] (%p3722_p4)  ;;  %v411_v1 = vld [vmem:[%s3888_s10 + $0x8] sm:$0xff] (%p3722_p4)  ;;  %v413_v2 = vld [vmem:[%s3888_s10 + $0x10] sm:$0xff] (%p3722_p4) }
  0x3b   : > { %410 = vst [vmem:[%s3893_s11] sm:$0xff] (%p3722_p4), %v409_v0  ;;  %412 = vst [vmem:[%s3893_s11 + $0x8] sm:$0xff] (%p3722_p4), %v411_v1  ;;  %v415_v3 = vld [vmem:[%s3888_s10 + $0x18] sm:$0xff] (%p3722_p4)  ;;  %v417_v4 = vld [vmem:[%s3888_s10 + $0x20] sm:$0xff] (%p3722_p4) }
  0x3c   : > { %414 = vst [vmem:[%s3893_s11 + $0x10] sm:$0xff] %v413_v2  ;;  %v419_v5 = vld [vmem:[%s3888_s10 + $0x28] sm:$0xff]  ;;  %416 = vst [vmem:[%s3893_s11 + $0x18] sm:$0xff] %v415_v3  ;;  %v421_v6 = vld [vmem:[%s3888_s10 + $0x30] sm:$0xff] }
  0x3d   : > { %418 = vst [vmem:[%s3893_s11 + $0x20] sm:$0xff] %v417_v4  ;;  %420 = vst [vmem:[%s3893_s11 + $0x28] sm:$0xff] %v419_v5  ;;  %v423_v7 = vld [vmem:[%s3888_s10 + $0x38] sm:$0xff]  ;;  %v425_v8 = vld [vmem:[%s3888_s10 + $0x100] sm:$0xff] }
  0x3e   : > { %422 = vst [vmem:[%s3893_s11 + $0x30] sm:$0xff] %v421_v6  ;;  %424 = vst [vmem:[%s3893_s11 + $0x38] sm:$0xff] %v423_v7  ;;  %v427_v9 = vld [vmem:[%s3888_s10 + $0x108] sm:$0xff]  ;;  %v429_v10 = vld [vmem:[%s3888_s10 + $0x110] sm:$0xff] }
  0x3f   : > { %426 = vst [vmem:[%s3893_s11 + $0x40] sm:$0xff] %v425_v8  ;;  %v431_v11 = vld [vmem:[%s3888_s10 + $0x118] sm:$0xff]  ;;  %428 = vst [vmem:[%s3893_s11 + $0x48] sm:$0xff] %v427_v9  ;;  %v433_v12 = vld [vmem:[%s3888_s10 + $0x120] sm:$0xff] }
  0x40   : > { %430 = vst [vmem:[%s3893_s11 + $0x50] sm:$0xff] %v429_v10  ;;  %432 = vst [vmem:[%s3893_s11 + $0x58] sm:$0xff] %v431_v11  ;;  %v435_v13 = vld [vmem:[%s3888_s10 + $0x128] sm:$0xff]  ;;  %v437_v14 = vld [vmem:[%s3888_s10 + $0x130] sm:$0xff] }
  0x41   : > { %434 = vst [vmem:[%s3893_s11 + $0x60] sm:$0xff] %v433_v12  ;;  %436 = vst [vmem:[%s3893_s11 + $0x68] sm:$0xff] %v435_v13  ;;  %v439_v15 = vld [vmem:[%s3888_s10 + $0x138] sm:$0xff]  ;;  %v441_v16 = vld [vmem:[%s3888_s10 + $0x200] sm:$0xff] }
  0x42   : > { %438 = vst [vmem:[%s3893_s11 + $0x70] sm:$0xff] %v437_v14  ;;  %v443_v17 = vld [vmem:[%s3888_s10 + $0x208] sm:$0xff]  ;;  %440 = vst [vmem:[%s3893_s11 + $0x78] sm:$0xff] %v439_v15  ;;  %v445_v18 = vld [vmem:[%s3888_s10 + $0x210] sm:$0xff] }
  0x43   : > { %442 = vst [vmem:[%s3893_s11 + $0x80] sm:$0xff] %v441_v16  ;;  %444 = vst [vmem:[%s3893_s11 + $0x88] sm:$0xff] %v443_v17  ;;  %v447_v19 = vld [vmem:[%s3888_s10 + $0x218] sm:$0xff]  ;;  %v449_v20 = vld [vmem:[%s3888_s10 + $0x220] sm:$0xff] }
  0x44   : > { %446 = vst [vmem:[%s3893_s11 + $0x90] sm:$0xff] %v445_v18  ;;  %448 = vst [vmem:[%s3893_s11 + $0x98] sm:$0xff] %v447_v19  ;;  %v451_v21 = vld [vmem:[%s3888_s10 + $0x228] sm:$0xff]  ;;  %v453_v22 = vld [vmem:[%s3888_s10 + $0x230] sm:$0xff] }
  0x45   : > { %450 = vst [vmem:[%s3893_s11 + $0xa0] sm:$0xff] %v449_v20  ;;  %v455_v23 = vld [vmem:[%s3888_s10 + $0x238] sm:$0xff]  ;;  %452 = vst [vmem:[%s3893_s11 + $0xa8] sm:$0xff] %v451_v21  ;;  %v457_v24 = vld [vmem:[%s3888_s10 + $0x300] sm:$0xff] }
  0x46   : > { %454 = vst [vmem:[%s3893_s11 + $0xb0] sm:$0xff] %v453_v22  ;;  %456 = vst [vmem:[%s3893_s11 + $0xb8] sm:$0xff] %v455_v23  ;;  %v459_v25 = vld [vmem:[%s3888_s10 + $0x308] sm:$0xff]  ;;  %v461_v26 = vld [vmem:[%s3888_s10 + $0x310] sm:$0xff] }
  0x47   : > { %458 = vst [vmem:[%s3893_s11 + $0xc0] sm:$0xff] %v457_v24  ;;  %460 = vst [vmem:[%s3893_s11 + $0xc8] sm:$0xff] %v459_v25  ;;  %v463_v27 = vld [vmem:[%s3888_s10 + $0x318] sm:$0xff]  ;;  %v465_v28 = vld [vmem:[%s3888_s10 + $0x320] sm:$0xff] }
  0x48   : > { %462 = vst [vmem:[%s3893_s11 + $0xd0] sm:$0xff] %v461_v26  ;;  %v467_v29 = vld [vmem:[%s3888_s10 + $0x328] sm:$0xff]  ;;  %464 = vst [vmem:[%s3893_s11 + $0xd8] sm:$0xff] %v463_v27  ;;  %v469_v30 = vld [vmem:[%s3888_s10 + $0x330] sm:$0xff] }
  0x49   : > { %466 = vst [vmem:[%s3893_s11 + $0xe0] sm:$0xff] %v465_v28  ;;  %468 = vst [vmem:[%s3893_s11 + $0xe8] sm:$0xff] %v467_v29  ;;  %v471_v31 = vld [vmem:[%s3888_s10 + $0x338] sm:$0xff] }
  0x4a   : > { %470 = vst [vmem:[%s3893_s11 + $0xf0] sm:$0xff] %v469_v30  ;;  %472 = vst [vmem:[%s3893_s11 + $0xf8] sm:$0xff] %v471_v31 }
  0x4b PF: > { %478 = sbr.rel (!%p3722_p4) target bundleno = 95 (0x5f), region = 97  ;;  %s480_s12 = sand.u32 (%p3722_p4), 1, %s3649_s22  }
  0x4c   : > { %s3585_s13 = sshll.u32 (%p3722_p4), %s3653_s23, 6  ;;  %s3391_s14 = sshll.u32 (%p3722_p4), %s480_s12, 8 }
  0x4d   : > { %s3963_s17 = scalar_lea.vmem (%p3722_p4), %s4925_s3, %s3585_s13  ;;  %s3968_s29 = scalar_lea.vmem (%p3722_p4), [#allocation5], %s3391_s14 }
  0x4e   : > { %v498_v32 = vld [vmem:[%s3963_s17] sm:$0xff] (%p3722_p4)  ;;  %v500_v33 = vld [vmem:[%s3963_s17 + $0x8] sm:$0xff] (%p3722_p4)  ;;  %v502_v34 = vld [vmem:[%s3963_s17 + $0x10] sm:$0xff] (%p3722_p4) }
  0x4f   : > { %499 = vst [vmem:[%s3968_s29] sm:$0xff] (%p3722_p4), %v498_v32  ;;  %501 = vst [vmem:[%s3968_s29 + $0x8] sm:$0xff] (%p3722_p4), %v500_v33  ;;  %v504_v35 = vld [vmem:[%s3963_s17 + $0x18] sm:$0xff] (%p3722_p4)  ;;  %v506_v36 = vld [vmem:[%s3963_s17 + $0x20] sm:$0xff] (%p3722_p4) }
  0x50   : > { %503 = vst [vmem:[%s3968_s29 + $0x10] sm:$0xff] %v502_v34  ;;  %v508_v37 = vld [vmem:[%s3963_s17 + $0x28] sm:$0xff]  ;;  %505 = vst [vmem:[%s3968_s29 + $0x18] sm:$0xff] %v504_v35  ;;  %v510_v38 = vld [vmem:[%s3963_s17 + $0x30] sm:$0xff] }
  0x51   : > { %507 = vst [vmem:[%s3968_s29 + $0x20] sm:$0xff] %v506_v36  ;;  %509 = vst [vmem:[%s3968_s29 + $0x28] sm:$0xff] %v508_v37  ;;  %v512_v39 = vld [vmem:[%s3963_s17 + $0x38] sm:$0xff]  ;;  %v514_v40 = vld [vmem:[%s3963_s17 + $0x100] sm:$0xff] }
  0x52   : > { %511 = vst [vmem:[%s3968_s29 + $0x30] sm:$0xff] %v510_v38  ;;  %513 = vst [vmem:[%s3968_s29 + $0x38] sm:$0xff] %v512_v39  ;;  %v516_v41 = vld [vmem:[%s3963_s17 + $0x108] sm:$0xff]  ;;  %v518_v42 = vld [vmem:[%s3963_s17 + $0x110] sm:$0xff] }
  0x53   : > { %515 = vst [vmem:[%s3968_s29 + $0x40] sm:$0xff] %v514_v40  ;;  %v520_v43 = vld [vmem:[%s3963_s17 + $0x118] sm:$0xff]  ;;  %517 = vst [vmem:[%s3968_s29 + $0x48] sm:$0xff] %v516_v41  ;;  %v522_v44 = vld [vmem:[%s3963_s17 + $0x120] sm:$0xff] }
  0x54   : > { %519 = vst [vmem:[%s3968_s29 + $0x50] sm:$0xff] %v518_v42  ;;  %521 = vst [vmem:[%s3968_s29 + $0x58] sm:$0xff] %v520_v43  ;;  %v524_v45 = vld [vmem:[%s3963_s17 + $0x128] sm:$0xff]  ;;  %v526_v46 = vld [vmem:[%s3963_s17 + $0x130] sm:$0xff] }
  0x55   : > { %523 = vst [vmem:[%s3968_s29 + $0x60] sm:$0xff] %v522_v44  ;;  %525 = vst [vmem:[%s3968_s29 + $0x68] sm:$0xff] %v524_v45  ;;  %v528_v47 = vld [vmem:[%s3963_s17 + $0x138] sm:$0xff]  ;;  %v530_v48 = vld [vmem:[%s3963_s17 + $0x200] sm:$0xff] }
  0x56   : > { %527 = vst [vmem:[%s3968_s29 + $0x70] sm:$0xff] %v526_v46  ;;  %v532_v49 = vld [vmem:[%s3963_s17 + $0x208] sm:$0xff]  ;;  %529 = vst [vmem:[%s3968_s29 + $0x78] sm:$0xff] %v528_v47  ;;  %v534_v50 = vld [vmem:[%s3963_s17 + $0x210] sm:$0xff] }
  0x57   : > { %531 = vst [vmem:[%s3968_s29 + $0x80] sm:$0xff] %v530_v48  ;;  %533 = vst [vmem:[%s3968_s29 + $0x88] sm:$0xff] %v532_v49  ;;  %v536_v51 = vld [vmem:[%s3963_s17 + $0x218] sm:$0xff]  ;;  %v538_v52 = vld [vmem:[%s3963_s17 + $0x220] sm:$0xff] }
  0x58   : > { %535 = vst [vmem:[%s3968_s29 + $0x90] sm:$0xff] %v534_v50  ;;  %537 = vst [vmem:[%s3968_s29 + $0x98] sm:$0xff] %v536_v51  ;;  %v540_v53 = vld [vmem:[%s3963_s17 + $0x228] sm:$0xff]  ;;  %v542_v54 = vld [vmem:[%s3963_s17 + $0x230] sm:$0xff] }
  0x59   : > { %539 = vst [vmem:[%s3968_s29 + $0xa0] sm:$0xff] %v538_v52  ;;  %v544_v55 = vld [vmem:[%s3963_s17 + $0x238] sm:$0xff]  ;;  %541 = vst [vmem:[%s3968_s29 + $0xa8] sm:$0xff] %v540_v53  ;;  %v546_v56 = vld [vmem:[%s3963_s17 + $0x300] sm:$0xff] }
  0x5a   : > { %543 = vst [vmem:[%s3968_s29 + $0xb0] sm:$0xff] %v542_v54  ;;  %545 = vst [vmem:[%s3968_s29 + $0xb8] sm:$0xff] %v544_v55  ;;  %v548_v57 = vld [vmem:[%s3963_s17 + $0x308] sm:$0xff]  ;;  %v550_v58 = vld [vmem:[%s3963_s17 + $0x310] sm:$0xff] }
  0x5b   : > { %547 = vst [vmem:[%s3968_s29 + $0xc0] sm:$0xff] %v546_v56  ;;  %549 = vst [vmem:[%s3968_s29 + $0xc8] sm:$0xff] %v548_v57  ;;  %v552_v59 = vld [vmem:[%s3963_s17 + $0x318] sm:$0xff]  ;;  %v554_v60 = vld [vmem:[%s3963_s17 + $0x320] sm:$0xff] }
  0x5c   : > { %551 = vst [vmem:[%s3968_s29 + $0xd0] sm:$0xff] %v550_v58  ;;  %v556_v61 = vld [vmem:[%s3963_s17 + $0x328] sm:$0xff]  ;;  %553 = vst [vmem:[%s3968_s29 + $0xd8] sm:$0xff] %v552_v59  ;;  %v558_v62 = vld [vmem:[%s3963_s17 + $0x330] sm:$0xff] }
  0x5d   : > { %555 = vst [vmem:[%s3968_s29 + $0xe0] sm:$0xff] %v554_v60  ;;  %557 = vst [vmem:[%s3968_s29 + $0xe8] sm:$0xff] %v556_v61  ;;  %v560_v63 = vld [vmem:[%s3963_s17 + $0x338] sm:$0xff] }
  0x5e   : > { %559 = vst [vmem:[%s3968_s29 + $0xf0] sm:$0xff] %v558_v62  ;;  %561 = vst [vmem:[%s3968_s29 + $0xf8] sm:$0xff] %v560_v63 }
  0x5f PF: > { %p3394_p7 = scmp.ge.s32.totalorder %s3653_s23, 1  ;;  %p566_p8 = scmp.lt.s32.totalorder %s3653_s23, 5 }
  0x61   : > { %p567_p9 = pnand %p3394_p7, %p566_p8 }
  0x63   : > { %570 = sbr.rel (%p567_p9) target bundleno = 461 (0x1cd), region = 120 }
  0x68   : > { %s573_s18 = sand.u32 1, %s3645_s21   ;;  %vm827_vm0 = vcmask 1044480   ;;  %vm828_vm1 = vcmask 1045504   ;;  %v3655_v0 = vmov 65535   ;;  %v3656_v2 = vmov 0   ;;  %v4065_v31 = vld [vmem:[%s4926_s4] sm:$0xff]  }
  0x69   : > { %s4036_s19 = sshll.u32 %s573_s18, 8  ;;  %v829_v1 = vsel %vm827_vm0, 4294967295, %v3655_v0  ;;  %911 = vmatprep.mubr.bf16.mxu0 %v3656_v2  ;;  %954 = vmatprep.mubr.bf16.mxu1 %v3656_v2  ;;  %vm823_vm2 = vcmask 220160   ;;  %s3399_s14 = sshll.u32 %s573_s18, 7 }
  0x6a   : > { %3629 = vset.pattern.permute.xlu0 %v3656_v2  ;;  %s4042_s20 = scalar_lea.vmem [#allocation2], %s4036_s19  ;;  %v4046_v5 = vsel %vm828_vm1, %v829_v1, 0  ;;  %s4108_s7 = scalar_lea.vmem [#allocation3], %s4036_s19 }
  0x6b   : > { %v658_v3 = vld [vmem:[%s4042_s20 + $0x80] sm:$0xff]  ;;  %v659_v6 = vld [vmem:[%s4042_s20 + $0x88] sm:$0xff]  ;;  %v660_v16 = vld [vmem:[%s4042_s20 + $0x90] sm:$0xff]  ;;  %s4159_s8 = scalar_lea.vmem [#allocation5], %s4036_s19  ;;  %s4323_s11 = scalar_lea.vmem [#allocation4], %s4036_s19 }
  0x6c   : > { %v666_v4 = vld [vmem:[%s4042_s20 + $0xc0] sm:$0x33]  ;;  %v667_v8 = vld [vmem:[%s4042_s20 + $0xc8] sm:$0x33]  ;;  %v668_v20 = vld [vmem:[%s4042_s20 + $0xd0] sm:$0x33] }
  0x6d   : > { %v3418_v7 = vcombine.high %v658_v3, %v666_v4  ;;  %v3417_v9 = vcombine.low %v658_v3, %v666_v4  ;;  %v642_v10 = vld [vmem:[%s4042_s20] sm:$0xff]  ;;  %v3420_v12 = vcombine.high %v659_v6, %v667_v8  ;;  %v3419_v13 = vcombine.low %v659_v6, %v667_v8  ;;  %v643_v14 = vld [vmem:[%s4042_s20 + $0x8] sm:$0xff]  ;;  %v661_v21 = vld [vmem:[%s4042_s20 + $0x98] sm:$0xff]  ;;  %s4790_s21 = scalar_lea.vmem [#allocation6], %s3399_s14  ;;  %s3602_s15 = sshll.u32 (%p3726_p5), %s3378_s24, 6 }
  0x6e   : > { %v650_v11 = vld [vmem:[%s4042_s20 + $0x40] sm:$0xff]  ;;  %v651_v15 = vld [vmem:[%s4042_s20 + $0x48] sm:$0xff]  ;;  %v669_v22 = vld [vmem:[%s4042_s20 + $0xd8] sm:$0x33]  ;;  %v3422_v26 = vcombine.high %v660_v16, %v668_v20  ;;  %v3421_v29 = vcombine.low %v660_v16, %v668_v20  ;;  %s3220_s30 = scalar_lea.vmem (%p3726_p5), %s4928_s6, %s3602_s15 }
  0x6f   : > { %v835_v17 = vand.u32 %v3418_v7, %v4046_v5  ;;  %v832_v18 = vand.u32 %v3417_v9, %v4046_v5  ;;  %v3402_v19 = vcombine.high %v642_v10, %v650_v11  ;;  %v841_v23 = vand.u32 %v3420_v12, %v4046_v5  ;;  %v644_v34 = vld [vmem:[%s4042_s20 + $0x10] sm:$0xff]  ;;  %v645_v37 = vld [vmem:[%s4042_s20 + $0x18] sm:$0xff]  ;;  %v662_v38 = vld [vmem:[%s4042_s20 + $0xa0] sm:$0xff] }
  0x70   : > { %v838_v24 = vand.u32 %v3419_v13, %v4046_v5  ;;  %v3404_v25 = vcombine.high %v643_v14, %v651_v15  ;;  %v3424_v27 = vcombine.high %v661_v21, %v669_v22  ;;  %v3401_v28 = vcombine.low %v642_v10, %v650_v11  ;;  %v652_v35 = vld [vmem:[%s4042_s20 + $0x50] sm:$0xff]  ;;  %v670_v39 = vld [vmem:[%s4042_s20 + $0xe0] sm:$0x33]  ;;  %v653_v40 = vld [vmem:[%s4042_s20 + $0x58] sm:$0xff] }
  0x71   : > { %891 = vmatprep.subr.bf16.mxu0 %v835_v17  ;;  %934 = vmatprep.subr.bf16.mxu1 %v841_v23  ;;  %v3403_v30 = vcombine.low %v643_v14, %v651_v15  ;;  %v847_v32 = vand.u32 %v3422_v26, %v4046_v5  ;;  %v3423_v33 = vcombine.low %v661_v21, %v669_v22  ;;  %v663_v41 = vld [vmem:[%s4042_s20 + $0xa8] sm:$0xff]  ;;  %v646_v54 = vld [vmem:[%s4042_s20 + $0x20] sm:$0xff]  ;;  %v664_v58 = vld [vmem:[%s4042_s20 + $0xb0] sm:$0xff] }
  0x72   : > { %892 = vmatpush1.bf16.msra.mxu0 %v832_v18  ;;  %935 = vmatpush1.bf16.msra.mxu1 %v838_v24  ;;  %v853_v36 = vand.u32 %v3424_v27, %v4046_v5  ;;  %v671_v42 = vld [vmem:[%s4042_s20 + $0xe8] sm:$0x33]  ;;  %v844_v43 = vand.u32 %v3421_v29, %v4046_v5  ;;  %v3406_v45 = vcombine.high %v644_v34, %v652_v35  ;;  %v654_v55 = vld [vmem:[%s4042_s20 + $0x60] sm:$0xff]  ;;  %v672_v59 = vld [vmem:[%s4042_s20 + $0xf0] sm:$0x33] }
  0x73   : > { %893 = vmatprep.subr.bf16.mxu0 %v3402_v19  ;;  %936 = vmatprep.subr.bf16.mxu1 %v3404_v25  ;;  %v850_v44 = vand.u32 %v3423_v33, %v4046_v5  ;;  %v3426_v46 = vcombine.high %v662_v38, %v670_v39  ;;  %v3408_v47 = vcombine.high %v645_v37, %v653_v40  ;;  %v647_v57 = vld [vmem:[%s4042_s20 + $0x28] sm:$0xff]  ;;  %v665_v61 = vld [vmem:[%s4042_s20 + $0xb8] sm:$0xff]  ;;  %v648_v12 = vld [vmem:[%s4042_s20 + $0x30] sm:$0xff] }
  0x74   : > { %v3428_v48 = vcombine.high %v663_v41, %v671_v42  ;;  %v3405_v49 = vcombine.low %v644_v34, %v652_v35  ;;  %v3425_v50 = vcombine.low %v662_v38, %v670_v39  ;;  %v3407_v51 = vcombine.low %v645_v37, %v653_v40  ;;  %v655_v60 = vld [vmem:[%s4042_s20 + $0x68] sm:$0xff]  ;;  %v673_v62 = vld [vmem:[%s4042_s20 + $0xf8] sm:$0x33]  ;;  %v656_v13 = vld [vmem:[%s4042_s20 + $0x70] sm:$0xff] }
  0x75   : > { %v859_v52 = vand.u32 %v3426_v46, %v4046_v5  ;;  %v3427_v53 = vcombine.low %v663_v41, %v671_v42  ;;  %v3410_v1 = vcombine.high %v646_v54, %v654_v55  ;;  %v3430_v3 = vcombine.high %v664_v58, %v672_v59  ;;  %v649_v15 = vld [vmem:[%s4042_s20 + $0x38] sm:$0xff]  ;;  %v1239_v16 = vld [vmem:[%s4108_s7 + $0x80] sm:$0xff]  ;;  %v1240_v19 = vld [vmem:[%s4108_s7 + $0x88] sm:$0xff] }
  0x76   : > { %894 = vmatpush1.bf16.msra.mxu0 %v3401_v28  ;;  %937 = vmatpush1.bf16.msra.mxu1 %v3403_v30  ;;  %v865_v56 = vand.u32 %v3428_v48, %v4046_v5  ;;  %v856_v63 = vand.u32 %v3425_v50, %v4046_v5  ;;  %v3412_v4 = vcombine.high %v647_v57, %v655_v60  ;;  %v1247_v17 = vld [vmem:[%s4108_s7 + $0xc0] sm:$0x33]  ;;  %v657_v18 = vld [vmem:[%s4042_s20 + $0x78] sm:$0xff]  ;;  %v1248_v20 = vld [vmem:[%s4108_s7 + $0xc8] sm:$0x33] }
  0x77   : > { %977 = vmatprep.subr.bf16.mxu0 %v847_v32  ;;  %1020 = vmatprep.subr.bf16.mxu1 %v853_v36  ;;  %v862_v0 = vand.u32 %v3427_v53, %v4046_v5  ;;  %v3432_v6 = vcombine.high %v665_v61, %v673_v62  ;;  %v3409_v7 = vcombine.low %v646_v54, %v654_v55  ;;  %v1223_v33 = vld [vmem:[%s4108_s7] sm:$0xff]  ;;  %v1224_v36 = vld [vmem:[%s4108_s7 + $0x8] sm:$0xff]  ;;  %v1241_v37 = vld [vmem:[%s4108_s7 + $0x90] sm:$0xff] }
  0x78   : > { %v3429_v8 = vcombine.low %v664_v58, %v672_v59  ;;  %v3411_v9 = vcombine.low %v647_v57, %v655_v60  ;;  %v871_v10 = vand.u32 %v3430_v3, %v4046_v5  ;;  %v3431_v11 = vcombine.low %v665_v61, %v673_v62  ;;  %v1231_v34 = vld [vmem:[%s4108_s7 + $0x40] sm:$0xff]  ;;  %v1249_v38 = vld [vmem:[%s4108_s7 + $0xd0] sm:$0x33]  ;;  %v1232_v39 = vld [vmem:[%s4108_s7 + $0x48] sm:$0xff] }
  0x79   : > { %3433 = vmatmul.mubr.msk.bf16.vlgmr.msra.gmra.mxu0 %vm823_vm2, %v4065_v31  ;;  %3434 = vmatmul.mubr.msk.bf16.vlgmr.msra.gmra.mxu1 %vm823_vm2, %v4065_v31  ;;  %v877_v14 = vand.u32 %v3432_v6, %v4046_v5  ;;  %v3414_v23 = vcombine.high %v648_v12, %v656_v13  ;;  %v3458_v24 = vcombine.high %v1239_v16, %v1247_v17  ;;  %v1242_v40 = vld [vmem:[%s4108_s7 + $0x98] sm:$0xff]  ;;  %v4137_v48 = vld [vmem:[%s4108_s7 + $0x10] sm:$0xff]  ;;  %v4153_v55 = vld [vmem:[%s4108_s7 + $0xa0] sm:$0xff] }
  0x7a   : > { %978 = vmatpush1.bf16.msra.mxu0 %v844_v43  ;;  %1021 = vmatpush1.bf16.msra.mxu1 %v850_v44  ;;  %v868_v21 = vand.u32 %v3429_v8, %v4046_v5  ;;  %v874_v22 = vand.u32 %v3431_v11, %v4046_v5  ;;  %v3416_v25 = vcombine.high %v649_v15, %v657_v18  ;;  %v1250_v41 = vld [vmem:[%s4108_s7 + $0xd8] sm:$0x33]  ;;  %v2439_v57 = vld [vmem:[%s4159_s8 + $0x80] sm:$0xff]  ;;  %v2440_v61 = vld [vmem:[%s4159_s8 + $0x88] sm:$0xff] }
  0x7b   : > { %979 = vmatprep.subr.bf16.mxu0 %v3406_v45  ;;  %1022 = vmatprep.subr.bf16.mxu1 %v3408_v47  ;;  %v3460_v26 = vcombine.high %v1240_v19, %v1248_v20  ;;  %v3413_v27 = vcombine.low %v648_v12, %v656_v13  ;;  %v3457_v28 = vcombine.low %v1239_v16, %v1247_v17  ;;  %v4148_v53 = vld [vmem:[%s4108_s7 + $0x58] sm:$0xff]  ;;  %v2447_v60 = vld [vmem:[%s4159_s8 + $0xc0] sm:$0x33]  ;;  %v2448_v62 = vld [vmem:[%s4159_s8 + $0xc8] sm:$0x33] }
  0x7c   : > { %997 = vmatprep.mubr.bf16.mxu0 %v3656_v2  ;;  %1040 = vmatprep.mubr.bf16.mxu1 %v3656_v2  ;;  %v3415_v29 = vcombine.low %v649_v15, %v657_v18  ;;  %v1403_v30 = vand.u32 %v3458_v24, %v4046_v5  ;;  %v3459_v32 = vcombine.low %v1240_v19, %v1248_v20  ;;  %v4173_v3 = vld [vmem:[%s4108_s7 + $0xa8] sm:$0xff]  ;;  %v2449_v15 = vld [vmem:[%s4159_s8 + $0xd0] sm:$0x33]  ;;  %v2442_v16 = vld [vmem:[%s4159_s8 + $0x98] sm:$0xff] }
  0x7d   : > { %v1409_v35 = vand.u32 %v3460_v26, %v4046_v5  ;;  %v1400_v42 = vand.u32 %v3457_v28, %v4046_v5  ;;  %v3442_v44 = vcombine.high %v1223_v33, %v1231_v34  ;;  %v3462_v45 = vcombine.high %v1241_v37, %v1249_v38  ;;  %v2450_v17 = vld [vmem:[%s4159_s8 + $0xd8] sm:$0x33]  ;;  %v4218_v28 = vld [vmem:[%s4108_s7 + $0x28] sm:$0xff] }
  0x7e   : > { %980 = vmatpush1.bf16.msra.mxu0 %v3405_v49  ;;  %1023 = vmatpush1.bf16.msra.mxu1 %v3407_v51  ;;  %v1406_v43 = vand.u32 %v3459_v32, %v4046_v5  ;;  %v3444_v46 = vcombine.high %v1224_v36, %v1232_v39  ;;  %v3464_v47 = vcombine.high %v1242_v40, %v1250_v41  ;;  %v4142_v51 = vld [vmem:[%s4108_s7 + $0x50] sm:$0xff] }
  0x7f   : > { %1063 = vmatprep.subr.bf16.mxu0 %v859_v52  ;;  %1106 = vmatprep.subr.bf16.mxu1 %v865_v56  ;;  %v3461_v49 = vcombine.low %v1241_v37, %v1249_v38  ;;  %v3463_v50 = vcombine.low %v1242_v40, %v1250_v41  ;;  %v4145_v52 = vld [vmem:[%s4108_s7 + $0x18] sm:$0xff]  ;;  %v3441_v54 = vcombine.low %v1223_v33, %v1231_v34  ;;  %v4156_v56 = vld [vmem:[%s4108_s7 + $0xe0] sm:$0x33]  ;;  %v2444_v40 = vld [vmem:[%s4159_s8 + $0xa8] sm:$0xff] }
  0x80   : > { %v3443_v58 = vcombine.low %v1224_v36, %v1232_v39  ;;  %v1415_v59 = vand.u32 %v3462_v45, %v4046_v5  ;;  %v3447_v8 = vcombine.low %v4145_v52, %v4148_v53  ;;  %v3537_v11 = vcombine.low %v2439_v57, %v2447_v60  ;;  %v2451_v39 = vld [vmem:[%s4159_s8 + $0xe0] sm:$0x33]  ;;  %v2452_v41 = vld [vmem:[%s4159_s8 + $0xe8] sm:$0x33] }
  0x81   : > { %3435 = vmatmul.mubr.msk.bf16.vlgmr.msra.gmra.mxu0 %vm823_vm2, %v4065_v31  ;;  %3436 = vmatmul.mubr.msk.bf16.vlgmr.msra.gmra.mxu1 %vm823_vm2, %v4065_v31  ;;  %v1412_v6 = vand.u32 %v3461_v49, %v4046_v5  ;;  %v3538_v12 = vcombine.high %v2439_v57, %v2447_v60  ;;  %v3539_v13 = vcombine.low %v2440_v61, %v2448_v62  ;;  %v2453_v60 = vld [vmem:[%s4159_s8 + $0xf0] sm:$0x33] }
  0x82   : > { %1064 = vmatpush1.bf16.msra.mxu0 %v856_v63  ;;  %1107 = vmatpush1.bf16.msra.mxu1 %v862_v0  ;;  %v1421_v63 = vand.u32 %v3464_v47, %v4046_v5  ;;  %v3445_v0 = vcombine.low %v4137_v48, %v4142_v51  ;;  %v3448_v18 = vcombine.high %v4145_v52, %v4148_v53 }
  0x83   : > { %1065 = vmatprep.subr.bf16.mxu0 %v3410_v1  ;;  %1108 = vmatprep.subr.bf16.mxu1 %v3412_v4  ;;  %v3446_v1 = vcombine.high %v4137_v48, %v4142_v51  ;;  %v4176_v4 = vld [vmem:[%s4108_s7 + $0xe8] sm:$0x33]  ;;  %v3465_v19 = vcombine.low %v4153_v55, %v4156_v56  ;;  %v4211_v26 = vand.u32 %v3539_v13, %v4046_v5 }
  0x84   : > { %1083 = vmatprep.mubr.bf16.mxu0 %v3656_v2  ;;  %1126 = vmatprep.mubr.bf16.mxu1 %v3656_v2  ;;  %v3468_v20 = vcombine.high %v4173_v3, %v4176_v4  ;;  %v3543_v34 = vcombine.low %v2442_v16, %v2450_v17  ;;  %v3544_v38 = vcombine.high %v2442_v16, %v2450_v17 }
  0x86   : > { %1066 = vmatpush1.bf16.msra.mxu0 %v3409_v7  ;;  %1109 = vmatpush1.bf16.msra.mxu1 %v3411_v9  ;;  %v1418_v7 = vand.u32 %v3463_v50, %v4046_v5  ;;  %v3466_v9 = vcombine.high %v4153_v55, %v4156_v56  ;;  %v4251_v47 = vand.u32 %v3543_v34, %v4046_v5  ;;  %v2445_v55 = vld [vmem:[%s4159_s8 + $0xb0] sm:$0xff]  ;;  %v3024_v34 = vld [vmem:[%s4927_s5 + $0x8] sm:$0xff] }
  0x87   : > { %1149 = vmatprep.subr.bf16.mxu0 %v871_v10  ;;  %1192 = vmatprep.subr.bf16.mxu1 %v877_v14  ;;  %v2441_v10 = vld [vmem:[%s4159_s8 + $0x90] sm:$0xff]  ;;  %v3540_v14 = vcombine.high %v2440_v61, %v2448_v62  ;;  %v1433_v49 = vand.u32 %v3468_v20, %v4046_v5  ;;  %v1424_v50 = vand.u32 %v3465_v19, %v4046_v5  ;;  %v2446_v61 = vld [vmem:[%s4159_s8 + $0xb8] sm:$0xff] }
  0x88   : > { %v3541_v32 = vcombine.low %v2441_v10, %v2449_v15  ;;  %v3542_v33 = vcombine.high %v2441_v10, %v2449_v15  ;;  %v1427_v36 = vand.u32 %v3466_v9, %v4046_v5  ;;  %v2454_v62 = vld [vmem:[%s4159_s8 + $0xf8] sm:$0x33]  ;;  %v3550_v9 = vcombine.high %v2445_v55, %v2453_v60  ;;  %v3023_v15 = vld [vmem:[%s4927_s5] sm:$0xff]  ;;  %v1237_v19 = vld [vmem:[%s4108_s7 + $0x70] sm:$0xff] }
  0x89   : > { %3437 = vmatmul.mubr.msk.bf16.vlgmr.msra.gmra.mxu0 %vm823_vm2, %v4065_v31  ;;  %3438 = vmatmul.mubr.msk.bf16.vlgmr.msra.gmra.mxu1 %vm823_vm2, %v4065_v31  ;;  %v4205_v24 = vand.u32 %v3540_v14, %v4046_v5  ;;  %v3551_v10 = vcombine.low %v2446_v61, %v2454_v62 }
  0x8a   : > { %1150 = vmatpush1.bf16.msra.mxu0 %v868_v21  ;;  %1193 = vmatpush1.bf16.msra.mxu1 %v874_v22  ;;  %v4196_v21 = vld [vmem:[%s4108_s7 + $0x20] sm:$0xff]  ;;  %v4245_v45 = vand.u32 %v3542_v33, %v4046_v5 }
  0x8b   : > { %1151 = vmatprep.subr.bf16.mxu0 %v3414_v23  ;;  %1194 = vmatprep.subr.bf16.mxu1 %v3416_v25  ;;  %v4199_v22 = vld [vmem:[%s4108_s7 + $0x60] sm:$0xff]  ;;  %v4202_v23 = vand.u32 %v3538_v12, %v4046_v5  ;;  %v4208_v25 = vand.u32 %v3537_v11, %v4046_v5  ;;  %v3552_v11 = vcombine.high %v2446_v61, %v2454_v62  ;;  %v1850_v61 = vld [vmem:[%s4323_s11 + $0xd8] sm:$0x33] }
  0x8c   : > { %1169 = vmatprep.mubr.bf16.mxu0 %v3656_v2  ;;  %1212 = vmatprep.mubr.bf16.mxu1 %v3656_v2  ;;  %v3450_v37 = vcombine.high %v4196_v21, %v4199_v22  ;;  %v3449_v52 = vcombine.low %v4196_v21, %v4199_v22  ;;  %v4300_v12 = vand.u32 %v3550_v9, %v4046_v5  ;;  %v1230_v22 = vld [vmem:[%s4108_s7 + $0x38] sm:$0xff] }
  0x8d   : > { %v4306_v14 = vand.u32 %v3551_v10, %v4046_v5  ;;  %v4317_v20 = vand.u32 %v3552_v11, %v4046_v5  ;;  %3027 = vperm.xlu0 %3629, %v3023_v15   ;;  %v1825_v11 = vld [vmem:[%s4323_s11 + $0x10] sm:$0xff] }
  0x8e   : > { %1152 = vmatpush1.bf16.msra.mxu0 %v3413_v27  ;;  %1195 = vmatpush1.bf16.msra.mxu1 %v3415_v29  ;;  %v3467_v27 = vcombine.low %v4173_v3, %v4176_v4  ;;  %v4221_v29 = vld [vmem:[%s4108_s7 + $0x68] sm:$0xff]  ;;  %v1833_v15 = vld [vmem:[%s4323_s11 + $0x50] sm:$0xff] }
  0x8f   : > { %1459 = vmatprep.subr.bf16.mxu0 %v1403_v30  ;;  %1502 = vmatprep.subr.bf16.mxu1 %v1409_v35  ;;  %v4224_v30 = vld [vmem:[%s4108_s7 + $0xb0] sm:$0xff]  ;;  %v2443_v35 = vld [vmem:[%s4159_s8 + $0xa0] sm:$0xff]  ;;  %v3451_v53 = vcombine.low %v4218_v28, %v4221_v29 }
  0x90   : > { %v3545_v56 = vcombine.low %v2443_v35, %v2451_v39  ;;  %v3546_v57 = vcombine.high %v2443_v35, %v2451_v39 }
  0x91   : > { %3439 = vmatmul.mubr.msk.bf16.vlgmr.msra.gmra.mxu0 %vm823_vm2, %v4065_v31  ;;  %3440 = vmatmul.mubr.msk.bf16.vlgmr.msra.gmra.mxu1 %vm823_vm2, %v4065_v31 }
  0x92   : > { %1460 = vmatpush1.bf16.msra.mxu0 %v1400_v42  ;;  %1503 = vmatpush1.bf16.msra.mxu1 %v1406_v43  ;;  %v4236_v42 = vld [vmem:[%s4108_s7 + $0xf0] sm:$0x33]  ;;  %v4239_v43 = vld [vmem:[%s4108_s7 + $0xb8] sm:$0xff]  ;;  %v4284_v51 = vand.u32 %v3545_v56, %v4046_v5  ;;  %v1824_v56 = vld [vmem:[%s4323_s11 + $0x8] sm:$0xff] }
  0x93   : > { %1461 = vmatprep.subr.bf16.mxu0 %v3442_v44  ;;  %1504 = vmatprep.subr.bf16.mxu1 %v3444_v46  ;;  %v4242_v44 = vld [vmem:[%s4108_s7 + $0xf8] sm:$0x33]  ;;  %v4248_v46 = vand.u32 %v3541_v32, %v4046_v5  ;;  %v3470_v3 = vcombine.high %v4224_v30, %v4236_v42  ;;  %v1848_v32 = vld [vmem:[%s4323_s11 + $0xc8] sm:$0x33] }
  0x94   : > { %1479 = vmatprep.mubr.bf16.mxu0 %v3656_v2  ;;  %1522 = vmatprep.mubr.bf16.mxu1 %v3656_v2  ;;  %v3472_v4 = vcombine.high %v4239_v43, %v4242_v44  ;;  %v3471_v17 = vcombine.low %v4239_v43, %v4242_v44 }
  0x95   : > { %v1439_v16 = vand.u32 %v3470_v3, %v4046_v5  ;;  %3032 = vperm.xlu0 %3629, %v3024_v34  }
  0x96   : > { %1462 = vmatpush1.bf16.msra.mxu0 %v3441_v54  ;;  %1505 = vmatpush1.bf16.msra.mxu1 %v3443_v58  ;;  %v4257_v54 = vand.u32 %v3544_v38, %v4046_v5  ;;  %v3547_v58 = vcombine.low %v2444_v40, %v2452_v41  ;;  %v1445_v21 = vand.u32 %v3472_v4, %v4046_v5 }
  0x97   : > { %1545 = vmatprep.subr.bf16.mxu0 %v1415_v59  ;;  %1588 = vmatprep.subr.bf16.mxu1 %v1421_v63  ;;  %v3548_v59 = vcombine.high %v2444_v40, %v2452_v41  ;;  %v1430_v63 = vand.u32 %v3467_v27, %v4046_v5  ;;  %v1839_v27 = vld [vmem:[%s4323_s11 + $0x80] sm:$0xff]  ;;  %v1442_v35 = vand.u32 %v3471_v17, %v4046_v5  ;;  %v1826_v17 = vld [vmem:[%s4323_s11 + $0x18] sm:$0xff] }
  0x99   : > { %3473 = vmatmul.mubr.msk.bf16.vlgmr.msra.gmra.mxu0 %vm823_vm2, %v4065_v31  ;;  %3474 = vmatmul.mubr.msk.bf16.vlgmr.msra.gmra.mxu1 %vm823_vm2, %v4065_v31  ;;  %v4281_v48 = vand.u32 %v3548_v59, %v4046_v5  ;;  %v1832_v59 = vld [vmem:[%s4323_s11 + $0x48] sm:$0xff] }
  0x9a   : > { %1546 = vmatpush1.bf16.msra.mxu0 %v1412_v6  ;;  %1589 = vmatpush1.bf16.msra.mxu1 %v1418_v7  ;;  %v4278_v6 = vand.u32 %v3546_v57, %v4046_v5  ;;  %v3549_v7 = vcombine.low %v2445_v55, %v2453_v60  ;;  %v1841_v57 = vld [vmem:[%s4323_s11 + $0x90] sm:$0xff]  ;;  %v1842_v60 = vld [vmem:[%s4323_s11 + $0x98] sm:$0xff]  ;;  %v3484_v4 = vcombine.high %v1824_v56, %v1832_v59 }
  0x9b   : > { %1547 = vmatprep.subr.bf16.mxu0 %v3446_v1  ;;  %1590 = vmatprep.subr.bf16.mxu1 %v3448_v18  ;;  %v3452_v1 = vcombine.high %v4218_v28, %v4221_v29  ;;  %v1229_v18 = vld [vmem:[%s4108_s7 + $0x30] sm:$0xff]  ;;  %v1847_v28 = vld [vmem:[%s4323_s11 + $0xc0] sm:$0x33]  ;;  %v1238_v29 = vld [vmem:[%s4108_s7 + $0x78] sm:$0xff] }
  0x9c   : > { %1565 = vmatprep.mubr.bf16.mxu0 %v3656_v2  ;;  %1608 = vmatprep.mubr.bf16.mxu1 %v3656_v2  ;;  %v4303_v13 = vand.u32 %v3549_v7, %v4046_v5  ;;  %v3456_v38 = vcombine.high %v1230_v22, %v1238_v29  ;;  %v3453_v40 = vcombine.low %v1229_v18, %v1237_v19 }
  0x9d   : > { %v3497_v41 = vcombine.low %v1839_v27, %v1847_v28  ;;  %v3504_v7 = vcombine.high %v1842_v60, %v1850_v61 }
  0x9e   : > { %1548 = vmatpush1.bf16.msra.mxu0 %v3445_v0  ;;  %1591 = vmatpush1.bf16.msra.mxu1 %v3447_v8  ;;  %v4287_v0 = vand.u32 %v3547_v58, %v4046_v5  ;;  %v3469_v8 = vcombine.low %v4224_v30, %v4236_v42  ;;  %v1840_v30 = vld [vmem:[%s4323_s11 + $0x88] sm:$0xff]  ;;  %v3455_v42 = vcombine.low %v1230_v22, %v1238_v29  ;;  %v1849_v58 = vld [vmem:[%s4323_s11 + $0xd0] sm:$0x33] }
  0x9f   : > { %1631 = vmatprep.subr.bf16.mxu0 %v1427_v36  ;;  %1674 = vmatprep.subr.bf16.mxu1 %v1433_v49  ;;  %v3454_v36 = vcombine.high %v1229_v18, %v1237_v19  ;;  %v3500_v39 = vcombine.high %v1840_v30, %v1848_v32  ;;  %v3499_v44 = vcombine.low %v1840_v30, %v1848_v32  ;;  %v1823_v49 = vld [vmem:[%s4323_s11] sm:$0xff]  ;;  %v1844_v22 = vld [vmem:[%s4323_s11 + $0xa8] sm:$0xff] }
  0xa0   : > { %v1436_v33 = vand.u32 %v3469_v8, %v4046_v5  ;;  %v2000_v62 = vand.u32 %v3497_v41, %v4046_v5  ;;  %v3502_v3 = vcombine.high %v1841_v57, %v1849_v58  ;;  %v3501_v10 = vcombine.low %v1841_v57, %v1849_v58  ;;  %v1843_v18 = vld [vmem:[%s4323_s11 + $0xa0] sm:$0xff] }
  0xa1   : > { %3475 = vmatmul.mubr.msk.bf16.vlgmr.msra.gmra.mxu0 %vm823_vm2, %v4065_v31  ;;  %3476 = vmatmul.mubr.msk.bf16.vlgmr.msra.gmra.mxu1 %vm823_vm2, %v4065_v31  ;;  %v2009_v55 = vand.u32 %v3500_v39, %v4046_v5  ;;  %v3503_v8 = vcombine.low %v1842_v60, %v1850_v61  ;;  %v1851_v19 = vld [vmem:[%s4323_s11 + $0xe0] sm:$0x33]  ;;  %v3486_v30 = vcombine.high %v1825_v11, %v1833_v15 }
  0xa2   : > { %1632 = vmatpush1.bf16.msra.mxu0 %v1424_v50  ;;  %1675 = vmatpush1.bf16.msra.mxu1 %v1430_v63  ;;  %v1831_v50 = vld [vmem:[%s4323_s11 + $0x40] sm:$0xff]  ;;  %v2006_v63 = vand.u32 %v3499_v44, %v4046_v5  ;;  %v3506_v32 = vcombine.high %v1843_v18, %v1851_v19  ;;  %v1845_v44 = vld [vmem:[%s4323_s11 + $0xb0] sm:$0xff] }
  0xa3   : > { %1633 = vmatprep.subr.bf16.mxu0 %v3450_v37  ;;  %1676 = vmatprep.subr.bf16.mxu1 %v3452_v1  ;;  %v3498_v37 = vcombine.high %v1839_v27, %v1847_v28  ;;  %v3482_v1 = vcombine.high %v1823_v49, %v1831_v50  ;;  %v3481_v9 = vcombine.low %v1823_v49, %v1831_v50  ;;  %v1852_v27 = vld [vmem:[%s4323_s11 + $0xe8] sm:$0x33]  ;;  %v1835_v41 = vld [vmem:[%s4323_s11 + $0x60] sm:$0xff]  ;;  %v1853_v49 = vld [vmem:[%s4323_s11 + $0xf0] sm:$0x33] }
  0xa4   : > { %1651 = vmatprep.mubr.bf16.mxu0 %v3656_v2  ;;  %1694 = vmatprep.mubr.bf16.mxu1 %v3656_v2  ;;  %v2012_v28 = vand.u32 %v3501_v10, %v4046_v5  ;;  %v2018_v29 = vand.u32 %v3503_v8, %v4046_v5  ;;  %v3508_v34 = vcombine.high %v1844_v22, %v1852_v27  ;;  %v1836_v50 = vld [vmem:[%s4323_s11 + $0x68] sm:$0xff]  ;;  %v1829_v10 = vld [vmem:[%s4323_s11 + $0x30] sm:$0xff]  ;;  %v1838_v8 = vld [vmem:[%s4323_s11 + $0x78] sm:$0xff] }
  0xa5   : > { %v2003_v43 = vand.u32 %v3498_v37, %v4046_v5  ;;  %v3507_v39 = vcombine.low %v1844_v22, %v1852_v27  ;;  %v3510_v60 = vcombine.high %v1845_v44, %v1853_v49  ;;  %v2424_v22 = vld [vmem:[%s4159_s8 + $0x8] sm:$0xff] }
  0xa6   : > { %1634 = vmatpush1.bf16.msra.mxu0 %v3449_v52  ;;  %1677 = vmatpush1.bf16.msra.mxu1 %v3451_v53  ;;  %v3483_v52 = vcombine.low %v1824_v56, %v1832_v59  ;;  %v2015_v53 = vand.u32 %v3502_v3, %v4046_v5  ;;  %v1854_v56 = vld [vmem:[%s4323_s11 + $0xf8] sm:$0x33]  ;;  %v2432_v27 = vld [vmem:[%s4159_s8 + $0x48] sm:$0xff] }
  0xa7   : > { %1717 = vmatprep.subr.bf16.mxu0 %v1439_v16  ;;  %1760 = vmatprep.subr.bf16.mxu1 %v1445_v21  ;;  %v2021_v16 = vand.u32 %v3504_v7, %v4046_v5  ;;  %v1834_v21 = vld [vmem:[%s4323_s11 + $0x58] sm:$0xff]  ;;  %v2030_v58 = vand.u32 %v3507_v39, %v4046_v5 }
  0xa8   : > { %v3487_v37 = vcombine.low %v1826_v17, %v1834_v21 }
  0xa9   : > { %3477 = vmatmul.mubr.msk.bf16.vlgmr.msra.gmra.mxu0 %vm823_vm2, %v4065_v31  ;;  %3478 = vmatmul.mubr.msk.bf16.vlgmr.msra.gmra.mxu1 %vm823_vm2, %v4065_v31 }
  0xaa   : > { %1718 = vmatpush1.bf16.msra.mxu0 %v1436_v33  ;;  %1761 = vmatpush1.bf16.msra.mxu1 %v1442_v35  ;;  %v3488_v33 = vcombine.high %v1826_v17, %v1834_v21  ;;  %v3485_v35 = vcombine.low %v1825_v11, %v1833_v15  ;;  %v2431_v21 = vld [vmem:[%s4159_s8 + $0x40] sm:$0xff] }
  0xab   : > { %1719 = vmatprep.subr.bf16.mxu0 %v3454_v36  ;;  %1762 = vmatprep.subr.bf16.mxu1 %v3456_v38  ;;  %v3505_v36 = vcombine.low %v1843_v18, %v1851_v19  ;;  %v2027_v38 = vand.u32 %v3506_v32, %v4046_v5  ;;  %v3523_v32 = vcombine.low %v2424_v22, %v2432_v27 }
  0xac   : > { %1737 = vmatprep.mubr.bf16.mxu0 %v3656_v2  ;;  %1780 = vmatprep.mubr.bf16.mxu1 %v3656_v2 }
  0xad   : > { %v2024_v57 = vand.u32 %v3505_v36, %v4046_v5 }
  0xae   : > { %1720 = vmatpush1.bf16.msra.mxu0 %v3453_v40  ;;  %1763 = vmatpush1.bf16.msra.mxu1 %v3455_v42  ;;  %v1827_v40 = vld [vmem:[%s4323_s11 + $0x20] sm:$0xff]  ;;  %v2033_v42 = vand.u32 %v3508_v34, %v4046_v5  ;;  %v2434_v34 = vld [vmem:[%s4159_s8 + $0x58] sm:$0xff] }
  0xaf   : > { %2059 = vmatprep.subr.bf16.mxu0 %v2003_v43  ;;  %2102 = vmatprep.subr.bf16.mxu1 %v2009_v55  ;;  %v1828_v43 = vld [vmem:[%s4323_s11 + $0x28] sm:$0xff]  ;;  %v1846_v55 = vld [vmem:[%s4323_s11 + $0xb8] sm:$0xff]  ;;  %v3490_v59 = vcombine.high %v1827_v40, %v1835_v41 }
  0xb0   : > { %v3492_v61 = vcombine.high %v1828_v43, %v1836_v50  ;;  %v3491_v3 = vcombine.low %v1828_v43, %v1836_v50  ;;  %v3511_v7 = vcombine.low %v1846_v55, %v1854_v56 }
  0xb1   : > { %3479 = vmatmul.mubr.msk.bf16.vlgmr.msra.gmra.mxu0 %vm823_vm2, %v4065_v31  ;;  %3480 = vmatmul.mubr.msk.bf16.vlgmr.msra.gmra.mxu1 %vm823_vm2, %v4065_v31 }
  0xb2   : > { %2060 = vmatpush1.bf16.msra.mxu0 %v2000_v62  ;;  %2103 = vmatpush1.bf16.msra.mxu1 %v2006_v63  ;;  %v3512_v62 = vcombine.high %v1846_v55, %v1854_v56  ;;  %v3489_v63 = vcombine.low %v1827_v40, %v1835_v41  ;;  %v2042_v15 = vand.u32 %v3511_v7, %v4046_v5  ;;  %v2437_v41 = vld [vmem:[%s4159_s8 + $0x70] sm:$0xff] }
  0xb3   : > { %2061 = vmatprep.subr.bf16.mxu0 %v3482_v1  ;;  %2104 = vmatprep.subr.bf16.mxu1 %v3484_v4  ;;  %v3509_v1 = vcombine.low %v1845_v44, %v1853_v49  ;;  %v2039_v4 = vand.u32 %v3510_v60, %v4046_v5 }
  0xb4   : > { %2079 = vmatprep.mubr.bf16.mxu0 %v3656_v2  ;;  %2122 = vmatprep.mubr.bf16.mxu1 %v3656_v2 }
  0xb5   : > { %v2036_v11 = vand.u32 %v3509_v1, %v4046_v5 }
  0xb6   : > { %2062 = vmatpush1.bf16.msra.mxu0 %v3481_v9  ;;  %2105 = vmatpush1.bf16.msra.mxu1 %v3483_v52  ;;  %v2045_v9 = vand.u32 %v3512_v62, %v4046_v5  ;;  %v1837_v52 = vld [vmem:[%s4323_s11 + $0x70] sm:$0xff]  ;;  %v2423_v5 = vld [vmem:[%s4159_s8] sm:$0xff] }
  0xb7   : > { %2145 = vmatprep.subr.bf16.mxu0 %v2015_v53  ;;  %2188 = vmatprep.subr.bf16.mxu1 %v2021_v16  ;;  %v1830_v53 = vld [vmem:[%s4323_s11 + $0x38] sm:$0xff]  ;;  %v3494_v16 = vcombine.high %v1829_v10, %v1837_v52  ;;  %v3493_v18 = vcombine.low %v1829_v10, %v1837_v52 }
  0xb8   : > { %v3496_v17 = vcombine.high %v1830_v53, %v1838_v8  ;;  %v3495_v19 = vcombine.low %v1830_v53, %v1838_v8 }
  0xb9   : > { %3513 = vmatmul.mubr.msk.bf16.vlgmr.msra.gmra.mxu0 %vm823_vm2, %v4065_v31  ;;  %3514 = vmatmul.mubr.msk.bf16.vlgmr.msra.gmra.mxu1 %vm823_vm2, %v4065_v31 }
  0xba   : > { %2146 = vmatpush1.bf16.msra.mxu0 %v2012_v28  ;;  %2189 = vmatpush1.bf16.msra.mxu1 %v2018_v29  ;;  %v3522_v28 = vcombine.high %v2423_v5, %v2431_v21  ;;  %v3524_v29 = vcombine.high %v2424_v22, %v2432_v27 }
  0xbb   : > { %2147 = vmatprep.subr.bf16.mxu0 %v3486_v30  ;;  %2190 = vmatprep.subr.bf16.mxu1 %v3488_v33  ;;  %v3521_v30 = vcombine.low %v2423_v5, %v2431_v21  ;;  %v2433_v33 = vld [vmem:[%s4159_s8 + $0x50] sm:$0xff] }
  0xbc   : > { %2165 = vmatprep.mubr.bf16.mxu0 %v3656_v2  ;;  %2208 = vmatprep.mubr.bf16.mxu1 %v3656_v2 }
  0xbe   : > { %2148 = vmatpush1.bf16.msra.mxu0 %v3485_v35  ;;  %2191 = vmatpush1.bf16.msra.mxu1 %v3487_v37  ;;  %v2435_v37 = vld [vmem:[%s4159_s8 + $0x60] sm:$0xff] }
  0xbf   : > { %2231 = vmatprep.subr.bf16.mxu0 %v2027_v38  ;;  %2274 = vmatprep.subr.bf16.mxu1 %v2033_v42  ;;  %v2436_v38 = vld [vmem:[%s4159_s8 + $0x68] sm:$0xff]  ;;  %v2438_v42 = vld [vmem:[%s4159_s8 + $0x78] sm:$0xff] }
  0xc1   : > { %3515 = vmatmul.mubr.msk.bf16.vlgmr.msra.gmra.mxu0 %vm823_vm2, %v4065_v31  ;;  %3516 = vmatmul.mubr.msk.bf16.vlgmr.msra.gmra.mxu1 %vm823_vm2, %v4065_v31 }
  0xc2   : > { %2232 = vmatpush1.bf16.msra.mxu0 %v2024_v57  ;;  %2275 = vmatpush1.bf16.msra.mxu1 %v2030_v58 }
  0xc3   : > { %2233 = vmatprep.subr.bf16.mxu0 %v3490_v59  ;;  %2276 = vmatprep.subr.bf16.mxu1 %v3492_v61 }
  0xc4   : > { %2251 = vmatprep.mubr.bf16.mxu0 %v3656_v2  ;;  %2294 = vmatprep.mubr.bf16.mxu1 %v3656_v2 }
  0xc6   : > { %2234 = vmatpush1.bf16.msra.mxu0 %v3489_v63  ;;  %2277 = vmatpush1.bf16.msra.mxu1 %v3491_v3 }
  0xc7   : > { %2317 = vmatprep.subr.bf16.mxu0 %v2039_v4  ;;  %2360 = vmatprep.subr.bf16.mxu1 %v2045_v9 }
  0xc9   : > { %3517 = vmatmul.mubr.msk.bf16.vlgmr.msra.gmra.mxu0 %vm823_vm2, %v4065_v31  ;;  %3518 = vmatmul.mubr.msk.bf16.vlgmr.msra.gmra.mxu1 %vm823_vm2, %v4065_v31 }
  0xca   : > { %2318 = vmatpush1.bf16.msra.mxu0 %v2036_v11  ;;  %2361 = vmatpush1.bf16.msra.mxu1 %v2042_v15 }
  0xcb   : > { %2319 = vmatprep.subr.bf16.mxu0 %v3494_v16  ;;  %2362 = vmatprep.subr.bf16.mxu1 %v3496_v17 }
  0xcc   : > { %2337 = vmatprep.mubr.bf16.mxu0 %v3656_v2  ;;  %2380 = vmatprep.mubr.bf16.mxu1 %v3656_v2 }
  0xce   : > { %2320 = vmatpush1.bf16.msra.mxu0 %v3493_v18  ;;  %2363 = vmatpush1.bf16.msra.mxu1 %v3495_v19 }
  0xcf   : > { %2659 = vmatprep.subr.bf16.mxu0 %v4202_v23  ;;  %2702 = vmatprep.subr.bf16.mxu1 %v4205_v24  ;;  %v2425_v23 = vld [vmem:[%s4159_s8 + $0x10] sm:$0xff]  ;;  %v2426_v24 = vld [vmem:[%s4159_s8 + $0x18] sm:$0xff] }
  0xd0   : > { %v3525_v35 = vcombine.low %v2425_v23, %v2433_v33  ;;  %v3527_v36 = vcombine.low %v2426_v24, %v2434_v34 }
  0xd1   : > { %3519 = vmatmul.mubr.msk.bf16.vlgmr.msra.gmra.mxu0 %vm823_vm2, %v4065_v31  ;;  %3520 = vmatmul.mubr.msk.bf16.vlgmr.msra.gmra.mxu1 %vm823_vm2, %v4065_v31 }
  0xd2   : > { %2660 = vmatpush1.bf16.msra.mxu0 %v4208_v25  ;;  %2703 = vmatpush1.bf16.msra.mxu1 %v4211_v26  ;;  %v3526_v25 = vcombine.high %v2425_v23, %v2433_v33  ;;  %v3528_v26 = vcombine.high %v2426_v24, %v2434_v34 }
  0xd3   : > { %2661 = vmatprep.subr.bf16.mxu0 %v3522_v28  ;;  %2704 = vmatprep.subr.bf16.mxu1 %v3524_v29 }
  0xd4   : > { %2679 = vmatprep.mubr.bf16.mxu0 %v3656_v2  ;;  %2722 = vmatprep.mubr.bf16.mxu1 %v3656_v2 }
  0xd6   : > { %2662 = vmatpush1.bf16.msra.mxu0 %v3521_v30  ;;  %2705 = vmatpush1.bf16.msra.mxu1 %v3523_v32 }
  0xd7   : > { %2745 = vmatprep.subr.bf16.mxu0 %v4245_v45  ;;  %2788 = vmatprep.subr.bf16.mxu1 %v4257_v54  ;;  %v2427_v45 = vld [vmem:[%s4159_s8 + $0x20] sm:$0xff]  ;;  %v2428_v54 = vld [vmem:[%s4159_s8 + $0x28] sm:$0xff] }
  0xd8   : > { %v3529_v39 = vcombine.low %v2427_v45, %v2435_v37  ;;  %v3531_v40 = vcombine.low %v2428_v54, %v2436_v38 }
  0xd9   : > { %3553 = vmatmul.mubr.msk.bf16.vlgmr.msra.gmra.mxu0 %vm823_vm2, %v4065_v31  ;;  %3554 = vmatmul.mubr.msk.bf16.vlgmr.msra.gmra.mxu1 %vm823_vm2, %v4065_v31 }
  0xda   : > { %2746 = vmatpush1.bf16.msra.mxu0 %v4248_v46  ;;  %2789 = vmatpush1.bf16.msra.mxu1 %v4251_v47  ;;  %v3530_v46 = vcombine.high %v2427_v45, %v2435_v37  ;;  %v3532_v47 = vcombine.high %v2428_v54, %v2436_v38 }
  0xdb   : > { %2747 = vmatprep.subr.bf16.mxu0 %v3526_v25  ;;  %2790 = vmatprep.subr.bf16.mxu1 %v3528_v26 }
  0xdc   : > { %2765 = vmatprep.mubr.bf16.mxu0 %v3656_v2  ;;  %2808 = vmatprep.mubr.bf16.mxu1 %v3656_v2 }
  0xde   : > { %2748 = vmatpush1.bf16.msra.mxu0 %v3525_v35  ;;  %2791 = vmatpush1.bf16.msra.mxu1 %v3527_v36 }
  0xdf   : > { %2831 = vmatprep.subr.bf16.mxu0 %v4278_v6  ;;  %2874 = vmatprep.subr.bf16.mxu1 %v4281_v48  ;;  %v2429_v6 = vld [vmem:[%s4159_s8 + $0x30] sm:$0xff]  ;;  %v2430_v48 = vld [vmem:[%s4159_s8 + $0x38] sm:$0xff] }
  0xe0   : > { %v3534_v43 = vcombine.high %v2429_v6, %v2437_v41  ;;  %v3535_v44 = vcombine.low %v2430_v48, %v2438_v42 }
  0xe1   : > { %3555 = vmatmul.mubr.msk.bf16.vlgmr.msra.gmra.mxu0 %vm823_vm2, %v4065_v31  ;;  %3556 = vmatmul.mubr.msk.bf16.vlgmr.msra.gmra.mxu1 %vm823_vm2, %v4065_v31 }
  0xe2   : > { %2832 = vmatpush1.bf16.msra.mxu0 %v4284_v51  ;;  %2875 = vmatpush1.bf16.msra.mxu1 %v4287_v0  ;;  %v3536_v51 = vcombine.high %v2430_v48, %v2438_v42  ;;  %v3533_v0 = vcombine.low %v2429_v6, %v2437_v41 }
  0xe3   : > { %2833 = vmatprep.subr.bf16.mxu0 %v3530_v46  ;;  %2876 = vmatprep.subr.bf16.mxu1 %v3532_v47 }
  0xe4   : > { %2851 = vmatprep.mubr.bf16.mxu0 %v3656_v2  ;;  %2894 = vmatprep.mubr.bf16.mxu1 %v3656_v2 }
  0xe6   : > { %2834 = vmatpush1.bf16.msra.mxu0 %v3529_v39  ;;  %2877 = vmatpush1.bf16.msra.mxu1 %v3531_v40 }
  0xe7   : > { %2917 = vmatprep.subr.bf16.mxu0 %v4300_v12  ;;  %2960 = vmatprep.subr.bf16.mxu1 %v4317_v20 }
  0xe9   : > { %3557 = vmatmul.mubr.msk.bf16.vlgmr.msra.gmra.mxu0 %vm823_vm2, %v4065_v31  ;;  %3558 = vmatmul.mubr.msk.bf16.vlgmr.msra.gmra.mxu1 %vm823_vm2, %v4065_v31 }
  0xea   : > { %2918 = vmatpush1.bf16.msra.mxu0 %v4303_v13  ;;  %2961 = vmatpush1.bf16.msra.mxu1 %v4306_v14 }
  0xeb   : > { %2919 = vmatprep.subr.bf16.mxu0 %v3534_v43  ;;  %2962 = vmatprep.subr.bf16.mxu1 %v3536_v51 }
  0xec   : > { %2937 = vmatprep.mubr.bf16.mxu0 %v3656_v2  ;;  %2980 = vmatprep.mubr.bf16.mxu1 %v3656_v2 }
  0xee   : > { %2920 = vmatpush1.bf16.msra.mxu0 %v3533_v0  ;;  %2963 = vmatpush1.bf16.msra.mxu1 %v3535_v44 }
  0xf1   : > { %3559 = vmatmul.mubr.msk.bf16.vlgmr.msra.gmra.mxu0 %vm823_vm2, %v4065_v31  ;;  %3560 = vmatmul.mubr.msk.bf16.vlgmr.msra.gmra.mxu1 %vm823_vm2, %v4065_v31 }
 0x139   : > { %v4470_v12 = vpop.f32.mrf.mxu0  ;;  %v4472_v13 = vpop.f32.mrf.mxu1 }
 0x13b   : > { %v4474_v14 = vpop.f32.mrf.mxu0  ;;  %v4476_v20 = vpop.f32.mrf.mxu1 }
 0x13d   : > { %v4478_v49 = vpop.f32.mrf.mxu0  ;;  %v4480_v50 = vpop.f32.mrf.mxu1 }
 0x13f   : > { %v4482_v2 = vpop.f32.mrf.mxu0  ;;  %v4484_v55 = vpop.f32.mrf.mxu1 }
 0x141   : > { %v4486_v56 = vpop.f32.mrf.mxu0  ;;  %v4488_v57 = vpop.f32.mrf.mxu1 }
 0x143   : > { %v4490_v31 = vpop.f32.mrf.mxu0  ;;  %v4492_v58 = vpop.f32.mrf.mxu1 }
 0x145   : > { %v4494_v59 = vpop.f32.mrf.mxu0  ;;  %v4496_v60 = vpop.f32.mrf.mxu1 }
 0x147   : > { %v4498_v61 = vpop.f32.mrf.mxu0  ;;  %v4500_v62 = vpop.f32.mrf.mxu1 }
 0x149   : > { %v4502_v63 = vpop.f32.mrf.mxu0  ;;  %v4504_v1 = vpop.f32.mrf.mxu1 }
 0x14b   : > { %v4506_v3 = vpop.f32.mrf.mxu0  ;;  %v4508_v4 = vpop.f32.mrf.mxu1 }
 0x14d   : > { %v4510_v7 = vpop.f32.mrf.mxu0  ;;  %v4512_v9 = vpop.f32.mrf.mxu1 }
 0x14f   : > { %v4514_v10 = vpop.f32.mrf.mxu0  ;;  %v4516_v52 = vpop.f32.mrf.mxu1 }
 0x151   : > { %v4518_v53 = vpop.f32.mrf.mxu0  ;;  %v4520_v8 = vpop.f32.mrf.mxu1 }
 0x153   : > { %v4522_v11 = vpop.f32.mrf.mxu0  ;;  %v4524_v15 = vpop.f32.mrf.mxu1 }
 0x154   : > { %4942 = vst [vmem:[#allocation7_spill] sm:$0xff] %v4522_v11  ;;  %4943 = vst [vmem:[#allocation8_spill] sm:$0xff] %v4524_v15 }
 0x155   : > { %v4526_v16 = vpop.f32.mrf.mxu0  ;;  %v4528_v17 = vpop.f32.mrf.mxu1 }
 0x156   : > { %4944 = vst [vmem:[#allocation9_spill] sm:$0xff] %v4526_v16  ;;  %4945 = vst [vmem:[#allocation10_spill] sm:$0xff] %v4528_v17 }
 0x157   : > { %v4530_v18 = vpop.f32.mrf.mxu0  ;;  %v4532_v19 = vpop.f32.mrf.mxu1 }
 0x158   : > { %4946 = vst [vmem:[#allocation11_spill] sm:$0xff] %v4530_v18  ;;  %4947 = vst [vmem:[#allocation12_spill] sm:$0xff] %v4532_v19 }
 0x159   : > { %v4534_v5 = vpop.f32.mrf.mxu0  ;;  %v4536_v21 = vpop.f32.mrf.mxu1 }
 0x15b   : > { %v4538_v22 = vpop.f32.mrf.mxu0  ;;  %v4540_v27 = vpop.f32.mrf.mxu1 }
 0x15d   : > { %v4542_v28 = vpop.f32.mrf.mxu0  ;;  %v4544_v29 = vpop.f32.mrf.mxu1 }
 0x15f   : > { %v4546_v30 = vpop.f32.mrf.mxu0  ;;  %v4548_v32 = vpop.f32.mrf.mxu1 }
 0x161   : > { %v4550_v23 = vpop.f32.mrf.mxu0  ;;  %v4552_v33 = vpop.f32.mrf.mxu1 }
 0x163   : > { %v4554_v24 = vpop.f32.mrf.mxu0  ;;  %v4556_v34 = vpop.f32.mrf.mxu1 }
 0x165   : > { %v4558_v25 = vpop.f32.mrf.mxu0  ;;  %v4560_v26 = vpop.f32.mrf.mxu1 }
 0x167   : > { %v4562_v35 = vpop.f32.mrf.mxu0  ;;  %v4564_v36 = vpop.f32.mrf.mxu1 }
 0x169   : > { %v4566_v45 = vpop.f32.mrf.mxu0  ;;  %v4568_v37 = vpop.f32.mrf.mxu1 }
 0x16b   : > { %v4570_v54 = vpop.f32.mrf.mxu0  ;;  %v4572_v38 = vpop.f32.mrf.mxu1 }
 0x16d   : > { %v4574_v46 = vpop.f32.mrf.mxu0  ;;  %v4576_v47 = vpop.f32.mrf.mxu1 }
 0x16f   : > { %v4578_v39 = vpop.f32.mrf.mxu0  ;;  %v4580_v40 = vpop.f32.mrf.mxu1 }
 0x171   : > { %v4582_v6 = vpop.f32.mrf.mxu0  ;;  %v4584_v41 = vpop.f32.mrf.mxu1 }
 0x173   : > { %v4586_v48 = vpop.f32.mrf.mxu0  ;;  %v4588_v42 = vpop.f32.mrf.mxu1 }
 0x174   : > { %4948 = vst [vmem:[#allocation13_spill] sm:$0xff] %v4588_v42 }
 0x175   : > { %v4590_v43 = vpop.f32.mrf.mxu0  ;;  %v4592_v51 = vpop.f32.mrf.mxu1 }
 0x176   : > { %4949 = vst [vmem:[#allocation14_spill] sm:$0xff] %v4590_v43  ;;  %4950 = vst [vmem:[#allocation15_spill] sm:$0xff] %v4592_v51 }
 0x177   : > { %v4594_v0 = vpop.f32.mrf.mxu0  ;;  %v4596_v44 = vpop.f32.mrf.mxu1 }
 0x178   : > { %4951 = vst [vmem:[#allocation16_spill] sm:$0xff] %v4594_v0  ;;  %4952 = vst [vmem:[#allocation17_spill] sm:$0xff] %v4596_v44 }
 0x179   : > { %v4598_v19 = vpop.f32.mrf.mxu0  ;;  %v4600_v18 = vpop.f32.mrf.mxu1 }
 0x17a   : > { %4953 = vst [vmem:[#allocation18_spill] sm:$0xff] %v4598_v19  ;;  %4954 = vst [vmem:[#allocation19_spill] sm:$0xff] %v4600_v18 }
 0x17b   : > { %v4602_v17 = vpop.f32.mrf.mxu0  ;;  %v4604_v16 = vpop.f32.mrf.mxu1 }
 0x17c   : > { %4955 = vst [vmem:[#allocation20_spill] sm:$0xff] %v4602_v17  ;;  %4956 = vst [vmem:[#allocation21_spill] sm:$0xff] %v4604_v16 }
 0x17d   : > { %v4606_v15 = vpop.f32.mrf.mxu0  ;;  %v4608_v11 = vpop.f32.mrf.mxu1 }
 0x17e   : > { %4957 = vst [vmem:[#allocation22_spill] sm:$0xff] %v4606_v15  ;;  %4958 = vst [vmem:[#allocation23_spill] sm:$0xff] %v4608_v11 }
 0x17f   : > { %v4610_v42 = vpop.f32.mrf.mxu0  ;;  %v4612_v43 = vpop.f32.mrf.mxu1 }
 0x180   : > { %4959 = vst [vmem:[#allocation24_spill] sm:$0xff] %v4610_v42  ;;  %4960 = vst [vmem:[#allocation25_spill] sm:$0xff] %v4612_v43 }
 0x181   : > { %v4614_v51 = vpop.f32.mrf.mxu0  ;;  %v4616_v0 = vpop.f32.mrf.mxu1 }
 0x182   : > { %4961 = vst [vmem:[#allocation26_spill] sm:$0xff] %v4614_v51  ;;  %4962 = vst [vmem:[#allocation27_spill] sm:$0xff] %v4616_v0 }
 0x183   : > { %v4618_v44 = vpop.f32.mrf.mxu0  ;;  %v4620_v19 = vpop.f32.mrf.mxu1 }
 0x184   : > { %4963 = vst [vmem:[#allocation28_spill] sm:$0xff] %v4618_v44  ;;  %4964 = vst [vmem:[#allocation29_spill] sm:$0xff] %v4620_v19 }
 0x185   : > { %v4622_v18 = vpop.f32.mrf.mxu0  ;;  %v4624_v17 = vpop.f32.mrf.mxu1 }
 0x186   : > { %4965 = vst [vmem:[#allocation30_spill] sm:$0xff] %v4624_v17  ;;  %v1791_v17 = vmax.f32 %v4470_v12, %v4534_v5  ;;  %v1808_v12 = vmax.f32 %v4482_v2, %v4546_v30  ;;  %v1811_v2 = vmax.f32 %v4494_v59, %v4558_v25  ;;  %v1800_v59 = vmax.f32 %v4506_v3, %v4570_v54  ;;  %v4987_v30 = vld [vmem:[#allocation18_spill] sm:$0xff]  ;;  %v4990_v25 = vld [vmem:[#allocation20_spill] sm:$0xff] }
 0x187   : > { %v4626_v16 = vpop.f32.mrf.mxu0  ;;  %v4628_v15 = vpop.f32.mrf.mxu1  ;;  %v4995_v54 = vld [vmem:[#allocation25_spill] sm:$0xff] }
 0x188   : > { %4966 = vst [vmem:[#allocation31_spill] sm:$0xff] %v4626_v16  ;;  %4967 = vst [vmem:[#allocation32_spill] sm:$0xff] %v4628_v15  ;;  %v1793_v15 = vmax.f32 %v4472_v13, %v4536_v21  ;;  %v1810_v13 = vmax.f32 %v4484_v55, %v4548_v32  ;;  %v1813_v55 = vmax.f32 %v4496_v60, %v4560_v26  ;;  %v4992_v26 = vld [vmem:[#allocation22_spill] sm:$0xff] }
 0x189   : > { %v4630_v11 = vpop.f32.mrf.mxu0  ;;  %v4632_v42 = vpop.f32.mrf.mxu1  ;;  %v1802_v60 = vmax.f32 %v4508_v4, %v4572_v38 }
 0x18a   : > { %4968 = vst [vmem:[#allocation33_spill] sm:$0xff] %v4632_v42  ;;  %v1792_v42 = vmax.f32 %v4474_v14, %v4538_v22  ;;  %v1795_v14 = vmax.f32 %v4486_v56, %v4550_v23  ;;  %v1812_v56 = vmax.f32 %v4498_v61, %v4562_v35  ;;  %v4988_v61 = vld [vmem:[#allocation19_spill] sm:$0xff]  ;;  %v4994_v23 = vld [vmem:[#allocation24_spill] sm:$0xff]  ;;  %v2410_v38 = vmax.f32 %v1810_v13, %v4995_v54 }
 0x18b   : > { %v4634_v43 = vpop.f32.mrf.mxu0  ;;  %v4636_v51 = vpop.f32.mrf.mxu1  ;;  %v4993_v35 = vld [vmem:[#allocation23_spill] sm:$0xff]  ;;  %v2408_v4 = vmax.f32 %v1808_v12, %v4994_v23 }
 0x18c   : > { %4969 = vst [vmem:[#allocation34_spill] sm:$0xff] %v4636_v51  ;;  %v1794_v51 = vmax.f32 %v4476_v20, %v4540_v27  ;;  %v1797_v20 = vmax.f32 %v4488_v57, %v4552_v33  ;;  %v1814_v57 = vmax.f32 %v4500_v62, %v4564_v36  ;;  %v2391_v62 = vmax.f32 %v1791_v17, %v4987_v30 }
 0x18d   : > { %v4638_v0 = vpop.f32.mrf.mxu0  ;;  %v4640_v44 = vpop.f32.mrf.mxu1  ;;  %v2393_v33 = vmax.f32 %v1793_v15, %v4988_v61  ;;  %v4997_v15 = vld [vmem:[#allocation27_spill] sm:$0xff]  ;;  %v5000_v12 = vld [vmem:[#allocation30_spill] sm:$0xff] }
 0x18e   : > { %4970 = vst [vmem:[#allocation35_spill] sm:$0xff] %v4638_v0  ;;  %4971 = vst [vmem:[#allocation36_spill] sm:$0xff] %v4640_v44  ;;  %v1807_v0 = vmax.f32 %v4478_v49, %v4542_v28  ;;  %v1796_v49 = vmax.f32 %v4490_v31, %v4554_v24  ;;  %v1799_v31 = vmax.f32 %v4502_v63, %v4566_v45  ;;  %v4996_v63 = vld [vmem:[#allocation26_spill] sm:$0xff] }
 0x18f   : > { %v4642_v19 = vpop.f32.mrf.mxu0  ;;  %v4648_v16 = vpop.f32.mrf.mxu1  ;;  %v2392_v24 = vmax.f32 %v1792_v42, %v4990_v25  ;;  %v2395_v3 = vmax.f32 %v1795_v14, %v4996_v63  ;;  %v2397_v61 = vmax.f32 %v1797_v20, %v4997_v15  ;;  %v4999_v42 = vld [vmem:[#allocation29_spill] sm:$0xff]  ;;  %v4746_v23 = vmax.f32 %v1813_v55, %v5000_v12  ;;  %v5001_v63 = vld [vmem:[#allocation31_spill] sm:$0xff] }
 0x190   : > { %4972 = vst [vmem:[#allocation37_spill] sm:$0xff] %v4642_v19  ;;  %v1809_v19 = vmax.f32 %v4480_v50, %v4544_v29  ;;  %v1798_v50 = vmax.f32 %v4492_v58, %v4556_v34  ;;  %v1801_v58 = vmax.f32 %v4504_v1, %v4568_v37  ;;  %v4975_v29 = vld [vmem:[#allocation7_spill] sm:$0xff]  ;;  %v4720_v37 = vpop.permute.xlu0 %3027  ;;  %v4991_v34 = vld [vmem:[#allocation21_spill] sm:$0xff]  ;;  %v4998_v1 = vld [vmem:[#allocation28_spill] sm:$0xff]  ;;  %v4750_v20 = vmax.f32 %v1812_v56, %v5001_v63 }
 0x191   : > { %v4658_v44 = vpop.f32.mrf.mxu0  ;;  %v4668_v5 = vpop.f32.mrf.mxu1  ;;  %v2394_v36 = vmax.f32 %v1794_v51, %v4991_v34 }
 0x192   : > { %v4740_v25 = vmax.f32 %v1798_v50, %v4999_v42 }
 0x193   : > { %v4678_v21 = vpop.f32.mrf.mxu0  ;;  %v4688_v22 = vpop.f32.mrf.mxu1 }
 0x194   : > { %v4756_v34 = vpop.permute.xlu0 %3032 }
 0x195   : > { %v4698_v27 = vpop.f32.mrf.mxu0  ;;  %v4708_v28 = vpop.f32.mrf.mxu1  ;;  %v5007_v63 = vld [vmem:[#allocation36_spill] sm:$0xff] }
 0x196   : > { %4973 = vst [vmem:[#allocation38_spill] sm:$0xff] %v4698_v27  ;;  %4974 = vst [vmem:[#allocation39_spill] sm:$0xff] %v4708_v28  ;;  %v2409_v27 = vmax.f32 %v1809_v19, %v4993_v35  ;;  %v4743_v19 = vmax.f32 %v1811_v2, %v4622_v18  ;;  %v4759_v18 = vmax.f32 %v1799_v31, %v4630_v11  ;;  %v5003_v2 = vld [vmem:[#allocation33_spill] sm:$0xff]  ;;  %v5004_v35 = vld [vmem:[#allocation34_spill] sm:$0xff] }
 0x197   : > { %v4718_v45 = vpop.f32.mrf.mxu0  ;;  %v4728_v28 = vpop.f32.mrf.mxu1  ;;  %v4762_v55 = vmax.f32 %v1801_v58, %v5003_v2 }
 0x198   : > { %4982 = vst [vmem:[#allocation7_spill] sm:$0xff] %v4718_v45  ;;  %4989 = vst [vmem:[#allocation18_spill] sm:$0xff] %v4728_v28  ;;  %v2407_v45 = vmax.f32 %v1807_v0, %v4992_v26  ;;  %v2396_v28 = vmax.f32 %v1796_v49, %v4998_v1  ;;  %v5002_v49 = vld [vmem:[#allocation32_spill] sm:$0xff] }
 0x199   : > { %v2681_v32 = vpop.f32.mrf.mxu0  ;;  %v2724_v30 = vpop.f32.mrf.mxu1  ;;  %v4753_v1 = vmax.f32 %v1814_v57, %v5002_v49  ;;  %v4768_v57 = vmax.f32 %v1800_v59, %v4634_v43  ;;  %v5005_v59 = vld [vmem:[#allocation35_spill] sm:$0xff]  ;;  %v5008_v49 = vmax.f32 %v4512_v9, %v4576_v47 }
 0x19a   : > { %v2991_v17 = vmax.f32 %v2391_v62, %v2681_v32  ;;  %v2993_v51 = vmax.f32 %v2393_v33, %v2724_v30 }
 0x19b   : > { %v2683_v0 = vpop.f32.mrf.mxu0  ;;  %v2726_v62 = vpop.f32.mrf.mxu1 }
 0x19c   : > { %v2992_v13 = vmax.f32 %v2392_v24, %v2683_v0  ;;  %v3035_v14 = vadd.f32 %v4720_v37, %v2991_v17  ;;  %v2994_v50 = vmax.f32 %v2394_v36, %v2726_v62  ;;  %v3037_v32 = vadd.f32 %v4720_v37, %v2993_v51 }
 0x19d   : > { %v2685_v33 = vpop.f32.mrf.mxu0  ;;  %v2728_v26 = vpop.f32.mrf.mxu1  ;;  %v4771_v36 = vmax.f32 %v1802_v60, %v5004_v35  ;;  %v5006_v60 = vmax.f32 %v4510_v7, %v4574_v46 }
 0x19e   : > { %v3036_v56 = vadd.f32 %v4720_v37, %v2992_v13  ;;  %v3007_v24 = vmax.f32 %v2407_v45, %v2685_v33  ;;  %v3038_v54 = vadd.f32 %v4720_v37, %v2994_v50  ;;  %v3009_v17 = vmax.f32 %v2409_v27, %v2728_v26 }
 0x19f   : > { %v2687_v11 = vpop.f32.mrf.mxu0  ;;  %v3067_v31 = vmax.f32 %v3035_v14, 0.0  ;;  %v2730_v42 = vpop.f32.mrf.mxu1  ;;  %v3069_v51 = vmax.f32 %v3037_v32, 0.0  ;;  %v4780_v13 = vmax.f32 %v5006_v60, %v5005_v59  ;;  %v4787_v50 = vmax.f32 %v5008_v49, %v5007_v63 }
 0x1a0   : > { %v3068_v30 = vmax.f32 %v3036_v56, 0.0  ;;  %v3008_v58 = vmax.f32 %v2408_v4, %v2687_v11  ;;  %v3051_v15 = vadd.f32 %v4756_v34, %v3007_v24  ;;  %v3070_v0 = vmax.f32 %v3038_v54, 0.0  ;;  %v5009_v54 = vld [vmem:[#allocation37_spill] sm:$0xff] }
 0x1a1   : > { %v3010_v45 = vmax.f32 %v2410_v38, %v2730_v42  ;;  %v3053_v12 = vadd.f32 %v4756_v34, %v3009_v17  ;;  %v2767_v43 = vpop.f32.mrf.mxu0  ;;  %v2810_v4 = vpop.f32.mrf.mxu1  ;;  %v5010_v17 = vmax.f32 %v4514_v10, %v4578_v39  ;;  %v5013_v63 = vmax.f32 %v4520_v8, %v4584_v41 }
 0x1a2   : > { %v3586_v27 = vpack.c.bf16 %v3068_v30, %v3067_v31  ;;  %v3052_v14 = vadd.f32 %v4756_v34, %v3008_v58  ;;  %v2995_v62 = vmax.f32 %v2395_v3, %v2767_v43  ;;  %v3587_v38 = vpack.c.bf16 %v3070_v0, %v3069_v51 }
 0x1a3   : > { %v3054_v32 = vadd.f32 %v4756_v34, %v3010_v45  ;;  %v2997_v33 = vmax.f32 %v2397_v61, %v2810_v4  ;;  %v2769_v2 = vpop.f32.mrf.mxu0  ;;  %v3083_v7 = vmax.f32 %v3051_v15, 0.0  ;;  %v2812_v24 = vpop.f32.mrf.mxu1  ;;  %v3085_v9 = vmax.f32 %v3053_v12, 0.0 }
 0x1a4   : > { %3195 = vst [vmem:[%s4790_s21] sm:$0xff] %v3586_v27  ;;  %v3084_v46 = vmax.f32 %v3052_v14, 0.0  ;;  %v3039_v3 = vadd.f32 %v4720_v37, %v2995_v62  ;;  %v2996_v56 = vmax.f32 %v2396_v28, %v2769_v2  ;;  %3196 = vst [vmem:[%s4790_s21 + $0x8] sm:$0xff] %v3587_v38  ;;  %v2998_v61 = vmax.f32 %v4740_v25, %v2812_v24 }
 0x1a5   : > { %v3086_v47 = vmax.f32 %v3054_v32, 0.0  ;;  %v3041_v26 = vadd.f32 %v4720_v37, %v2997_v33  ;;  %v2771_v35 = vpop.f32.mrf.mxu0  ;;  %v4801_v11 = vmax.f32 %v5010_v17, %v5009_v54  ;;  %v2814_v58 = vpop.f32.mrf.mxu1  ;;  %v5011_v15 = vmax.f32 %v4516_v52, %v4580_v40 }
 0x1a6   : > { %v3594_v31 = vpack.c.bf16 %v3084_v46, %v3083_v7  ;;  %v3040_v28 = vadd.f32 %v4720_v37, %v2996_v56  ;;  %v3011_v30 = vmax.f32 %v4743_v19, %v2771_v35  ;;  %v3042_v51 = vadd.f32 %v4720_v37, %v2998_v61 }
 0x1a7   : > { %v4809_v42 = vmax.f32 %v5011_v15, %v4648_v16  ;;  %v3595_v25 = vpack.c.bf16 %v3086_v47, %v3085_v9  ;;  %v3013_v10 = vmax.f32 %v4746_v23, %v2814_v58  ;;  %v2773_v39 = vpop.f32.mrf.mxu0  ;;  %v3071_v0 = vmax.f32 %v3039_v3, 0.0  ;;  %v2816_v43 = vpop.f32.mrf.mxu1  ;;  %v5015_v47 = vld [vmem:[#allocation8_spill] sm:$0xff] }
 0x1a8   : > { %3203 = vst [vmem:[%s4790_s21 + $0x40] sm:$0xff] %v3594_v31  ;;  %v3072_v45 = vmax.f32 %v3040_v28, 0.0  ;;  %v3055_v12 = vadd.f32 %v4756_v34, %v3011_v30  ;;  %v3012_v19 = vmax.f32 %v4750_v20, %v2773_v39  ;;  %v3073_v59 = vmax.f32 %v3041_v26, 0.0  ;;  %v5016_v26 = vld [vmem:[#allocation13_spill] sm:$0xff] }
 0x1a9   : > { %3204 = vst [vmem:[%s4790_s21 + $0x48] sm:$0xff] %v3595_v25  ;;  %v3074_v52 = vmax.f32 %v3042_v51, 0.0  ;;  %v3057_v16 = vadd.f32 %v4756_v34, %v3013_v10  ;;  %v3014_v40 = vmax.f32 %v4753_v1, %v2816_v43  ;;  %v2853_v60 = vpop.f32.mrf.mxu0  ;;  %v5012_v23 = vmax.f32 %v4518_v53, %v4582_v6  ;;  %v2896_v4 = vpop.f32.mrf.mxu1  ;;  %v5018_v51 = vld [vmem:[#allocation38_spill] sm:$0xff]  ;;  %v5022_v43 = vld [vmem:[#allocation39_spill] sm:$0xff] }
 0x1aa   : > { %v3588_v14 = vpack.c.bf16 %v3072_v45, %v3071_v0  ;;  %v3056_v62 = vadd.f32 %v4756_v34, %v3012_v19  ;;  %v2999_v20 = vmax.f32 %v4759_v18, %v2853_v60  ;;  %v2405_v49 = vmax.f32 %v5013_v63, %v4668_v5  ;;  %v5020_v10 = vld [vmem:[#allocation14_spill] sm:$0xff] }
 0x1ab   : > { %v2403_v27 = vmax.f32 %v5012_v23, %v4658_v44  ;;  %v3589_v38 = vpack.c.bf16 %v3074_v52, %v3073_v59  ;;  %v3058_v1 = vadd.f32 %v4756_v34, %v3014_v40  ;;  %v3001_v32 = vmax.f32 %v4762_v55, %v2896_v4  ;;  %v2855_v33 = vpop.f32.mrf.mxu0  ;;  %v2898_v18 = vpop.f32.mrf.mxu1  ;;  %v5023_v59 = vld [vmem:[#allocation10_spill] sm:$0xff]  ;;  %v5024_v52 = vld [vmem:[#allocation15_spill] sm:$0xff] }
 0x1ac   : > { %3197 = vst [vmem:[%s4790_s21 + $0x10] sm:$0xff] %v3588_v14  ;;  %v3087_v53 = vmax.f32 %v3055_v12, 0.0  ;;  %v3088_v6 = vmax.f32 %v3056_v62, 0.0  ;;  %v3043_v44 = vadd.f32 %v4720_v37, %v2999_v20  ;;  %v3000_v2 = vmax.f32 %v4768_v57, %v2855_v33 }
 0x1ad   : > { %3198 = vst [vmem:[%s4790_s21 + $0x18] sm:$0xff] %v3589_v38  ;;  %v3089_v7 = vmax.f32 %v3057_v16, 0.0  ;;  %v3090_v46 = vmax.f32 %v3058_v1, 0.0  ;;  %v3045_v8 = vadd.f32 %v4720_v37, %v3001_v32  ;;  %v3002_v41 = vmax.f32 %v4771_v36, %v2898_v18  ;;  %v2857_v5 = vpop.f32.mrf.mxu0  ;;  %v2900_v9 = vpop.f32.mrf.mxu1 }
 0x1ae   : > { %v5014_v55 = vmax.f32 %v4975_v29, %v4586_v48  ;;  %v3596_v56 = vpack.c.bf16 %v3088_v6, %v3087_v53  ;;  %v3044_v24 = vadd.f32 %v4720_v37, %v3000_v2  ;;  %v3015_v57 = vmax.f32 %v4780_v13, %v2857_v5  ;;  %v5026_v6 = vld [vmem:[#allocation7_spill] sm:$0xff]  ;;  %v5028_v2 = vld [vmem:[#allocation16_spill] sm:$0xff]  ;;  %v5030_v5 = vld [vmem:[#allocation18_spill] sm:$0xff] }
 0x1af   : > { %v5017_v61 = vmax.f32 %v5015_v47, %v5016_v26  ;;  %v3597_v54 = vpack.c.bf16 %v3090_v46, %v3089_v7  ;;  %v3046_v36 = vadd.f32 %v4720_v37, %v3002_v41  ;;  %v3017_v17 = vmax.f32 %v4787_v50, %v2900_v9  ;;  %v2859_v31 = vpop.f32.mrf.mxu0  ;;  %v2902_v13 = vpop.f32.mrf.mxu1  ;;  %v5019_v50 = vld [vmem:[#allocation9_spill] sm:$0xff] }
 0x1b0   : > { %v2404_v3 = vmax.f32 %v5014_v55, %v4678_v21  ;;  %3205 = vst [vmem:[%s4790_s21 + $0x50] sm:$0xff] %v3596_v56  ;;  %v3075_v48 = vmax.f32 %v3043_v44, 0.0  ;;  %v3076_v21 = vmax.f32 %v3044_v24, 0.0  ;;  %v3059_v29 = vadd.f32 %v4756_v34, %v3015_v57  ;;  %v5027_v44 = vld [vmem:[#allocation11_spill] sm:$0xff]  ;;  %v5031_v55 = vld [vmem:[#allocation12_spill] sm:$0xff] }
 0x1b1   : > { %v2406_v35 = vmax.f32 %v5017_v61, %v4688_v22  ;;  %v3016_v28 = vmax.f32 %v4801_v11, %v2859_v31  ;;  %3206 = vst [vmem:[%s4790_s21 + $0x58] sm:$0xff] %v3597_v54  ;;  %v3077_v30 = vmax.f32 %v3045_v8, 0.0  ;;  %v3078_v58 = vmax.f32 %v3046_v36, 0.0  ;;  %v2939_v25 = vpop.f32.mrf.mxu0  ;;  %v2982_v19 = vpop.f32.mrf.mxu1 }
 0x1b2   : > { %v3061_v22 = vadd.f32 %v4756_v34, %v3017_v17  ;;  %v3018_v15 = vmax.f32 %v4809_v42, %v2902_v13  ;;  %v5021_v39 = vmax.f32 %v5019_v50, %v5020_v10  ;;  %v3590_v45 = vpack.c.bf16 %v3076_v21, %v3075_v48  ;;  %v3235_v10 = vld [vmem:[%s4790_s21 + $0x8] sm:$0xff] (%p3726_p5) }
 0x1b3   : > { %v3060_v12 = vadd.f32 %v4756_v34, %v3016_v28  ;;  %v3003_v11 = vmax.f32 %v2403_v27, %v2939_v25  ;;  %v5025_v16 = vmax.f32 %v5023_v59, %v5024_v52  ;;  %v3591_v60 = vpack.c.bf16 %v3078_v58, %v3077_v30  ;;  %v2941_v14 = vpop.f32.mrf.mxu0  ;;  %v2984_v38 = vpop.f32.mrf.mxu1  ;;  %3236 = vst [vmem:[%s3220_s30 + $0x8] sm:$0xff] (%p3726_p5), %v3235_v10  ;;  %v3251_v59 = vld [vmem:[%s4790_s21 + $0x48] sm:$0xff] (%p3726_p5) }
 0x1b4   : > { %v2419_v0 = vmax.f32 %v5021_v39, %v5018_v51  ;;  %v3062_v42 = vadd.f32 %v4756_v34, %v3018_v15  ;;  %v3005_v23 = vmax.f32 %v2405_v49, %v2982_v19  ;;  %3199 = vst [vmem:[%s4790_s21 + $0x20] sm:$0xff] %v3590_v45  ;;  %v3091_v62 = vmax.f32 %v3059_v29, 0.0  ;;  %v3237_v39 = vld [vmem:[%s4790_s21 + $0x10] sm:$0xff] (%p3726_p5)  ;;  %3252 = vst [vmem:[%s3220_s30 + $0x108] sm:$0xff] (%p3726_p5), %v3251_v59 }
 0x1b5   : > { %v2421_v40 = vmax.f32 %v5025_v16, %v5022_v43  ;;  %v3092_v20 = vmax.f32 %v3060_v12, 0.0  ;;  %v3047_v4 = vadd.f32 %v4720_v37, %v3003_v11  ;;  %v3004_v63 = vmax.f32 %v2404_v3, %v2941_v14  ;;  %3200 = vst [vmem:[%s4790_s21 + $0x28] sm:$0xff] %v3591_v60  ;;  %v2943_v53 = vpop.f32.mrf.mxu0  ;;  %v2986_v41 = vpop.f32.mrf.mxu1  ;;  %v5032_v3 = vld [vmem:[#allocation17_spill] sm:$0xff]  ;;  %3238 = vst [vmem:[%s3220_s30 + $0x10] sm:$0xff] (%p3726_p5), %v3237_v39  ;;  %v3249_v43 = vld [vmem:[%s4790_s21 + $0x40] sm:$0xff] (%p3726_p5) }
 0x1b6   : > { %v3093_v27 = vmax.f32 %v3061_v22, 0.0  ;;  %v3094_v1 = vmax.f32 %v3062_v42, 0.0  ;;  %v3049_v32 = vadd.f32 %v4720_v37, %v3005_v23  ;;  %v3006_v33 = vmax.f32 %v2406_v35, %v2984_v38  ;;  %3250 = vst [vmem:[%s3220_s30 + $0x100] sm:$0xff] (%p3726_p5), %v3249_v43 }
 0x1b7   : > { %v5029_v49 = vmax.f32 %v5027_v44, %v5028_v2  ;;  %v3598_v7 = vpack.c.bf16 %v3092_v20, %v3091_v62  ;;  %v3048_v46 = vadd.f32 %v4720_v37, %v3004_v63  ;;  %v3019_v8 = vmax.f32 %v2419_v0, %v2943_v53  ;;  %v2945_v26 = vpop.f32.mrf.mxu0  ;;  %v2988_v17 = vpop.f32.mrf.mxu1  ;;  %v3239_v0 = vld [vmem:[%s4790_s21 + $0x18] sm:$0xff] (%p3726_p5)  ;;  %v3253_v52 = vld [vmem:[%s4790_s21 + $0x50] sm:$0xff] (%p3726_p5) }
 0x1b8   : > { %v5033_v56 = vmax.f32 %v5031_v55, %v5032_v3  ;;  %v3599_v57 = vpack.c.bf16 %v3094_v1, %v3093_v27  ;;  %v3050_v9 = vadd.f32 %v4720_v37, %v3006_v33  ;;  %v3021_v47 = vmax.f32 %v2421_v40, %v2986_v41  ;;  %3240 = vst [vmem:[%s3220_s30 + $0x18] sm:$0xff] (%p3726_p5), %v3239_v0  ;;  %v3255_v16 = vld [vmem:[%s4790_s21 + $0x58] sm:$0xff] (%p3726_p5) }
 0x1b9   : > { %v2420_v18 = vmax.f32 %v5029_v49, %v5026_v6  ;;  %3207 = vst [vmem:[%s4790_s21 + $0x60] sm:$0xff] %v3598_v7  ;;  %v3079_v61 = vmax.f32 %v3047_v4, 0.0  ;;  %v3080_v35 = vmax.f32 %v3048_v46, 0.0  ;;  %v3063_v54 = vadd.f32 %v4756_v34, %v3019_v8  ;;  %3254 = vst [vmem:[%s3220_s30 + $0x110] sm:$0xff] (%p3726_p5), %v3253_v52 }
 0x1ba   : > { %v2422_v24 = vmax.f32 %v5033_v56, %v5030_v5  ;;  %3208 = vst [vmem:[%s4790_s21 + $0x68] sm:$0xff] %v3599_v57  ;;  %v3081_v31 = vmax.f32 %v3049_v32, 0.0  ;;  %v3082_v48 = vmax.f32 %v3050_v9, 0.0  ;;  %v3065_v21 = vadd.f32 %v4756_v34, %v3021_v47  ;;  %3256 = vst [vmem:[%s3220_s30 + $0x118] sm:$0xff] (%p3726_p5), %v3255_v16 }
 0x1bb   : > { %v3020_v36 = vmax.f32 %v2420_v18, %v2945_v26  ;;  %v3592_v37 = vpack.c.bf16 %v3080_v35, %v3079_v61  ;;  %v3095_v58 = vmax.f32 %v3063_v54, 0.0  ;;  %v3241_v45 = vld [vmem:[%s4790_s21 + $0x20] sm:$0xff] (%p3726_p5) }
 0x1bc   : > { %v3022_v29 = vmax.f32 %v2422_v24, %v2988_v17  ;;  %v3593_v13 = vpack.c.bf16 %v3082_v48, %v3081_v31  ;;  %v3097_v15 = vmax.f32 %v3065_v21, 0.0  ;;  %v3243_v12 = vld [vmem:[%s4790_s21 + $0x28] sm:$0xff] (%p3726_p5)  ;;  %3242 = vst [vmem:[%s3220_s30 + $0x20] sm:$0xff] (%p3726_p5), %v3241_v45 }
 0x1bd   : > { %v3064_v28 = vadd.f32 %v4756_v34, %v3020_v36  ;;  %3201 = vst [vmem:[%s4790_s21 + $0x30] sm:$0xff] %v3592_v37  ;;  %3244 = vst [vmem:[%s3220_s30 + $0x28] sm:$0xff] (%p3726_p5), %v3243_v12 }
 0x1be   : > { %v3066_v30 = vadd.f32 %v4756_v34, %v3022_v29  ;;  %3202 = vst [vmem:[%s4790_s21 + $0x38] sm:$0xff] %v3593_v13  ;;  %v3233_v34 = vld [vmem:[%s4790_s21] sm:$0xff] (%p3726_p5) }
 0x1bf   : > { %v3096_v22 = vmax.f32 %v3064_v28, 0.0  ;;  %3234 = vst [vmem:[%s3220_s30] sm:$0xff] (%p3726_p5), %v3233_v34 }
 0x1c0   : > { %v3098_v25 = vmax.f32 %v3066_v30, 0.0  ;;  %3217 = sbr.rel (!%p3726_p5) target bundleno = 461 (0x1cd), region = 140  ;;  %v3257_v40 = vld [vmem:[%s4790_s21 + $0x60] sm:$0xff] (%p3726_p5) }
 0x1c1   : > { %v3600_v51 = vpack.c.bf16 %v3096_v22, %v3095_v58  ;;  %v3259_v60 = vld [vmem:[%s4790_s21 + $0x68] sm:$0xff] (%p3726_p5)  ;;  %3258 = vst [vmem:[%s3220_s30 + $0x120] sm:$0xff] (%p3726_p5), %v3257_v40 }
 0x1c2   : > { %v3601_v50 = vpack.c.bf16 %v3098_v25, %v3097_v15  ;;  %3260 = vst [vmem:[%s3220_s30 + $0x128] sm:$0xff] (%p3726_p5), %v3259_v60 }
 0x1c3   : > { %3209 = vst [vmem:[%s4790_s21 + $0x70] sm:$0xff] %v3600_v51 }
 0x1c4   : > { %3210 = vst [vmem:[%s4790_s21 + $0x78] sm:$0xff] %v3601_v50  ;;  %v3245_v11 = vld [vmem:[%s4790_s21 + $0x30] sm:$0xff] (%p3726_p5) }
 0x1c5   : > { %v3247_v19 = vld [vmem:[%s4790_s21 + $0x38] sm:$0xff]  ;;  %3246 = vst [vmem:[%s3220_s30 + $0x30] sm:$0xff] %v3245_v11 }
 0x1c6   : > { %3248 = vst [vmem:[%s3220_s30 + $0x38] sm:$0xff] %v3247_v19 }
 0x1ca   : > { %v3261_v42 = vld [vmem:[%s4790_s21 + $0x70] sm:$0xff] }
 0x1cb   : > { %3262 = vst [vmem:[%s3220_s30 + $0x130] sm:$0xff] %v3261_v42  ;;  %v3263_v23 = vld [vmem:[%s4790_s21 + $0x78] sm:$0xff] }
 0x1cc   : > { %3264 = vst [vmem:[%s3220_s30 + $0x138] sm:$0xff] %v3263_v23 }
 0x1cd PF: > { %p13_p10 = scmp.ge.s32.totalorder %s3709_s25, 6   ;;  %s5034_s21 = smov %s3649_s22 }
 0x1ce   : > { %s5035_s22 = smov %s3720_s28  ;;  %s5036_s23 = smov %s3709_s25 }
 0x1cf   :  { %15 = sbr.rel (!%p13_p10) target bundleno = 2 (0x2), region = 218 }

// kernel: fedavg_cnn2_light_forward.4
= control target key start
LH: loop header
LB: loop body
LE: loop exit
PB: predicated region body
PF: predicated region fallthrough
CT: control target
= control target key end

     0   :  { %vm910_vm0 = vcmask 130048   ;;  %s9298_s0 = inlined_call_operand.vmem [shape: bf16[144,2048], index: 0, kind: input, shape index: {}]   ;;  %s9299_s4 = inlined_call_operand.vmem [shape: bf16[32,144], index: 4, kind: input, shape index: {}]   ;;  %s9300_s1 = inlined_call_operand.vmem [shape: bf16[144,2048], index: 1, kind: input, shape index: {}]   ;;  %s9301_s2 = inlined_call_operand.vmem [shape: bf16[144,2048], index: 2, kind: input, shape index: {}]   ;;  %s9302_s5 = inlined_call_operand.vmem [shape: f32[32,1], index: 5, kind: input, shape index: {}]   ;;  %s9303_s3 = inlined_call_operand.vmem [shape: bf16[144,2048], index: 3, kind: input, shape index: {}]   ;;  %s9304_s6 = inlined_call_operand.vmem [shape: bf16[32,2048], index: 6, kind: output, shape index: {}]  }
   0x1   :  { %v140_v0 = vld [vmem:[%s9298_s0 + $0x380] sm:$0xff]  ;;  %v141_v2 = vld [vmem:[%s9298_s0 + $0x388] sm:$0xff] }
   0x2   :  { %v148_v1 = vld [vmem:[%s9298_s0 + $0x3c0] sm:$0xff]  ;;  %v149_v4 = vld [vmem:[%s9298_s0 + $0x3c8] sm:$0xff] }
   0x3   :  { %v5894_v3 = vcombine.high %v140_v0, %v148_v1  ;;  %v5893_v5 = vcombine.low %v140_v0, %v148_v1  ;;  %v124_v6 = vld [vmem:[%s9298_s0 + $0x300] sm:$0xff]  ;;  %v5896_v8 = vcombine.high %v141_v2, %v149_v4  ;;  %v5895_v9 = vcombine.low %v141_v2, %v149_v4  ;;  %v125_v11 = vld [vmem:[%s9298_s0 + $0x308] sm:$0xff] }
   0x4   :  { %v132_v7 = vld [vmem:[%s9298_s0 + $0x340] sm:$0xff]  ;;  %v133_v12 = vld [vmem:[%s9298_s0 + $0x348] sm:$0xff] }
   0x5   :  { %v5878_v10 = vcombine.high %v124_v6, %v132_v7  ;;  %v108_v13 = vld [vmem:[%s9298_s0 + $0x280] sm:$0xff]  ;;  %917 = vmatprep.subr.bf16.mxu0 %v5894_v3  ;;  %v5880_v14 = vcombine.high %v125_v11, %v133_v12  ;;  %v109_v16 = vld [vmem:[%s9298_s0 + $0x288] sm:$0xff]  ;;  %970 = vmatprep.subr.bf16.mxu1 %v5896_v8  ;;  %v5877_v18 = vcombine.low %v124_v6, %v132_v7  ;;  %v142_v7 = vld [vmem:[%s9298_s0 + $0x390] sm:$0xff] }
   0x6   :  { %v116_v15 = vld [vmem:[%s9298_s0 + $0x2c0] sm:$0xff]  ;;  %v117_v17 = vld [vmem:[%s9298_s0 + $0x2c8] sm:$0xff]  ;;  %918 = vmatpush1.bf16.msra.mxu0 %v5893_v5  ;;  %971 = vmatpush1.bf16.msra.mxu1 %v5895_v9  ;;  %v5879_v19 = vcombine.low %v125_v11, %v133_v12  ;;  %v150_v8 = vld [vmem:[%s9298_s0 + $0x3d0] sm:$0xff] }
   0x7   :  { %919 = vmatprep.subr.bf16.mxu0 %v5878_v10  ;;  %v5862_v20 = vcombine.high %v108_v13, %v116_v15  ;;  %972 = vmatprep.subr.bf16.mxu1 %v5880_v14  ;;  %v5864_v21 = vcombine.high %v109_v16, %v117_v17  ;;  %v92_v22 = vld [vmem:[%s9298_s0 + $0x200] sm:$0xff]  ;;  %v93_v24 = vld [vmem:[%s9298_s0 + $0x208] sm:$0xff]  ;;  %v5861_v26 = vcombine.low %v108_v13, %v116_v15  ;;  %v143_v9 = vld [vmem:[%s9298_s0 + $0x398] sm:$0xff] }
   0x8   :  { %v100_v23 = vld [vmem:[%s9298_s0 + $0x240] sm:$0xff]  ;;  %v101_v25 = vld [vmem:[%s9298_s0 + $0x248] sm:$0xff]  ;;  %v5863_v27 = vcombine.low %v109_v16, %v117_v17  ;;  %v151_v10 = vld [vmem:[%s9298_s0 + $0x3d8] sm:$0xff]  ;;  %v5898_v13 = vcombine.high %v142_v7, %v150_v8 }
   0x9   :  { %v5846_v28 = vcombine.high %v92_v22, %v100_v23  ;;  %v5848_v29 = vcombine.high %v93_v24, %v101_v25  ;;  %v76_v30 = vld [vmem:[%s9298_s0 + $0x180] sm:$0xff]  ;;  %v77_v32 = vld [vmem:[%s9298_s0 + $0x188] sm:$0xff]  ;;  %v5845_v34 = vcombine.low %v92_v22, %v100_v23  ;;  %v5847_v36 = vcombine.low %v93_v24, %v101_v25  ;;  %v126_v15 = vld [vmem:[%s9298_s0 + $0x310] sm:$0xff] }
   0xa   :  { %920 = vmatpush1.bf16.msra.mxu0 %v5877_v18  ;;  %973 = vmatpush1.bf16.msra.mxu1 %v5879_v19  ;;  %v84_v31 = vld [vmem:[%s9298_s0 + $0x1c0] sm:$0xff]  ;;  %v85_v33 = vld [vmem:[%s9298_s0 + $0x1c8] sm:$0xff]  ;;  %v5900_v14 = vcombine.high %v143_v9, %v151_v10  ;;  %v134_v16 = vld [vmem:[%s9298_s0 + $0x350] sm:$0xff] }
   0xb   :  { %921 = vmatprep.subr.bf16.mxu0 %v5862_v20  ;;  %974 = vmatprep.subr.bf16.mxu1 %v5864_v21  ;;  %v6605_v35 = vld [vmem:[%s9299_s4 + $0x4] ss:$8 sps:$4 sm:$0xff]   ;;  %v5830_v37 = vcombine.high %v76_v30, %v84_v31  ;;  %v5832_v38 = vcombine.high %v77_v32, %v85_v33  ;;  %v5829_v43 = vcombine.low %v76_v30, %v84_v31  ;;  %v6680_v17 = vld [vmem:[%s9299_s4] ss:$8 sps:$4 sm:$0xff]   ;;  %v127_v18 = vld [vmem:[%s9298_s0 + $0x318] sm:$0xff] }
   0xc   :  { %v60_v39 = vld [vmem:[%s9298_s0 + $0x100] sm:$0xff]  ;;  %5925 = vmatprep.mubr.msk.bf16.mxu0 %vm910_vm0, %v6605_v35  ;;  %v61_v41 = vld [vmem:[%s9298_s0 + $0x108] sm:$0xff]  ;;  %5927 = vmatprep.mubr.msk.bf16.mxu1 %vm910_vm0, %v6605_v35  ;;  %v5831_v44 = vcombine.low %v77_v32, %v85_v33  ;;  %v135_v19 = vld [vmem:[%s9298_s0 + $0x358] sm:$0xff]  ;;  %v5897_v20 = vcombine.low %v142_v7, %v150_v8  ;;  %v5899_v21 = vcombine.low %v143_v9, %v151_v10 }
   0xd   :  { %v68_v40 = vld [vmem:[%s9298_s0 + $0x140] sm:$0xff]  ;;  %v69_v42 = vld [vmem:[%s9298_s0 + $0x148] sm:$0xff]  ;;  %v5882_v22 = vcombine.high %v126_v15, %v134_v16  ;;  %v5884_v23 = vcombine.high %v127_v18, %v135_v19  ;;  %v110_v24 = vld [vmem:[%s9298_s0 + $0x290] sm:$0xff]  ;;  %v5883_v30 = vcombine.low %v127_v18, %v135_v19 }
   0xe   :  { %922 = vmatpush1.bf16.msra.mxu0 %v5861_v26  ;;  %975 = vmatpush1.bf16.msra.mxu1 %v5863_v27  ;;  %v5814_v45 = vcombine.high %v60_v39, %v68_v40  ;;  %v5816_v46 = vcombine.high %v61_v41, %v69_v42  ;;  %v44_v47 = vld [vmem:[%s9298_s0 + $0x80] sm:$0xff]  ;;  %v45_v49 = vld [vmem:[%s9298_s0 + $0x88] sm:$0xff]  ;;  %v5813_v51 = vcombine.low %v60_v39, %v68_v40  ;;  %v118_v25 = vld [vmem:[%s9298_s0 + $0x2d0] sm:$0xff] }
   0xf   :  { %923 = vmatprep.subr.bf16.mxu0 %v5846_v28  ;;  %976 = vmatprep.subr.bf16.mxu1 %v5848_v29  ;;  %v52_v48 = vld [vmem:[%s9298_s0 + $0xc0] sm:$0xff]  ;;  %v53_v50 = vld [vmem:[%s9298_s0 + $0xc8] sm:$0xff]  ;;  %v5815_v52 = vcombine.low %v61_v41, %v69_v42  ;;  %v6697_v26 = vld [vmem:[%s9299_s4 + $0x14] ss:$8 sps:$4 sm:$0xff]   ;;  %v5881_v29 = vcombine.low %v126_v15, %v134_v16  ;;  %v5866_v31 = vcombine.high %v110_v24, %v118_v25 }
  0x10   :  { %v5798_v53 = vcombine.high %v44_v47, %v52_v48  ;;  %v5800_v54 = vcombine.high %v45_v49, %v53_v50  ;;  %v28_v55 = vld [vmem:[%s9298_s0] sm:$0xff]  ;;  %v29_v57 = vld [vmem:[%s9298_s0 + $0x8] sm:$0xff]  ;;  %v5797_v59 = vcombine.low %v44_v47, %v52_v48  ;;  %v5799_v60 = vcombine.low %v45_v49, %v53_v50  ;;  %v111_v27 = vld [vmem:[%s9298_s0 + $0x298] sm:$0xff] }
  0x11   :  { %v36_v56 = vld [vmem:[%s9298_s0 + $0x40] sm:$0xff]  ;;  %v37_v58 = vld [vmem:[%s9298_s0 + $0x48] sm:$0xff]  ;;  %v119_v28 = vld [vmem:[%s9298_s0 + $0x2d8] sm:$0xff]  ;;  %v5865_v39 = vcombine.low %v110_v24, %v118_v25 }
  0x12   :  { %924 = vmatpush1.bf16.msra.mxu0 %v5845_v34  ;;  %977 = vmatpush1.bf16.msra.mxu1 %v5847_v36  ;;  %v5782_v61 = vcombine.high %v28_v55, %v36_v56  ;;  %v5784_v62 = vcombine.high %v29_v57, %v37_v58  ;;  %v156_v63 = vld [vmem:[%s9298_s0 + $0x400] sm:$0xff]  ;;  %v157_v1 = vld [vmem:[%s9298_s0 + $0x408] sm:$0xff]  ;;  %v5781_v3 = vcombine.low %v28_v55, %v36_v56  ;;  %v94_v33 = vld [vmem:[%s9298_s0 + $0x210] sm:$0xff] }
  0x13   :  { %925 = vmatprep.subr.bf16.mxu0 %v5830_v37  ;;  %978 = vmatprep.subr.bf16.mxu1 %v5832_v38  ;;  %v164_v0 = vld [vmem:[%s9298_s0 + $0x440] sm:$0xff]  ;;  %v165_v2 = vld [vmem:[%s9298_s0 + $0x448] sm:$0xff]  ;;  %v5783_v4 = vcombine.low %v29_v57, %v37_v58  ;;  %v5868_v32 = vcombine.high %v111_v27, %v119_v28  ;;  %v102_v34 = vld [vmem:[%s9298_s0 + $0x250] sm:$0xff]  ;;  %v5867_v40 = vcombine.low %v111_v27, %v119_v28 }
  0x14   :  { %v5910_v5 = vcombine.high %v156_v63, %v164_v0  ;;  %v5912_v6 = vcombine.high %v157_v1, %v165_v2  ;;  %v5909_v11 = vcombine.low %v156_v63, %v164_v0  ;;  %v5911_v12 = vcombine.low %v157_v1, %v165_v2  ;;  %v95_v36 = vld [vmem:[%s9298_s0 + $0x218] sm:$0xff] }
  0x15   :  { %v103_v37 = vld [vmem:[%s9298_s0 + $0x258] sm:$0xff]  ;;  %v5850_v41 = vcombine.high %v94_v33, %v102_v34  ;;  %v5849_v47 = vcombine.low %v94_v33, %v102_v34 }
  0x16   :  { %926 = vmatpush1.bf16.msra.mxu0 %v5829_v43  ;;  %979 = vmatpush1.bf16.msra.mxu1 %v5831_v44  ;;  %v6726_v38 = vld [vmem:[%s9299_s4 + $0x10] ss:$8 sps:$4 sm:$0xff]   ;;  %v5852_v42 = vcombine.high %v95_v36, %v103_v37  ;;  %v5851_v48 = vcombine.low %v95_v36, %v103_v37 }
  0x17   :  { %927 = vmatprep.subr.bf16.mxu0 %v5814_v45  ;;  %980 = vmatprep.subr.bf16.mxu1 %v5816_v46  ;;  %v78_v43 = vld [vmem:[%s9298_s0 + $0x190] sm:$0xff]  ;;  %v79_v45 = vld [vmem:[%s9298_s0 + $0x198] sm:$0xff] }
  0x18   :  { %v86_v44 = vld [vmem:[%s9298_s0 + $0x1d0] sm:$0xff]  ;;  %v87_v46 = vld [vmem:[%s9298_s0 + $0x1d8] sm:$0xff] }
  0x19   :  { %v5834_v49 = vcombine.high %v78_v43, %v86_v44  ;;  %v5836_v50 = vcombine.high %v79_v45, %v87_v46  ;;  %v5833_v55 = vcombine.low %v78_v43, %v86_v44  ;;  %v5835_v56 = vcombine.low %v79_v45, %v87_v46 }
  0x1a   :  { %928 = vmatpush1.bf16.msra.mxu0 %v5813_v51  ;;  %981 = vmatpush1.bf16.msra.mxu1 %v5815_v52  ;;  %v62_v51 = vld [vmem:[%s9298_s0 + $0x110] sm:$0xff] }
  0x1b   :  { %929 = vmatprep.subr.bf16.mxu0 %v5798_v53  ;;  %982 = vmatprep.subr.bf16.mxu1 %v5800_v54  ;;  %v70_v52 = vld [vmem:[%s9298_s0 + $0x150] sm:$0xff]  ;;  %v63_v53 = vld [vmem:[%s9298_s0 + $0x118] sm:$0xff] }
  0x1c   :  { %v71_v54 = vld [vmem:[%s9298_s0 + $0x158] sm:$0xff]  ;;  %v5818_v57 = vcombine.high %v62_v51, %v70_v52  ;;  %v5817_v63 = vcombine.low %v62_v51, %v70_v52 }
  0x1d   :  { %v5820_v58 = vcombine.high %v63_v53, %v71_v54  ;;  %v5819_v0 = vcombine.low %v63_v53, %v71_v54 }
  0x1e   :  { %930 = vmatpush1.bf16.msra.mxu0 %v5797_v59  ;;  %983 = vmatpush1.bf16.msra.mxu1 %v5799_v60  ;;  %v46_v59 = vld [vmem:[%s9298_s0 + $0x90] sm:$0xff] }
  0x1f   :  { %931 = vmatprep.subr.bf16.mxu0 %v5782_v61  ;;  %984 = vmatprep.subr.bf16.mxu1 %v5784_v62  ;;  %v54_v60 = vld [vmem:[%s9298_s0 + $0xd0] sm:$0xff]  ;;  %v47_v61 = vld [vmem:[%s9298_s0 + $0x98] sm:$0xff] }
  0x20   :  { %v55_v62 = vld [vmem:[%s9298_s0 + $0xd8] sm:$0xff]  ;;  %v5802_v1 = vcombine.high %v46_v59, %v54_v60  ;;  %v5801_v7 = vcombine.low %v46_v59, %v54_v60 }
  0x21   :  { %v5804_v2 = vcombine.high %v47_v61, %v55_v62  ;;  %v5803_v8 = vcombine.low %v47_v61, %v55_v62 }
  0x22   :  { %932 = vmatpush1.bf16.msra.mxu0 %v5781_v3  ;;  %985 = vmatpush1.bf16.msra.mxu1 %v5783_v4  ;;  %v30_v3 = vld [vmem:[%s9298_s0 + $0x10] sm:$0xff] }
  0x23   :  { %947 = vmatprep.subr.bf16.mxu0 %v5910_v5  ;;  %1000 = vmatprep.subr.bf16.mxu1 %v5912_v6  ;;  %v38_v4 = vld [vmem:[%s9298_s0 + $0x50] sm:$0xff]  ;;  %v31_v5 = vld [vmem:[%s9298_s0 + $0x18] sm:$0xff] }
  0x24   :  { %v39_v6 = vld [vmem:[%s9298_s0 + $0x58] sm:$0xff]  ;;  %v5786_v9 = vcombine.high %v30_v3, %v38_v4  ;;  %v5785_v15 = vcombine.low %v30_v3, %v38_v4 }
  0x25   :  { %v5788_v10 = vcombine.high %v31_v5, %v39_v6  ;;  %v5787_v16 = vcombine.low %v31_v5, %v39_v6 }
  0x26   :  { %948 = vmatpush2.bf16.msra.mxu0 %v5909_v11  ;;  %1001 = vmatpush2.bf16.msra.mxu1 %v5911_v12  ;;  %v158_v11 = vld [vmem:[%s9298_s0 + $0x410] sm:$0xff] }
  0x27   :  { %1023 = vmatprep.subr.bf16.mxu0 %v5898_v13  ;;  %1076 = vmatprep.subr.bf16.mxu1 %v5900_v14  ;;  %v166_v12 = vld [vmem:[%s9298_s0 + $0x450] sm:$0xff]  ;;  %v159_v13 = vld [vmem:[%s9298_s0 + $0x418] sm:$0xff] }
  0x28   :  { %v167_v14 = vld [vmem:[%s9298_s0 + $0x458] sm:$0xff]  ;;  %v5914_v18 = vcombine.high %v158_v11, %v166_v12  ;;  %v5913_v24 = vcombine.low %v158_v11, %v166_v12 }
  0x29   :  { %950 = vmatmul.mubr.bf16.vlgmr.msra.gmra.mxu0 %v6680_v17  ;;  %1003 = vmatmul.mubr.bf16.vlgmr.msra.gmra.mxu1 %v6680_v17  ;;  %v5916_v19 = vcombine.high %v159_v13, %v167_v14  ;;  %v5915_v25 = vcombine.low %v159_v13, %v167_v14 }
  0x2a   :  { %1024 = vmatpush1.bf16.msra.mxu0 %v5897_v20  ;;  %1077 = vmatpush1.bf16.msra.mxu1 %v5899_v21  ;;  %v144_v20 = vld [vmem:[%s9298_s0 + $0x3a0] sm:$0xff] }
  0x2b   :  { %1025 = vmatprep.subr.bf16.mxu0 %v5882_v22  ;;  %1078 = vmatprep.subr.bf16.mxu1 %v5884_v23  ;;  %v152_v21 = vld [vmem:[%s9298_s0 + $0x3e0] sm:$0xff]  ;;  %v145_v22 = vld [vmem:[%s9298_s0 + $0x3a8] sm:$0xff] }
  0x2c   :  { %5926 = vmatprep.mubr.msk.bf16.mxu0 %vm910_vm0, %v6697_v26  ;;  %5928 = vmatprep.mubr.msk.bf16.mxu1 %vm910_vm0, %v6697_v26  ;;  %v153_v23 = vld [vmem:[%s9298_s0 + $0x3e8] sm:$0xff]  ;;  %v5902_v27 = vcombine.high %v144_v20, %v152_v21  ;;  %v5901_v33 = vcombine.low %v144_v20, %v152_v21 }
  0x2d   :  { %v5904_v28 = vcombine.high %v145_v22, %v153_v23  ;;  %v5903_v34 = vcombine.low %v145_v22, %v153_v23 }
  0x2e   :  { %1026 = vmatpush1.bf16.msra.mxu0 %v5881_v29  ;;  %1079 = vmatpush1.bf16.msra.mxu1 %v5883_v30  ;;  %v128_v29 = vld [vmem:[%s9298_s0 + $0x320] sm:$0xff] }
  0x2f   :  { %1027 = vmatprep.subr.bf16.mxu0 %v5866_v31  ;;  %1080 = vmatprep.subr.bf16.mxu1 %v5868_v32  ;;  %v136_v30 = vld [vmem:[%s9298_s0 + $0x360] sm:$0xff]  ;;  %v129_v31 = vld [vmem:[%s9298_s0 + $0x328] sm:$0xff] }
  0x30   :  { %v137_v32 = vld [vmem:[%s9298_s0 + $0x368] sm:$0xff]  ;;  %v5886_v36 = vcombine.high %v128_v29, %v136_v30  ;;  %v5885_v43 = vcombine.low %v128_v29, %v136_v30 }
  0x31   :  { %960 = vmatmul.mubr.bf16.gmra.mxu0 %v6726_v38  ;;  %1013 = vmatmul.mubr.bf16.gmra.mxu1 %v6726_v38  ;;  %v5888_v37 = vcombine.high %v129_v31, %v137_v32  ;;  %v5887_v44 = vcombine.low %v129_v31, %v137_v32 }
  0x32   :  { %1028 = vmatpush1.bf16.msra.mxu0 %v5865_v39  ;;  %1081 = vmatpush1.bf16.msra.mxu1 %v5867_v40  ;;  %v112_v39 = vld [vmem:[%s9298_s0 + $0x2a0] sm:$0xff] }
  0x33   :  { %1029 = vmatprep.subr.bf16.mxu0 %v5850_v41  ;;  %1082 = vmatprep.subr.bf16.mxu1 %v5852_v42  ;;  %v120_v40 = vld [vmem:[%s9298_s0 + $0x2e0] sm:$0xff]  ;;  %v113_v41 = vld [vmem:[%s9298_s0 + $0x2a8] sm:$0xff] }
  0x34   :  { %5929 = vmatprep.mubr.msk.bf16.mxu0 %vm910_vm0, %v6605_v35  ;;  %5931 = vmatprep.mubr.msk.bf16.mxu1 %vm910_vm0, %v6605_v35  ;;  %v121_v42 = vld [vmem:[%s9298_s0 + $0x2e8] sm:$0xff]  ;;  %v5870_v45 = vcombine.high %v112_v39, %v120_v40  ;;  %v5869_v51 = vcombine.low %v112_v39, %v120_v40 }
  0x35   :  { %v5872_v46 = vcombine.high %v113_v41, %v121_v42  ;;  %v5871_v52 = vcombine.low %v113_v41, %v121_v42 }
  0x36   :  { %1030 = vmatpush1.bf16.msra.mxu0 %v5849_v47  ;;  %1083 = vmatpush1.bf16.msra.mxu1 %v5851_v48  ;;  %v96_v47 = vld [vmem:[%s9298_s0 + $0x220] sm:$0xff] }
  0x37   :  { %1031 = vmatprep.subr.bf16.mxu0 %v5834_v49  ;;  %1084 = vmatprep.subr.bf16.mxu1 %v5836_v50  ;;  %v104_v48 = vld [vmem:[%s9298_s0 + $0x260] sm:$0xff]  ;;  %v97_v49 = vld [vmem:[%s9298_s0 + $0x228] sm:$0xff] }
  0x38   :  { %v105_v50 = vld [vmem:[%s9298_s0 + $0x268] sm:$0xff]  ;;  %v5854_v53 = vcombine.high %v96_v47, %v104_v48  ;;  %v5853_v59 = vcombine.low %v96_v47, %v104_v48 }
  0x39   :  { %v5856_v54 = vcombine.high %v97_v49, %v105_v50  ;;  %v5855_v60 = vcombine.low %v97_v49, %v105_v50 }
  0x3a   :  { %1032 = vmatpush1.bf16.msra.mxu0 %v5833_v55  ;;  %1085 = vmatpush1.bf16.msra.mxu1 %v5835_v56  ;;  %v80_v55 = vld [vmem:[%s9298_s0 + $0x1a0] sm:$0xff] }
  0x3b   :  { %1033 = vmatprep.subr.bf16.mxu0 %v5818_v57  ;;  %1086 = vmatprep.subr.bf16.mxu1 %v5820_v58  ;;  %v88_v56 = vld [vmem:[%s9298_s0 + $0x1e0] sm:$0xff]  ;;  %v81_v57 = vld [vmem:[%s9298_s0 + $0x1a8] sm:$0xff] }
  0x3c   :  { %v89_v58 = vld [vmem:[%s9298_s0 + $0x1e8] sm:$0xff]  ;;  %v5838_v61 = vcombine.high %v80_v55, %v88_v56  ;;  %v5837_v3 = vcombine.low %v80_v55, %v88_v56 }
  0x3d   :  { %v5840_v62 = vcombine.high %v81_v57, %v89_v58  ;;  %v5839_v4 = vcombine.low %v81_v57, %v89_v58 }
  0x3e   :  { %1034 = vmatpush1.bf16.msra.mxu0 %v5817_v63  ;;  %1087 = vmatpush1.bf16.msra.mxu1 %v5819_v0  ;;  %v64_v63 = vld [vmem:[%s9298_s0 + $0x120] sm:$0xff] }
  0x3f   :  { %1035 = vmatprep.subr.bf16.mxu0 %v5802_v1  ;;  %1088 = vmatprep.subr.bf16.mxu1 %v5804_v2  ;;  %v72_v0 = vld [vmem:[%s9298_s0 + $0x160] sm:$0xff]  ;;  %v65_v1 = vld [vmem:[%s9298_s0 + $0x128] sm:$0xff] }
  0x40   :  { %v73_v2 = vld [vmem:[%s9298_s0 + $0x168] sm:$0xff]  ;;  %v5822_v5 = vcombine.high %v64_v63, %v72_v0  ;;  %v5821_v11 = vcombine.low %v64_v63, %v72_v0 }
  0x41   :  { %v5824_v6 = vcombine.high %v65_v1, %v73_v2  ;;  %v5823_v12 = vcombine.low %v65_v1, %v73_v2 }
  0x42   :  { %1036 = vmatpush1.bf16.msra.mxu0 %v5801_v7  ;;  %1089 = vmatpush1.bf16.msra.mxu1 %v5803_v8  ;;  %v48_v7 = vld [vmem:[%s9298_s0 + $0xa0] sm:$0xff] }
  0x43   :  { %1037 = vmatprep.subr.bf16.mxu0 %v5786_v9  ;;  %1090 = vmatprep.subr.bf16.mxu1 %v5788_v10  ;;  %v56_v8 = vld [vmem:[%s9298_s0 + $0xe0] sm:$0xff]  ;;  %v49_v9 = vld [vmem:[%s9298_s0 + $0xa8] sm:$0xff] }
  0x44   :  { %v57_v10 = vld [vmem:[%s9298_s0 + $0xe8] sm:$0xff]  ;;  %v5806_v13 = vcombine.high %v48_v7, %v56_v8  ;;  %v5805_v20 = vcombine.low %v48_v7, %v56_v8 }
  0x45   :  { %v5808_v14 = vcombine.high %v49_v9, %v57_v10  ;;  %v5807_v21 = vcombine.low %v49_v9, %v57_v10 }
  0x46   :  { %1038 = vmatpush1.bf16.msra.mxu0 %v5785_v15  ;;  %1091 = vmatpush1.bf16.msra.mxu1 %v5787_v16  ;;  %v32_v15 = vld [vmem:[%s9298_s0 + $0x20] sm:$0xff] }
  0x47   :  { %1053 = vmatprep.subr.bf16.mxu0 %v5914_v18  ;;  %1106 = vmatprep.subr.bf16.mxu1 %v5916_v19  ;;  %v40_v16 = vld [vmem:[%s9298_s0 + $0x60] sm:$0xff]  ;;  %v33_v18 = vld [vmem:[%s9298_s0 + $0x28] sm:$0xff] }
  0x48   :  { %v41_v19 = vld [vmem:[%s9298_s0 + $0x68] sm:$0xff]  ;;  %v5790_v22 = vcombine.high %v32_v15, %v40_v16  ;;  %v5789_v29 = vcombine.low %v32_v15, %v40_v16 }
  0x49   :  { %v5792_v23 = vcombine.high %v33_v18, %v41_v19  ;;  %v5791_v30 = vcombine.low %v33_v18, %v41_v19 }
  0x4a   :  { %1054 = vmatpush2.bf16.msra.mxu0 %v5913_v24  ;;  %1107 = vmatpush2.bf16.msra.mxu1 %v5915_v25  ;;  %v160_v24 = vld [vmem:[%s9298_s0 + $0x420] sm:$0xff] }
  0x4b   :  { %1129 = vmatprep.subr.bf16.mxu0 %v5902_v27  ;;  %1182 = vmatprep.subr.bf16.mxu1 %v5904_v28  ;;  %v168_v25 = vld [vmem:[%s9298_s0 + $0x460] sm:$0xff]  ;;  %v161_v27 = vld [vmem:[%s9298_s0 + $0x428] sm:$0xff] }
  0x4c   :  { %v169_v28 = vld [vmem:[%s9298_s0 + $0x468] sm:$0xff]  ;;  %v5918_v31 = vcombine.high %v160_v24, %v168_v25  ;;  %v5917_v39 = vcombine.low %v160_v24, %v168_v25 }
  0x4d   :  { %1056 = vmatmul.mubr.bf16.vlgmr.msra.gmra.mxu0 %v6680_v17  ;;  %1109 = vmatmul.mubr.bf16.vlgmr.msra.gmra.mxu1 %v6680_v17  ;;  %v5920_v32 = vcombine.high %v161_v27, %v169_v28  ;;  %v5919_v40 = vcombine.low %v161_v27, %v169_v28 }
  0x4e   :  { %1130 = vmatpush1.bf16.msra.mxu0 %v5901_v33  ;;  %1183 = vmatpush1.bf16.msra.mxu1 %v5903_v34  ;;  %v146_v33 = vld [vmem:[%s9298_s0 + $0x3b0] sm:$0xff] }
  0x4f   :  { %1131 = vmatprep.subr.bf16.mxu0 %v5886_v36  ;;  %1184 = vmatprep.subr.bf16.mxu1 %v5888_v37  ;;  %v154_v34 = vld [vmem:[%s9298_s0 + $0x3f0] sm:$0xff]  ;;  %v147_v36 = vld [vmem:[%s9298_s0 + $0x3b8] sm:$0xff] }
  0x50   :  { %5930 = vmatprep.mubr.msk.bf16.mxu0 %vm910_vm0, %v6697_v26  ;;  %5932 = vmatprep.mubr.msk.bf16.mxu1 %vm910_vm0, %v6697_v26  ;;  %v155_v37 = vld [vmem:[%s9298_s0 + $0x3f8] sm:$0xff]  ;;  %v5906_v41 = vcombine.high %v146_v33, %v154_v34  ;;  %v5905_v47 = vcombine.low %v146_v33, %v154_v34 }
  0x51   :  { %v5908_v42 = vcombine.high %v147_v36, %v155_v37  ;;  %v5907_v48 = vcombine.low %v147_v36, %v155_v37 }
  0x52   :  { %1132 = vmatpush1.bf16.msra.mxu0 %v5885_v43  ;;  %1185 = vmatpush1.bf16.msra.mxu1 %v5887_v44  ;;  %v130_v43 = vld [vmem:[%s9298_s0 + $0x330] sm:$0xff] }
  0x53   :  { %1133 = vmatprep.subr.bf16.mxu0 %v5870_v45  ;;  %1186 = vmatprep.subr.bf16.mxu1 %v5872_v46  ;;  %v138_v44 = vld [vmem:[%s9298_s0 + $0x370] sm:$0xff]  ;;  %v131_v45 = vld [vmem:[%s9298_s0 + $0x338] sm:$0xff] }
  0x54   :  { %v139_v46 = vld [vmem:[%s9298_s0 + $0x378] sm:$0xff]  ;;  %v5890_v49 = vcombine.high %v130_v43, %v138_v44  ;;  %v5889_v55 = vcombine.low %v130_v43, %v138_v44 }
  0x55   :  { %1066 = vmatmul.mubr.bf16.gmra.mxu0 %v6726_v38  ;;  %1119 = vmatmul.mubr.bf16.gmra.mxu1 %v6726_v38  ;;  %v5892_v50 = vcombine.high %v131_v45, %v139_v46  ;;  %v5891_v56 = vcombine.low %v131_v45, %v139_v46 }
  0x56   :  { %1134 = vmatpush1.bf16.msra.mxu0 %v5869_v51  ;;  %1187 = vmatpush1.bf16.msra.mxu1 %v5871_v52  ;;  %v114_v51 = vld [vmem:[%s9298_s0 + $0x2b0] sm:$0xff] }
  0x57   :  { %1135 = vmatprep.subr.bf16.mxu0 %v5854_v53  ;;  %1188 = vmatprep.subr.bf16.mxu1 %v5856_v54  ;;  %v122_v52 = vld [vmem:[%s9298_s0 + $0x2f0] sm:$0xff]  ;;  %v115_v53 = vld [vmem:[%s9298_s0 + $0x2b8] sm:$0xff] }
  0x58   :  { %5933 = vmatprep.mubr.msk.bf16.mxu0 %vm910_vm0, %v6605_v35  ;;  %5935 = vmatprep.mubr.msk.bf16.mxu1 %vm910_vm0, %v6605_v35  ;;  %v123_v54 = vld [vmem:[%s9298_s0 + $0x2f8] sm:$0xff]  ;;  %v5874_v57 = vcombine.high %v114_v51, %v122_v52  ;;  %v5873_v63 = vcombine.low %v114_v51, %v122_v52 }
  0x59   :  { %v5876_v58 = vcombine.high %v115_v53, %v123_v54  ;;  %v5875_v0 = vcombine.low %v115_v53, %v123_v54 }
  0x5a   :  { %1136 = vmatpush1.bf16.msra.mxu0 %v5853_v59  ;;  %1189 = vmatpush1.bf16.msra.mxu1 %v5855_v60  ;;  %v98_v59 = vld [vmem:[%s9298_s0 + $0x230] sm:$0xff] }
  0x5b   :  { %1137 = vmatprep.subr.bf16.mxu0 %v5838_v61  ;;  %1190 = vmatprep.subr.bf16.mxu1 %v5840_v62  ;;  %v106_v60 = vld [vmem:[%s9298_s0 + $0x270] sm:$0xff]  ;;  %v99_v61 = vld [vmem:[%s9298_s0 + $0x238] sm:$0xff] }
  0x5c   :  { %v107_v62 = vld [vmem:[%s9298_s0 + $0x278] sm:$0xff]  ;;  %v5858_v1 = vcombine.high %v98_v59, %v106_v60  ;;  %v5857_v7 = vcombine.low %v98_v59, %v106_v60 }
  0x5d   :  { %v5860_v2 = vcombine.high %v99_v61, %v107_v62  ;;  %v5859_v8 = vcombine.low %v99_v61, %v107_v62 }
  0x5e   :  { %1138 = vmatpush1.bf16.msra.mxu0 %v5837_v3  ;;  %1191 = vmatpush1.bf16.msra.mxu1 %v5839_v4  ;;  %v82_v3 = vld [vmem:[%s9298_s0 + $0x1b0] sm:$0xff] }
  0x5f   :  { %1139 = vmatprep.subr.bf16.mxu0 %v5822_v5  ;;  %1192 = vmatprep.subr.bf16.mxu1 %v5824_v6  ;;  %v90_v4 = vld [vmem:[%s9298_s0 + $0x1f0] sm:$0xff]  ;;  %v83_v5 = vld [vmem:[%s9298_s0 + $0x1b8] sm:$0xff] }
  0x60   :  { %v91_v6 = vld [vmem:[%s9298_s0 + $0x1f8] sm:$0xff]  ;;  %v5842_v9 = vcombine.high %v82_v3, %v90_v4  ;;  %v5841_v15 = vcombine.low %v82_v3, %v90_v4 }
  0x61   :  { %v5844_v10 = vcombine.high %v83_v5, %v91_v6  ;;  %v5843_v16 = vcombine.low %v83_v5, %v91_v6 }
  0x62   :  { %1140 = vmatpush1.bf16.msra.mxu0 %v5821_v11  ;;  %1193 = vmatpush1.bf16.msra.mxu1 %v5823_v12  ;;  %v66_v11 = vld [vmem:[%s9298_s0 + $0x130] sm:$0xff] }
  0x63   :  { %1141 = vmatprep.subr.bf16.mxu0 %v5806_v13  ;;  %1194 = vmatprep.subr.bf16.mxu1 %v5808_v14  ;;  %v74_v12 = vld [vmem:[%s9298_s0 + $0x170] sm:$0xff]  ;;  %v67_v13 = vld [vmem:[%s9298_s0 + $0x138] sm:$0xff] }
  0x64   :  { %v75_v14 = vld [vmem:[%s9298_s0 + $0x178] sm:$0xff]  ;;  %v5826_v18 = vcombine.high %v66_v11, %v74_v12  ;;  %v5825_v24 = vcombine.low %v66_v11, %v74_v12 }
  0x65   :  { %v5828_v19 = vcombine.high %v67_v13, %v75_v14  ;;  %v5827_v25 = vcombine.low %v67_v13, %v75_v14 }
  0x66   :  { %1142 = vmatpush1.bf16.msra.mxu0 %v5805_v20  ;;  %1195 = vmatpush1.bf16.msra.mxu1 %v5807_v21  ;;  %v50_v20 = vld [vmem:[%s9298_s0 + $0xb0] sm:$0xff] }
  0x67   :  { %1143 = vmatprep.subr.bf16.mxu0 %v5790_v22  ;;  %1196 = vmatprep.subr.bf16.mxu1 %v5792_v23  ;;  %v58_v21 = vld [vmem:[%s9298_s0 + $0xf0] sm:$0xff]  ;;  %v51_v22 = vld [vmem:[%s9298_s0 + $0xb8] sm:$0xff] }
  0x68   :  { %v59_v23 = vld [vmem:[%s9298_s0 + $0xf8] sm:$0xff]  ;;  %v5810_v27 = vcombine.high %v50_v20, %v58_v21  ;;  %v5809_v33 = vcombine.low %v50_v20, %v58_v21 }
  0x69   :  { %v5812_v28 = vcombine.high %v51_v22, %v59_v23  ;;  %v5811_v34 = vcombine.low %v51_v22, %v59_v23 }
  0x6a   :  { %1144 = vmatpush1.bf16.msra.mxu0 %v5789_v29  ;;  %1197 = vmatpush1.bf16.msra.mxu1 %v5791_v30  ;;  %v34_v29 = vld [vmem:[%s9298_s0 + $0x30] sm:$0xff] }
  0x6b   :  { %1159 = vmatprep.subr.bf16.mxu0 %v5918_v31  ;;  %1212 = vmatprep.subr.bf16.mxu1 %v5920_v32  ;;  %v42_v30 = vld [vmem:[%s9298_s0 + $0x70] sm:$0xff]  ;;  %v35_v31 = vld [vmem:[%s9298_s0 + $0x38] sm:$0xff] }
  0x6c   :  { %v43_v32 = vld [vmem:[%s9298_s0 + $0x78] sm:$0xff]  ;;  %v5794_v36 = vcombine.high %v34_v29, %v42_v30  ;;  %v5793_v43 = vcombine.low %v34_v29, %v42_v30 }
  0x6d   :  { %v5796_v37 = vcombine.high %v35_v31, %v43_v32  ;;  %v5795_v44 = vcombine.low %v35_v31, %v43_v32 }
  0x6e   :  { %1160 = vmatpush2.bf16.msra.mxu0 %v5917_v39  ;;  %1213 = vmatpush2.bf16.msra.mxu1 %v5919_v40  ;;  %v162_v39 = vld [vmem:[%s9298_s0 + $0x430] sm:$0xff] }
  0x6f   :  { %1235 = vmatprep.subr.bf16.mxu0 %v5906_v41  ;;  %1288 = vmatprep.subr.bf16.mxu1 %v5908_v42  ;;  %v170_v40 = vld [vmem:[%s9298_s0 + $0x470] sm:$0xff]  ;;  %v163_v41 = vld [vmem:[%s9298_s0 + $0x438] sm:$0xff] }
  0x70   :  { %v171_v42 = vld [vmem:[%s9298_s0 + $0x478] sm:$0xff]  ;;  %v5922_v45 = vcombine.high %v162_v39, %v170_v40  ;;  %v5921_v51 = vcombine.low %v162_v39, %v170_v40 }
  0x71   :  { %1162 = vmatmul.mubr.bf16.vlgmr.msra.gmra.mxu0 %v6680_v17  ;;  %1215 = vmatmul.mubr.bf16.vlgmr.msra.gmra.mxu1 %v6680_v17  ;;  %v5924_v46 = vcombine.high %v163_v41, %v171_v42  ;;  %v5923_v52 = vcombine.low %v163_v41, %v171_v42  ;;  %v1341_v42 = vld [vmem:[%s9300_s1] sm:$0xff] }
  0x72   :  { %1236 = vmatpush1.bf16.msra.mxu0 %v5905_v47  ;;  %1289 = vmatpush1.bf16.msra.mxu1 %v5907_v48  ;;  %v1453_v47 = vld [vmem:[%s9300_s1 + $0x380] sm:$0xff] }
  0x73   :  { %1237 = vmatprep.subr.bf16.mxu0 %v5890_v49  ;;  %1290 = vmatprep.subr.bf16.mxu1 %v5892_v50  ;;  %v1461_v48 = vld [vmem:[%s9300_s1 + $0x3c0] sm:$0xff]  ;;  %v1454_v49 = vld [vmem:[%s9300_s1 + $0x388] sm:$0xff] }
  0x74   :  { %5934 = vmatprep.mubr.msk.bf16.mxu0 %vm910_vm0, %v6697_v26  ;;  %5936 = vmatprep.mubr.msk.bf16.mxu1 %vm910_vm0, %v6697_v26  ;;  %v1462_v50 = vld [vmem:[%s9300_s1 + $0x3c8] sm:$0xff]  ;;  %v6054_v53 = vcombine.high %v1453_v47, %v1461_v48  ;;  %v6053_v59 = vcombine.low %v1453_v47, %v1461_v48 }
  0x75   :  { %v6056_v54 = vcombine.high %v1454_v49, %v1462_v50  ;;  %v6055_v60 = vcombine.low %v1454_v49, %v1462_v50  ;;  %v1469_v50 = vld [vmem:[%s9300_s1 + $0x400] sm:$0xff] }
  0x76   :  { %1238 = vmatpush1.bf16.msra.mxu0 %v5889_v55  ;;  %1291 = vmatpush1.bf16.msra.mxu1 %v5891_v56  ;;  %v1437_v55 = vld [vmem:[%s9300_s1 + $0x300] sm:$0xff] }
  0x77   :  { %1239 = vmatprep.subr.bf16.mxu0 %v5874_v57  ;;  %1292 = vmatprep.subr.bf16.mxu1 %v5876_v58  ;;  %v1445_v56 = vld [vmem:[%s9300_s1 + $0x340] sm:$0xff]  ;;  %v1438_v57 = vld [vmem:[%s9300_s1 + $0x308] sm:$0xff] }
  0x78   :  { %v1446_v58 = vld [vmem:[%s9300_s1 + $0x348] sm:$0xff]  ;;  %v6038_v61 = vcombine.high %v1437_v55, %v1445_v56  ;;  %v6037_v3 = vcombine.low %v1437_v55, %v1445_v56 }
  0x79   :  { %1172 = vmatmul.mubr.bf16.gmra.mxu0 %v6726_v38  ;;  %1225 = vmatmul.mubr.bf16.gmra.mxu1 %v6726_v38  ;;  %v6040_v62 = vcombine.high %v1438_v57, %v1446_v58  ;;  %v6039_v4 = vcombine.low %v1438_v57, %v1446_v58  ;;  %v1455_v58 = vld [vmem:[%s9300_s1 + $0x390] sm:$0xff] }
  0x7a   :  { %1240 = vmatpush1.bf16.msra.mxu0 %v5873_v63  ;;  %1293 = vmatpush1.bf16.msra.mxu1 %v5875_v0  ;;  %v1421_v63 = vld [vmem:[%s9300_s1 + $0x280] sm:$0xff] }
  0x7b   :  { %1241 = vmatprep.subr.bf16.mxu0 %v5858_v1  ;;  %1294 = vmatprep.subr.bf16.mxu1 %v5860_v2  ;;  %v1429_v0 = vld [vmem:[%s9300_s1 + $0x2c0] sm:$0xff]  ;;  %v1422_v1 = vld [vmem:[%s9300_s1 + $0x288] sm:$0xff] }
  0x7c   :  { %5937 = vmatprep.mubr.msk.bf16.mxu0 %vm910_vm0, %v6605_v35  ;;  %5939 = vmatprep.mubr.msk.bf16.mxu1 %vm910_vm0, %v6605_v35  ;;  %v1430_v2 = vld [vmem:[%s9300_s1 + $0x2c8] sm:$0xff]  ;;  %v6022_v5 = vcombine.high %v1421_v63, %v1429_v0  ;;  %v6021_v11 = vcombine.low %v1421_v63, %v1429_v0 }
  0x7d   :  { %v6024_v6 = vcombine.high %v1422_v1, %v1430_v2  ;;  %v6023_v12 = vcombine.low %v1422_v1, %v1430_v2  ;;  %v1439_v2 = vld [vmem:[%s9300_s1 + $0x310] sm:$0xff] }
  0x7e   :  { %1242 = vmatpush1.bf16.msra.mxu0 %v5857_v7  ;;  %1295 = vmatpush1.bf16.msra.mxu1 %v5859_v8  ;;  %v1405_v7 = vld [vmem:[%s9300_s1 + $0x200] sm:$0xff] }
  0x7f   :  { %1243 = vmatprep.subr.bf16.mxu0 %v5842_v9  ;;  %1296 = vmatprep.subr.bf16.mxu1 %v5844_v10  ;;  %v1413_v8 = vld [vmem:[%s9300_s1 + $0x240] sm:$0xff]  ;;  %v1406_v9 = vld [vmem:[%s9300_s1 + $0x208] sm:$0xff] }
  0x80   :  { %v1414_v10 = vld [vmem:[%s9300_s1 + $0x248] sm:$0xff]  ;;  %v6006_v13 = vcombine.high %v1405_v7, %v1413_v8  ;;  %v6005_v20 = vcombine.low %v1405_v7, %v1413_v8 }
  0x81   :  { %v6008_v14 = vcombine.high %v1406_v9, %v1414_v10  ;;  %v6007_v21 = vcombine.low %v1406_v9, %v1414_v10  ;;  %v1423_v10 = vld [vmem:[%s9300_s1 + $0x290] sm:$0xff] }
  0x82   :  { %1244 = vmatpush1.bf16.msra.mxu0 %v5841_v15  ;;  %1297 = vmatpush1.bf16.msra.mxu1 %v5843_v16  ;;  %v1389_v15 = vld [vmem:[%s9300_s1 + $0x180] sm:$0xff] }
  0x83   :  { %1245 = vmatprep.subr.bf16.mxu0 %v5826_v18  ;;  %1298 = vmatprep.subr.bf16.mxu1 %v5828_v19  ;;  %v1397_v16 = vld [vmem:[%s9300_s1 + $0x1c0] sm:$0xff]  ;;  %v1390_v18 = vld [vmem:[%s9300_s1 + $0x188] sm:$0xff] }
  0x84   :  { %v1398_v19 = vld [vmem:[%s9300_s1 + $0x1c8] sm:$0xff]  ;;  %v5990_v22 = vcombine.high %v1389_v15, %v1397_v16  ;;  %v5989_v29 = vcombine.low %v1389_v15, %v1397_v16 }
  0x85   :  { %v5992_v23 = vcombine.high %v1390_v18, %v1398_v19  ;;  %v5991_v30 = vcombine.low %v1390_v18, %v1398_v19  ;;  %v1407_v19 = vld [vmem:[%s9300_s1 + $0x210] sm:$0xff] }
  0x86   :  { %1246 = vmatpush1.bf16.msra.mxu0 %v5825_v24  ;;  %1299 = vmatpush1.bf16.msra.mxu1 %v5827_v25  ;;  %v1373_v24 = vld [vmem:[%s9300_s1 + $0x100] sm:$0xff] }
  0x87   :  { %1247 = vmatprep.subr.bf16.mxu0 %v5810_v27  ;;  %1300 = vmatprep.subr.bf16.mxu1 %v5812_v28  ;;  %v1381_v25 = vld [vmem:[%s9300_s1 + $0x140] sm:$0xff]  ;;  %v1374_v27 = vld [vmem:[%s9300_s1 + $0x108] sm:$0xff] }
  0x88   :  { %v1382_v28 = vld [vmem:[%s9300_s1 + $0x148] sm:$0xff]  ;;  %v5974_v31 = vcombine.high %v1373_v24, %v1381_v25 }
  0x89   :  { %v5976_v32 = vcombine.high %v1374_v27, %v1382_v28  ;;  %v5975_v39 = vcombine.low %v1374_v27, %v1382_v28  ;;  %v1399_v27 = vld [vmem:[%s9300_s1 + $0x1d0] sm:$0xff]  ;;  %v1392_v28 = vld [vmem:[%s9300_s1 + $0x198] sm:$0xff] }
  0x8a   :  { %1248 = vmatpush1.bf16.msra.mxu0 %v5809_v33  ;;  %1301 = vmatpush1.bf16.msra.mxu1 %v5811_v34  ;;  %v1357_v33 = vld [vmem:[%s9300_s1 + $0x80] sm:$0xff] }
  0x8b   :  { %1249 = vmatprep.subr.bf16.mxu0 %v5794_v36  ;;  %1302 = vmatprep.subr.bf16.mxu1 %v5796_v37  ;;  %v1365_v34 = vld [vmem:[%s9300_s1 + $0xc0] sm:$0xff]  ;;  %v1366_v36 = vld [vmem:[%s9300_s1 + $0xc8] sm:$0xff]  ;;  %v5973_v37 = vcombine.low %v1373_v24, %v1381_v25 }
  0x8c   :  { %v5958_v40 = vcombine.high %v1357_v33, %v1365_v34 }
  0x8e   :  { %1250 = vmatpush1.bf16.msra.mxu0 %v5793_v43  ;;  %1303 = vmatpush1.bf16.msra.mxu1 %v5795_v44  ;;  %v1349_v43 = vld [vmem:[%s9300_s1 + $0x40] sm:$0xff]  ;;  %v1342_v44 = vld [vmem:[%s9300_s1 + $0x8] sm:$0xff] }
  0x8f   :  { %1265 = vmatprep.subr.bf16.mxu0 %v5922_v45  ;;  %1318 = vmatprep.subr.bf16.mxu1 %v5924_v46  ;;  %v1350_v45 = vld [vmem:[%s9300_s1 + $0x48] sm:$0xff]  ;;  %v5957_v46 = vcombine.low %v1357_v33, %v1365_v34  ;;  %v5942_v48 = vcombine.high %v1341_v42, %v1349_v43  ;;  %v1375_v34 = vld [vmem:[%s9300_s1 + $0x110] sm:$0xff] }
  0x90   :  { %v5944_v49 = vcombine.high %v1342_v44, %v1350_v45  ;;  %v5943_v55 = vcombine.low %v1342_v44, %v1350_v45  ;;  %v1367_v44 = vld [vmem:[%s9300_s1 + $0xd0] sm:$0xff]  ;;  %v1360_v45 = vld [vmem:[%s9300_s1 + $0x98] sm:$0xff] }
  0x92   :  { %1266 = vmatpush2.bf16.msra.mxu0 %v5921_v51  ;;  %1319 = vmatpush2.bf16.msra.mxu1 %v5923_v52  ;;  %v1477_v51 = vld [vmem:[%s9300_s1 + $0x440] sm:$0xff]  ;;  %v1470_v52 = vld [vmem:[%s9300_s1 + $0x408] sm:$0xff] }
  0x93   :  { %2205 = vmatprep.subr.bf16.mxu0 %v6054_v53  ;;  %2258 = vmatprep.subr.bf16.mxu1 %v6056_v54  ;;  %v1478_v53 = vld [vmem:[%s9300_s1 + $0x448] sm:$0xff]  ;;  %v5941_v54 = vcombine.low %v1341_v42, %v1349_v43  ;;  %v6070_v56 = vcombine.high %v1469_v50, %v1477_v51  ;;  %v1359_v43 = vld [vmem:[%s9300_s1 + $0x90] sm:$0xff] }
  0x94   :  { %v6072_v57 = vcombine.high %v1470_v52, %v1478_v53  ;;  %v6071_v63 = vcombine.low %v1470_v52, %v1478_v53  ;;  %v1351_v52 = vld [vmem:[%s9300_s1 + $0x50] sm:$0xff]  ;;  %v1344_v53 = vld [vmem:[%s9300_s1 + $0x18] sm:$0xff] }
  0x95   :  { %1268 = vmatmul.mubr.bf16.vlgmr.msra.gmra.mxu0 %v6680_v17  ;;  %1321 = vmatmul.mubr.bf16.vlgmr.msra.gmra.mxu1 %v6680_v17 }
  0x96   :  { %2206 = vmatpush1.bf16.msra.mxu0 %v6053_v59  ;;  %2259 = vmatpush1.bf16.msra.mxu1 %v6055_v60  ;;  %v1463_v59 = vld [vmem:[%s9300_s1 + $0x3d0] sm:$0xff]  ;;  %v1456_v60 = vld [vmem:[%s9300_s1 + $0x398] sm:$0xff] }
  0x97   :  { %2207 = vmatprep.subr.bf16.mxu0 %v6038_v61  ;;  %2260 = vmatprep.subr.bf16.mxu1 %v6040_v62  ;;  %v1464_v61 = vld [vmem:[%s9300_s1 + $0x3d8] sm:$0xff]  ;;  %v6069_v62 = vcombine.low %v1469_v50, %v1477_v51  ;;  %v6058_v0 = vcombine.high %v1455_v58, %v1463_v59  ;;  %v1343_v51 = vld [vmem:[%s9300_s1 + $0x10] sm:$0xff] }
  0x98   :  { %5938 = vmatprep.mubr.msk.bf16.mxu0 %vm910_vm0, %v6697_v26  ;;  %5940 = vmatprep.mubr.msk.bf16.mxu1 %vm910_vm0, %v6697_v26  ;;  %v6060_v1 = vcombine.high %v1456_v60, %v1464_v61  ;;  %v6059_v7 = vcombine.low %v1456_v60, %v1464_v61  ;;  %v1479_v60 = vld [vmem:[%s9300_s1 + $0x450] sm:$0xff]  ;;  %v1472_v61 = vld [vmem:[%s9300_s1 + $0x418] sm:$0xff] }
  0x9a   :  { %2208 = vmatpush1.bf16.msra.mxu0 %v6037_v3  ;;  %2261 = vmatpush1.bf16.msra.mxu1 %v6039_v4  ;;  %v1447_v3 = vld [vmem:[%s9300_s1 + $0x350] sm:$0xff]  ;;  %v1440_v4 = vld [vmem:[%s9300_s1 + $0x318] sm:$0xff] }
  0x9b   :  { %2209 = vmatprep.subr.bf16.mxu0 %v6022_v5  ;;  %2262 = vmatprep.subr.bf16.mxu1 %v6024_v6  ;;  %v1448_v5 = vld [vmem:[%s9300_s1 + $0x358] sm:$0xff]  ;;  %v6057_v6 = vcombine.low %v1455_v58, %v1463_v59  ;;  %v6042_v8 = vcombine.high %v1439_v2, %v1447_v3  ;;  %v1471_v59 = vld [vmem:[%s9300_s1 + $0x410] sm:$0xff] }
  0x9c   :  { %v6044_v9 = vcombine.high %v1440_v4, %v1448_v5  ;;  %v6043_v15 = vcombine.low %v1440_v4, %v1448_v5  ;;  %v1465_v4 = vld [vmem:[%s9300_s1 + $0x3e0] sm:$0xff]  ;;  %v1458_v5 = vld [vmem:[%s9300_s1 + $0x3a8] sm:$0xff] }
  0x9d   :  { %1278 = vmatmul.mubr.bf16.gmra.mxu0 %v6726_v38  ;;  %1331 = vmatmul.mubr.bf16.gmra.mxu1 %v6726_v38 }
  0x9e   :  { %2210 = vmatpush1.bf16.msra.mxu0 %v6021_v11  ;;  %2263 = vmatpush1.bf16.msra.mxu1 %v6023_v12  ;;  %v1431_v11 = vld [vmem:[%s9300_s1 + $0x2d0] sm:$0xff]  ;;  %v1424_v12 = vld [vmem:[%s9300_s1 + $0x298] sm:$0xff] }
  0x9f   :  { %2211 = vmatprep.subr.bf16.mxu0 %v6006_v13  ;;  %2264 = vmatprep.subr.bf16.mxu1 %v6008_v14  ;;  %v1432_v13 = vld [vmem:[%s9300_s1 + $0x2d8] sm:$0xff]  ;;  %v6041_v14 = vcombine.low %v1439_v2, %v1447_v3  ;;  %v6026_v16 = vcombine.high %v1423_v10, %v1431_v11  ;;  %v1457_v3 = vld [vmem:[%s9300_s1 + $0x3a0] sm:$0xff] }
  0xa0   :  { %6085 = vmatprep.mubr.msk.bf16.mxu0 %vm910_vm0, %v6605_v35  ;;  %6087 = vmatprep.mubr.msk.bf16.mxu1 %vm910_vm0, %v6605_v35  ;;  %v1358_v35 = vld [vmem:[%s9300_s1 + $0x88] sm:$0xff]  ;;  %v6028_v18 = vcombine.high %v1424_v12, %v1432_v13 }
  0xa1   :  { %v5960_v41 = vcombine.high %v1358_v35, %v1366_v36  ;;  %v5959_v47 = vcombine.low %v1358_v35, %v1366_v36  ;;  %v1383_v35 = vld [vmem:[%s9300_s1 + $0x150] sm:$0xff]  ;;  %v1376_v36 = vld [vmem:[%s9300_s1 + $0x118] sm:$0xff] }
  0xa2   :  { %2212 = vmatpush1.bf16.msra.mxu0 %v6005_v20  ;;  %2265 = vmatpush1.bf16.msra.mxu1 %v6007_v21  ;;  %v1415_v20 = vld [vmem:[%s9300_s1 + $0x250] sm:$0xff]  ;;  %v1416_v21 = vld [vmem:[%s9300_s1 + $0x258] sm:$0xff] }
  0xa3   :  { %2213 = vmatprep.subr.bf16.mxu0 %v5990_v22  ;;  %2266 = vmatprep.subr.bf16.mxu1 %v5992_v23  ;;  %v6025_v22 = vcombine.low %v1423_v10, %v1431_v11  ;;  %v6027_v23 = vcombine.low %v1424_v12, %v1432_v13  ;;  %v6010_v24 = vcombine.high %v1407_v19, %v1415_v20  ;;  %v1441_v11 = vld [vmem:[%s9300_s1 + $0x320] sm:$0xff]  ;;  %v1442_v13 = vld [vmem:[%s9300_s1 + $0x328] sm:$0xff] }
  0xa4   :  { %v1449_v12 = vld [vmem:[%s9300_s1 + $0x360] sm:$0xff] }
  0xa6   :  { %2214 = vmatpush1.bf16.msra.mxu0 %v5989_v29  ;;  %2267 = vmatpush1.bf16.msra.mxu1 %v5991_v30  ;;  %v1400_v29 = vld [vmem:[%s9300_s1 + $0x1d8] sm:$0xff]  ;;  %v6009_v30 = vcombine.low %v1407_v19, %v1415_v20  ;;  %v1425_v20 = vld [vmem:[%s9300_s1 + $0x2a0] sm:$0xff] }
  0xa7   :  { %2215 = vmatprep.subr.bf16.mxu0 %v5974_v31  ;;  %2268 = vmatprep.subr.bf16.mxu1 %v5976_v32  ;;  %v5996_v33 = vcombine.high %v1392_v28, %v1400_v29 }
  0xaa   :  { %2216 = vmatpush1.bf16.msra.mxu0 %v5973_v37  ;;  %2269 = vmatpush1.bf16.msra.mxu1 %v5975_v39  ;;  %v1384_v37 = vld [vmem:[%s9300_s1 + $0x158] sm:$0xff] }
  0xab   :  { %2217 = vmatprep.subr.bf16.mxu0 %v5958_v40  ;;  %2270 = vmatprep.subr.bf16.mxu1 %v5960_v41  ;;  %v5995_v40 = vcombine.low %v1392_v28, %v1400_v29  ;;  %v5978_v41 = vcombine.high %v1375_v34, %v1383_v35  ;;  %v5980_v42 = vcombine.high %v1376_v36, %v1384_v37  ;;  %v1409_v29 = vld [vmem:[%s9300_s1 + $0x220] sm:$0xff] }
  0xae   :  { %2218 = vmatpush1.bf16.msra.mxu0 %v5957_v46  ;;  %2271 = vmatpush1.bf16.msra.mxu1 %v5959_v47  ;;  %v1368_v46 = vld [vmem:[%s9300_s1 + $0xd8] sm:$0xff]  ;;  %v5977_v47 = vcombine.low %v1375_v34, %v1383_v35 }
  0xaf   :  { %2219 = vmatprep.subr.bf16.mxu0 %v5942_v48  ;;  %2272 = vmatprep.subr.bf16.mxu1 %v5944_v49  ;;  %v5979_v48 = vcombine.low %v1376_v36, %v1384_v37  ;;  %v5962_v49 = vcombine.high %v1359_v43, %v1367_v44  ;;  %v5964_v50 = vcombine.high %v1360_v45, %v1368_v46  ;;  %v1393_v37 = vld [vmem:[%s9300_s1 + $0x1a0] sm:$0xff] }
  0xb2   :  { %2220 = vmatpush1.bf16.msra.mxu0 %v5941_v54  ;;  %2273 = vmatpush1.bf16.msra.mxu1 %v5943_v55  ;;  %v1352_v54 = vld [vmem:[%s9300_s1 + $0x58] sm:$0xff]  ;;  %v5961_v55 = vcombine.low %v1359_v43, %v1367_v44 }
  0xb3   :  { %2235 = vmatprep.subr.bf16.mxu0 %v6070_v56  ;;  %2288 = vmatprep.subr.bf16.mxu1 %v6072_v57  ;;  %v5963_v56 = vcombine.low %v1360_v45, %v1368_v46  ;;  %v5946_v57 = vcombine.high %v1343_v51, %v1351_v52  ;;  %v5948_v58 = vcombine.high %v1344_v53, %v1352_v54 }
  0xb6   :  { %2236 = vmatpush2.bf16.msra.mxu0 %v6069_v62  ;;  %2289 = vmatpush2.bf16.msra.mxu1 %v6071_v63  ;;  %v1480_v62 = vld [vmem:[%s9300_s1 + $0x458] sm:$0xff]  ;;  %v5945_v63 = vcombine.low %v1343_v51, %v1351_v52 }
  0xb7   :  { %2311 = vmatprep.subr.bf16.mxu0 %v6058_v0  ;;  %2364 = vmatprep.subr.bf16.mxu1 %v6060_v1  ;;  %v5947_v0 = vcombine.low %v1344_v53, %v1352_v54  ;;  %v6074_v1 = vcombine.high %v1471_v59, %v1479_v60  ;;  %v6076_v2 = vcombine.high %v1472_v61, %v1480_v62 }
  0xb9   :  { %2238 = vmatmul.mubr.bf16.vlgmr.msra.gmra.mxu0 %v6680_v17  ;;  %2291 = vmatmul.mubr.bf16.vlgmr.msra.gmra.mxu1 %v6680_v17  ;;  %v1408_v17 = vld [vmem:[%s9300_s1 + $0x218] sm:$0xff] }
  0xba   :  { %2312 = vmatpush1.bf16.msra.mxu0 %v6057_v6  ;;  %2365 = vmatpush1.bf16.msra.mxu1 %v6059_v7  ;;  %v6012_v25 = vcombine.high %v1408_v17, %v1416_v21  ;;  %v6011_v31 = vcombine.low %v1408_v17, %v1416_v21  ;;  %v1466_v6 = vld [vmem:[%s9300_s1 + $0x3e8] sm:$0xff]  ;;  %v6073_v7 = vcombine.low %v1471_v59, %v1479_v60  ;;  %v1433_v17 = vld [vmem:[%s9300_s1 + $0x2e0] sm:$0xff] }
  0xbb   :  { %2313 = vmatprep.subr.bf16.mxu0 %v6042_v8  ;;  %2366 = vmatprep.subr.bf16.mxu1 %v6044_v9  ;;  %v6075_v8 = vcombine.low %v1472_v61, %v1480_v62  ;;  %v6062_v9 = vcombine.high %v1457_v3, %v1465_v4  ;;  %v6064_v10 = vcombine.high %v1458_v5, %v1466_v6  ;;  %v7312_v21 = vld [vmem:[%s9299_s4] ss:$8 sps:$4 sm:$0xff]  }
  0xbc   :  { %6086 = vmatprep.mubr.msk.bf16.mxu0 %vm910_vm0, %v6697_v26  ;;  %6088 = vmatprep.mubr.msk.bf16.mxu1 %vm910_vm0, %v6697_v26  ;;  %v1391_v26 = vld [vmem:[%s9300_s1 + $0x190] sm:$0xff] }
  0xbd   :  { %v5994_v32 = vcombine.high %v1391_v26, %v1399_v27  ;;  %v5993_v39 = vcombine.low %v1391_v26, %v1399_v27  ;;  %v6030_v26 = vcombine.high %v1425_v20, %v1433_v17  ;;  %v7325_v27 = vld [vmem:[%s9299_s4 + $0x14] ss:$8 sps:$4 sm:$0xff]  }
  0xbe   :  { %2314 = vmatpush1.bf16.msra.mxu0 %v6041_v14  ;;  %2367 = vmatpush1.bf16.msra.mxu1 %v6043_v15  ;;  %v1450_v14 = vld [vmem:[%s9300_s1 + $0x368] sm:$0xff]  ;;  %v6061_v15 = vcombine.low %v1457_v3, %v1465_v4 }
  0xbf   :  { %2315 = vmatprep.subr.bf16.mxu0 %v6026_v16  ;;  %2368 = vmatprep.subr.bf16.mxu1 %v6028_v18  ;;  %v6063_v16 = vcombine.low %v1458_v5, %v1466_v6  ;;  %v6046_v18 = vcombine.high %v1441_v11, %v1449_v12  ;;  %v6048_v19 = vcombine.high %v1442_v13, %v1450_v14 }
  0xc1   :  { %2248 = vmatmul.mubr.bf16.gmra.mxu0 %v6726_v38  ;;  %2301 = vmatmul.mubr.bf16.gmra.mxu1 %v6726_v38  ;;  %v7231_v38 = vld [vmem:[%s9299_s4 + $0x4] ss:$8 sps:$4 sm:$0xff]  }
  0xc2   :  { %2316 = vmatpush1.bf16.msra.mxu0 %v6025_v22  ;;  %2369 = vmatpush1.bf16.msra.mxu1 %v6027_v23  ;;  %v1426_v22 = vld [vmem:[%s9300_s1 + $0x2a8] sm:$0xff] }
  0xc3   :  { %2317 = vmatprep.subr.bf16.mxu0 %v6010_v24  ;;  %2370 = vmatprep.subr.bf16.mxu1 %v6012_v25  ;;  %v1434_v23 = vld [vmem:[%s9300_s1 + $0x2e8] sm:$0xff]  ;;  %v6045_v24 = vcombine.low %v1441_v11, %v1449_v12  ;;  %v6047_v25 = vcombine.low %v1442_v13, %v1450_v14 }
  0xc4   :  { %6089 = vmatprep.mubr.msk.bf16.mxu0 %vm910_vm0, %v7231_v38  ;;  %6091 = vmatprep.mubr.msk.bf16.mxu1 %vm910_vm0, %v7231_v38  ;;  %v6032_v28 = vcombine.high %v1426_v22, %v1434_v23  ;;  %v6031_v34 = vcombine.low %v1426_v22, %v1434_v23 }
  0xc6   :  { %2318 = vmatpush1.bf16.msra.mxu0 %v6009_v30  ;;  %2371 = vmatpush1.bf16.msra.mxu1 %v6011_v31  ;;  %v1417_v30 = vld [vmem:[%s9300_s1 + $0x260] sm:$0xff]  ;;  %v1410_v31 = vld [vmem:[%s9300_s1 + $0x228] sm:$0xff] }
  0xc7   :  { %2319 = vmatprep.subr.bf16.mxu0 %v5994_v32  ;;  %2372 = vmatprep.subr.bf16.mxu1 %v5996_v33  ;;  %v1418_v32 = vld [vmem:[%s9300_s1 + $0x268] sm:$0xff]  ;;  %v6029_v33 = vcombine.low %v1425_v20, %v1433_v17  ;;  %v6014_v35 = vcombine.high %v1409_v29, %v1417_v30  ;;  %v6013_v43 = vcombine.low %v1409_v29, %v1417_v30 }
  0xc8   :  { %v6016_v36 = vcombine.high %v1410_v31, %v1418_v32  ;;  %v6015_v44 = vcombine.low %v1410_v31, %v1418_v32 }
  0xca   :  { %2320 = vmatpush1.bf16.msra.mxu0 %v5993_v39  ;;  %2373 = vmatpush1.bf16.msra.mxu1 %v5995_v40  ;;  %v1401_v39 = vld [vmem:[%s9300_s1 + $0x1e0] sm:$0xff]  ;;  %v7352_v40 = vld [vmem:[%s9299_s4 + $0x10] ss:$8 sps:$4 sm:$0xff]  }
  0xcb   :  { %2321 = vmatprep.subr.bf16.mxu0 %v5978_v41  ;;  %2374 = vmatprep.subr.bf16.mxu1 %v5980_v42  ;;  %v1394_v41 = vld [vmem:[%s9300_s1 + $0x1a8] sm:$0xff]  ;;  %v5998_v45 = vcombine.high %v1393_v37, %v1401_v39  ;;  %v5997_v51 = vcombine.low %v1393_v37, %v1401_v39 }
  0xcc   :  { %v1402_v42 = vld [vmem:[%s9300_s1 + $0x1e8] sm:$0xff] }
  0xcd   :  { %v6000_v46 = vcombine.high %v1394_v41, %v1402_v42  ;;  %v5999_v52 = vcombine.low %v1394_v41, %v1402_v42 }
  0xce   :  { %2322 = vmatpush1.bf16.msra.mxu0 %v5977_v47  ;;  %2375 = vmatpush1.bf16.msra.mxu1 %v5979_v48  ;;  %v1377_v47 = vld [vmem:[%s9300_s1 + $0x120] sm:$0xff] }
  0xcf   :  { %2323 = vmatprep.subr.bf16.mxu0 %v5962_v49  ;;  %2376 = vmatprep.subr.bf16.mxu1 %v5964_v50  ;;  %v1385_v48 = vld [vmem:[%s9300_s1 + $0x160] sm:$0xff]  ;;  %v1378_v49 = vld [vmem:[%s9300_s1 + $0x128] sm:$0xff] }
  0xd0   :  { %v1386_v50 = vld [vmem:[%s9300_s1 + $0x168] sm:$0xff]  ;;  %v5982_v53 = vcombine.high %v1377_v47, %v1385_v48  ;;  %v5981_v59 = vcombine.low %v1377_v47, %v1385_v48 }
  0xd1   :  { %v5984_v54 = vcombine.high %v1378_v49, %v1386_v50  ;;  %v5983_v60 = vcombine.low %v1378_v49, %v1386_v50 }
  0xd2   :  { %2324 = vmatpush1.bf16.msra.mxu0 %v5961_v55  ;;  %2377 = vmatpush1.bf16.msra.mxu1 %v5963_v56  ;;  %v1361_v55 = vld [vmem:[%s9300_s1 + $0xa0] sm:$0xff] }
  0xd3   :  { %2325 = vmatprep.subr.bf16.mxu0 %v5946_v57  ;;  %2378 = vmatprep.subr.bf16.mxu1 %v5948_v58  ;;  %v1369_v56 = vld [vmem:[%s9300_s1 + $0xe0] sm:$0xff]  ;;  %v1362_v57 = vld [vmem:[%s9300_s1 + $0xa8] sm:$0xff] }
  0xd4   :  { %v1370_v58 = vld [vmem:[%s9300_s1 + $0xe8] sm:$0xff]  ;;  %v5966_v61 = vcombine.high %v1361_v55, %v1369_v56  ;;  %v5965_v3 = vcombine.low %v1361_v55, %v1369_v56 }
  0xd5   :  { %v5968_v62 = vcombine.high %v1362_v57, %v1370_v58  ;;  %v5967_v4 = vcombine.low %v1362_v57, %v1370_v58 }
  0xd6   :  { %2326 = vmatpush1.bf16.msra.mxu0 %v5945_v63  ;;  %2379 = vmatpush1.bf16.msra.mxu1 %v5947_v0  ;;  %v1345_v63 = vld [vmem:[%s9300_s1 + $0x20] sm:$0xff] }
  0xd7   :  { %2341 = vmatprep.subr.bf16.mxu0 %v6074_v1  ;;  %2394 = vmatprep.subr.bf16.mxu1 %v6076_v2  ;;  %v1353_v0 = vld [vmem:[%s9300_s1 + $0x60] sm:$0xff]  ;;  %v1346_v1 = vld [vmem:[%s9300_s1 + $0x28] sm:$0xff] }
  0xd8   :  { %v1354_v2 = vld [vmem:[%s9300_s1 + $0x68] sm:$0xff]  ;;  %v5950_v5 = vcombine.high %v1345_v63, %v1353_v0  ;;  %v5949_v11 = vcombine.low %v1345_v63, %v1353_v0 }
  0xd9   :  { %v5952_v6 = vcombine.high %v1346_v1, %v1354_v2  ;;  %v5951_v12 = vcombine.low %v1346_v1, %v1354_v2 }
  0xda   :  { %2342 = vmatpush2.bf16.msra.mxu0 %v6073_v7  ;;  %2395 = vmatpush2.bf16.msra.mxu1 %v6075_v8  ;;  %v1473_v7 = vld [vmem:[%s9300_s1 + $0x420] sm:$0xff] }
  0xdb   :  { %2417 = vmatprep.subr.bf16.mxu0 %v6062_v9  ;;  %2470 = vmatprep.subr.bf16.mxu1 %v6064_v10  ;;  %v1481_v8 = vld [vmem:[%s9300_s1 + $0x460] sm:$0xff]  ;;  %v1474_v9 = vld [vmem:[%s9300_s1 + $0x428] sm:$0xff] }
  0xdc   :  { %v1482_v10 = vld [vmem:[%s9300_s1 + $0x468] sm:$0xff]  ;;  %v6078_v13 = vcombine.high %v1473_v7, %v1481_v8  ;;  %v6077_v20 = vcombine.low %v1473_v7, %v1481_v8 }
  0xdd   :  { %2344 = vmatmul.mubr.bf16.vlgmr.msra.gmra.mxu0 %v7312_v21  ;;  %2397 = vmatmul.mubr.bf16.vlgmr.msra.gmra.mxu1 %v7312_v21  ;;  %v6080_v14 = vcombine.high %v1474_v9, %v1482_v10  ;;  %v6079_v17 = vcombine.low %v1474_v9, %v1482_v10 }
  0xde   :  { %2418 = vmatpush1.bf16.msra.mxu0 %v6061_v15  ;;  %2471 = vmatpush1.bf16.msra.mxu1 %v6063_v16  ;;  %v1459_v15 = vld [vmem:[%s9300_s1 + $0x3b0] sm:$0xff] }
  0xdf   :  { %2419 = vmatprep.subr.bf16.mxu0 %v6046_v18  ;;  %2472 = vmatprep.subr.bf16.mxu1 %v6048_v19  ;;  %v1467_v16 = vld [vmem:[%s9300_s1 + $0x3f0] sm:$0xff]  ;;  %v1460_v18 = vld [vmem:[%s9300_s1 + $0x3b8] sm:$0xff] }
  0xe0   :  { %6090 = vmatprep.mubr.msk.bf16.mxu0 %vm910_vm0, %v7325_v27  ;;  %6092 = vmatprep.mubr.msk.bf16.mxu1 %vm910_vm0, %v7325_v27  ;;  %v1468_v19 = vld [vmem:[%s9300_s1 + $0x3f8] sm:$0xff]  ;;  %v6066_v22 = vcombine.high %v1459_v15, %v1467_v16  ;;  %v6065_v29 = vcombine.low %v1459_v15, %v1467_v16 }
  0xe1   :  { %v6068_v23 = vcombine.high %v1460_v18, %v1468_v19  ;;  %v6067_v30 = vcombine.low %v1460_v18, %v1468_v19 }
  0xe2   :  { %2420 = vmatpush1.bf16.msra.mxu0 %v6045_v24  ;;  %2473 = vmatpush1.bf16.msra.mxu1 %v6047_v25  ;;  %v1443_v24 = vld [vmem:[%s9300_s1 + $0x330] sm:$0xff] }
  0xe3   :  { %2421 = vmatprep.subr.bf16.mxu0 %v6030_v26  ;;  %2474 = vmatprep.subr.bf16.mxu1 %v6032_v28  ;;  %v1451_v25 = vld [vmem:[%s9300_s1 + $0x370] sm:$0xff]  ;;  %v1444_v26 = vld [vmem:[%s9300_s1 + $0x338] sm:$0xff] }
  0xe4   :  { %v1452_v28 = vld [vmem:[%s9300_s1 + $0x378] sm:$0xff]  ;;  %v6050_v31 = vcombine.high %v1443_v24, %v1451_v25  ;;  %v6049_v37 = vcombine.low %v1443_v24, %v1451_v25 }
  0xe5   :  { %2354 = vmatmul.mubr.bf16.gmra.mxu0 %v7352_v40  ;;  %2407 = vmatmul.mubr.bf16.gmra.mxu1 %v7352_v40  ;;  %v6052_v32 = vcombine.high %v1444_v26, %v1452_v28  ;;  %v6051_v39 = vcombine.low %v1444_v26, %v1452_v28 }
  0xe6   :  { %2422 = vmatpush1.bf16.msra.mxu0 %v6029_v33  ;;  %2475 = vmatpush1.bf16.msra.mxu1 %v6031_v34  ;;  %v1427_v33 = vld [vmem:[%s9300_s1 + $0x2b0] sm:$0xff] }
  0xe7   :  { %2423 = vmatprep.subr.bf16.mxu0 %v6014_v35  ;;  %2476 = vmatprep.subr.bf16.mxu1 %v6016_v36  ;;  %v1435_v34 = vld [vmem:[%s9300_s1 + $0x2f0] sm:$0xff]  ;;  %v1428_v35 = vld [vmem:[%s9300_s1 + $0x2b8] sm:$0xff] }
  0xe8   :  { %6093 = vmatprep.mubr.msk.bf16.mxu0 %vm910_vm0, %v7231_v38  ;;  %6095 = vmatprep.mubr.msk.bf16.mxu1 %vm910_vm0, %v7231_v38  ;;  %v1436_v36 = vld [vmem:[%s9300_s1 + $0x2f8] sm:$0xff]  ;;  %v6034_v41 = vcombine.high %v1427_v33, %v1435_v34  ;;  %v6033_v47 = vcombine.low %v1427_v33, %v1435_v34 }
  0xe9   :  { %v6036_v42 = vcombine.high %v1428_v35, %v1436_v36  ;;  %v6035_v48 = vcombine.low %v1428_v35, %v1436_v36 }
  0xea   :  { %2424 = vmatpush1.bf16.msra.mxu0 %v6013_v43  ;;  %2477 = vmatpush1.bf16.msra.mxu1 %v6015_v44  ;;  %v1411_v43 = vld [vmem:[%s9300_s1 + $0x230] sm:$0xff] }
  0xeb   :  { %2425 = vmatprep.subr.bf16.mxu0 %v5998_v45  ;;  %2478 = vmatprep.subr.bf16.mxu1 %v6000_v46  ;;  %v1419_v44 = vld [vmem:[%s9300_s1 + $0x270] sm:$0xff]  ;;  %v1412_v45 = vld [vmem:[%s9300_s1 + $0x238] sm:$0xff] }
  0xec   :  { %v1420_v46 = vld [vmem:[%s9300_s1 + $0x278] sm:$0xff]  ;;  %v6018_v49 = vcombine.high %v1411_v43, %v1419_v44  ;;  %v6017_v55 = vcombine.low %v1411_v43, %v1419_v44  ;;  %v2798_v43 = vld [vmem:[%s9301_s2 + $0x348] sm:$0xff]  ;;  %v7560_v44 = vpop.f32.mrf.mxu1 }
  0xed   :  { %v6020_v50 = vcombine.high %v1412_v45, %v1420_v46  ;;  %v6019_v56 = vcombine.low %v1412_v45, %v1420_v46 }
  0xee   :  { %2426 = vmatpush1.bf16.msra.mxu0 %v5997_v51  ;;  %2479 = vmatpush1.bf16.msra.mxu1 %v5999_v52  ;;  %v1395_v51 = vld [vmem:[%s9300_s1 + $0x1b0] sm:$0xff] }
  0xef   :  { %2427 = vmatprep.subr.bf16.mxu0 %v5982_v53  ;;  %2480 = vmatprep.subr.bf16.mxu1 %v5984_v54  ;;  %v1403_v52 = vld [vmem:[%s9300_s1 + $0x1f0] sm:$0xff]  ;;  %v1396_v53 = vld [vmem:[%s9300_s1 + $0x1b8] sm:$0xff] }
  0xf0   :  { %v1404_v54 = vld [vmem:[%s9300_s1 + $0x1f8] sm:$0xff]  ;;  %v6002_v57 = vcombine.high %v1395_v51, %v1403_v52  ;;  %v6001_v63 = vcombine.low %v1395_v51, %v1403_v52  ;;  %v2774_v52 = vld [vmem:[%s9301_s2 + $0x288] sm:$0xff] }
  0xf1   :  { %v6004_v58 = vcombine.high %v1396_v53, %v1404_v54  ;;  %v6003_v0 = vcombine.low %v1396_v53, %v1404_v54  ;;  %v2782_v53 = vld [vmem:[%s9301_s2 + $0x2c8] sm:$0xff]  ;;  %v7577_v54 = vpop.f32.mrf.mxu1 }
  0xf2   :  { %2428 = vmatpush1.bf16.msra.mxu0 %v5981_v59  ;;  %2481 = vmatpush1.bf16.msra.mxu1 %v5983_v60  ;;  %v1379_v59 = vld [vmem:[%s9300_s1 + $0x130] sm:$0xff]  ;;  %9306 = vst [vmem:[#allocation3_spill] sm:$0xff] %v7577_v54  ;;  %v2737_v54 = vld [vmem:[%s9301_s2 + $0x160] sm:$0xff] }
  0xf3   :  { %2429 = vmatprep.subr.bf16.mxu0 %v5966_v61  ;;  %2482 = vmatprep.subr.bf16.mxu1 %v5968_v62  ;;  %v1387_v60 = vld [vmem:[%s9300_s1 + $0x170] sm:$0xff]  ;;  %v1380_v61 = vld [vmem:[%s9300_s1 + $0x138] sm:$0xff] }
  0xf4   :  { %v1388_v62 = vld [vmem:[%s9300_s1 + $0x178] sm:$0xff]  ;;  %v5986_v1 = vcombine.high %v1379_v59, %v1387_v60  ;;  %v5985_v7 = vcombine.low %v1379_v59, %v1387_v60  ;;  %v2757_v59 = vld [vmem:[%s9301_s2 + $0x200] sm:$0xff] }
  0xf5   :  { %v5988_v2 = vcombine.high %v1380_v61, %v1388_v62  ;;  %v5987_v8 = vcombine.low %v1380_v61, %v1388_v62  ;;  %v2765_v60 = vld [vmem:[%s9301_s2 + $0x240] sm:$0xff]  ;;  %v2758_v62 = vld [vmem:[%s9301_s2 + $0x208] sm:$0xff] }
  0xf6   :  { %2430 = vmatpush1.bf16.msra.mxu0 %v5965_v3  ;;  %2483 = vmatpush1.bf16.msra.mxu1 %v5967_v4  ;;  %v1363_v3 = vld [vmem:[%s9300_s1 + $0xb0] sm:$0xff] }
  0xf7   :  { %2431 = vmatprep.subr.bf16.mxu0 %v5950_v5  ;;  %2484 = vmatprep.subr.bf16.mxu1 %v5952_v6  ;;  %v1371_v4 = vld [vmem:[%s9300_s1 + $0xf0] sm:$0xff]  ;;  %v1364_v5 = vld [vmem:[%s9300_s1 + $0xb8] sm:$0xff] }
  0xf8   :  { %v1372_v6 = vld [vmem:[%s9300_s1 + $0xf8] sm:$0xff]  ;;  %v5970_v9 = vcombine.high %v1363_v3, %v1371_v4  ;;  %v5969_v15 = vcombine.low %v1363_v3, %v1371_v4  ;;  %v6166_v3 = vcombine.high %v2757_v59, %v2765_v60 }
  0xf9   :  { %v5972_v10 = vcombine.high %v1364_v5, %v1372_v6  ;;  %v5971_v16 = vcombine.low %v1364_v5, %v1372_v6  ;;  %v2741_v5 = vld [vmem:[%s9301_s2 + $0x180] sm:$0xff] }
  0xfa   :  { %2432 = vmatpush1.bf16.msra.mxu0 %v5949_v11  ;;  %2485 = vmatpush1.bf16.msra.mxu1 %v5951_v12  ;;  %v1347_v11 = vld [vmem:[%s9300_s1 + $0x30] sm:$0xff]  ;;  %v2749_v6 = vld [vmem:[%s9301_s2 + $0x1c0] sm:$0xff] }
  0xfb   :  { %2447 = vmatprep.subr.bf16.mxu0 %v6078_v13  ;;  %2500 = vmatprep.subr.bf16.mxu1 %v6080_v14  ;;  %v1355_v12 = vld [vmem:[%s9300_s1 + $0x70] sm:$0xff]  ;;  %v1348_v13 = vld [vmem:[%s9300_s1 + $0x38] sm:$0xff] }
  0xfc   :  { %v1356_v14 = vld [vmem:[%s9300_s1 + $0x78] sm:$0xff]  ;;  %v5954_v18 = vcombine.high %v1347_v11, %v1355_v12  ;;  %v5953_v24 = vcombine.low %v1347_v11, %v1355_v12  ;;  %v6165_v11 = vcombine.low %v2757_v59, %v2765_v60  ;;  %v2830_v59 = vld [vmem:[%s9301_s2 + $0x448] sm:$0xff] }
  0xfd   :  { %v5956_v19 = vcombine.high %v1348_v13, %v1356_v14  ;;  %v5955_v25 = vcombine.low %v1348_v13, %v1356_v14  ;;  %v6150_v14 = vcombine.high %v2741_v5, %v2749_v6 }
  0xfe   :  { %2448 = vmatpush2.bf16.msra.mxu0 %v6077_v20  ;;  %2501 = vmatpush2.bf16.msra.mxu1 %v6079_v17  ;;  %v1475_v20 = vld [vmem:[%s9300_s1 + $0x430] sm:$0xff] }
  0xff   :  { %2523 = vmatprep.subr.bf16.mxu0 %v6066_v22  ;;  %2576 = vmatprep.subr.bf16.mxu1 %v6068_v23  ;;  %v1483_v17 = vld [vmem:[%s9300_s1 + $0x470] sm:$0xff]  ;;  %v1476_v22 = vld [vmem:[%s9300_s1 + $0x438] sm:$0xff] }
 0x100   :  { %v1484_v23 = vld [vmem:[%s9300_s1 + $0x478] sm:$0xff]  ;;  %v6082_v26 = vcombine.high %v1475_v20, %v1483_v17  ;;  %v6081_v33 = vcombine.low %v1475_v20, %v1483_v17  ;;  %v2726_v20 = vld [vmem:[%s9301_s2 + $0x108] sm:$0xff] }
 0x101   :  { %2450 = vmatmul.mubr.bf16.vlgmr.msra.gmra.mxu0 %v7312_v21  ;;  %2503 = vmatmul.mubr.bf16.vlgmr.msra.gmra.mxu1 %v7312_v21  ;;  %v6084_v28 = vcombine.high %v1476_v22, %v1484_v23  ;;  %v6083_v34 = vcombine.low %v1476_v22, %v1484_v23  ;;  %v2734_v17 = vld [vmem:[%s9301_s2 + $0x148] sm:$0xff]  ;;  %v6149_v22 = vcombine.low %v2741_v5, %v2749_v6  ;;  %v2808_v6 = vld [vmem:[%s9301_s2 + $0x398] sm:$0xff] }
 0x102   :  { %2524 = vmatpush1.bf16.msra.mxu0 %v6065_v29  ;;  %2577 = vmatpush1.bf16.msra.mxu1 %v6067_v30  ;;  %v2805_v29 = vld [vmem:[%s9301_s2 + $0x380] sm:$0xff] }
 0x103   :  { %2525 = vmatprep.subr.bf16.mxu0 %v6050_v31  ;;  %2578 = vmatprep.subr.bf16.mxu1 %v6052_v32  ;;  %v2813_v30 = vld [vmem:[%s9301_s2 + $0x3c0] sm:$0xff]  ;;  %v2806_v31 = vld [vmem:[%s9301_s2 + $0x388] sm:$0xff] }
 0x104   :  { %6094 = vmatprep.mubr.msk.bf16.mxu0 %vm910_vm0, %v7325_v27  ;;  %6096 = vmatprep.mubr.msk.bf16.mxu1 %vm910_vm0, %v7325_v27  ;;  %v2814_v32 = vld [vmem:[%s9301_s2 + $0x3c8] sm:$0xff]  ;;  %v6214_v35 = vcombine.high %v2805_v29, %v2813_v30  ;;  %v6213_v45 = vcombine.low %v2805_v29, %v2813_v30  ;;  %v2709_v29 = vld [vmem:[%s9301_s2 + $0x80] sm:$0xff] }
 0x105   :  { %v6216_v36 = vcombine.high %v2806_v31, %v2814_v32  ;;  %v6215_v46 = vcombine.low %v2806_v31, %v2814_v32  ;;  %v2717_v30 = vld [vmem:[%s9301_s2 + $0xc0] sm:$0xff]  ;;  %v2710_v31 = vld [vmem:[%s9301_s2 + $0x88] sm:$0xff] }
 0x106   :  { %2526 = vmatpush1.bf16.msra.mxu0 %v6049_v37  ;;  %2579 = vmatpush1.bf16.msra.mxu1 %v6051_v39  ;;  %v2789_v37 = vld [vmem:[%s9301_s2 + $0x300] sm:$0xff]  ;;  %v2718_v32 = vld [vmem:[%s9301_s2 + $0xc8] sm:$0xff] }
 0x107   :  { %2527 = vmatprep.subr.bf16.mxu0 %v6034_v41  ;;  %2580 = vmatprep.subr.bf16.mxu1 %v6036_v42  ;;  %v2797_v39 = vld [vmem:[%s9301_s2 + $0x340] sm:$0xff]  ;;  %v7552_v41 = vpop.f32.mrf.mxu0  ;;  %v2790_v42 = vld [vmem:[%s9301_s2 + $0x308] sm:$0xff] }
 0x109   :  { %2460 = vmatmul.mubr.bf16.gmra.mxu0 %v7352_v40  ;;  %2513 = vmatmul.mubr.bf16.gmra.mxu1 %v7352_v40  ;;  %v7568_v51 = vpop.f32.mrf.mxu0 }
 0x10a   :  { %2528 = vmatpush1.bf16.msra.mxu0 %v6033_v47  ;;  %2581 = vmatpush1.bf16.msra.mxu1 %v6035_v48  ;;  %v6198_v47 = vcombine.high %v2789_v37, %v2797_v39  ;;  %v6200_v48 = vcombine.high %v2790_v42, %v2798_v43  ;;  %9305 = vst [vmem:[#allocation2_spill] sm:$0xff] %v7568_v51  ;;  %v7966_v51 = vld [vmem:[%s9299_s4 + $0x4] ss:$8 sps:$4 sm:$0xff]  }
 0x10b   :  { %2529 = vmatprep.subr.bf16.mxu0 %v6018_v49  ;;  %2582 = vmatprep.subr.bf16.mxu1 %v6020_v50  ;;  %v2773_v49 = vld [vmem:[%s9301_s2 + $0x280] sm:$0xff]  ;;  %v7588_v61 = vpop.f32.mrf.mxu0 }
 0x10c   :  { %6097 = vmatprep.mubr.msk.bf16.mxu0 %vm910_vm0, %v7231_v38  ;;  %6099 = vmatprep.mubr.msk.bf16.mxu1 %vm910_vm0, %v7231_v38  ;;  %v2781_v50 = vld [vmem:[%s9301_s2 + $0x2c0] sm:$0xff] }
 0x10e   :  { %2530 = vmatpush1.bf16.msra.mxu0 %v6017_v55  ;;  %2583 = vmatpush1.bf16.msra.mxu1 %v6019_v56  ;;  %v6197_v55 = vcombine.low %v2789_v37, %v2797_v39  ;;  %v6199_v56 = vcombine.low %v2790_v42, %v2798_v43  ;;  %v6120_v39 = vcombine.high %v2710_v31, %v2718_v32  ;;  %v2693_v42 = vld [vmem:[%s9301_s2] sm:$0xff] }
 0x10f   :  { %2531 = vmatprep.subr.bf16.mxu0 %v6002_v57  ;;  %2584 = vmatprep.subr.bf16.mxu1 %v6004_v58  ;;  %v6182_v57 = vcombine.high %v2773_v49, %v2781_v50  ;;  %v6184_v58 = vcombine.high %v2774_v52, %v2782_v53  ;;  %v2701_v43 = vld [vmem:[%s9301_s2 + $0x40] sm:$0xff] }
 0x112   :  { %2532 = vmatpush1.bf16.msra.mxu0 %v6001_v63  ;;  %2585 = vmatpush1.bf16.msra.mxu1 %v6003_v0  ;;  %v2766_v63 = vld [vmem:[%s9301_s2 + $0x248] sm:$0xff]  ;;  %v7598_v0 = vpop.f32.mrf.mxu1 }
 0x113   :  { %2533 = vmatprep.subr.bf16.mxu0 %v5986_v1  ;;  %2586 = vmatprep.subr.bf16.mxu1 %v5988_v2  ;;  %v6181_v1 = vcombine.low %v2773_v49, %v2781_v50  ;;  %v6183_v2 = vcombine.low %v2774_v52, %v2782_v53  ;;  %v6168_v4 = vcombine.high %v2758_v62, %v2766_v63 }
 0x114   :  { %v6167_v13 = vcombine.low %v2758_v62, %v2766_v63  ;;  %v6119_v49 = vcombine.low %v2710_v31, %v2718_v32  ;;  %v6102_v50 = vcombine.high %v2693_v42, %v2701_v43  ;;  %v6101_v62 = vcombine.low %v2693_v42, %v2701_v43  ;;  %v2775_v31 = vld [vmem:[%s9301_s2 + $0x290] sm:$0xff] }
 0x115   :  { %v2783_v32 = vld [vmem:[%s9301_s2 + $0x2d0] sm:$0xff] }
 0x116   :  { %2534 = vmatpush1.bf16.msra.mxu0 %v5985_v7  ;;  %2587 = vmatpush1.bf16.msra.mxu1 %v5987_v8  ;;  %v7606_v7 = vpop.f32.mrf.mxu0  ;;  %v2742_v8 = vld [vmem:[%s9301_s2 + $0x188] sm:$0xff] }
 0x117   :  { %2535 = vmatprep.subr.bf16.mxu0 %v5970_v9  ;;  %2588 = vmatprep.subr.bf16.mxu1 %v5972_v10  ;;  %9307 = vst [vmem:[#allocation4_spill] sm:$0xff] %v7606_v7  ;;  %v2750_v9 = vld [vmem:[%s9301_s2 + $0x1c8] sm:$0xff]  ;;  %v7615_v10 = vpop.f32.mrf.mxu1  ;;  %v2729_v7 = vld [vmem:[%s9301_s2 + $0x120] sm:$0xff] }
 0x118   :  { %9308 = vst [vmem:[#allocation5_spill] sm:$0xff] %v7615_v10  ;;  %v7618_v12 = vpop.f32.mrf.mxu0 }
 0x11a   :  { %2536 = vmatpush1.bf16.msra.mxu0 %v5969_v15  ;;  %2589 = vmatpush1.bf16.msra.mxu1 %v5971_v16  ;;  %v7620_v15 = vpop.f32.mrf.mxu1  ;;  %v6152_v16 = vcombine.high %v2742_v8, %v2750_v9  ;;  %v7638_v23 = vpop.f32.mrf.mxu0 }
 0x11b   :  { %2537 = vmatprep.subr.bf16.mxu0 %v5954_v18  ;;  %2590 = vmatprep.subr.bf16.mxu1 %v5956_v19  ;;  %v2725_v18 = vld [vmem:[%s9301_s2 + $0x100] sm:$0xff]  ;;  %9309 = vst [vmem:[#allocation6_spill] sm:$0xff] %v7638_v23 }
 0x11c   :  { %v2733_v19 = vld [vmem:[%s9301_s2 + $0x140] sm:$0xff] }
 0x11d   :  { %v2753_v23 = vld [vmem:[%s9301_s2 + $0x1e0] sm:$0xff] }
 0x11e   :  { %2538 = vmatpush1.bf16.msra.mxu0 %v5953_v24  ;;  %2591 = vmatpush1.bf16.msra.mxu1 %v5955_v25  ;;  %v6151_v24 = vcombine.low %v2742_v8, %v2750_v9  ;;  %v6134_v25 = vcombine.high %v2725_v18, %v2733_v19  ;;  %v2816_v8 = vld [vmem:[%s9301_s2 + $0x3d8] sm:$0xff] }
 0x11f   :  { %2553 = vmatprep.subr.bf16.mxu0 %v6082_v26  ;;  %2606 = vmatprep.subr.bf16.mxu1 %v6084_v28  ;;  %v7640_v26 = vpop.f32.mrf.mxu1  ;;  %v6136_v28 = vcombine.high %v2726_v20, %v2734_v17 }
 0x120   :  { %9310 = vst [vmem:[#allocation7_spill] sm:$0xff] %v7640_v26  ;;  %v2745_v26 = vld [vmem:[%s9301_s2 + $0x1a0] sm:$0xff] }
 0x121   :  { %v7656_v37 = vpop.f32.mrf.mxu1 }
 0x122   :  { %2554 = vmatpush2.bf16.msra.mxu0 %v6081_v33  ;;  %2607 = vmatpush2.bf16.msra.mxu1 %v6083_v34  ;;  %v6133_v33 = vcombine.low %v2725_v18, %v2733_v19  ;;  %v7654_v34 = vpop.f32.mrf.mxu0  ;;  %v2791_v18 = vld [vmem:[%s9301_s2 + $0x310] sm:$0xff] }
 0x123   :  { %3557 = vmatprep.subr.bf16.mxu0 %v6214_v35  ;;  %3610 = vmatprep.subr.bf16.mxu1 %v6216_v36  ;;  %v6135_v35 = vcombine.low %v2726_v20, %v2734_v17  ;;  %v6118_v36 = vcombine.high %v2709_v29, %v2717_v30  ;;  %v7672_v52 = vpop.f32.mrf.mxu1  ;;  %v2799_v19 = vld [vmem:[%s9301_s2 + $0x350] sm:$0xff]  ;;  %v2792_v17 = vld [vmem:[%s9301_s2 + $0x318] sm:$0xff] }
 0x124   :  { %9312 = vst [vmem:[#allocation9_spill] sm:$0xff] %v7672_v52  ;;  %v6201_v42 = vcombine.low %v2791_v18, %v2799_v19  ;;  %v2761_v52 = vld [vmem:[%s9301_s2 + $0x220] sm:$0xff] }
 0x125   :  { %2556 = vmatmul.mubr.bf16.vlgmr.msra.gmra.mxu0 %v7312_v21  ;;  %2609 = vmatmul.mubr.bf16.vlgmr.msra.gmra.mxu1 %v7312_v21  ;;  %v7688_v60 = vpop.f32.mrf.mxu1 }
 0x126   :  { %3558 = vmatpush1.bf16.msra.mxu0 %v6213_v45  ;;  %3611 = vmatpush1.bf16.msra.mxu1 %v6215_v46  ;;  %v2694_v45 = vld [vmem:[%s9301_s2 + $0x8] sm:$0xff] }
 0x127   :  { %3559 = vmatprep.subr.bf16.mxu0 %v6198_v47  ;;  %3612 = vmatprep.subr.bf16.mxu1 %v6200_v48  ;;  %v2702_v46 = vld [vmem:[%s9301_s2 + $0x48] sm:$0xff]  ;;  %v6117_v47 = vcombine.low %v2709_v29, %v2717_v30  ;;  %v7670_v48 = vpop.f32.mrf.mxu0  ;;  %v7704_v9 = vpop.f32.mrf.mxu1  ;;  %v6202_v29 = vcombine.high %v2791_v18, %v2799_v19 }
 0x128   :  { %6098 = vmatprep.mubr.msk.bf16.mxu0 %vm910_vm0, %v7325_v27  ;;  %6100 = vmatprep.mubr.msk.bf16.mxu1 %vm910_vm0, %v7325_v27  ;;  %9311 = vst [vmem:[#allocation8_spill] sm:$0xff] %v7670_v48  ;;  %v6104_v53 = vcombine.high %v2694_v45, %v2702_v46  ;;  %v6103_v63 = vcombine.low %v2694_v45, %v2702_v46 }
 0x129   :  { %v6186_v46 = vcombine.high %v2775_v31, %v2783_v32 }
 0x12a   :  { %3560 = vmatpush1.bf16.msra.mxu0 %v6197_v55  ;;  %3613 = vmatpush1.bf16.msra.mxu1 %v6199_v56  ;;  %v2821_v55 = vld [vmem:[%s9301_s2 + $0x400] sm:$0xff] }
 0x12b   :  { %3561 = vmatprep.subr.bf16.mxu0 %v6182_v57  ;;  %3614 = vmatprep.subr.bf16.mxu1 %v6184_v58  ;;  %v2829_v56 = vld [vmem:[%s9301_s2 + $0x440] sm:$0xff]  ;;  %v7680_v57 = vpop.f32.mrf.mxu0  ;;  %v2822_v58 = vld [vmem:[%s9301_s2 + $0x408] sm:$0xff] }
 0x12d   :  { %2566 = vmatmul.mubr.bf16.gmra.mxu0 %v7352_v40  ;;  %2619 = vmatmul.mubr.bf16.gmra.mxu1 %v7352_v40  ;;  %v7696_v5 = vpop.f32.mrf.mxu0 }
 0x12e   :  { %3562 = vmatpush1.bf16.msra.mxu0 %v6181_v1  ;;  %3615 = vmatpush1.bf16.msra.mxu1 %v6183_v2  ;;  %v6230_v1 = vcombine.high %v2821_v55, %v2829_v56  ;;  %v6232_v2 = vcombine.high %v2822_v58, %v2830_v59 }
 0x12f   :  { %3563 = vmatprep.subr.bf16.mxu0 %v6166_v3  ;;  %3616 = vmatprep.subr.bf16.mxu1 %v6168_v4  ;;  %v2807_v3 = vld [vmem:[%s9301_s2 + $0x390] sm:$0xff]  ;;  %v7712_v20 = vpop.f32.mrf.mxu0 }
 0x130   :  { %6245 = vmatprep.mubr.msk.bf16.mxu0 %vm910_vm0, %v7231_v38  ;;  %6247 = vmatprep.mubr.msk.bf16.mxu1 %vm910_vm0, %v7231_v38  ;;  %v2815_v4 = vld [vmem:[%s9301_s2 + $0x3d0] sm:$0xff] }
 0x132   :  { %3564 = vmatpush1.bf16.msra.mxu0 %v6165_v11  ;;  %3617 = vmatpush1.bf16.msra.mxu1 %v6167_v13  ;;  %v6229_v11 = vcombine.low %v2821_v55, %v2829_v56  ;;  %v6231_v13 = vcombine.low %v2822_v58, %v2830_v59  ;;  %v2760_v55 = vld [vmem:[%s9301_s2 + $0x218] sm:$0xff]  ;;  %v6185_v58 = vcombine.low %v2775_v31, %v2783_v32 }
 0x133   :  { %3565 = vmatprep.subr.bf16.mxu0 %v6150_v14  ;;  %3618 = vmatprep.subr.bf16.mxu1 %v6152_v16  ;;  %v6218_v14 = vcombine.high %v2807_v3, %v2815_v4  ;;  %v6220_v16 = vcombine.high %v2808_v6, %v2816_v8  ;;  %v2768_v56 = vld [vmem:[%s9301_s2 + $0x258] sm:$0xff] }
 0x136   :  { %3566 = vmatpush1.bf16.msra.mxu0 %v6149_v22  ;;  %3619 = vmatpush1.bf16.msra.mxu1 %v6151_v24  ;;  %v2800_v22 = vld [vmem:[%s9301_s2 + $0x358] sm:$0xff]  ;;  %v7720_v24 = vpop.f32.mrf.mxu1 }
 0x137   :  { %3567 = vmatprep.subr.bf16.mxu0 %v6134_v25  ;;  %3620 = vmatprep.subr.bf16.mxu1 %v6136_v28  ;;  %v6217_v25 = vcombine.low %v2807_v3, %v2815_v4  ;;  %v6219_v28 = vcombine.low %v2808_v6, %v2816_v8  ;;  %v6204_v30 = vcombine.high %v2792_v17, %v2800_v22  ;;  %v2743_v3 = vld [vmem:[%s9301_s2 + $0x190] sm:$0xff]  ;;  %v2744_v6 = vld [vmem:[%s9301_s2 + $0x198] sm:$0xff] }
 0x138   :  { %v6203_v45 = vcombine.low %v2792_v17, %v2800_v22  ;;  %v2751_v4 = vld [vmem:[%s9301_s2 + $0x1d0] sm:$0xff]  ;;  %v2752_v8 = vld [vmem:[%s9301_s2 + $0x1d8] sm:$0xff] }
 0x139   :  { %v6156_v19 = vcombine.high %v2744_v6, %v2752_v8  ;;  %v2727_v17 = vld [vmem:[%s9301_s2 + $0x110] sm:$0xff]  ;;  %v2728_v22 = vld [vmem:[%s9301_s2 + $0x118] sm:$0xff] }
 0x13a   :  { %3568 = vmatpush1.bf16.msra.mxu0 %v6133_v33  ;;  %3621 = vmatpush1.bf16.msra.mxu1 %v6135_v35  ;;  %v7728_v33 = vpop.f32.mrf.mxu0  ;;  %v2776_v35 = vld [vmem:[%s9301_s2 + $0x298] sm:$0xff] }
 0x13b   :  { %3569 = vmatprep.subr.bf16.mxu0 %v6118_v36  ;;  %3622 = vmatprep.subr.bf16.mxu1 %v6120_v39  ;;  %v2784_v36 = vld [vmem:[%s9301_s2 + $0x2d8] sm:$0xff]  ;;  %v7737_v39 = vpop.f32.mrf.mxu1 }
 0x13c   :  { %v7740_v43 = vpop.f32.mrf.mxu0 }
 0x13e   :  { %3570 = vmatpush1.bf16.msra.mxu0 %v6117_v47  ;;  %3623 = vmatpush1.bf16.msra.mxu1 %v6119_v49  ;;  %v7742_v47 = vpop.f32.mrf.mxu1  ;;  %v6188_v49 = vcombine.high %v2776_v35, %v2784_v36  ;;  %v7760_v59 = vpop.f32.mrf.mxu0 }
 0x13f   :  { %3571 = vmatprep.subr.bf16.mxu0 %v6102_v50  ;;  %3624 = vmatprep.subr.bf16.mxu1 %v6104_v53  ;;  %v2759_v50 = vld [vmem:[%s9301_s2 + $0x210] sm:$0xff] }
 0x140   :  { %v2767_v53 = vld [vmem:[%s9301_s2 + $0x250] sm:$0xff] }
 0x142   :  { %3572 = vmatpush1.bf16.msra.mxu0 %v6101_v62  ;;  %3625 = vmatpush1.bf16.msra.mxu1 %v6103_v63  ;;  %v6187_v62 = vcombine.low %v2776_v35, %v2784_v36  ;;  %v6170_v63 = vcombine.high %v2759_v50, %v2767_v53  ;;  %v2711_v36 = vld [vmem:[%s9301_s2 + $0x90] sm:$0xff] }
 0x143   :  { %3587 = vmatprep.subr.bf16.mxu0 %v6230_v1  ;;  %3640 = vmatprep.subr.bf16.mxu1 %v6232_v2  ;;  %v7762_v1 = vpop.f32.mrf.mxu1  ;;  %v6172_v2 = vcombine.high %v2760_v55, %v2768_v56 }
 0x144   :  { %9313 = vst [vmem:[#allocation10_spill] sm:$0xff] %v7762_v1 }
 0x145   :  { %v7780_v18 = vpop.f32.mrf.mxu1 }
 0x146   :  { %3588 = vmatpush2.bf16.msra.mxu0 %v6229_v11  ;;  %3641 = vmatpush2.bf16.msra.mxu1 %v6231_v13  ;;  %v6169_v11 = vcombine.low %v2759_v50, %v2767_v53  ;;  %v7778_v13 = vpop.f32.mrf.mxu0  ;;  %9315 = vst [vmem:[#allocation12_spill] sm:$0xff] %v7780_v18  ;;  %v4045_v18 = vld [vmem:[%s9303_s3] sm:$0xff] }
 0x147   :  { %3663 = vmatprep.subr.bf16.mxu0 %v6218_v14  ;;  %3716 = vmatprep.subr.bf16.mxu1 %v6220_v16  ;;  %9314 = vst [vmem:[#allocation11_spill] sm:$0xff] %v7778_v13  ;;  %v6171_v14 = vcombine.low %v2760_v55, %v2768_v56  ;;  %v6154_v16 = vcombine.high %v2743_v3, %v2751_v4  ;;  %v7800_v32 = vpop.f32.mrf.mxu1  ;;  %v4053_v13 = vld [vmem:[%s9303_s3 + $0x40] sm:$0xff] }
 0x148   :  { %9317 = vst [vmem:[#allocation14_spill] sm:$0xff] %v7800_v32  ;;  %v4061_v32 = vld [vmem:[%s9303_s3 + $0x80] sm:$0xff] }
 0x149   :  { %3590 = vmatmul.mubr.bf16.vlgmr.msra.gmra.mxu0 %v7312_v21  ;;  %3643 = vmatmul.mubr.bf16.vlgmr.msra.gmra.mxu1 %v7312_v21 }
 0x14a   :  { %3664 = vmatpush1.bf16.msra.mxu0 %v6217_v25  ;;  %3717 = vmatpush1.bf16.msra.mxu1 %v6219_v28  ;;  %v2736_v25 = vld [vmem:[%s9301_s2 + $0x158] sm:$0xff]  ;;  %v6153_v28 = vcombine.low %v2743_v3, %v2751_v4 }
 0x14b   :  { %3665 = vmatprep.subr.bf16.mxu0 %v6202_v29  ;;  %3718 = vmatprep.subr.bf16.mxu1 %v6204_v30  ;;  %v7798_v29 = vpop.f32.mrf.mxu0  ;;  %v6155_v30 = vcombine.low %v2744_v6, %v2752_v8  ;;  %v6140_v35 = vcombine.high %v2728_v22, %v2736_v25  ;;  %v6139_v53 = vcombine.low %v2728_v22, %v2736_v25  ;;  %v2704_v3 = vld [vmem:[%s9301_s2 + $0x58] sm:$0xff] }
 0x14c   :  { %6246 = vmatprep.mubr.msk.bf16.mxu0 %vm910_vm0, %v7325_v27  ;;  %6248 = vmatprep.mubr.msk.bf16.mxu1 %vm910_vm0, %v7325_v27  ;;  %9316 = vst [vmem:[#allocation13_spill] sm:$0xff] %v7798_v29  ;;  %v2832_v22 = vld [vmem:[%s9301_s2 + $0x458] sm:$0xff]  ;;  %v4069_v29 = vld [vmem:[%s9303_s3 + $0xc0] sm:$0xff] }
 0x14e   :  { %3666 = vmatpush1.bf16.msra.mxu0 %v6201_v42  ;;  %3719 = vmatpush1.bf16.msra.mxu1 %v6203_v45  ;;  %v7808_v42 = vpop.f32.mrf.mxu0  ;;  %v2712_v45 = vld [vmem:[%s9301_s2 + $0x98] sm:$0xff] }
 0x14f   :  { %3667 = vmatprep.subr.bf16.mxu0 %v6186_v46  ;;  %3720 = vmatprep.subr.bf16.mxu1 %v6188_v49  ;;  %9318 = vst [vmem:[#allocation15_spill] sm:$0xff] %v7808_v42  ;;  %v2720_v46 = vld [vmem:[%s9301_s2 + $0xd8] sm:$0xff]  ;;  %v7816_v49 = vpop.f32.mrf.mxu1  ;;  %v4085_v42 = vld [vmem:[%s9303_s3 + $0x140] sm:$0xff] }
 0x150   :  { %9319 = vst [vmem:[#allocation16_spill] sm:$0xff] %v7816_v49  ;;  %v6124_v56 = vcombine.high %v2712_v45, %v2720_v46  ;;  %v6123_v8 = vcombine.low %v2712_v45, %v2720_v46  ;;  %v2810_v46 = vld [vmem:[%s9301_s2 + $0x3a8] sm:$0xff]  ;;  %v4077_v49 = vld [vmem:[%s9303_s3 + $0x100] sm:$0xff] }
 0x151   :  { %3600 = vmatmul.mubr.bf16.gmra.mxu0 %v7352_v40  ;;  %3653 = vmatmul.mubr.bf16.gmra.mxu1 %v7352_v40  ;;  %v2735_v40 = vld [vmem:[%s9301_s2 + $0x150] sm:$0xff]  ;;  %v7832_v4 = vpop.f32.mrf.mxu1 }
 0x152   :  { %3668 = vmatpush1.bf16.msra.mxu0 %v6185_v58  ;;  %3721 = vmatpush1.bf16.msra.mxu1 %v6187_v62  ;;  %v6138_v31 = vcombine.high %v2727_v17, %v2735_v40  ;;  %v6137_v50 = vcombine.low %v2727_v17, %v2735_v40  ;;  %v2695_v58 = vld [vmem:[%s9301_s2 + $0x10] sm:$0xff]  ;;  %9321 = vst [vmem:[#allocation18_spill] sm:$0xff] %v7832_v4  ;;  %v2824_v40 = vld [vmem:[%s9301_s2 + $0x418] sm:$0xff]  ;;  %v4093_v4 = vld [vmem:[%s9303_s3 + $0x180] sm:$0xff] }
 0x153   :  { %3669 = vmatprep.subr.bf16.mxu0 %v6170_v63  ;;  %3722 = vmatprep.subr.bf16.mxu1 %v6172_v2  ;;  %v2703_v62 = vld [vmem:[%s9301_s2 + $0x50] sm:$0xff]  ;;  %v7824_v63 = vpop.f32.mrf.mxu0  ;;  %v2696_v2 = vld [vmem:[%s9301_s2 + $0x18] sm:$0xff]  ;;  %v7848_v25 = vpop.f32.mrf.mxu1 }
 0x154   :  { %6249 = vmatprep.mubr.msk.bf16.mxu0 %vm910_vm0, %v7231_v38  ;;  %6251 = vmatprep.mubr.msk.bf16.mxu1 %vm910_vm0, %v7231_v38  ;;  %v2719_v38 = vld [vmem:[%s9301_s2 + $0xd0] sm:$0xff]  ;;  %9320 = vst [vmem:[#allocation17_spill] sm:$0xff] %v7824_v63  ;;  %9323 = vst [vmem:[#allocation20_spill] sm:$0xff] %v7848_v25  ;;  %v4109_v25 = vld [vmem:[%s9303_s3 + $0x200] sm:$0xff] }
 0x155   :  { %v6122_v55 = vcombine.high %v2711_v36, %v2719_v38  ;;  %v6121_v6 = vcombine.low %v2711_v36, %v2719_v38  ;;  %v7840_v17 = vpop.f32.mrf.mxu0  ;;  %v2809_v36 = vld [vmem:[%s9301_s2 + $0x3a0] sm:$0xff] }
 0x156   :  { %3670 = vmatpush1.bf16.msra.mxu0 %v6169_v11  ;;  %3723 = vmatpush1.bf16.msra.mxu1 %v6171_v14  ;;  %v6106_v11 = vcombine.high %v2695_v58, %v2703_v62  ;;  %v6108_v14 = vcombine.high %v2696_v2, %v2704_v3  ;;  %9322 = vst [vmem:[#allocation19_spill] sm:$0xff] %v7840_v17  ;;  %v2817_v38 = vld [vmem:[%s9301_s2 + $0x3e0] sm:$0xff] }
 0x157   :  { %3671 = vmatprep.subr.bf16.mxu0 %v6154_v16  ;;  %3724 = vmatprep.subr.bf16.mxu1 %v6156_v19  ;;  %v2823_v16 = vld [vmem:[%s9301_s2 + $0x410] sm:$0xff]  ;;  %v7856_v45 = vpop.f32.mrf.mxu0  ;;  %v4101_v63 = vld [vmem:[%s9303_s3 + $0x1c0] sm:$0xff] }
 0x158   :  { %v2831_v19 = vld [vmem:[%s9301_s2 + $0x450] sm:$0xff]  ;;  %9324 = vst [vmem:[#allocation21_spill] sm:$0xff] %v7856_v45  ;;  %v4133_v45 = vld [vmem:[%s9303_s3 + $0x2c0] sm:$0xff] }
 0x15a   :  { %3672 = vmatpush1.bf16.msra.mxu0 %v6153_v28  ;;  %3725 = vmatpush1.bf16.msra.mxu1 %v6155_v30  ;;  %v6105_v28 = vcombine.low %v2695_v58, %v2703_v62  ;;  %v6107_v30 = vcombine.low %v2696_v2, %v2704_v3  ;;  %v6235_v58 = vcombine.low %v2824_v40, %v2832_v22 }
 0x15b   :  { %3673 = vmatprep.subr.bf16.mxu0 %v6138_v31  ;;  %3726 = vmatprep.subr.bf16.mxu1 %v6140_v35  ;;  %v6234_v31 = vcombine.high %v2823_v16, %v2831_v19  ;;  %v6236_v35 = vcombine.high %v2824_v40, %v2832_v22  ;;  %v6222_v62 = vcombine.high %v2809_v36, %v2817_v38 }
 0x15e   :  { %3674 = vmatpush1.bf16.msra.mxu0 %v6137_v50  ;;  %3727 = vmatpush1.bf16.msra.mxu1 %v6139_v53  ;;  %v2818_v50 = vld [vmem:[%s9301_s2 + $0x3e8] sm:$0xff]  ;;  %v7864_v53 = vpop.f32.mrf.mxu1 }
 0x15f   :  { %3675 = vmatprep.subr.bf16.mxu0 %v6122_v55  ;;  %3728 = vmatprep.subr.bf16.mxu1 %v6124_v56  ;;  %9325 = vst [vmem:[#allocation22_spill] sm:$0xff] %v7864_v53  ;;  %v6233_v55 = vcombine.low %v2823_v16, %v2831_v19  ;;  %v7866_v56 = vpop.f32.mrf.mxu0  ;;  %v6224_v3 = vcombine.high %v2810_v46, %v2818_v50  ;;  %v4125_v53 = vld [vmem:[%s9303_s3 + $0x280] sm:$0xff] }
 0x160   :  { %9326 = vst [vmem:[#allocation23_spill] sm:$0xff] %v7866_v56  ;;  %v7868_v2 = vpop.f32.mrf.mxu1  ;;  %v6221_v16 = vcombine.low %v2809_v36, %v2817_v38  ;;  %v6223_v40 = vcombine.low %v2810_v46, %v2818_v50  ;;  %v2778_v36 = vld [vmem:[%s9301_s2 + $0x2a8] sm:$0xff]  ;;  %v4141_v56 = vld [vmem:[%s9303_s3 + $0x300] sm:$0xff] }
 0x161   :  { %9327 = vst [vmem:[#allocation24_spill] sm:$0xff] %v7868_v2  ;;  %v7882_v19 = vpop.f32.mrf.mxu0  ;;  %v2786_v38 = vld [vmem:[%s9301_s2 + $0x2e8] sm:$0xff]  ;;  %v4165_v2 = vld [vmem:[%s9303_s3 + $0x3c0] sm:$0xff] }
 0x162   :  { %3676 = vmatpush1.bf16.msra.mxu0 %v6121_v6  ;;  %3729 = vmatpush1.bf16.msra.mxu1 %v6123_v8  ;;  %v2793_v6 = vld [vmem:[%s9301_s2 + $0x320] sm:$0xff]  ;;  %9328 = vst [vmem:[#allocation25_spill] sm:$0xff] %v7882_v19  ;;  %v2699_v19 = vld [vmem:[%s9301_s2 + $0x30] sm:$0xff] }
 0x163   :  { %3677 = vmatprep.subr.bf16.mxu0 %v6106_v11  ;;  %3730 = vmatprep.subr.bf16.mxu1 %v6108_v14  ;;  %v2801_v8 = vld [vmem:[%s9301_s2 + $0x360] sm:$0xff]  ;;  %v2794_v11 = vld [vmem:[%s9301_s2 + $0x328] sm:$0xff] }
 0x164   :  { %v2802_v14 = vld [vmem:[%s9301_s2 + $0x368] sm:$0xff]  ;;  %v6206_v22 = vcombine.high %v2793_v6, %v2801_v8  ;;  %v6205_v50 = vcombine.low %v2793_v6, %v2801_v8  ;;  %v2769_v6 = vld [vmem:[%s9301_s2 + $0x260] sm:$0xff]  ;;  %v7920_v8 = vld [vmem:[%s9299_s4 + $0x14] ss:$8 sps:$4 sm:$0xff]  }
 0x165   :  { %v7902_v46 = vld [vmem:[%s9299_s4] ss:$8 sps:$4 sm:$0xff]  }
 0x166   :  { %3678 = vmatpush1.bf16.msra.mxu0 %v6105_v28  ;;  %3731 = vmatpush1.bf16.msra.mxu1 %v6107_v30  ;;  %v7884_v28 = vpop.f32.mrf.mxu1  ;;  %v6208_v30 = vcombine.high %v2794_v11, %v2802_v14 }
 0x167   :  { %3693 = vmatprep.subr.bf16.mxu0 %v6234_v31  ;;  %3746 = vmatprep.subr.bf16.mxu1 %v6236_v35  ;;  %9329 = vst [vmem:[#allocation26_spill] sm:$0xff] %v7884_v28  ;;  %v2777_v31 = vld [vmem:[%s9301_s2 + $0x2a0] sm:$0xff] }
 0x168   :  { %v2785_v35 = vld [vmem:[%s9301_s2 + $0x2e0] sm:$0xff] }
 0x16a   :  { %3694 = vmatpush2.bf16.msra.mxu0 %v6233_v55  ;;  %3747 = vmatpush2.bf16.msra.mxu1 %v6235_v58  ;;  %v7905_v55 = vpop.f32.mrf.mxu0  ;;  %v6190_v58 = vcombine.high %v2777_v31, %v2785_v35 }
 0x16b   :  { %3769 = vmatprep.subr.bf16.mxu0 %v6222_v62  ;;  %3822 = vmatprep.subr.bf16.mxu1 %v6224_v3  ;;  %9330 = vst [vmem:[#allocation27_spill] sm:$0xff] %v7905_v55  ;;  %v7907_v62 = vpop.f32.mrf.mxu1  ;;  %v6192_v3 = vcombine.high %v2778_v36, %v2786_v38  ;;  %v6506_v55 = vmov 0  }
 0x16c   :  { %9331 = vst [vmem:[#allocation28_spill] sm:$0xff] %v7907_v62  ;;  %6486 = vset.pattern.permute.xlu0 %v6506_v55  ;;  %6487 = vset.pattern.permute.xlu1 %v6506_v55  ;;  %v2700_v55 = vld [vmem:[%s9301_s2 + $0x38] sm:$0xff] }
 0x16d   :  { %3696 = vmatmul.mubr.bf16.vlgmr.msra.gmra.mxu0 %v7312_v21  ;;  %3749 = vmatmul.mubr.bf16.vlgmr.msra.gmra.mxu1 %v7902_v46  ;;  %v6207_v21 = vcombine.low %v2794_v11, %v2802_v14  ;;  %v2770_v11 = vld [vmem:[%s9301_s2 + $0x268] sm:$0xff]  ;;  %v6189_v14 = vcombine.low %v2777_v31, %v2785_v35  ;;  %v7945_v31 = vld [vmem:[%s9299_s4 + $0x10] ss:$8 sps:$4 sm:$0xff]  }
 0x16e   :  { %3770 = vmatpush1.bf16.msra.mxu0 %v6221_v16  ;;  %3823 = vmatpush1.bf16.msra.mxu1 %v6223_v40  ;;  %v7930_v16 = vpop.f32.mrf.mxu0  ;;  %v6191_v40 = vcombine.low %v2778_v36, %v2786_v38  ;;  %v2746_v35 = vld [vmem:[%s9301_s2 + $0x1a8] sm:$0xff] }
 0x16f   :  { %3771 = vmatprep.subr.bf16.mxu0 %v6206_v22  ;;  %3824 = vmatprep.subr.bf16.mxu1 %v6208_v30  ;;  %9332 = vst [vmem:[#allocation29_spill] sm:$0xff] %v7930_v16  ;;  %v6174_v22 = vcombine.high %v2761_v52, %v2769_v6  ;;  %v7932_v30 = vpop.f32.mrf.mxu1  ;;  %v2754_v36 = vld [vmem:[%s9301_s2 + $0x1e8] sm:$0xff] }
 0x170   :  { %6250 = vmatprep.mubr.msk.bf16.mxu0 %vm910_vm0, %v7325_v27  ;;  %6252 = vmatprep.mubr.msk.bf16.mxu1 %vm910_vm0, %v7920_v8  ;;  %v2762_v27 = vld [vmem:[%s9301_s2 + $0x228] sm:$0xff]  ;;  %9333 = vst [vmem:[#allocation30_spill] sm:$0xff] %v7932_v30  ;;  %v6160_v10 = vcombine.high %v2746_v35, %v2754_v36 }
 0x171   :  { %v6176_v48 = vcombine.high %v2762_v27, %v2770_v11  ;;  %v7954_v38 = vpop.f32.mrf.mxu1 }
 0x172   :  { %3772 = vmatpush1.bf16.msra.mxu0 %v6205_v50  ;;  %3825 = vmatpush1.bf16.msra.mxu1 %v6207_v21  ;;  %v7940_v50 = vpop.f32.mrf.mxu0  ;;  %9335 = vst [vmem:[#allocation32_spill] sm:$0xff] %v7954_v38  ;;  %v6173_v21 = vcombine.low %v2761_v52, %v2769_v6  ;;  %v2738_v6 = vld [vmem:[%s9301_s2 + $0x168] sm:$0xff]  ;;  %v2721_v38 = vld [vmem:[%s9301_s2 + $0xe0] sm:$0xff] }
 0x173   :  { %3773 = vmatprep.subr.bf16.mxu0 %v6190_v58  ;;  %3826 = vmatprep.subr.bf16.mxu1 %v6192_v3  ;;  %9334 = vst [vmem:[#allocation31_spill] sm:$0xff] %v7940_v50  ;;  %v6175_v58 = vcombine.low %v2762_v27, %v2770_v11  ;;  %v6158_v3 = vcombine.high %v2745_v26, %v2753_v23  ;;  %v7980_v27 = vpop.f32.mrf.mxu1 }
 0x174   :  { %v7970_v52 = vpop.f32.mrf.mxu0  ;;  %9337 = vst [vmem:[#allocation34_spill] sm:$0xff] %v7980_v27  ;;  %v6157_v11 = vcombine.low %v2745_v26, %v2753_v23  ;;  %v2714_v23 = vld [vmem:[%s9301_s2 + $0xa8] sm:$0xff] }
 0x175   :  { %3706 = vmatmul.mubr.bf16.gmra.mxu0 %v7945_v31  ;;  %3759 = vmatmul.mubr.bf16.gmra.mxu1 %v7945_v31  ;;  %9336 = vst [vmem:[#allocation33_spill] sm:$0xff] %v7970_v52  ;;  %v2713_v52 = vld [vmem:[%s9301_s2 + $0xa0] sm:$0xff]  ;;  %v2722_v26 = vld [vmem:[%s9301_s2 + $0xe8] sm:$0xff] }
 0x176   :  { %3774 = vmatpush1.bf16.msra.mxu0 %v6189_v14  ;;  %3827 = vmatpush1.bf16.msra.mxu1 %v6191_v40  ;;  %v6159_v14 = vcombine.low %v2746_v35, %v2754_v36  ;;  %v6142_v40 = vcombine.high %v2729_v7, %v2737_v54  ;;  %v7988_v50 = vpop.f32.mrf.mxu0  ;;  %v6141_v35 = vcombine.low %v2729_v7, %v2737_v54  ;;  %v2698_v54 = vld [vmem:[%s9301_s2 + $0x28] sm:$0xff] }
 0x177   :  { %3775 = vmatprep.subr.bf16.mxu0 %v6174_v22  ;;  %3828 = vmatprep.subr.bf16.mxu1 %v6176_v48  ;;  %v2730_v48 = vld [vmem:[%s9301_s2 + $0x128] sm:$0xff]  ;;  %9338 = vst [vmem:[#allocation35_spill] sm:$0xff] %v7988_v50  ;;  %v2705_v50 = vld [vmem:[%s9301_s2 + $0x60] sm:$0xff] }
 0x178   :  { %6253 = vmatprep.mubr.msk.bf16.mxu0 %vm910_vm0, %v7966_v51  ;;  %6255 = vmatprep.mubr.msk.bf16.mxu1 %vm910_vm0, %v7966_v51  ;;  %v6144_v22 = vcombine.high %v2730_v48, %v2738_v6  ;;  %v6143_v36 = vcombine.low %v2730_v48, %v2738_v6  ;;  %v8004_v27 = vpop.f32.mrf.mxu0  ;;  %v2706_v7 = vld [vmem:[%s9301_s2 + $0x68] sm:$0xff]  ;;  %v6125_v6 = vcombine.low %v2713_v52, %v2721_v38 }
 0x179   :  { %9340 = vst [vmem:[#allocation37_spill] sm:$0xff] %v8004_v27  ;;  %v6112_v27 = vcombine.high %v2698_v54, %v2706_v7 }
 0x17a   :  { %3776 = vmatpush1.bf16.msra.mxu0 %v6173_v21  ;;  %3829 = vmatpush1.bf16.msra.mxu1 %v6175_v58  ;;  %v6126_v21 = vcombine.high %v2713_v52, %v2721_v38  ;;  %v6128_v58 = vcombine.high %v2714_v23, %v2722_v26  ;;  %v2826_v38 = vld [vmem:[%s9301_s2 + $0x428] sm:$0xff] }
 0x17b   :  { %3777 = vmatprep.subr.bf16.mxu0 %v6158_v3  ;;  %3830 = vmatprep.subr.bf16.mxu1 %v6160_v10  ;;  %v7996_v10 = vpop.f32.mrf.mxu1  ;;  %v2697_v3 = vld [vmem:[%s9301_s2 + $0x20] sm:$0xff]  ;;  %v2834_v52 = vld [vmem:[%s9301_s2 + $0x468] sm:$0xff] }
 0x17c   :  { %9339 = vst [vmem:[#allocation36_spill] sm:$0xff] %v7996_v10  ;;  %v2825_v10 = vld [vmem:[%s9301_s2 + $0x420] sm:$0xff] }
 0x17d   :  { %v8012_v48 = vpop.f32.mrf.mxu1 }
 0x17e   :  { %3778 = vmatpush1.bf16.msra.mxu0 %v6157_v11  ;;  %3831 = vmatpush1.bf16.msra.mxu1 %v6159_v14  ;;  %9341 = vst [vmem:[#allocation38_spill] sm:$0xff] %v8012_v48  ;;  %v8014_v11 = vpop.f32.mrf.mxu0  ;;  %v6127_v14 = vcombine.low %v2714_v23, %v2722_v26  ;;  %v2833_v48 = vld [vmem:[%s9301_s2 + $0x460] sm:$0xff]  ;;  %v6109_v23 = vcombine.low %v2697_v3, %v2705_v50 }
 0x17f   :  { %3779 = vmatprep.subr.bf16.mxu0 %v6142_v40  ;;  %3832 = vmatprep.subr.bf16.mxu1 %v6144_v22  ;;  %9342 = vst [vmem:[#allocation39_spill] sm:$0xff] %v8014_v11  ;;  %v6110_v40 = vcombine.high %v2697_v3, %v2705_v50  ;;  %v8016_v22 = vpop.f32.mrf.mxu1  ;;  %v2819_v11 = vld [vmem:[%s9301_s2 + $0x3f0] sm:$0xff]  ;;  %v2812_v50 = vld [vmem:[%s9301_s2 + $0x3b8] sm:$0xff] }
 0x180   :  { %9343 = vst [vmem:[#allocation40_spill] sm:$0xff] %v8016_v22  ;;  %v8030_v26 = vpop.f32.mrf.mxu0  ;;  %v2811_v22 = vld [vmem:[%s9301_s2 + $0x3b0] sm:$0xff]  ;;  %v2820_v3 = vld [vmem:[%s9301_s2 + $0x3f8] sm:$0xff] }
 0x181   :  { %9344 = vst [vmem:[#allocation41_spill] sm:$0xff] %v8030_v26  ;;  %v2803_v26 = vld [vmem:[%s9301_s2 + $0x370] sm:$0xff] }
 0x182   :  { %3780 = vmatpush1.bf16.msra.mxu0 %v6141_v35  ;;  %3833 = vmatpush1.bf16.msra.mxu1 %v6143_v36  ;;  %v6111_v35 = vcombine.low %v2698_v54, %v2706_v7  ;;  %v6238_v36 = vcombine.high %v2825_v10, %v2833_v48  ;;  %v6237_v54 = vcombine.low %v2825_v10, %v2833_v48  ;;  %v2796_v10 = vld [vmem:[%s9301_s2 + $0x338] sm:$0xff] }
 0x183   :  { %3781 = vmatprep.subr.bf16.mxu0 %v6126_v21  ;;  %3834 = vmatprep.subr.bf16.mxu1 %v6128_v58  ;;  %v8032_v21 = vpop.f32.mrf.mxu1  ;;  %v6240_v58 = vcombine.high %v2826_v38, %v2834_v52  ;;  %v6239_v7 = vcombine.low %v2826_v38, %v2834_v52  ;;  %v2804_v48 = vld [vmem:[%s9301_s2 + $0x378] sm:$0xff]  ;;  %v6225_v38 = vcombine.low %v2811_v22, %v2819_v11 }
 0x184   :  { %9345 = vst [vmem:[#allocation42_spill] sm:$0xff] %v8032_v21  ;;  %v2795_v21 = vld [vmem:[%s9301_s2 + $0x330] sm:$0xff] }
 0x186   :  { %3782 = vmatpush1.bf16.msra.mxu0 %v6125_v6  ;;  %3835 = vmatpush1.bf16.msra.mxu1 %v6127_v14  ;;  %v6226_v6 = vcombine.high %v2811_v22, %v2819_v11  ;;  %v8048_v14 = vpop.f32.mrf.mxu1  ;;  %v2780_v11 = vld [vmem:[%s9301_s2 + $0x2b8] sm:$0xff] }
 0x187   :  { %3783 = vmatprep.subr.bf16.mxu0 %v6110_v40  ;;  %3836 = vmatprep.subr.bf16.mxu1 %v6112_v27  ;;  %v8046_v27 = vpop.f32.mrf.mxu0  ;;  %9347 = vst [vmem:[#allocation44_spill] sm:$0xff] %v8048_v14  ;;  %v6228_v40 = vcombine.high %v2812_v50, %v2820_v3  ;;  %v2779_v14 = vld [vmem:[%s9301_s2 + $0x2b0] sm:$0xff]  ;;  %v2788_v22 = vld [vmem:[%s9301_s2 + $0x2f8] sm:$0xff] }
 0x188   :  { %9346 = vst [vmem:[#allocation43_spill] sm:$0xff] %v8046_v27  ;;  %v2787_v27 = vld [vmem:[%s9301_s2 + $0x2f0] sm:$0xff] }
 0x189   :  { %v8062_v52 = vpop.f32.mrf.mxu0 }
 0x18a   :  { %3784 = vmatpush1.bf16.msra.mxu0 %v6109_v23  ;;  %3837 = vmatpush1.bf16.msra.mxu1 %v6111_v35  ;;  %9348 = vst [vmem:[#allocation45_spill] sm:$0xff] %v8062_v52  ;;  %v6227_v23 = vcombine.low %v2812_v50, %v2820_v3  ;;  %v6210_v35 = vcombine.high %v2795_v21, %v2803_v26  ;;  %v2771_v52 = vld [vmem:[%s9301_s2 + $0x270] sm:$0xff] }
 0x18b   :  { %3799 = vmatprep.subr.bf16.mxu0 %v6238_v36  ;;  %3852 = vmatprep.subr.bf16.mxu1 %v6240_v58  ;;  %v8064_v36 = vpop.f32.mrf.mxu1  ;;  %v6212_v58 = vcombine.high %v2796_v10, %v2804_v48  ;;  %v6209_v3 = vcombine.low %v2795_v21, %v2803_v26  ;;  %v2764_v26 = vld [vmem:[%s9301_s2 + $0x238] sm:$0xff] }
 0x18c   :  { %9349 = vst [vmem:[#allocation46_spill] sm:$0xff] %v8064_v36  ;;  %v2763_v36 = vld [vmem:[%s9301_s2 + $0x230] sm:$0xff]  ;;  %v2772_v21 = vld [vmem:[%s9301_s2 + $0x278] sm:$0xff] }
 0x18d   :  { %v8081_v50 = vpop.f32.mrf.mxu1 }
 0x18e   :  { %3800 = vmatpush2.bf16.msra.mxu0 %v6237_v54  ;;  %3853 = vmatpush2.bf16.msra.mxu1 %v6239_v7  ;;  %v8072_v54 = vpop.f32.mrf.mxu0  ;;  %v6211_v7 = vcombine.low %v2796_v10, %v2804_v48  ;;  %v6193_v48 = vcombine.low %v2779_v14, %v2787_v27 }
 0x18f   :  { %3875 = vmatprep.subr.bf16.mxu0 %v6226_v6  ;;  %3928 = vmatprep.subr.bf16.mxu1 %v6228_v40  ;;  %v6194_v6 = vcombine.high %v2779_v14, %v2787_v27  ;;  %v6196_v40 = vcombine.high %v2780_v11, %v2788_v22  ;;  %v8102_v10 = vpop.f32.mrf.mxu1  ;;  %v2748_v27 = vld [vmem:[%s9301_s2 + $0x1b8] sm:$0xff] }
 0x190   :  { %v8092_v30 = vpop.f32.mrf.mxu0  ;;  %9351 = vst [vmem:[#allocation48_spill] sm:$0xff] %v8102_v10  ;;  %v2756_v14 = vld [vmem:[%s9301_s2 + $0x1f8] sm:$0xff]  ;;  %v2739_v10 = vld [vmem:[%s9301_s2 + $0x170] sm:$0xff] }
 0x191   :  { %3802 = vmatmul.mubr.bf16.vlgmr.msra.gmra.mxu0 %v7902_v46  ;;  %3855 = vmatmul.mubr.bf16.vlgmr.msra.gmra.mxu1 %v7902_v46  ;;  %9350 = vst [vmem:[#allocation47_spill] sm:$0xff] %v8092_v30  ;;  %v2755_v30 = vld [vmem:[%s9301_s2 + $0x1f0] sm:$0xff] }
 0x192   :  { %3876 = vmatpush1.bf16.msra.mxu0 %v6225_v38  ;;  %3929 = vmatpush1.bf16.msra.mxu1 %v6227_v23  ;;  %v6195_v38 = vcombine.low %v2780_v11, %v2788_v22  ;;  %v6178_v23 = vcombine.high %v2763_v36, %v2771_v52  ;;  %v8110_v16 = vpop.f32.mrf.mxu0  ;;  %v8119_v11 = vpop.f32.mrf.mxu1  ;;  %v6177_v22 = vcombine.low %v2763_v36, %v2771_v52  ;;  %v2732_v52 = vld [vmem:[%s9301_s2 + $0x138] sm:$0xff] }
 0x193   :  { %3877 = vmatprep.subr.bf16.mxu0 %v6210_v35  ;;  %3930 = vmatprep.subr.bf16.mxu1 %v6212_v58  ;;  %v6180_v35 = vcombine.high %v2764_v26, %v2772_v21  ;;  %v2747_v58 = vld [vmem:[%s9301_s2 + $0x1b0] sm:$0xff]  ;;  %v2740_v36 = vld [vmem:[%s9301_s2 + $0x178] sm:$0xff] }
 0x194   :  { %6254 = vmatprep.mubr.msk.bf16.mxu0 %vm910_vm0, %v7920_v8  ;;  %6256 = vmatprep.mubr.msk.bf16.mxu1 %vm910_vm0, %v7920_v8  ;;  %v8130_v62 = vpop.f32.mrf.mxu0 }
 0x195   :  { %9352 = vst [vmem:[#allocation49_spill] sm:$0xff] %v8130_v62  ;;  %v2723_v62 = vld [vmem:[%s9301_s2 + $0xf0] sm:$0xff] }
 0x196   :  { %3878 = vmatpush1.bf16.msra.mxu0 %v6209_v3  ;;  %3931 = vmatpush1.bf16.msra.mxu1 %v6211_v7  ;;  %v6179_v3 = vcombine.low %v2764_v26, %v2772_v21  ;;  %v6162_v7 = vcombine.high %v2747_v58, %v2755_v30  ;;  %v8140_v26 = vpop.f32.mrf.mxu1  ;;  %v6161_v21 = vcombine.low %v2747_v58, %v2755_v30  ;;  %v5397_v30 = vld [vmem:[%s9302_s5] sm:$0xff]  ;;  %v8151_v58 = vpop.f32.mrf.mxu0 }
 0x197   :  { %3879 = vmatprep.subr.bf16.mxu0 %v6194_v6  ;;  %3932 = vmatprep.subr.bf16.mxu1 %v6196_v40  ;;  %v6164_v6 = vcombine.high %v2748_v27, %v2756_v14  ;;  %v2731_v40 = vld [vmem:[%s9301_s2 + $0x130] sm:$0xff]  ;;  %9353 = vst [vmem:[#allocation50_spill] sm:$0xff] %v8140_v26  ;;  %v5398_v26 = vld [vmem:[%s9302_s5 + $0x8] sm:$0xff] }
 0x198   :  { %5403 = vperm.xlu0 %6486, %v5397_v30  }
 0x199   :  { %3812 = vmatmul.mubr.bf16.gmra.mxu0 %v7945_v31  ;;  %3865 = vmatmul.mubr.bf16.gmra.mxu1 %v7945_v31 }
 0x19a   :  { %3880 = vmatpush1.bf16.msra.mxu0 %v6193_v48  ;;  %3933 = vmatpush1.bf16.msra.mxu1 %v6195_v38  ;;  %v6163_v48 = vcombine.low %v2748_v27, %v2756_v14  ;;  %v6146_v38 = vcombine.high %v2731_v40, %v2739_v10  ;;  %v2716_v27 = vld [vmem:[%s9301_s2 + $0xb8] sm:$0xff] }
 0x19b   :  { %3881 = vmatprep.subr.bf16.mxu0 %v6178_v23  ;;  %3934 = vmatprep.subr.bf16.mxu1 %v6180_v35  ;;  %v6148_v23 = vcombine.high %v2732_v52, %v2740_v36  ;;  %v2715_v35 = vld [vmem:[%s9301_s2 + $0xb0] sm:$0xff]  ;;  %v2724_v14 = vld [vmem:[%s9301_s2 + $0xf8] sm:$0xff] }
 0x19c   :  { %6257 = vmatprep.mubr.msk.bf16.mxu0 %vm910_vm0, %v7966_v51  ;;  %6259 = vmatprep.mubr.msk.bf16.mxu1 %vm910_vm0, %v7966_v51  ;;  %v6132_v28 = vcombine.high %v2716_v27, %v2724_v14 }
 0x19d   :  { %5408 = vperm.xlu0 %6486, %v5398_v26   ;;  %v2835_v26 = vld [vmem:[%s9301_s2 + $0x470] sm:$0xff] }
 0x19e   :  { %3882 = vmatpush1.bf16.msra.mxu0 %v6177_v22  ;;  %3935 = vmatpush1.bf16.msra.mxu1 %v6179_v3  ;;  %v8159_v22 = vpop.f32.mrf.mxu1  ;;  %v6145_v3 = vcombine.low %v2731_v40, %v2739_v10  ;;  %v8170_v10 = vpop.f32.mrf.mxu0  ;;  %v2708_v40 = vld [vmem:[%s9301_s2 + $0x78] sm:$0xff] }
 0x19f   :  { %3883 = vmatprep.subr.bf16.mxu0 %v6162_v7  ;;  %3936 = vmatprep.subr.bf16.mxu1 %v6164_v6  ;;  %v6147_v7 = vcombine.low %v2732_v52, %v2740_v36  ;;  %v6130_v6 = vcombine.high %v2715_v35, %v2723_v62  ;;  %9354 = vst [vmem:[#allocation51_spill] sm:$0xff] %v8170_v10  ;;  %v2827_v10 = vld [vmem:[%s9301_s2 + $0x430] sm:$0xff] }
 0x1a0   :  { %v8178_v52 = vpop.f32.mrf.mxu1  ;;  %v6129_v36 = vcombine.low %v2715_v35, %v2723_v62  ;;  %v6116_v30 = vcombine.high %v2700_v55, %v2708_v40  ;;  %v8189_v62 = vpop.f32.mrf.mxu0  ;;  %v2828_v35 = vld [vmem:[%s9301_s2 + $0x438] sm:$0xff] }
 0x1a1   :  { %9355 = vst [vmem:[#allocation52_spill] sm:$0xff] %v8178_v52  ;;  %v4157_v52 = vld [vmem:[%s9303_s3 + $0x380] sm:$0xff] }
 0x1a2   :  { %3884 = vmatpush1.bf16.msra.mxu0 %v6161_v21  ;;  %3937 = vmatpush1.bf16.msra.mxu1 %v6163_v48  ;;  %v2707_v21 = vld [vmem:[%s9301_s2 + $0x70] sm:$0xff]  ;;  %v6131_v48 = vcombine.low %v2716_v27, %v2724_v14  ;;  %v8197_v27 = vpop.f32.mrf.mxu1 }
 0x1a3   :  { %3885 = vmatprep.subr.bf16.mxu0 %v6146_v38  ;;  %3938 = vmatprep.subr.bf16.mxu1 %v6148_v23  ;;  %v6114_v38 = vcombine.high %v2699_v19, %v2707_v21  ;;  %v5399_v23 = vld [vmem:[%s9302_s5 + $0x10] sm:$0xff]  ;;  %v6113_v14 = vcombine.low %v2699_v19, %v2707_v21  ;;  %v8208_v19 = vpop.f32.mrf.mxu0  ;;  %v4158_v21 = vld [vmem:[%s9303_s3 + $0x388] sm:$0xff] }
 0x1a4   :  { %5413 = vperm.xlu1 %6487, %v5399_v23   ;;  %9356 = vst [vmem:[#allocation53_spill] sm:$0xff] %v8208_v19 }
 0x1a6   :  { %3886 = vmatpush1.bf16.msra.mxu0 %v6145_v3  ;;  %3939 = vmatpush1.bf16.msra.mxu1 %v6147_v7  ;;  %v6115_v3 = vcombine.low %v2700_v55, %v2708_v40  ;;  %v6242_v7 = vcombine.high %v2827_v10, %v2835_v26  ;;  %v4166_v55 = vld [vmem:[%s9303_s3 + $0x3c8] sm:$0xff]  ;;  %v8216_v40 = vpop.f32.mrf.mxu1 }
 0x1a7   :  { %3887 = vmatprep.subr.bf16.mxu0 %v6130_v6  ;;  %3940 = vmatprep.subr.bf16.mxu1 %v6132_v28  ;;  %v2836_v28 = vld [vmem:[%s9301_s2 + $0x478] sm:$0xff]  ;;  %9357 = vst [vmem:[#allocation54_spill] sm:$0xff] %v8216_v40  ;;  %v6376_v19 = vcombine.high %v4158_v21, %v4166_v55  ;;  %v4149_v40 = vld [vmem:[%s9303_s3 + $0x340] sm:$0xff] }
 0x1a8   :  { %v5400_v6 = vld [vmem:[%s9302_s5 + $0x18] sm:$0xff]  ;;  %v6244_v23 = vcombine.high %v2828_v35, %v2836_v28 }
 0x1a9   :  { %5418 = vperm.xlu1 %6487, %v5400_v6   ;;  %v8220_v6 = vpop.f32.mrf.mxu1 }
 0x1aa   :  { %3888 = vmatpush1.bf16.msra.mxu0 %v6129_v36  ;;  %3941 = vmatpush1.bf16.msra.mxu1 %v6131_v48  ;;  %v6241_v36 = vcombine.low %v2827_v10, %v2835_v26  ;;  %v8218_v48 = vpop.f32.mrf.mxu0  ;;  %v4142_v10 = vld [vmem:[%s9303_s3 + $0x308] sm:$0xff] }
 0x1ab   :  { %3889 = vmatprep.subr.bf16.mxu0 %v6114_v38  ;;  %3942 = vmatprep.subr.bf16.mxu1 %v6116_v30  ;;  %v6243_v38 = vcombine.low %v2828_v35, %v2836_v28  ;;  %v6374_v30 = vcombine.high %v4157_v52, %v4165_v2  ;;  %v4150_v26 = vld [vmem:[%s9303_s3 + $0x348] sm:$0xff]  ;;  %v6373_v35 = vcombine.low %v4157_v52, %v4165_v2 }
 0x1ac   :  { %v8234_v28 = vpop.f32.mrf.mxu0  ;;  %v4126_v2 = vld [vmem:[%s9303_s3 + $0x288] sm:$0xff] }
 0x1ad   :  { %v4134_v52 = vld [vmem:[%s9303_s3 + $0x2c8] sm:$0xff] }
 0x1ae   :  { %3890 = vmatpush1.bf16.msra.mxu0 %v6113_v14  ;;  %3943 = vmatpush1.bf16.msra.mxu1 %v6115_v3  ;;  %v6375_v14 = vcombine.low %v4158_v21, %v4166_v55  ;;  %v6358_v3 = vcombine.high %v4141_v56, %v4149_v40  ;;  %v8252_v21 = vpop.f32.mrf.mxu0  ;;  %v6359_v55 = vcombine.low %v4142_v10, %v4150_v26 }
 0x1af   :  { %3905 = vmatprep.subr.bf16.mxu0 %v6242_v7  ;;  %3958 = vmatprep.subr.bf16.mxu1 %v6244_v23  ;;  %v8236_v7 = vpop.f32.mrf.mxu1  ;;  %v6360_v23 = vcombine.high %v4142_v10, %v4150_v26  ;;  %v4118_v10 = vld [vmem:[%s9303_s3 + $0x248] sm:$0xff]  ;;  %v6341_v26 = vcombine.low %v4125_v53, %v4133_v45 }
 0x1b2   :  { %3906 = vmatpush2.bf16.msra.mxu0 %v6241_v36  ;;  %3959 = vmatpush2.bf16.msra.mxu1 %v6243_v38  ;;  %v6342_v36 = vcombine.high %v4125_v53, %v4133_v45  ;;  %v8254_v38 = vpop.f32.mrf.mxu1  ;;  %v4094_v45 = vld [vmem:[%s9303_s3 + $0x188] sm:$0xff] }
 0x1b3   :  { %4909 = vmatprep.subr.bf16.mxu0 %v6374_v30  ;;  %4962 = vmatprep.subr.bf16.mxu1 %v6376_v19  ;;  %v6357_v19 = vcombine.low %v4141_v56, %v4149_v40  ;;  %v6344_v30 = vcombine.high %v4126_v2, %v4134_v52  ;;  %v4117_v56 = vld [vmem:[%s9303_s3 + $0x240] sm:$0xff]  ;;  %v4110_v40 = vld [vmem:[%s9303_s3 + $0x208] sm:$0xff] }
 0x1b4   :  { %v6328_v17 = vcombine.high %v4110_v40, %v4118_v10  ;;  %v4102_v53 = vld [vmem:[%s9303_s3 + $0x1c8] sm:$0xff] }
 0x1b5   :  { %3908 = vmatmul.mubr.bf16.vlgmr.msra.gmra.mxu0 %v7902_v46  ;;  %3961 = vmatmul.mubr.bf16.vlgmr.msra.gmra.mxu1 %v7902_v46 }
 0x1b6   :  { %4910 = vmatpush1.bf16.msra.mxu0 %v6373_v35  ;;  %4963 = vmatpush1.bf16.msra.mxu1 %v6375_v14  ;;  %v8272_v35 = vpop.f32.mrf.mxu0  ;;  %v6343_v14 = vcombine.low %v4126_v2, %v4134_v52  ;;  %v6325_v2 = vcombine.low %v4109_v25, %v4117_v56 }
 0x1b7   :  { %4911 = vmatprep.subr.bf16.mxu0 %v6358_v3  ;;  %4964 = vmatprep.subr.bf16.mxu1 %v6360_v23  ;;  %v6326_v3 = vcombine.high %v4109_v25, %v4117_v56  ;;  %v8274_v23 = vpop.f32.mrf.mxu1  ;;  %v4078_v25 = vld [vmem:[%s9303_s3 + $0x108] sm:$0xff]  ;;  %v6309_v56 = vcombine.low %v4093_v4, %v4101_v63 }
 0x1b8   :  { %6258 = vmatprep.mubr.msk.bf16.mxu0 %vm910_vm0, %v7920_v8  ;;  %6260 = vmatprep.mubr.msk.bf16.mxu1 %vm910_vm0, %v7920_v8  ;;  %v8290_v52 = vpop.f32.mrf.mxu0 }
 0x1ba   :  { %4912 = vmatpush1.bf16.msra.mxu0 %v6357_v19  ;;  %4965 = vmatpush1.bf16.msra.mxu1 %v6359_v55  ;;  %v6327_v19 = vcombine.low %v4110_v40, %v4118_v10  ;;  %v6310_v55 = vcombine.high %v4093_v4, %v4101_v63  ;;  %v8310_v40 = vpop.f32.mrf.mxu0  ;;  %v6311_v10 = vcombine.low %v4094_v45, %v4102_v53  ;;  %v4062_v63 = vld [vmem:[%s9303_s3 + $0x88] sm:$0xff] }
 0x1bb   :  { %4913 = vmatprep.subr.bf16.mxu0 %v6342_v36  ;;  %4966 = vmatprep.subr.bf16.mxu1 %v6344_v30  ;;  %v8292_v36 = vpop.f32.mrf.mxu1  ;;  %v6312_v30 = vcombine.high %v4094_v45, %v4102_v53  ;;  %v4070_v4 = vld [vmem:[%s9303_s3 + $0xc8] sm:$0xff]  ;;  %v6293_v45 = vcombine.low %v4077_v49, %v4085_v42 }
 0x1bc   :  { %v8326_v53 = vpop.f32.mrf.mxu0 }
 0x1bd   :  { %3918 = vmatmul.mubr.bf16.gmra.mxu0 %v7945_v31  ;;  %3971 = vmatmul.mubr.bf16.gmra.mxu1 %v7945_v31  ;;  %9358 = vst [vmem:[#allocation55_spill] sm:$0xff] %v8326_v53  ;;  %v4181_v53 = vld [vmem:[%s9303_s3 + $0x440] sm:$0xff] }
 0x1be   :  { %4914 = vmatpush1.bf16.msra.mxu0 %v6341_v26  ;;  %4967 = vmatpush1.bf16.msra.mxu1 %v6343_v14  ;;  %v6294_v26 = vcombine.high %v4077_v49, %v4085_v42  ;;  %v8312_v14 = vpop.f32.mrf.mxu1  ;;  %v4046_v42 = vld [vmem:[%s9303_s3 + $0x8] sm:$0xff] }
 0x1bf   :  { %4915 = vmatprep.subr.bf16.mxu0 %v6326_v3  ;;  %4968 = vmatprep.subr.bf16.mxu1 %v6328_v17  ;;  %v4086_v17 = vld [vmem:[%s9303_s3 + $0x148] sm:$0xff] }
 0x1c0   :  { %6405 = vmatprep.mubr.msk.bf16.mxu0 %vm910_vm0, %v7966_v51  ;;  %6407 = vmatprep.mubr.msk.bf16.mxu1 %vm910_vm0, %v7966_v51  ;;  %v6296_v3 = vcombine.high %v4078_v25, %v4086_v17  ;;  %v4054_v49 = vld [vmem:[%s9303_s3 + $0x48] sm:$0xff] }
 0x1c2   :  { %4916 = vmatpush1.bf16.msra.mxu0 %v6325_v2  ;;  %4969 = vmatpush1.bf16.msra.mxu1 %v6327_v19  ;;  %v6295_v2 = vcombine.low %v4078_v25, %v4086_v17  ;;  %v6278_v19 = vcombine.high %v4061_v32, %v4069_v29  ;;  %v6277_v25 = vcombine.low %v4061_v32, %v4069_v29  ;;  %v8342_v17 = vpop.f32.mrf.mxu0  ;;  %v4174_v29 = vld [vmem:[%s9303_s3 + $0x408] sm:$0xff] }
 0x1c3   :  { %4917 = vmatprep.subr.bf16.mxu0 %v6310_v55  ;;  %4970 = vmatprep.subr.bf16.mxu1 %v6312_v30  ;;  %v8328_v55 = vpop.f32.mrf.mxu1  ;;  %v6280_v30 = vcombine.high %v4062_v63, %v4070_v4  ;;  %9360 = vst [vmem:[#allocation57_spill] sm:$0xff] %v8342_v17  ;;  %v4182_v32 = vld [vmem:[%s9303_s3 + $0x448] sm:$0xff] }
 0x1c4   :  { %9359 = vst [vmem:[#allocation56_spill] sm:$0xff] %v8328_v55  ;;  %v4173_v55 = vld [vmem:[%s9303_s3 + $0x400] sm:$0xff] }
 0x1c6   :  { %4918 = vmatpush1.bf16.msra.mxu0 %v6309_v56  ;;  %4971 = vmatpush1.bf16.msra.mxu1 %v6311_v10  ;;  %v6279_v56 = vcombine.low %v4062_v63, %v4070_v4  ;;  %v6262_v10 = vcombine.high %v4045_v18, %v4053_v13  ;;  %v6261_v4 = vcombine.low %v4045_v18, %v4053_v13  ;;  %v4160_v13 = vld [vmem:[%s9303_s3 + $0x398] sm:$0xff] }
 0x1c7   :  { %4919 = vmatprep.subr.bf16.mxu0 %v6294_v26  ;;  %4972 = vmatprep.subr.bf16.mxu1 %v6296_v3  ;;  %v8344_v26 = vpop.f32.mrf.mxu1  ;;  %v6264_v3 = vcombine.high %v4046_v42, %v4054_v49  ;;  %v4168_v18 = vld [vmem:[%s9303_s3 + $0x3d8] sm:$0xff] }
 0x1c8   :  { %9361 = vst [vmem:[#allocation58_spill] sm:$0xff] %v8344_v26  ;;  %v4167_v26 = vld [vmem:[%s9303_s3 + $0x3d0] sm:$0xff] }
 0x1c9   :  { %v8360_v63 = vpop.f32.mrf.mxu1 }
 0x1ca   :  { %4920 = vmatpush1.bf16.msra.mxu0 %v6293_v45  ;;  %4973 = vmatpush1.bf16.msra.mxu1 %v6295_v2  ;;  %v8352_v45 = vpop.f32.mrf.mxu0  ;;  %9363 = vst [vmem:[#allocation60_spill] sm:$0xff] %v8360_v63  ;;  %v6263_v2 = vcombine.low %v4046_v42, %v4054_v49  ;;  %v6389_v49 = vcombine.low %v4173_v55, %v4181_v53 }
 0x1cb   :  { %4921 = vmatprep.subr.bf16.mxu0 %v6278_v19  ;;  %4974 = vmatprep.subr.bf16.mxu1 %v6280_v30  ;;  %9362 = vst [vmem:[#allocation59_spill] sm:$0xff] %v8352_v45  ;;  %v6390_v19 = vcombine.high %v4173_v55, %v4181_v53  ;;  %v6392_v30 = vcombine.high %v4174_v29, %v4182_v32  ;;  %v4159_v45 = vld [vmem:[%s9303_s3 + $0x390] sm:$0xff]  ;;  %v8376_v42 = vpop.f32.mrf.mxu1  ;;  %v4144_v53 = vld [vmem:[%s9303_s3 + $0x318] sm:$0xff] }
 0x1cc   :  { %v8368_v17 = vpop.f32.mrf.mxu0  ;;  %9365 = vst [vmem:[#allocation62_spill] sm:$0xff] %v8376_v42  ;;  %v4152_v55 = vld [vmem:[%s9303_s3 + $0x358] sm:$0xff] }
 0x1cd   :  { %9364 = vst [vmem:[#allocation61_spill] sm:$0xff] %v8368_v17  ;;  %v4151_v17 = vld [vmem:[%s9303_s3 + $0x350] sm:$0xff] }
 0x1ce   :  { %4922 = vmatpush1.bf16.msra.mxu0 %v6277_v25  ;;  %4975 = vmatpush1.bf16.msra.mxu1 %v6279_v56  ;;  %v6391_v25 = vcombine.low %v4174_v29, %v4182_v32  ;;  %v6378_v56 = vcombine.high %v4159_v45, %v4167_v26  ;;  %v8384_v63 = vpop.f32.mrf.mxu0  ;;  %v8392_v29 = vpop.f32.mrf.mxu1  ;;  %v6377_v32 = vcombine.low %v4159_v45, %v4167_v26  ;;  %v4128_v26 = vld [vmem:[%s9303_s3 + $0x298] sm:$0xff] }
 0x1cf   :  { %4923 = vmatprep.subr.bf16.mxu0 %v6262_v10  ;;  %4976 = vmatprep.subr.bf16.mxu1 %v6264_v3  ;;  %v6380_v10 = vcombine.high %v4160_v13, %v4168_v18  ;;  %v4143_v3 = vld [vmem:[%s9303_s3 + $0x310] sm:$0xff]  ;;  %9366 = vst [vmem:[#allocation63_spill] sm:$0xff] %v8384_v63  ;;  %9367 = vst [vmem:[#allocation64_spill] sm:$0xff] %v8392_v29  ;;  %v4136_v45 = vld [vmem:[%s9303_s3 + $0x2d8] sm:$0xff] }
 0x1d0   :  { %v4135_v63 = vld [vmem:[%s9303_s3 + $0x2d0] sm:$0xff]  ;;  %v8400_v42 = vpop.f32.mrf.mxu0 }
 0x1d1   :  { %9368 = vst [vmem:[#allocation65_spill] sm:$0xff] %v8400_v42  ;;  %v4081_v42 = vld [vmem:[%s9303_s3 + $0x120] sm:$0xff] }
 0x1d2   :  { %4924 = vmatpush1.bf16.msra.mxu0 %v6261_v4  ;;  %4977 = vmatpush1.bf16.msra.mxu1 %v6263_v2  ;;  %v6379_v4 = vcombine.low %v4160_v13, %v4168_v18  ;;  %v6362_v2 = vcombine.high %v4143_v3, %v4151_v17  ;;  %v8409_v13 = vpop.f32.mrf.mxu1  ;;  %v6361_v18 = vcombine.low %v4143_v3, %v4151_v17  ;;  %v4112_v17 = vld [vmem:[%s9303_s3 + $0x218] sm:$0xff] }
 0x1d3   :  { %4939 = vmatprep.subr.bf16.mxu0 %v6390_v19  ;;  %4992 = vmatprep.subr.bf16.mxu1 %v6392_v30  ;;  %v6364_v19 = vcombine.high %v4144_v53, %v4152_v55  ;;  %v4127_v30 = vld [vmem:[%s9303_s3 + $0x290] sm:$0xff]  ;;  %9369 = vst [vmem:[#allocation66_spill] sm:$0xff] %v8409_v13  ;;  %v4120_v3 = vld [vmem:[%s9303_s3 + $0x258] sm:$0xff] }
 0x1d4   :  { %v4119_v13 = vld [vmem:[%s9303_s3 + $0x250] sm:$0xff] }
 0x1d6   :  { %4940 = vmatpush2.bf16.msra.mxu0 %v6389_v49  ;;  %4993 = vmatpush2.bf16.msra.mxu1 %v6391_v25  ;;  %v6363_v49 = vcombine.low %v4144_v53, %v4152_v55  ;;  %v6346_v25 = vcombine.high %v4127_v30, %v4135_v63  ;;  %v8430_v53 = vpop.f32.mrf.mxu1  ;;  %v6345_v55 = vcombine.low %v4127_v30, %v4135_v63  ;;  %v4096_v63 = vld [vmem:[%s9303_s3 + $0x198] sm:$0xff] }
 0x1d7   :  { %5015 = vmatprep.subr.bf16.mxu0 %v6378_v56  ;;  %5068 = vmatprep.subr.bf16.mxu1 %v6380_v10  ;;  %v6348_v56 = vcombine.high %v4128_v26, %v4136_v45  ;;  %v4111_v10 = vld [vmem:[%s9303_s3 + $0x210] sm:$0xff]  ;;  %9371 = vst [vmem:[#allocation68_spill] sm:$0xff] %v8430_v53  ;;  %v4104_v30 = vld [vmem:[%s9303_s3 + $0x1d8] sm:$0xff]  ;;  %v4105_v53 = vld [vmem:[%s9303_s3 + $0x1e0] sm:$0xff] }
 0x1d9   :  { %4942 = vmatmul.mubr.bf16.vlgmr.msra.gmra.mxu0 %v7902_v46  ;;  %4995 = vmatmul.mubr.bf16.vlgmr.msra.gmra.mxu1 %v7902_v46  ;;  %v8420_v46 = vpop.f32.mrf.mxu0 }
 0x1da   :  { %5016 = vmatpush1.bf16.msra.mxu0 %v6377_v32  ;;  %5069 = vmatpush1.bf16.msra.mxu1 %v6379_v4  ;;  %9370 = vst [vmem:[#allocation67_spill] sm:$0xff] %v8420_v46  ;;  %v6347_v32 = vcombine.low %v4128_v26, %v4136_v45  ;;  %v6330_v4 = vcombine.high %v4111_v10, %v4119_v13  ;;  %v8447_v26 = vpop.f32.mrf.mxu1 }
 0x1db   :  { %5017 = vmatprep.subr.bf16.mxu0 %v6362_v2  ;;  %5070 = vmatprep.subr.bf16.mxu1 %v6364_v19  ;;  %v6332_v2 = vcombine.high %v4112_v17, %v4120_v3  ;;  %v4103_v19 = vld [vmem:[%s9303_s3 + $0x1d0] sm:$0xff]  ;;  %v8438_v46 = vpop.f32.mrf.mxu0  ;;  %9373 = vst [vmem:[#allocation70_spill] sm:$0xff] %v8447_v26  ;;  %v6329_v45 = vcombine.low %v4111_v10, %v4119_v13  ;;  %v4080_v13 = vld [vmem:[%s9303_s3 + $0x118] sm:$0xff] }
 0x1dc   :  { %6406 = vmatprep.mubr.msk.bf16.mxu0 %vm910_vm0, %v7920_v8  ;;  %6408 = vmatprep.mubr.msk.bf16.mxu1 %vm910_vm0, %v7920_v8  ;;  %v4095_v8 = vld [vmem:[%s9303_s3 + $0x190] sm:$0xff]  ;;  %9372 = vst [vmem:[#allocation69_spill] sm:$0xff] %v8438_v46  ;;  %v4088_v10 = vld [vmem:[%s9303_s3 + $0x158] sm:$0xff] }
 0x1dd   :  { %v4087_v46 = vld [vmem:[%s9303_s3 + $0x150] sm:$0xff] }
 0x1de   :  { %5018 = vmatpush1.bf16.msra.mxu0 %v6361_v18  ;;  %5071 = vmatpush1.bf16.msra.mxu1 %v6363_v49  ;;  %v6331_v18 = vcombine.low %v4112_v17, %v4120_v3  ;;  %v6314_v49 = vcombine.high %v4095_v8, %v4103_v19  ;;  %v8468_v17 = vpop.f32.mrf.mxu1  ;;  %v6313_v3 = vcombine.low %v4095_v8, %v4103_v19  ;;  %v4072_v8 = vld [vmem:[%s9303_s3 + $0xd8] sm:$0xff] }
 0x1df   :  { %5019 = vmatprep.subr.bf16.mxu0 %v6346_v25  ;;  %5072 = vmatprep.subr.bf16.mxu1 %v6348_v56  ;;  %v6316_v25 = vcombine.high %v4096_v63, %v4104_v30  ;;  %v4079_v56 = vld [vmem:[%s9303_s3 + $0x110] sm:$0xff]  ;;  %9375 = vst [vmem:[#allocation72_spill] sm:$0xff] %v8468_v17  ;;  %v4097_v17 = vld [vmem:[%s9303_s3 + $0x1a0] sm:$0xff] }
 0x1e0   :  { %v8484_v19 = vpop.f32.mrf.mxu1 }
 0x1e1   :  { %4952 = vmatmul.mubr.bf16.gmra.mxu0 %v7945_v31  ;;  %5005 = vmatmul.mubr.bf16.gmra.mxu1 %v7945_v31  ;;  %v8458_v31 = vpop.f32.mrf.mxu0  ;;  %9377 = vst [vmem:[#allocation74_spill] sm:$0xff] %v8484_v19  ;;  %v4055_v19 = vld [vmem:[%s9303_s3 + $0x50] sm:$0xff] }
 0x1e2   :  { %5020 = vmatpush1.bf16.msra.mxu0 %v6345_v55  ;;  %5073 = vmatpush1.bf16.msra.mxu1 %v6347_v32  ;;  %9374 = vst [vmem:[#allocation71_spill] sm:$0xff] %v8458_v31  ;;  %v6315_v55 = vcombine.low %v4096_v63, %v4104_v30  ;;  %v6298_v32 = vcombine.high %v4079_v56, %v4087_v46  ;;  %v4071_v31 = vld [vmem:[%s9303_s3 + $0xd0] sm:$0xff] }
 0x1e3   :  { %5021 = vmatprep.subr.bf16.mxu0 %v6330_v4  ;;  %5074 = vmatprep.subr.bf16.mxu1 %v6332_v2  ;;  %v6300_v4 = vcombine.high %v4080_v13, %v4088_v10  ;;  %v4063_v2 = vld [vmem:[%s9303_s3 + $0x90] sm:$0xff]  ;;  %v8476_v26 = vpop.f32.mrf.mxu0  ;;  %v6297_v63 = vcombine.low %v4079_v56, %v4087_v46  ;;  %v4048_v46 = vld [vmem:[%s9303_s3 + $0x18] sm:$0xff] }
 0x1e4   :  { %6409 = vmatprep.mubr.msk.bf16.mxu0 %vm910_vm0, %v7966_v51  ;;  %6411 = vmatprep.mubr.msk.bf16.mxu1 %vm910_vm0, %v7966_v51  ;;  %9376 = vst [vmem:[#allocation73_spill] sm:$0xff] %v8476_v26  ;;  %v4064_v51 = vld [vmem:[%s9303_s3 + $0x98] sm:$0xff]  ;;  %v4047_v26 = vld [vmem:[%s9303_s3 + $0x10] sm:$0xff] }
 0x1e5   :  { %v8486_v30 = vpop.f32.mrf.mxu0  ;;  %v4056_v56 = vld [vmem:[%s9303_s3 + $0x58] sm:$0xff] }
 0x1e6   :  { %5022 = vmatpush1.bf16.msra.mxu0 %v6329_v45  ;;  %5075 = vmatpush1.bf16.msra.mxu1 %v6331_v18  ;;  %9378 = vst [vmem:[#allocation75_spill] sm:$0xff] %v8486_v30  ;;  %v6299_v45 = vcombine.low %v4080_v13, %v4088_v10  ;;  %v6282_v18 = vcombine.high %v4063_v2, %v4071_v31  ;;  %v4183_v30 = vld [vmem:[%s9303_s3 + $0x450] sm:$0xff] }
 0x1e7   :  { %5023 = vmatprep.subr.bf16.mxu0 %v6314_v49  ;;  %5076 = vmatprep.subr.bf16.mxu1 %v6316_v25  ;;  %v8488_v49 = vpop.f32.mrf.mxu1  ;;  %v6284_v25 = vcombine.high %v4064_v51, %v4072_v8  ;;  %v6281_v13 = vcombine.low %v4063_v2, %v4071_v31  ;;  %v8502_v10 = vpop.f32.mrf.mxu0  ;;  %v4176_v31 = vld [vmem:[%s9303_s3 + $0x418] sm:$0xff] }
 0x1e8   :  { %9379 = vst [vmem:[#allocation76_spill] sm:$0xff] %v8488_v49  ;;  %9380 = vst [vmem:[#allocation77_spill] sm:$0xff] %v8502_v10  ;;  %v4175_v49 = vld [vmem:[%s9303_s3 + $0x410] sm:$0xff]  ;;  %v4184_v2 = vld [vmem:[%s9303_s3 + $0x458] sm:$0xff] }
 0x1e9   :  { %v4169_v10 = vld [vmem:[%s9303_s3 + $0x3e0] sm:$0xff] }
 0x1ea   :  { %5024 = vmatpush1.bf16.msra.mxu0 %v6313_v3  ;;  %5077 = vmatpush1.bf16.msra.mxu1 %v6315_v55  ;;  %v6283_v3 = vcombine.low %v4064_v51, %v4072_v8  ;;  %v6266_v55 = vcombine.high %v4047_v26, %v4055_v19  ;;  %v6265_v51 = vcombine.low %v4047_v26, %v4055_v19  ;;  %v8518_v8 = vpop.f32.mrf.mxu0  ;;  %v4162_v26 = vld [vmem:[%s9303_s3 + $0x3a8] sm:$0xff] }
 0x1eb   :  { %5025 = vmatprep.subr.bf16.mxu0 %v6298_v32  ;;  %5078 = vmatprep.subr.bf16.mxu1 %v6300_v4  ;;  %v8504_v32 = vpop.f32.mrf.mxu1  ;;  %v6268_v4 = vcombine.high %v4048_v46, %v4056_v56  ;;  %9382 = vst [vmem:[#allocation79_spill] sm:$0xff] %v8518_v8  ;;  %v4170_v19 = vld [vmem:[%s9303_s3 + $0x3e8] sm:$0xff]  ;;  %v4153_v8 = vld [vmem:[%s9303_s3 + $0x360] sm:$0xff] }
 0x1ec   :  { %9381 = vst [vmem:[#allocation78_spill] sm:$0xff] %v8504_v32  ;;  %v4161_v32 = vld [vmem:[%s9303_s3 + $0x3a0] sm:$0xff] }
 0x1ee   :  { %5026 = vmatpush1.bf16.msra.mxu0 %v6297_v63  ;;  %5079 = vmatpush1.bf16.msra.mxu1 %v6299_v45  ;;  %v6267_v63 = vcombine.low %v4048_v46, %v4056_v56  ;;  %v6394_v45 = vcombine.high %v4175_v49, %v4183_v30  ;;  %v6393_v46 = vcombine.low %v4175_v49, %v4183_v30  ;;  %v8534_v56 = vpop.f32.mrf.mxu0  ;;  %v4146_v30 = vld [vmem:[%s9303_s3 + $0x328] sm:$0xff] }
 0x1ef   :  { %5027 = vmatprep.subr.bf16.mxu0 %v6282_v18  ;;  %5080 = vmatprep.subr.bf16.mxu1 %v6284_v25  ;;  %v8520_v18 = vpop.f32.mrf.mxu1  ;;  %v6396_v25 = vcombine.high %v4176_v31, %v4184_v2  ;;  %9384 = vst [vmem:[#allocation81_spill] sm:$0xff] %v8534_v56  ;;  %v4154_v49 = vld [vmem:[%s9303_s3 + $0x368] sm:$0xff]  ;;  %v4137_v56 = vld [vmem:[%s9303_s3 + $0x2e0] sm:$0xff] }
 0x1f0   :  { %9383 = vst [vmem:[#allocation80_spill] sm:$0xff] %v8520_v18  ;;  %v4145_v18 = vld [vmem:[%s9303_s3 + $0x320] sm:$0xff] }
 0x1f2   :  { %5028 = vmatpush1.bf16.msra.mxu0 %v6281_v13  ;;  %5081 = vmatpush1.bf16.msra.mxu1 %v6283_v3  ;;  %v6395_v13 = vcombine.low %v4176_v31, %v4184_v2  ;;  %v6382_v3 = vcombine.high %v4161_v32, %v4169_v10  ;;  %v6381_v31 = vcombine.low %v4161_v32, %v4169_v10  ;;  %v8550_v2 = vpop.f32.mrf.mxu0  ;;  %v8563_v10 = vld [vmem:[%s9299_s4] ss:$8 sps:$4 sm:$0xff]  }
 0x1f3   :  { %5029 = vmatprep.subr.bf16.mxu0 %v6266_v55  ;;  %5082 = vmatprep.subr.bf16.mxu1 %v6268_v4  ;;  %v8536_v55 = vpop.f32.mrf.mxu1  ;;  %v6384_v4 = vcombine.high %v4162_v26, %v4170_v19  ;;  %9386 = vst [vmem:[#allocation83_spill] sm:$0xff] %v8550_v2  ;;  %v4130_v32 = vld [vmem:[%s9303_s3 + $0x2a8] sm:$0xff] }
 0x1f4   :  { %9385 = vst [vmem:[#allocation82_spill] sm:$0xff] %v8536_v55  ;;  %v4129_v55 = vld [vmem:[%s9303_s3 + $0x2a0] sm:$0xff] }
 0x1f6   :  { %5030 = vmatpush1.bf16.msra.mxu0 %v6265_v51  ;;  %5083 = vmatpush1.bf16.msra.mxu1 %v6267_v63  ;;  %v6383_v51 = vcombine.low %v4162_v26, %v4170_v19  ;;  %v6366_v63 = vcombine.high %v4145_v18, %v4153_v8  ;;  %v4138_v26 = vld [vmem:[%s9303_s3 + $0x2e8] sm:$0xff]  ;;  %v6365_v19 = vcombine.low %v4145_v18, %v4153_v8  ;;  %v4113_v8 = vld [vmem:[%s9303_s3 + $0x220] sm:$0xff] }
 0x1f7   :  { %5045 = vmatprep.subr.bf16.mxu0 %v6394_v45  ;;  %5098 = vmatprep.subr.bf16.mxu1 %v6396_v25  ;;  %v8552_v45 = vpop.f32.mrf.mxu1  ;;  %v6368_v25 = vcombine.high %v4146_v30, %v4154_v49  ;;  %v6352_v2 = vcombine.high %v4130_v32, %v4138_v26  ;;  %v4121_v18 = vld [vmem:[%s9303_s3 + $0x260] sm:$0xff] }
 0x1f8   :  { %9387 = vst [vmem:[#allocation84_spill] sm:$0xff] %v8552_v45  ;;  %v8580_v45 = vld [vmem:[%s9299_s4 + $0x14] ss:$8 sps:$4 sm:$0xff]  }
 0x1fa   :  { %5046 = vmatpush2.bf16.msra.mxu0 %v6393_v46  ;;  %5099 = vmatpush2.bf16.msra.mxu1 %v6395_v13  ;;  %v8573_v46 = vpop.f32.mrf.mxu0  ;;  %v6367_v13 = vcombine.low %v4146_v30, %v4154_v49  ;;  %v4114_v30 = vld [vmem:[%s9303_s3 + $0x228] sm:$0xff] }
 0x1fb   :  { %5121 = vmatprep.subr.bf16.mxu0 %v6382_v3  ;;  %5174 = vmatprep.subr.bf16.mxu1 %v6384_v4  ;;  %9388 = vst [vmem:[#allocation85_spill] sm:$0xff] %v8573_v46  ;;  %v6350_v3 = vcombine.high %v4129_v55, %v4137_v56  ;;  %v8575_v4 = vpop.f32.mrf.mxu1  ;;  %v4122_v49 = vld [vmem:[%s9303_s3 + $0x268] sm:$0xff] }
 0x1fc   :  { %9389 = vst [vmem:[#allocation86_spill] sm:$0xff] %v8575_v4  ;;  %v6336_v46 = vcombine.high %v4114_v30, %v4122_v49 }
 0x1fd   :  { %5048 = vmatmul.mubr.bf16.vlgmr.msra.gmra.mxu0 %v8563_v10  ;;  %5101 = vmatmul.mubr.bf16.vlgmr.msra.gmra.mxu1 %v8563_v10  ;;  %v8600_v4 = vpop.f32.mrf.mxu1 }
 0x1fe   :  { %5122 = vmatpush1.bf16.msra.mxu0 %v6381_v31  ;;  %5175 = vmatpush1.bf16.msra.mxu1 %v6383_v51  ;;  %v6349_v31 = vcombine.low %v4129_v55, %v4137_v56  ;;  %v8598_v51 = vpop.f32.mrf.mxu0  ;;  %9391 = vst [vmem:[#allocation88_spill] sm:$0xff] %v8600_v4  ;;  %v8611_v56 = vld [vmem:[%s9299_s4 + $0x10] ss:$8 sps:$4 sm:$0xff]   ;;  %v4098_v55 = vld [vmem:[%s9303_s3 + $0x1a8] sm:$0xff] }
 0x1ff   :  { %5123 = vmatprep.subr.bf16.mxu0 %v6366_v63  ;;  %5176 = vmatprep.subr.bf16.mxu1 %v6368_v25  ;;  %9390 = vst [vmem:[#allocation87_spill] sm:$0xff] %v8598_v51  ;;  %v6351_v63 = vcombine.low %v4130_v32, %v4138_v26  ;;  %v6334_v25 = vcombine.high %v4113_v8, %v4121_v18  ;;  %v8625_v4 = vpop.f32.mrf.mxu1 }
 0x200   :  { %6410 = vmatprep.mubr.msk.bf16.mxu0 %vm910_vm0, %v8580_v45  ;;  %6412 = vmatprep.mubr.msk.bf16.mxu1 %vm910_vm0, %v8580_v45  ;;  %v6333_v32 = vcombine.low %v4113_v8, %v4121_v18  ;;  %v8621_v26 = vpop.f32.mrf.mxu0  ;;  %9393 = vst [vmem:[#allocation90_spill] sm:$0xff] %v8625_v4  ;;  %v4089_v8 = vld [vmem:[%s9303_s3 + $0x160] sm:$0xff] }
 0x201   :  { %9392 = vst [vmem:[#allocation89_spill] sm:$0xff] %v8621_v26  ;;  %v8636_v18 = vld [vmem:[%s9299_s4 + $0x4] ss:$8 sps:$4 sm:$0xff]   ;;  %v6302_v4 = vcombine.high %v4081_v42, %v4089_v8  ;;  %v2645_v26 = vmax.f32 %v7588_v61, %v8110_v16 }
 0x202   :  { %5124 = vmatpush1.bf16.msra.mxu0 %v6365_v19  ;;  %5177 = vmatpush1.bf16.msra.mxu1 %v6367_v13  ;;  %v6335_v19 = vcombine.low %v4114_v30, %v4122_v49  ;;  %v6318_v13 = vcombine.high %v4097_v17, %v4105_v53  ;;  %v4090_v30 = vld [vmem:[%s9303_s3 + $0x168] sm:$0xff] }
 0x203   :  { %5125 = vmatprep.subr.bf16.mxu0 %v6350_v3  ;;  %5178 = vmatprep.subr.bf16.mxu1 %v6352_v2  ;;  %v4106_v2 = vld [vmem:[%s9303_s3 + $0x1e8] sm:$0xff]  ;;  %v2629_v3 = vmax.f32 %v7552_v41, %v8072_v54  ;;  %v2631_v41 = vmax.f32 %v7560_v44, %v8081_v50 }
 0x204   :  { %v6320_v51 = vcombine.high %v4098_v55, %v4106_v2  ;;  %v6319_v50 = vcombine.low %v4098_v55, %v4106_v2  ;;  %v4066_v61 = vld [vmem:[%s9303_s3 + $0xa8] sm:$0xff] }
 0x205   :  { %5058 = vmatmul.mubr.bf16.gmra.mxu0 %v8611_v56  ;;  %5111 = vmatmul.mubr.bf16.gmra.mxu1 %v8611_v56  ;;  %v4074_v16 = vld [vmem:[%s9303_s3 + $0xe8] sm:$0xff] }
 0x206   :  { %5126 = vmatpush1.bf16.msra.mxu0 %v6349_v31  ;;  %5179 = vmatpush1.bf16.msra.mxu1 %v6351_v63  ;;  %v6317_v63 = vcombine.low %v4097_v17, %v4105_v53  ;;  %v4073_v53 = vld [vmem:[%s9303_s3 + $0xe0] sm:$0xff]  ;;  %v2647_v17 = vmax.f32 %v7598_v0, %v8119_v11 }
 0x207   :  { %5127 = vmatprep.subr.bf16.mxu0 %v6334_v25  ;;  %5180 = vmatprep.subr.bf16.mxu1 %v6336_v46  ;;  %v4082_v46 = vld [vmem:[%s9303_s3 + $0x128] sm:$0xff] }
 0x208   :  { %6413 = vmatprep.mubr.msk.bf16.mxu0 %vm910_vm0, %v8636_v18  ;;  %6415 = vmatprep.mubr.msk.bf16.mxu1 %vm910_vm0, %v8636_v18  ;;  %v6304_v1 = vcombine.high %v4082_v46, %v4090_v30  ;;  %v6303_v0 = vcombine.low %v4082_v46, %v4090_v30 }
 0x209   :  { %v3591_v54 = vpop.f32.mrf.mxu0  ;;  %v3644_v31 = vpop.f32.mrf.mxu1 }
 0x20a   :  { %v8650_v49 = vmax.f32 %v2629_v3, %v3591_v54  ;;  %5128 = vmatpush1.bf16.msra.mxu0 %v6333_v32  ;;  %v8652_v25 = vmax.f32 %v2631_v41, %v3644_v31  ;;  %5181 = vmatpush1.bf16.msra.mxu1 %v6335_v19  ;;  %v4065_v32 = vld [vmem:[%s9303_s3 + $0xa0] sm:$0xff]  ;;  %v6301_v19 = vcombine.low %v4081_v42, %v4089_v8 }
 0x20b   :  { %v8654_v44 = vpop.f32.mrf.mxu0  ;;  %5129 = vmatprep.subr.bf16.mxu0 %v6318_v13  ;;  %v8658_v29 = vpop.f32.mrf.mxu1  ;;  %5182 = vmatprep.subr.bf16.mxu1 %v6320_v51  ;;  %v6286_v11 = vcombine.high %v4065_v32, %v4073_v53  ;;  %v2661_v41 = vmax.f32 %v7618_v12, %v8151_v58  ;;  %v6288_v31 = vcombine.high %v4066_v61, %v4074_v16  ;;  %v4057_v42 = vld [vmem:[%s9303_s3 + $0x60] sm:$0xff]  ;;  %v4050_v12 = vld [vmem:[%s9303_s3 + $0x28] sm:$0xff] }
 0x20c   :  { %v6285_v30 = vcombine.low %v4065_v32, %v4073_v53  ;;  %v4185_v32 = vld [vmem:[%s9303_s3 + $0x460] sm:$0xff]  ;;  %v2679_v53 = vmax.f32 %v7656_v37, %v8197_v27 }
 0x20d   :  { %v3595_v55 = vpop.f32.mrf.mxu0  ;;  %v3648_v2 = vpop.f32.mrf.mxu1 }
 0x20e   :  { %v8674_v51 = vmax.f32 %v2645_v26, %v3595_v55  ;;  %5130 = vmatpush1.bf16.msra.mxu0 %v6317_v63  ;;  %v8676_v13 = vmax.f32 %v2647_v17, %v3648_v2  ;;  %5183 = vmatpush1.bf16.msra.mxu1 %v6319_v50  ;;  %v4049_v26 = vld [vmem:[%s9303_s3 + $0x20] sm:$0xff]  ;;  %v2677_v17 = vmax.f32 %v7654_v34, %v8189_v62  ;;  %v4178_v34 = vld [vmem:[%s9303_s3 + $0x428] sm:$0xff] }
 0x20f   :  { %v8678_v3 = vpop.f32.mrf.mxu0  ;;  %5131 = vmatprep.subr.bf16.mxu0 %v6302_v4  ;;  %v8682_v54 = vpop.f32.mrf.mxu1  ;;  %5184 = vmatprep.subr.bf16.mxu1 %v6304_v1  ;;  %v2663_v4 = vmax.f32 %v7620_v15, %v8159_v22  ;;  %v4058_v1 = vld [vmem:[%s9303_s3 + $0x68] sm:$0xff]  ;;  %v6287_v15 = vcombine.low %v4066_v61, %v4074_v16  ;;  %v6270_v22 = vcombine.high %v4049_v26, %v4057_v42 }
 0x210   :  { %v6272_v2 = vcombine.high %v4050_v12, %v4058_v1  ;;  %v4186_v62 = vld [vmem:[%s9303_s3 + $0x468] sm:$0xff] }
 0x211   :  { %v3601_v8 = vpop.f32.mrf.mxu0  ;;  %v3654_v46 = vpop.f32.mrf.mxu1  ;;  %v6400_v27 = vcombine.high %v4178_v34, %v4186_v62 }
 0x212   :  { %v8698_v58 = vmax.f32 %v2661_v41, %v3601_v8  ;;  %5132 = vmatpush1.bf16.msra.mxu0 %v6301_v19  ;;  %v8700_v63 = vmax.f32 %v2663_v4, %v3654_v46  ;;  %5185 = vmatpush1.bf16.msra.mxu1 %v6303_v0  ;;  %v4177_v19 = vld [vmem:[%s9303_s3 + $0x420] sm:$0xff]  ;;  %v4163_v4 = vld [vmem:[%s9303_s3 + $0x3b0] sm:$0xff] }
 0x213   :  { %v8702_v50 = vpop.f32.mrf.mxu0  ;;  %5133 = vmatprep.subr.bf16.mxu0 %v6286_v11  ;;  %v8706_v55 = vpop.f32.mrf.mxu1  ;;  %5186 = vmatprep.subr.bf16.mxu1 %v6288_v31  ;;  %v6269_v11 = vcombine.low %v4049_v26, %v4057_v42  ;;  %v6271_v31 = vcombine.low %v4050_v12, %v4058_v1  ;;  %v6398_v37 = vcombine.high %v4177_v19, %v4185_v32  ;;  %v4171_v8 = vld [vmem:[%s9303_s3 + $0x3f0] sm:$0xff]  ;;  %v4164_v26 = vld [vmem:[%s9303_s3 + $0x3b8] sm:$0xff] }
 0x214   :  { %v4172_v42 = vld [vmem:[%s9303_s3 + $0x3f8] sm:$0xff]  ;;  %v6397_v12 = vcombine.low %v4177_v19, %v4185_v32  ;;  %v6399_v1 = vcombine.low %v4178_v34, %v4186_v62  ;;  %v6386_v46 = vcombine.high %v4163_v4, %v4171_v8  ;;  %v6385_v19 = vcombine.low %v4163_v4, %v4171_v8  ;;  %v4131_v34 = vld [vmem:[%s9303_s3 + $0x2b0] sm:$0xff] }
 0x215   :  { %v3605_v61 = vpop.f32.mrf.mxu0  ;;  %v3658_v0 = vpop.f32.mrf.mxu1  ;;  %v6387_v32 = vcombine.low %v4164_v26, %v4172_v42  ;;  %v4139_v62 = vld [vmem:[%s9303_s3 + $0x2f0] sm:$0xff] }
 0x216   :  { %v8722_v16 = vmax.f32 %v2677_v17, %v3605_v61  ;;  %5134 = vmatpush1.bf16.msra.mxu0 %v6285_v30  ;;  %v8724_v41 = vmax.f32 %v2679_v53, %v3658_v0  ;;  %5187 = vmatpush1.bf16.msra.mxu1 %v6287_v15  ;;  %v6388_v30 = vcombine.high %v4164_v26, %v4172_v42  ;;  %v4147_v15 = vld [vmem:[%s9303_s3 + $0x330] sm:$0xff]  ;;  %v4148_v17 = vld [vmem:[%s9303_s3 + $0x338] sm:$0xff] }
 0x217   :  { %5135 = vmatprep.subr.bf16.mxu0 %v6270_v22  ;;  %5188 = vmatprep.subr.bf16.mxu1 %v6272_v2  ;;  %v4155_v22 = vld [vmem:[%s9303_s3 + $0x370] sm:$0xff]  ;;  %v4156_v2 = vld [vmem:[%s9303_s3 + $0x378] sm:$0xff] }
 0x218   :  { %v6370_v53 = vcombine.high %v4147_v15, %v4155_v22  ;;  %v6372_v61 = vcombine.high %v4148_v17, %v4156_v2  ;;  %v4132_v0 = vld [vmem:[%s9303_s3 + $0x2b8] sm:$0xff]  ;;  %v4115_v8 = vld [vmem:[%s9303_s3 + $0x230] sm:$0xff] }
 0x219   :  { %v4123_v26 = vld [vmem:[%s9303_s3 + $0x270] sm:$0xff]  ;;  %v4116_v42 = vld [vmem:[%s9303_s3 + $0x238] sm:$0xff] }
 0x21a   :  { %5136 = vmatpush1.bf16.msra.mxu0 %v6269_v11  ;;  %5189 = vmatpush1.bf16.msra.mxu1 %v6271_v31  ;;  %v4140_v11 = vld [vmem:[%s9303_s3 + $0x2f8] sm:$0xff]  ;;  %v6369_v31 = vcombine.low %v4147_v15, %v4155_v22  ;;  %v4099_v22 = vld [vmem:[%s9303_s3 + $0x1b0] sm:$0xff] }
 0x21b   :  { %5151 = vmatprep.subr.bf16.mxu0 %v6398_v37  ;;  %5204 = vmatprep.subr.bf16.mxu1 %v6400_v27  ;;  %v6371_v37 = vcombine.low %v4148_v17, %v4156_v2  ;;  %v6354_v27 = vcombine.high %v4131_v34, %v4139_v62  ;;  %v6356_v4 = vcombine.high %v4132_v0, %v4140_v11  ;;  %v4107_v17 = vld [vmem:[%s9303_s3 + $0x1f0] sm:$0xff]  ;;  %v4100_v2 = vld [vmem:[%s9303_s3 + $0x1b8] sm:$0xff] }
 0x21e   :  { %5152 = vmatpush2.bf16.msra.mxu0 %v6397_v12  ;;  %5205 = vmatpush2.bf16.msra.mxu1 %v6399_v1  ;;  %v4124_v12 = vld [vmem:[%s9303_s3 + $0x278] sm:$0xff]  ;;  %v6353_v1 = vcombine.low %v4131_v34, %v4139_v62  ;;  %v6322_v34 = vcombine.high %v4099_v22, %v4107_v17  ;;  %v2633_v62 = vmax.f32 %v7680_v57, %v8218_v48 }
 0x21f   :  { %5227 = vmatprep.subr.bf16.mxu0 %v6386_v46  ;;  %5280 = vmatprep.subr.bf16.mxu1 %v6388_v30  ;;  %v6355_v46 = vcombine.low %v4132_v0, %v4140_v11  ;;  %v6338_v30 = vcombine.high %v4115_v8, %v4123_v26  ;;  %v6340_v15 = vcombine.high %v4116_v42, %v4124_v12  ;;  %v8798_v0 = vpop.f32.mrf.mxu1  ;;  %v4084_v57 = vld [vmem:[%s9303_s3 + $0x138] sm:$0xff] }
 0x220   :  { %v4092_v48 = vld [vmem:[%s9303_s3 + $0x178] sm:$0xff] }
 0x221   :  { %5154 = vmatmul.mubr.bf16.vlgmr.msra.gmra.mxu0 %v8563_v10  ;;  %5207 = vmatmul.mubr.bf16.vlgmr.msra.gmra.mxu1 %v8563_v10 }
 0x222   :  { %5228 = vmatpush1.bf16.msra.mxu0 %v6385_v19  ;;  %5281 = vmatpush1.bf16.msra.mxu1 %v6387_v32  ;;  %v4108_v19 = vld [vmem:[%s9303_s3 + $0x1f8] sm:$0xff]  ;;  %v6337_v32 = vcombine.low %v4115_v8, %v4123_v26  ;;  %v2634_v8 = vmax.f32 %v7696_v5, %v8234_v28  ;;  %v2636_v26 = vmax.f32 %v7704_v9, %v8236_v7  ;;  %v4067_v28 = vld [vmem:[%s9303_s3 + $0xb0] sm:$0xff] }
 0x223   :  { %5229 = vmatprep.subr.bf16.mxu0 %v6370_v53  ;;  %5282 = vmatprep.subr.bf16.mxu1 %v6372_v61  ;;  %v8794_v53 = vpop.f32.mrf.mxu0  ;;  %v6339_v61 = vcombine.low %v4116_v42, %v4124_v12  ;;  %v6324_v11 = vcombine.high %v4100_v2, %v4108_v19  ;;  %v6308_v9 = vcombine.high %v4084_v57, %v4092_v48  ;;  %v4075_v7 = vld [vmem:[%s9303_s3 + $0xf0] sm:$0xff] }
 0x224   :  { %6414 = vmatprep.mubr.msk.bf16.mxu0 %vm910_vm0, %v8580_v45  ;;  %6416 = vmatprep.mubr.msk.bf16.mxu1 %vm910_vm0, %v8580_v45 }
 0x226   :  { %5230 = vmatpush1.bf16.msra.mxu0 %v6369_v31  ;;  %5283 = vmatpush1.bf16.msra.mxu1 %v6371_v37  ;;  %v4083_v31 = vld [vmem:[%s9303_s3 + $0x130] sm:$0xff] }
 0x227   :  { %5231 = vmatprep.subr.bf16.mxu0 %v6354_v27  ;;  %5284 = vmatprep.subr.bf16.mxu1 %v6356_v4  ;;  %v4091_v37 = vld [vmem:[%s9303_s3 + $0x170] sm:$0xff]  ;;  %v2635_v27 = vmax.f32 %v7688_v60, %v8220_v6  ;;  %v6321_v6 = vcombine.low %v4099_v22, %v4107_v17  ;;  %v2651_v22 = vmax.f32 %v7720_v24, %v8254_v38 }
 0x228   :  { %v6305_v38 = vcombine.low %v4083_v31, %v4091_v37 }
 0x229   :  { %5164 = vmatmul.mubr.bf16.gmra.mxu0 %v8611_v56  ;;  %5217 = vmatmul.mubr.bf16.gmra.mxu1 %v8611_v56 }
 0x22a   :  { %5232 = vmatpush1.bf16.msra.mxu0 %v6353_v1  ;;  %5285 = vmatpush1.bf16.msra.mxu1 %v6355_v46  ;;  %v6323_v46 = vcombine.low %v4100_v2, %v4108_v19  ;;  %v2650_v19 = vmax.f32 %v7728_v33, %v8272_v35  ;;  %v4051_v35 = vld [vmem:[%s9303_s3 + $0x30] sm:$0xff] }
 0x22b   :  { %5233 = vmatprep.subr.bf16.mxu0 %v6338_v30  ;;  %5286 = vmatprep.subr.bf16.mxu1 %v6340_v15  ;;  %v6306_v30 = vcombine.high %v4083_v31, %v4091_v37  ;;  %v2667_v31 = vmax.f32 %v7742_v47, %v8292_v36  ;;  %v6289_v36 = vcombine.low %v4067_v28, %v4075_v7 }
 0x22c   :  { %6417 = vmatprep.mubr.msk.bf16.mxu0 %vm910_vm0, %v8636_v18  ;;  %6419 = vmatprep.mubr.msk.bf16.mxu1 %vm910_vm0, %v8636_v18  ;;  %v2649_v18 = vmax.f32 %v7712_v20, %v8252_v21  ;;  %v4068_v20 = vld [vmem:[%s9303_s3 + $0xb8] sm:$0xff] }
 0x22d   :  { %v3697_v4 = vpop.f32.mrf.mxu0  ;;  %v3750_v60 = vpop.f32.mrf.mxu1  ;;  %v4076_v21 = vld [vmem:[%s9303_s3 + $0xf8] sm:$0xff] }
 0x22e   :  { %v8822_v42 = vmax.f32 %v2633_v62, %v3697_v4  ;;  %5234 = vmatpush1.bf16.msra.mxu0 %v6337_v32  ;;  %v8824_v12 = vmax.f32 %v2635_v27, %v3750_v60  ;;  %5287 = vmatpush1.bf16.msra.mxu1 %v6339_v61  ;;  %v2652_v32 = vmax.f32 %v7737_v39, %v8274_v23  ;;  %v4059_v23 = vld [vmem:[%s9303_s3 + $0x70] sm:$0xff] }
 0x22f   :  { %v3699_v1 = vpop.f32.mrf.mxu0  ;;  %5235 = vmatprep.subr.bf16.mxu0 %v6322_v34  ;;  %v3752_v5 = vpop.f32.mrf.mxu1  ;;  %5288 = vmatprep.subr.bf16.mxu1 %v6324_v11  ;;  %v6307_v11 = vcombine.low %v4084_v57, %v4092_v48  ;;  %v6290_v27 = vcombine.high %v4067_v28, %v4075_v7  ;;  %v2665_v4 = vmax.f32 %v7740_v43, %v8290_v52  ;;  %v4052_v43 = vld [vmem:[%s9303_s3 + $0x38] sm:$0xff]  ;;  %v4187_v28 = vld [vmem:[%s9303_s3 + $0x470] sm:$0xff] }
 0x230   :  { %v8828_v15 = vmax.f32 %v2634_v8, %v3699_v1  ;;  %v8838_v17 = vmax.f32 %v2636_v26, %v3752_v5  ;;  %v6292_v39 = vcombine.high %v4068_v20, %v4076_v21  ;;  %v4060_v52 = vld [vmem:[%s9303_s3 + $0x78] sm:$0xff]  ;;  %v2666_v48 = vmax.f32 %v7760_v59, %v8310_v40  ;;  %v9394_v26 = vld [vmem:[#allocation10_spill] sm:$0xff]  ;;  %v9395_v5 = vld [vmem:[#allocation55_spill] sm:$0xff] }
 0x231   :  { %v3701_v2 = vpop.f32.mrf.mxu0  ;;  %v3754_v24 = vpop.f32.mrf.mxu1  ;;  %v2668_v60 = vmax.f32 %v9394_v26, %v8312_v14  ;;  %v6276_v40 = vcombine.high %v4052_v43, %v4060_v52  ;;  %v4179_v14 = vld [vmem:[%s9303_s3 + $0x430] sm:$0xff] }
 0x232   :  { %v8850_v61 = vmax.f32 %v2649_v18, %v3701_v2  ;;  %5236 = vmatpush1.bf16.msra.mxu0 %v6321_v6  ;;  %v8852_v34 = vmax.f32 %v2651_v22, %v3754_v24  ;;  %5289 = vmatpush1.bf16.msra.mxu1 %v6323_v46  ;;  %v6274_v18 = vcombine.high %v4051_v35, %v4059_v23  ;;  %v9397_v7 = vld [vmem:[#allocation56_spill] sm:$0xff]  ;;  %v4180_v24 = vld [vmem:[%s9303_s3 + $0x438] sm:$0xff] }
 0x233   :  { %v3703_v62 = vpop.f32.mrf.mxu0  ;;  %5237 = vmatprep.subr.bf16.mxu0 %v6306_v30  ;;  %v3756_v33 = vpop.f32.mrf.mxu1  ;;  %5290 = vmatprep.subr.bf16.mxu1 %v6308_v9  ;;  %v6291_v30 = vcombine.low %v4068_v20, %v4076_v21  ;;  %v9396_v9 = vld [vmem:[#allocation11_spill] sm:$0xff] }
 0x234   :  { %v8856_v8 = vmax.f32 %v2650_v19, %v3703_v62  ;;  %v8866_v37 = vmax.f32 %v2652_v32, %v3756_v33  ;;  %v2681_v22 = vmax.f32 %v9396_v9, %v9395_v5  ;;  %v9398_v19 = vld [vmem:[#allocation12_spill] sm:$0xff]  ;;  %v9399_v62 = vld [vmem:[#allocation57_spill] sm:$0xff]  ;;  %v9402_v33 = vld [vmem:[#allocation14_spill] sm:$0xff] }
 0x235   :  { %v3707_v57 = vpop.f32.mrf.mxu0  ;;  %v3760_v47 = vpop.f32.mrf.mxu1  ;;  %v2683_v20 = vmax.f32 %v9398_v19, %v9397_v7 }
 0x236   :  { %v8878_v6 = vmax.f32 %v2665_v4, %v3707_v57  ;;  %5238 = vmatpush1.bf16.msra.mxu0 %v6305_v38  ;;  %v8880_v1 = vmax.f32 %v2667_v31, %v3760_v47  ;;  %5291 = vmatpush1.bf16.msra.mxu1 %v6307_v11  ;;  %v4188_v38 = vld [vmem:[%s9303_s3 + $0x478] sm:$0xff]  ;;  %v9401_v4 = vld [vmem:[#allocation58_spill] sm:$0xff]  ;;  %v6275_v47 = vcombine.low %v4052_v43, %v4060_v52  ;;  %v9405_v52 = vld [vmem:[#allocation60_spill] sm:$0xff] }
 0x237   :  { %v3709_v46 = vpop.f32.mrf.mxu0  ;;  %5239 = vmatprep.subr.bf16.mxu0 %v6290_v27  ;;  %v3762_v59 = vpop.f32.mrf.mxu1  ;;  %5292 = vmatprep.subr.bf16.mxu1 %v6292_v39  ;;  %v9400_v11 = vld [vmem:[#allocation13_spill] sm:$0xff]  ;;  %v2684_v39 = vmax.f32 %v9402_v33, %v9401_v4 }
 0x238   :  { %v8884_v2 = vmax.f32 %v2666_v48, %v3709_v46  ;;  %v8894_v21 = vmax.f32 %v2668_v60, %v3762_v59  ;;  %v2682_v27 = vmax.f32 %v9400_v11, %v9399_v62  ;;  %v6273_v48 = vcombine.low %v4051_v35, %v4059_v23  ;;  %v9403_v35 = vld [vmem:[#allocation59_spill] sm:$0xff] }
 0x239   :  { %v3711_v32 = vpop.f32.mrf.mxu0  ;;  %v3764_v57 = vpop.f32.mrf.mxu1  ;;  %v6402_v46 = vcombine.high %v4179_v14, %v4187_v28  ;;  %v6404_v59 = vcombine.high %v4180_v24, %v4188_v38  ;;  %v9404_v23 = vld [vmem:[#allocation15_spill] sm:$0xff] }
 0x23a   :  { %v8906_v31 = vmax.f32 %v2681_v22, %v3711_v32  ;;  %5240 = vmatpush1.bf16.msra.mxu0 %v6289_v36  ;;  %v8908_v26 = vmax.f32 %v2683_v20, %v3764_v57  ;;  %5293 = vmatpush1.bf16.msra.mxu1 %v6291_v30  ;;  %v6401_v22 = vcombine.low %v4179_v14, %v4187_v28  ;;  %v9406_v30 = vld [vmem:[#allocation16_spill] sm:$0xff]  ;;  %v9407_v14 = vld [vmem:[#allocation61_spill] sm:$0xff]  ;;  %v9409_v32 = vld [vmem:[#allocation62_spill] sm:$0xff] }
 0x23b   :  { %v3713_v60 = vpop.f32.mrf.mxu0  ;;  %5241 = vmatprep.subr.bf16.mxu0 %v6274_v18  ;;  %v3766_v9 = vpop.f32.mrf.mxu1  ;;  %5294 = vmatprep.subr.bf16.mxu1 %v6276_v40  ;;  %v6403_v36 = vcombine.low %v4180_v24, %v4188_v38  ;;  %v2637_v43 = vmax.f32 %v9404_v23, %v9403_v35  ;;  %v2639_v18 = vmax.f32 %v9406_v30, %v9405_v52  ;;  %v9408_v28 = vld [vmem:[#allocation17_spill] sm:$0xff]  ;;  %v9410_v24 = vld [vmem:[#allocation18_spill] sm:$0xff]  ;;  %v9412_v11 = vld [vmem:[#allocation19_spill] sm:$0xff] }
 0x23c   :  { %v8910_v5 = vmax.f32 %v2682_v27, %v3713_v60  ;;  %v8912_v7 = vmax.f32 %v2684_v39, %v3766_v9  ;;  %v9413_v39 = vld [vmem:[#allocation64_spill] sm:$0xff]  ;;  %v9416_v9 = vld [vmem:[#allocation21_spill] sm:$0xff]  ;;  %v9417_v35 = vld [vmem:[#allocation66_spill] sm:$0xff] }
 0x23d   :  { %v9414_v57 = vld [vmem:[#allocation20_spill] sm:$0xff]  ;;  %v9418_v23 = vld [vmem:[#allocation22_spill] sm:$0xff] }
 0x23e   :  { %5242 = vmatpush1.bf16.msra.mxu0 %v6273_v48  ;;  %5295 = vmatpush1.bf16.msra.mxu1 %v6275_v47  ;;  %v2655_v48 = vmax.f32 %v9414_v57, %v9413_v39  ;;  %v9425_v57 = vld [vmem:[#allocation70_spill] sm:$0xff] }
 0x23f   :  { %5257 = vmatprep.subr.bf16.mxu0 %v6402_v46  ;;  %5310 = vmatprep.subr.bf16.mxu1 %v6404_v59  ;;  %v9415_v46 = vld [vmem:[#allocation65_spill] sm:$0xff] }
 0x240   :  { %v2654_v59 = vmax.f32 %v9416_v9, %v9415_v46 }
 0x242   :  { %5258 = vmatpush2.bf16.msra.mxu0 %v6401_v22  ;;  %5311 = vmatpush2.bf16.msra.mxu1 %v6403_v36 }
 0x245   :  { %5260 = vmatmul.mubr.bf16.vlgmr.msra.gmra.mxu0 %v8563_v10  ;;  %5313 = vmatmul.mubr.bf16.vlgmr.msra.gmra.mxu1 %v8563_v10  ;;  %v2638_v10 = vmax.f32 %v9408_v28, %v9407_v14 }
 0x246   :  { %6418 = vmatprep.mubr.msk.bf16.mxu0 %vm910_vm0, %v8580_v45  ;;  %6420 = vmatprep.mubr.msk.bf16.mxu1 %vm910_vm0, %v8580_v45  ;;  %v2640_v45 = vmax.f32 %v9410_v24, %v9409_v32  ;;  %v9422_v32 = vld [vmem:[#allocation24_spill] sm:$0xff] }
 0x24d   :  { %5270 = vmatmul.mubr.bf16.gmra.mxu0 %v8611_v56  ;;  %5323 = vmatmul.mubr.bf16.gmra.mxu1 %v8611_v56  ;;  %v9411_v56 = vld [vmem:[#allocation63_spill] sm:$0xff] }
 0x24e   :  { %v2653_v27 = vmax.f32 %v9412_v11, %v9411_v56  ;;  %v9423_v56 = vld [vmem:[#allocation69_spill] sm:$0xff] }
 0x24f   :  { %v9424_v11 = vld [vmem:[#allocation25_spill] sm:$0xff] }
 0x251   :  { %v3803_v40 = vpop.f32.mrf.mxu0  ;;  %v3856_v20 = vpop.f32.mrf.mxu1 }
 0x252   :  { %v8928_v19 = vmax.f32 %v2637_v43, %v3803_v40  ;;  %v8932_v38 = vmax.f32 %v2639_v18, %v3856_v20  ;;  %v2656_v43 = vmax.f32 %v9418_v23, %v9417_v35  ;;  %v9419_v18 = vld [vmem:[#allocation67_spill] sm:$0xff]  ;;  %v9421_v20 = vld [vmem:[#allocation68_spill] sm:$0xff] }
 0x253   :  { %v3805_v62 = vpop.f32.mrf.mxu0  ;;  %v3858_v33 = vpop.f32.mrf.mxu1  ;;  %v9420_v40 = vld [vmem:[#allocation23_spill] sm:$0xff]  ;;  %v2671_v24 = vmax.f32 %v9422_v32, %v9421_v20  ;;  %v9434_v20 = vld [vmem:[#allocation73_spill] sm:$0xff] }
 0x254   :  { %v8936_v4 = vmax.f32 %v2638_v10, %v3805_v62  ;;  %v8940_v60 = vmax.f32 %v2640_v45, %v3858_v33  ;;  %v2669_v14 = vmax.f32 %v9420_v40, %v9419_v18  ;;  %v9432_v18 = vld [vmem:[#allocation28_spill] sm:$0xff]  ;;  %v9435_v32 = vld [vmem:[#allocation29_spill] sm:$0xff] }
 0x255   :  { %v3807_v47 = vpop.f32.mrf.mxu0  ;;  %v3860_v36 = vpop.f32.mrf.mxu1 }
 0x256   :  { %v8944_v22 = vmax.f32 %v2653_v27, %v3807_v47  ;;  %v8948_v52 = vmax.f32 %v2655_v48, %v3860_v36  ;;  %v2670_v27 = vmax.f32 %v9424_v11, %v9423_v56  ;;  %v9426_v48 = vld [vmem:[#allocation26_spill] sm:$0xff]  ;;  %v9429_v36 = vld [vmem:[#allocation27_spill] sm:$0xff] }
 0x257   :  { %v3809_v30 = vpop.f32.mrf.mxu0  ;;  %v3862_v10 = vpop.f32.mrf.mxu1  ;;  %v2672_v47 = vmax.f32 %v9426_v48, %v9425_v57  ;;  %v9437_v11 = vld [vmem:[#allocation74_spill] sm:$0xff] }
 0x258   :  { %v8952_v28 = vmax.f32 %v2654_v59, %v3809_v30  ;;  %v8956_v45 = vmax.f32 %v2656_v43, %v3862_v10  ;;  %v9428_v59 = vld [vmem:[#allocation71_spill] sm:$0xff]  ;;  %v9431_v30 = vld [vmem:[#allocation72_spill] sm:$0xff] }
 0x259   :  { %v3813_v62 = vpop.f32.mrf.mxu0  ;;  %v3866_v39 = vpop.f32.mrf.mxu1  ;;  %v2685_v35 = vmax.f32 %v9429_v36, %v9428_v59  ;;  %v2687_v40 = vmax.f32 %v9432_v18, %v9431_v30  ;;  %v9444_v18 = vld [vmem:[#allocation76_spill] sm:$0xff] }
 0x25a   :  { %v8960_v33 = vmax.f32 %v2669_v14, %v3813_v62  ;;  %v8964_v46 = vmax.f32 %v2671_v24, %v3866_v39  ;;  %v2686_v62 = vmax.f32 %v9435_v32, %v9434_v20  ;;  %v9438_v39 = vld [vmem:[#allocation30_spill] sm:$0xff]  ;;  %v9447_v32 = vld [vmem:[#allocation33_spill] sm:$0xff] }
 0x25b   :  { %v3815_v9 = vpop.f32.mrf.mxu0  ;;  %v3868_v43 = vpop.f32.mrf.mxu1  ;;  %v2688_v57 = vmax.f32 %v9438_v39, %v9437_v11  ;;  %v9450_v11 = vld [vmem:[#allocation34_spill] sm:$0xff] }
 0x25c   :  { %9427 = vst [vmem:[#allocation10_spill] sm:$0xff] %v8964_v46  ;;  %v8968_v23 = vmax.f32 %v2670_v27, %v3815_v9  ;;  %v8972_v10 = vmax.f32 %v2672_v47, %v3868_v43  ;;  %v9442_v47 = vld [vmem:[#allocation75_spill] sm:$0xff] }
 0x25d   :  { %v3817_v14 = vpop.f32.mrf.mxu0  ;;  %v3870_v24 = vpop.f32.mrf.mxu1  ;;  %v9443_v43 = vld [vmem:[#allocation31_spill] sm:$0xff] }
 0x25e   :  { %9430 = vst [vmem:[#allocation55_spill] sm:$0xff] %v8968_v23  ;;  %9433 = vst [vmem:[#allocation11_spill] sm:$0xff] %v8972_v10  ;;  %v8976_v56 = vmax.f32 %v2685_v35, %v3817_v14  ;;  %v8980_v48 = vmax.f32 %v2687_v40, %v3870_v24  ;;  %v2641_v30 = vmax.f32 %v9443_v43, %v9442_v47  ;;  %v9445_v10 = vld [vmem:[#allocation32_spill] sm:$0xff]  ;;  %v9446_v14 = vld [vmem:[#allocation77_spill] sm:$0xff] }
 0x25f   :  { %v3819_v27 = vpop.f32.mrf.mxu0  ;;  %v3872_v59 = vpop.f32.mrf.mxu1  ;;  %v2643_v20 = vmax.f32 %v9445_v10, %v9444_v18  ;;  %v9449_v24 = vld [vmem:[#allocation78_spill] sm:$0xff]  ;;  %v9455_v10 = vld [vmem:[#allocation80_spill] sm:$0xff] }
 0x260   :  { %9436 = vst [vmem:[#allocation56_spill] sm:$0xff] %v8976_v56  ;;  %9439 = vst [vmem:[#allocation12_spill] sm:$0xff] %v8980_v48  ;;  %v8982_v9 = vmax.f32 %v2686_v62, %v3819_v27  ;;  %v8984_v36 = vmax.f32 %v2688_v57, %v3872_v59  ;;  %v2642_v56 = vmax.f32 %v9447_v32, %v9446_v14  ;;  %v9452_v27 = vld [vmem:[#allocation79_spill] sm:$0xff]  ;;  %v9456_v18 = vld [vmem:[#allocation36_spill] sm:$0xff] }
 0x261   :  { %v2644_v62 = vmax.f32 %v9450_v11, %v9449_v24  ;;  %v9453_v59 = vld [vmem:[#allocation35_spill] sm:$0xff]  ;;  %v9459_v14 = vld [vmem:[#allocation37_spill] sm:$0xff]  ;;  %v9462_v24 = vld [vmem:[#allocation38_spill] sm:$0xff] }
 0x262   :  { %9440 = vst [vmem:[#allocation57_spill] sm:$0xff] %v8982_v9  ;;  %9441 = vst [vmem:[#allocation13_spill] sm:$0xff] %v8984_v36  ;;  %v2657_v36 = vmax.f32 %v9453_v59, %v9452_v27  ;;  %v2659_v9 = vmax.f32 %v9456_v18, %v9455_v10  ;;  %v9465_v27 = vld [vmem:[#allocation39_spill] sm:$0xff]  ;;  %v9468_v10 = vld [vmem:[#allocation40_spill] sm:$0xff] }
 0x275   :  { %v3909_v35 = vpop.f32.mrf.mxu0  ;;  %v3962_v40 = vpop.f32.mrf.mxu1 }
 0x276   :  { %v8992_v23 = vmax.f32 %v2641_v30, %v3909_v35  ;;  %v8996_v39 = vmax.f32 %v2643_v20, %v3962_v40  ;;  %v9458_v35 = vld [vmem:[#allocation81_spill] sm:$0xff]  ;;  %v9461_v40 = vld [vmem:[#allocation82_spill] sm:$0xff] }
 0x277   :  { %v3911_v57 = vpop.f32.mrf.mxu0  ;;  %v3964_v43 = vpop.f32.mrf.mxu1  ;;  %v2658_v32 = vmax.f32 %v9459_v14, %v9458_v35  ;;  %v2660_v11 = vmax.f32 %v9462_v24, %v9461_v40  ;;  %v9471_v35 = vld [vmem:[#allocation41_spill] sm:$0xff]  ;;  %v9474_v40 = vld [vmem:[#allocation42_spill] sm:$0xff] }
 0x278   :  { %9448 = vst [vmem:[#allocation58_spill] sm:$0xff] %v8992_v23  ;;  %9451 = vst [vmem:[#allocation14_spill] sm:$0xff] %v8996_v39  ;;  %v9000_v47 = vmax.f32 %v2642_v56, %v3911_v57  ;;  %v9004_v48 = vmax.f32 %v2644_v62, %v3964_v43  ;;  %v9464_v57 = vld [vmem:[#allocation83_spill] sm:$0xff]  ;;  %v9467_v43 = vld [vmem:[#allocation84_spill] sm:$0xff] }
 0x279   :  { %v3913_v30 = vpop.f32.mrf.mxu0  ;;  %v3966_v20 = vpop.f32.mrf.mxu1  ;;  %v2673_v59 = vmax.f32 %v9465_v27, %v9464_v57  ;;  %v2675_v18 = vmax.f32 %v9468_v10, %v9467_v43  ;;  %v9477_v57 = vld [vmem:[#allocation43_spill] sm:$0xff]  ;;  %v9480_v43 = vld [vmem:[#allocation44_spill] sm:$0xff] }
 0x27a   :  { %9454 = vst [vmem:[#allocation59_spill] sm:$0xff] %v9000_v47  ;;  %9457 = vst [vmem:[#allocation15_spill] sm:$0xff] %v9004_v48  ;;  %v9008_v23 = vmax.f32 %v2657_v36, %v3913_v30  ;;  %v9012_v39 = vmax.f32 %v2659_v9, %v3966_v20  ;;  %v9470_v30 = vld [vmem:[#allocation85_spill] sm:$0xff]  ;;  %v9473_v20 = vld [vmem:[#allocation86_spill] sm:$0xff] }
 0x27b   :  { %v3915_v56 = vpop.f32.mrf.mxu0  ;;  %v3968_v62 = vpop.f32.mrf.mxu1  ;;  %v2674_v14 = vmax.f32 %v9471_v35, %v9470_v30  ;;  %v2676_v24 = vmax.f32 %v9474_v40, %v9473_v20  ;;  %v9483_v30 = vld [vmem:[#allocation45_spill] sm:$0xff]  ;;  %v9486_v20 = vld [vmem:[#allocation46_spill] sm:$0xff] }
 0x27c   :  { %9460 = vst [vmem:[#allocation60_spill] sm:$0xff] %v9008_v23  ;;  %9463 = vst [vmem:[#allocation16_spill] sm:$0xff] %v9012_v39  ;;  %v9016_v47 = vmax.f32 %v2658_v32, %v3915_v56  ;;  %v9020_v48 = vmax.f32 %v2660_v11, %v3968_v62  ;;  %v9476_v56 = vld [vmem:[#allocation87_spill] sm:$0xff]  ;;  %v9479_v62 = vld [vmem:[#allocation88_spill] sm:$0xff] }
 0x27d   :  { %v3919_v36 = vpop.f32.mrf.mxu0  ;;  %v3972_v9 = vpop.f32.mrf.mxu1  ;;  %v2689_v27 = vmax.f32 %v9477_v57, %v9476_v56  ;;  %v2691_v10 = vmax.f32 %v9480_v43, %v9479_v62  ;;  %v9491_v62 = vld [vmem:[#allocation2_spill] sm:$0xff] }
 0x27e   :  { %9466 = vst [vmem:[#allocation61_spill] sm:$0xff] %v9016_v47  ;;  %9469 = vst [vmem:[#allocation17_spill] sm:$0xff] %v9020_v48  ;;  %v9024_v23 = vmax.f32 %v2673_v59, %v3919_v36  ;;  %v9028_v39 = vmax.f32 %v2675_v18, %v3972_v9  ;;  %v9482_v36 = vld [vmem:[#allocation89_spill] sm:$0xff]  ;;  %v9485_v9 = vld [vmem:[#allocation90_spill] sm:$0xff] }
 0x27f   :  { %v3921_v32 = vpop.f32.mrf.mxu0  ;;  %v3974_v11 = vpop.f32.mrf.mxu1  ;;  %v2690_v35 = vmax.f32 %v9483_v30, %v9482_v36  ;;  %v2692_v40 = vmax.f32 %v9486_v20, %v9485_v9  ;;  %v9492_v36 = vld [vmem:[#allocation48_spill] sm:$0xff] }
 0x280   :  { %9472 = vst [vmem:[#allocation62_spill] sm:$0xff] %v9024_v23  ;;  %9475 = vst [vmem:[#allocation18_spill] sm:$0xff] %v9028_v39  ;;  %v9032_v47 = vmax.f32 %v2674_v14, %v3921_v32  ;;  %v9036_v48 = vmax.f32 %v2676_v24, %v3974_v11  ;;  %v9050_v24 = vpop.permute.xlu0 %5403  ;;  %v9490_v11 = vld [vmem:[#allocation47_spill] sm:$0xff] }
 0x281   :  { %v3923_v59 = vpop.f32.mrf.mxu0  ;;  %v3976_v18 = vpop.f32.mrf.mxu1  ;;  %v2630_v43 = vmax.f32 %v9491_v62, %v9490_v11 }
 0x282   :  { %9478 = vst [vmem:[#allocation63_spill] sm:$0xff] %v9032_v47  ;;  %9481 = vst [vmem:[#allocation19_spill] sm:$0xff] %v9036_v48  ;;  %v9040_v23 = vmax.f32 %v2689_v27, %v3923_v59  ;;  %v9044_v39 = vmax.f32 %v2691_v10, %v3976_v18  ;;  %v9493_v27 = vld [vmem:[#allocation3_spill] sm:$0xff] }
 0x283   :  { %v3925_v14 = vpop.f32.mrf.mxu0  ;;  %v3978_v56 = vpop.f32.mrf.mxu1  ;;  %v2632_v59 = vmax.f32 %v9493_v27, %v9492_v36 }
 0x284   :  { %9484 = vst [vmem:[#allocation64_spill] sm:$0xff] %v9040_v23  ;;  %9487 = vst [vmem:[#allocation20_spill] sm:$0xff] %v9044_v39  ;;  %v9046_v32 = vmax.f32 %v2690_v35, %v3925_v14  ;;  %v9048_v57 = vmax.f32 %v2692_v40, %v3978_v56  ;;  %v3982_v23 = vmax.f32 %v2630_v43, %v8654_v44  ;;  %v9494_v40 = vld [vmem:[#allocation49_spill] sm:$0xff]  ;;  %v9495_v14 = vld [vmem:[#allocation4_spill] sm:$0xff] }
 0x285   :  { %v3984_v35 = vmax.f32 %v2632_v59, %v8658_v29  ;;  %v2646_v56 = vmax.f32 %v9495_v14, %v9494_v40  ;;  %v9498_v39 = vld [vmem:[#allocation51_spill] sm:$0xff]  ;;  %v9499_v44 = vld [vmem:[#allocation6_spill] sm:$0xff]  ;;  %v9502_v40 = vld [vmem:[#allocation53_spill] sm:$0xff] }
 0x286   :  { %9488 = vst [vmem:[#allocation65_spill] sm:$0xff] %v9046_v32  ;;  %9489 = vst [vmem:[#allocation21_spill] sm:$0xff] %v9048_v57  ;;  %v9496_v57 = vld [vmem:[#allocation50_spill] sm:$0xff]  ;;  %v9497_v32 = vld [vmem:[#allocation5_spill] sm:$0xff]  ;;  %v2662_v43 = vmax.f32 %v9499_v44, %v9498_v39 }
 0x287   :  { %v2648_v11 = vmax.f32 %v9497_v32, %v9496_v57  ;;  %v9503_v14 = vld [vmem:[#allocation8_spill] sm:$0xff]  ;;  %v9504_v39 = vld [vmem:[#allocation54_spill] sm:$0xff] }
 0x288   :  { %v2678_v47 = vmax.f32 %v9503_v14, %v9502_v40 }
 0x299   :  { %v4943_v30 = vpop.f32.mrf.mxu0  ;;  %v4996_v18 = vpop.f32.mrf.mxu1 }
 0x29a   :  { %v5333_v10 = vmax.f32 %v8650_v49, %v4943_v30  ;;  %v5335_v9 = vmax.f32 %v8652_v25, %v4996_v18  ;;  %v9500_v49 = vld [vmem:[#allocation52_spill] sm:$0xff]  ;;  %v9501_v30 = vld [vmem:[#allocation7_spill] sm:$0xff]  ;;  %v9070_v18 = vpop.permute.xlu0 %5408 }
 0x29b   :  { %v4945_v20 = vpop.f32.mrf.mxu0  ;;  %v4998_v27 = vpop.f32.mrf.mxu1  ;;  %v2664_v48 = vmax.f32 %v9501_v30, %v9500_v49 }
 0x29c   :  { %v5334_v62 = vmax.f32 %v3982_v23, %v4945_v20  ;;  %v5421_v36 = vadd.f32 %v9050_v24, %v5333_v10  ;;  %v5336_v29 = vmax.f32 %v3984_v35, %v4998_v27  ;;  %v5423_v25 = vadd.f32 %v9050_v24, %v5335_v9  ;;  %v9505_v20 = vld [vmem:[#allocation9_spill] sm:$0xff]  ;;  %v9082_v30 = vpop.permute.xlu1 %5413 }
 0x29d   :  { %v4947_v59 = vpop.f32.mrf.mxu0  ;;  %v3998_v23 = vmax.f32 %v2646_v56, %v8678_v3  ;;  %v5000_v10 = vpop.f32.mrf.mxu1  ;;  %v2680_v44 = vmax.f32 %v9505_v20, %v9504_v39  ;;  %v4000_v35 = vmax.f32 %v2648_v11, %v8682_v54  ;;  %v4014_v54 = vmax.f32 %v2662_v43, %v8702_v50 }
 0x29e   :  { %v5422_v32 = vadd.f32 %v9050_v24, %v5334_v62  ;;  %v5349_v57 = vmax.f32 %v8674_v51, %v4947_v59  ;;  %v5424_v9 = vadd.f32 %v9050_v24, %v5336_v29  ;;  %v5351_v27 = vmax.f32 %v8676_v13, %v5000_v10 }
 0x29f   :  { %v4949_v49 = vpop.f32.mrf.mxu0  ;;  %v5485_v40 = vmax.f32 %v5421_v36, 0.0  ;;  %v5002_v62 = vpop.f32.mrf.mxu1  ;;  %v5487_v51 = vmax.f32 %v5423_v25, 0.0  ;;  %v4016_v36 = vmax.f32 %v2664_v48, %v8706_v55 }
 0x2a0   :  { %v5486_v14 = vmax.f32 %v5422_v32, 0.0  ;;  %v5350_v3 = vmax.f32 %v3998_v23, %v4949_v49  ;;  %v5437_v56 = vadd.f32 %v9070_v18, %v5349_v57  ;;  %v5488_v59 = vmax.f32 %v5424_v9, 0.0  ;;  %v9100_v49 = vpop.permute.xlu1 %5418 }
 0x2a1   :  { %v5352_v46 = vmax.f32 %v4000_v35, %v5002_v62  ;;  %v5439_v39 = vadd.f32 %v9070_v18, %v5351_v27  ;;  %v4953_v20 = vpop.f32.mrf.mxu0  ;;  %v5006_v10 = vpop.f32.mrf.mxu1 }
 0x2a2   :  { %v6453_v11 = vpack.c.bf16 %v5486_v14, %v5485_v40  ;;  %v5438_v13 = vadd.f32 %v9070_v18, %v5350_v3  ;;  %v5365_v29 = vmax.f32 %v8698_v58, %v4953_v20  ;;  %v6454_v23 = vpack.c.bf16 %v5488_v59, %v5487_v51 }
 0x2a3   :  { %v5440_v32 = vadd.f32 %v9070_v18, %v5352_v46  ;;  %v5367_v25 = vmax.f32 %v8700_v63, %v5006_v10  ;;  %v4955_v57 = vpop.f32.mrf.mxu0  ;;  %v5501_v35 = vmax.f32 %v5437_v56, 0.0  ;;  %v5008_v27 = vpop.f32.mrf.mxu1  ;;  %v5503_v58 = vmax.f32 %v5439_v39, 0.0 }
 0x2a4   :  { %5741 = vst [vmem:[%s9304_s6] sm:$0xff] %v6453_v11  ;;  %v5502_v50 = vmax.f32 %v5438_v13, 0.0  ;;  %v5366_v43 = vmax.f32 %v4014_v54, %v4955_v57  ;;  %v5453_v9 = vadd.f32 %v9082_v30, %v5365_v29  ;;  %5742 = vst [vmem:[%s9304_s6 + $0x8] sm:$0xff] %v6454_v23  ;;  %v5368_v46 = vmax.f32 %v4016_v36, %v5008_v27 }
 0x2a5   :  { %v5504_v55 = vmax.f32 %v5440_v32, 0.0  ;;  %v5455_v63 = vadd.f32 %v9082_v30, %v5367_v25  ;;  %v4957_v48 = vpop.f32.mrf.mxu0  ;;  %v4030_v40 = vmax.f32 %v2678_v47, %v8794_v53  ;;  %v5010_v62 = vpop.f32.mrf.mxu1  ;;  %v4032_v51 = vmax.f32 %v2680_v44, %v8798_v0 }
 0x2a6   :  { %v6461_v14 = vpack.c.bf16 %v5502_v50, %v5501_v35  ;;  %v5454_v3 = vadd.f32 %v9082_v30, %v5366_v43  ;;  %v5381_v56 = vmax.f32 %v8722_v16, %v4957_v48  ;;  %v5456_v39 = vadd.f32 %v9082_v30, %v5368_v46 }
 0x2a7   :  { %v6462_v59 = vpack.c.bf16 %v5504_v55, %v5503_v58  ;;  %v5383_v20 = vmax.f32 %v8724_v41, %v5010_v62  ;;  %v4959_v54 = vpop.f32.mrf.mxu0  ;;  %v5517_v11 = vmax.f32 %v5453_v9, 0.0  ;;  %v5012_v29 = vpop.f32.mrf.mxu1  ;;  %v5519_v16 = vmax.f32 %v5455_v63, 0.0 }
 0x2a8   :  { %5749 = vst [vmem:[%s9304_s6 + $0x40] sm:$0xff] %v6461_v14  ;;  %v5518_v53 = vmax.f32 %v5454_v3, 0.0  ;;  %v5382_v47 = vmax.f32 %v4030_v40, %v4959_v54  ;;  %v5469_v13 = vadd.f32 %v9100_v49, %v5381_v56  ;;  %v5520_v0 = vmax.f32 %v5456_v39, 0.0 }
 0x2a9   :  { %5750 = vst [vmem:[%s9304_s6 + $0x48] sm:$0xff] %v6462_v59  ;;  %v5384_v44 = vmax.f32 %v4032_v51, %v5012_v29  ;;  %v5471_v41 = vadd.f32 %v9100_v49, %v5383_v20 }
 0x2aa   :  { %v6469_v10 = vpack.c.bf16 %v5518_v53, %v5517_v11  ;;  %v5470_v36 = vadd.f32 %v9100_v49, %v5382_v47  ;;  %v6470_v23 = vpack.c.bf16 %v5520_v0, %v5519_v16  ;;  %v5533_v25 = vmax.f32 %v5469_v13, 0.0 }
 0x2ab   :  { %v5472_v32 = vadd.f32 %v9100_v49, %v5384_v44  ;;  %v5535_v35 = vmax.f32 %v5471_v41, 0.0 }
 0x2ac   :  { %5757 = vst [vmem:[%s9304_s6 + $0x80] sm:$0xff] %v6469_v10  ;;  %v5534_v57 = vmax.f32 %v5470_v36, 0.0  ;;  %5758 = vst [vmem:[%s9304_s6 + $0x88] sm:$0xff] %v6470_v23 }
 0x2ad   :  { %v5536_v50 = vmax.f32 %v5472_v32, 0.0 }
 0x2ae   :  { %v6477_v43 = vpack.c.bf16 %v5534_v57, %v5533_v25 }
 0x2af   :  { %v6478_v9 = vpack.c.bf16 %v5536_v50, %v5535_v35 }
 0x2b0   :  { %5765 = vst [vmem:[%s9304_s6 + $0xc0] sm:$0xff] %v6477_v43 }
 0x2b1   :  { %5766 = vst [vmem:[%s9304_s6 + $0xc8] sm:$0xff] %v6478_v9 }
 0x2bd   :  { %v5049_v27 = vpop.f32.mrf.mxu0  ;;  %v5102_v55 = vpop.f32.mrf.mxu1 }
 0x2be   :  { %v5337_v58 = vmax.f32 %v8822_v42, %v5049_v27  ;;  %v5339_v46 = vmax.f32 %v8824_v12, %v5102_v55 }
 0x2bf   :  { %v5051_v63 = vpop.f32.mrf.mxu0  ;;  %v5104_v14 = vpop.f32.mrf.mxu1 }
 0x2c0   :  { %v5425_v48 = vadd.f32 %v9050_v24, %v5337_v58  ;;  %v5338_v40 = vmax.f32 %v8828_v15, %v5051_v63  ;;  %v5427_v3 = vadd.f32 %v9050_v24, %v5339_v46  ;;  %v5340_v56 = vmax.f32 %v8838_v17, %v5104_v14 }
 0x2c1   :  { %v5053_v62 = vpop.f32.mrf.mxu0  ;;  %v5106_v39 = vpop.f32.mrf.mxu1 }
 0x2c2   :  { %v5426_v51 = vadd.f32 %v9050_v24, %v5338_v40  ;;  %v5353_v59 = vmax.f32 %v8850_v61, %v5053_v62  ;;  %v5428_v42 = vadd.f32 %v9050_v24, %v5340_v56  ;;  %v5355_v12 = vmax.f32 %v8852_v34, %v5106_v39 }
 0x2c3   :  { %v5055_v20 = vpop.f32.mrf.mxu0  ;;  %v5489_v54 = vmax.f32 %v5425_v48, 0.0  ;;  %v5108_v47 = vpop.f32.mrf.mxu1  ;;  %v5491_v13 = vmax.f32 %v5427_v3, 0.0 }
 0x2c4   :  { %v5490_v11 = vmax.f32 %v5426_v51, 0.0  ;;  %v5441_v15 = vadd.f32 %v9070_v18, %v5353_v59  ;;  %v5354_v53 = vmax.f32 %v8856_v8, %v5055_v20  ;;  %v5492_v17 = vmax.f32 %v5428_v42, 0.0 }
 0x2c5   :  { %v5443_v29 = vadd.f32 %v9070_v18, %v5355_v12  ;;  %v5356_v16 = vmax.f32 %v8866_v37, %v5108_v47  ;;  %v5059_v61 = vpop.f32.mrf.mxu0  ;;  %v5112_v41 = vpop.f32.mrf.mxu1 }
 0x2c6   :  { %v6455_v0 = vpack.c.bf16 %v5490_v11, %v5489_v54  ;;  %v5442_v44 = vadd.f32 %v9070_v18, %v5354_v53  ;;  %v5369_v34 = vmax.f32 %v8878_v6, %v5059_v61  ;;  %v6456_v10 = vpack.c.bf16 %v5492_v17, %v5491_v13 }
 0x2c7   :  { %v5444_v36 = vadd.f32 %v9070_v18, %v5356_v16  ;;  %v5371_v23 = vmax.f32 %v8880_v1, %v5112_v41  ;;  %v5061_v8 = vpop.f32.mrf.mxu0  ;;  %v5505_v32 = vmax.f32 %v5441_v15, 0.0  ;;  %v5114_v35 = vpop.f32.mrf.mxu1  ;;  %v5507_v6 = vmax.f32 %v5443_v29, 0.0 }
 0x2c8   :  { %5743 = vst [vmem:[%s9304_s6 + $0x10] sm:$0xff] %v6455_v0  ;;  %v5506_v25 = vmax.f32 %v5442_v44, 0.0  ;;  %v5457_v37 = vadd.f32 %v9082_v30, %v5369_v34  ;;  %v5370_v57 = vmax.f32 %v8884_v2, %v5061_v8  ;;  %5744 = vst [vmem:[%s9304_s6 + $0x18] sm:$0xff] %v6456_v10  ;;  %v5372_v43 = vmax.f32 %v8894_v21, %v5114_v35 }
 0x2c9   :  { %v5508_v50 = vmax.f32 %v5444_v36, 0.0  ;;  %v5459_v1 = vadd.f32 %v9082_v30, %v5371_v23  ;;  %v5063_v9 = vpop.f32.mrf.mxu0  ;;  %v5116_v46 = vpop.f32.mrf.mxu1 }
 0x2ca   :  { %v6463_v27 = vpack.c.bf16 %v5506_v25, %v5505_v32  ;;  %v5458_v58 = vadd.f32 %v9082_v30, %v5370_v57  ;;  %v5385_v55 = vmax.f32 %v8906_v31, %v5063_v9  ;;  %v5460_v2 = vadd.f32 %v9082_v30, %v5372_v43 }
 0x2cb   :  { %v6464_v63 = vpack.c.bf16 %v5508_v50, %v5507_v6  ;;  %v5387_v48 = vmax.f32 %v8908_v26, %v5116_v46  ;;  %v5065_v40 = vpop.f32.mrf.mxu0  ;;  %v5521_v14 = vmax.f32 %v5457_v37, 0.0  ;;  %v5118_v62 = vpop.f32.mrf.mxu1  ;;  %v5523_v31 = vmax.f32 %v5459_v1, 0.0  ;;  %v9506_v46 = vld [vmem:[#allocation10_spill] sm:$0xff] }
 0x2cc   :  { %5751 = vst [vmem:[%s9304_s6 + $0x50] sm:$0xff] %v6463_v27  ;;  %v5522_v3 = vmax.f32 %v5458_v58, 0.0  ;;  %v5473_v21 = vadd.f32 %v9100_v49, %v5385_v55  ;;  %v5386_v56 = vmax.f32 %v8910_v5, %v5065_v40  ;;  %v5524_v51 = vmax.f32 %v5460_v2, 0.0  ;;  %v9507_v40 = vld [vmem:[#allocation55_spill] sm:$0xff] }
 0x2cd   :  { %5752 = vst [vmem:[%s9304_s6 + $0x58] sm:$0xff] %v6464_v63  ;;  %v5475_v26 = vadd.f32 %v9100_v49, %v5387_v48  ;;  %v5388_v59 = vmax.f32 %v8912_v7, %v5118_v62  ;;  %v9508_v62 = vld [vmem:[#allocation11_spill] sm:$0xff] }
 0x2ce   :  { %v6471_v39 = vpack.c.bf16 %v5522_v3, %v5521_v14  ;;  %v5474_v42 = vadd.f32 %v9100_v49, %v5386_v56  ;;  %v6472_v12 = vpack.c.bf16 %v5524_v51, %v5523_v31  ;;  %v5537_v5 = vmax.f32 %v5473_v21, 0.0 }
 0x2cf   :  { %v5476_v20 = vadd.f32 %v9100_v49, %v5388_v59  ;;  %v5539_v11 = vmax.f32 %v5475_v26, 0.0 }
 0x2d0   :  { %5759 = vst [vmem:[%s9304_s6 + $0x90] sm:$0xff] %v6471_v39  ;;  %v5538_v54 = vmax.f32 %v5474_v42, 0.0  ;;  %5760 = vst [vmem:[%s9304_s6 + $0x98] sm:$0xff] %v6472_v12  ;;  %v9509_v39 = vld [vmem:[#allocation56_spill] sm:$0xff] }
 0x2d1   :  { %v5540_v15 = vmax.f32 %v5476_v20, 0.0 }
 0x2d2   :  { %v6479_v53 = vpack.c.bf16 %v5538_v54, %v5537_v5  ;;  %v9510_v54 = vld [vmem:[#allocation12_spill] sm:$0xff] }
 0x2d3   :  { %v6480_v7 = vpack.c.bf16 %v5540_v15, %v5539_v11 }
 0x2d4   :  { %5767 = vst [vmem:[%s9304_s6 + $0xd0] sm:$0xff] %v6479_v53 }
 0x2d5   :  { %5768 = vst [vmem:[%s9304_s6 + $0xd8] sm:$0xff] %v6480_v7 }
 0x2e1   :  { %v5155_v47 = vpop.f32.mrf.mxu0  ;;  %v5208_v17 = vpop.f32.mrf.mxu1 }
 0x2e2   :  { %v5341_v13 = vmax.f32 %v8928_v19, %v5155_v47  ;;  %v5343_v29 = vmax.f32 %v8932_v38, %v5208_v17 }
 0x2e3   :  { %v5157_v16 = vpop.f32.mrf.mxu0  ;;  %v5210_v44 = vpop.f32.mrf.mxu1 }
 0x2e4   :  { %v5429_v61 = vadd.f32 %v9050_v24, %v5341_v13  ;;  %v5342_v0 = vmax.f32 %v8936_v4, %v5157_v16  ;;  %v5431_v34 = vadd.f32 %v9050_v24, %v5343_v29  ;;  %v5344_v41 = vmax.f32 %v8940_v60, %v5210_v44  ;;  %v9511_v13 = vld [vmem:[#allocation57_spill] sm:$0xff] }
 0x2e5   :  { %v5159_v10 = vpop.f32.mrf.mxu0  ;;  %v5212_v8 = vpop.f32.mrf.mxu1  ;;  %v9512_v44 = vld [vmem:[#allocation13_spill] sm:$0xff] }
 0x2e6   :  { %v5430_v36 = vadd.f32 %v9050_v24, %v5342_v0  ;;  %v5357_v23 = vmax.f32 %v8944_v22, %v5159_v10  ;;  %v5432_v19 = vadd.f32 %v9050_v24, %v5344_v41  ;;  %v5359_v38 = vmax.f32 %v8948_v52, %v5212_v8 }
 0x2e7   :  { %v5161_v32 = vpop.f32.mrf.mxu0  ;;  %v5493_v25 = vmax.f32 %v5429_v61, 0.0  ;;  %v5214_v35 = vpop.f32.mrf.mxu1  ;;  %v5495_v6 = vmax.f32 %v5431_v34, 0.0 }
 0x2e8   :  { %v5494_v37 = vmax.f32 %v5430_v36, 0.0  ;;  %v5445_v4 = vadd.f32 %v9070_v18, %v5357_v23  ;;  %v5358_v57 = vmax.f32 %v8952_v28, %v5161_v32  ;;  %v5496_v60 = vmax.f32 %v5432_v19, 0.0 }
 0x2e9   :  { %v5447_v50 = vadd.f32 %v9070_v18, %v5359_v38  ;;  %v5360_v1 = vmax.f32 %v8956_v45, %v5214_v35  ;;  %v5165_v22 = vpop.f32.mrf.mxu0  ;;  %v5218_v27 = vpop.f32.mrf.mxu1 }
 0x2ea   :  { %v6457_v43 = vpack.c.bf16 %v5494_v37, %v5493_v25  ;;  %v5446_v9 = vadd.f32 %v9070_v18, %v5358_v57  ;;  %v5373_v52 = vmax.f32 %v8960_v33, %v5165_v22  ;;  %v6458_v58 = vpack.c.bf16 %v5496_v60, %v5495_v6  ;;  %v9513_v57 = vld [vmem:[#allocation58_spill] sm:$0xff] }
 0x2eb   :  { %v5448_v55 = vadd.f32 %v9070_v18, %v5360_v1  ;;  %v5375_v63 = vmax.f32 %v9506_v46, %v5218_v27  ;;  %v5167_v28 = vpop.f32.mrf.mxu0  ;;  %v5509_v2 = vmax.f32 %v5445_v4, 0.0  ;;  %v5220_v3 = vpop.f32.mrf.mxu1  ;;  %v5511_v33 = vmax.f32 %v5447_v50, 0.0  ;;  %v9514_v60 = vld [vmem:[#allocation14_spill] sm:$0xff] }
 0x2ec   :  { %5745 = vst [vmem:[%s9304_s6 + $0x20] sm:$0xff] %v6457_v43  ;;  %v5510_v48 = vmax.f32 %v5446_v9, 0.0  ;;  %v5461_v45 = vadd.f32 %v9082_v30, %v5373_v52  ;;  %v5374_v14 = vmax.f32 %v9507_v40, %v5167_v28  ;;  %5746 = vst [vmem:[%s9304_s6 + $0x28] sm:$0xff] %v6458_v58  ;;  %v5376_v31 = vmax.f32 %v9508_v62, %v5220_v3  ;;  %v9515_v43 = vld [vmem:[#allocation59_spill] sm:$0xff]  ;;  %v9517_v28 = vld [vmem:[#allocation60_spill] sm:$0xff] }
 0x2ed   :  { %v5512_v21 = vmax.f32 %v5448_v55, 0.0  ;;  %v5463_v56 = vadd.f32 %v9082_v30, %v5375_v63  ;;  %v5169_v51 = vpop.f32.mrf.mxu0  ;;  %v5222_v12 = vpop.f32.mrf.mxu1  ;;  %v9516_v58 = vld [vmem:[#allocation15_spill] sm:$0xff]  ;;  %v9518_v40 = vld [vmem:[#allocation16_spill] sm:$0xff]  ;;  %v9519_v62 = vld [vmem:[#allocation61_spill] sm:$0xff] }
 0x2ee   :  { %v6465_v26 = vpack.c.bf16 %v5510_v48, %v5509_v2  ;;  %v5462_v59 = vadd.f32 %v9082_v30, %v5374_v14  ;;  %v5389_v42 = vmax.f32 %v9509_v39, %v5169_v51  ;;  %v5464_v5 = vadd.f32 %v9082_v30, %v5376_v31 }
 0x2ef   :  { %v6466_v20 = vpack.c.bf16 %v5512_v21, %v5511_v33  ;;  %v5391_v11 = vmax.f32 %v9510_v54, %v5222_v12  ;;  %v5171_v15 = vpop.f32.mrf.mxu0  ;;  %v5525_v53 = vmax.f32 %v5461_v45, 0.0  ;;  %v5224_v29 = vpop.f32.mrf.mxu1  ;;  %v5527_v16 = vmax.f32 %v5463_v56, 0.0  ;;  %v9521_v54 = vld [vmem:[#allocation62_spill] sm:$0xff] }
 0x2f0   :  { %5753 = vst [vmem:[%s9304_s6 + $0x60] sm:$0xff] %v6465_v26  ;;  %v5526_v7 = vmax.f32 %v5462_v59, 0.0  ;;  %v5477_v47 = vadd.f32 %v9100_v49, %v5389_v42  ;;  %v5390_v17 = vmax.f32 %v9511_v13, %v5171_v15  ;;  %v5528_v61 = vmax.f32 %v5464_v5, 0.0  ;;  %v9520_v42 = vld [vmem:[#allocation17_spill] sm:$0xff] }
 0x2f1   :  { %5754 = vst [vmem:[%s9304_s6 + $0x68] sm:$0xff] %v6466_v20  ;;  %v5479_v0 = vadd.f32 %v9100_v49, %v5391_v11  ;;  %v5392_v34 = vmax.f32 %v9512_v44, %v5224_v29 }
 0x2f2   :  { %v6473_v41 = vpack.c.bf16 %v5526_v7, %v5525_v53  ;;  %v5478_v10 = vadd.f32 %v9100_v49, %v5390_v17  ;;  %v6474_v36 = vpack.c.bf16 %v5528_v61, %v5527_v16  ;;  %v5541_v8 = vmax.f32 %v5477_v47, 0.0  ;;  %v9522_v47 = vld [vmem:[#allocation18_spill] sm:$0xff] }
 0x2f3   :  { %v5480_v23 = vadd.f32 %v9100_v49, %v5392_v34  ;;  %v5543_v38 = vmax.f32 %v5479_v0, 0.0  ;;  %v9523_v0 = vld [vmem:[#allocation63_spill] sm:$0xff] }
 0x2f4   :  { %5761 = vst [vmem:[%s9304_s6 + $0xa0] sm:$0xff] %v6473_v41  ;;  %v5542_v19 = vmax.f32 %v5478_v10, 0.0  ;;  %5762 = vst [vmem:[%s9304_s6 + $0xa8] sm:$0xff] %v6474_v36  ;;  %v9524_v36 = vld [vmem:[#allocation19_spill] sm:$0xff] }
 0x2f5   :  { %v5544_v32 = vmax.f32 %v5480_v23, 0.0 }
 0x2f6   :  { %v6481_v25 = vpack.c.bf16 %v5542_v19, %v5541_v8 }
 0x2f7   :  { %v6482_v37 = vpack.c.bf16 %v5544_v32, %v5543_v38  ;;  %v9525_v32 = vld [vmem:[#allocation64_spill] sm:$0xff] }
 0x2f8   :  { %5769 = vst [vmem:[%s9304_s6 + $0xe0] sm:$0xff] %v6481_v25 }
 0x2f9   :  { %5770 = vst [vmem:[%s9304_s6 + $0xe8] sm:$0xff] %v6482_v37 }
 0x305   :  { %v5261_v4 = vpop.f32.mrf.mxu0  ;;  %v5314_v6 = vpop.f32.mrf.mxu1 }
 0x306   :  { %v5345_v35 = vmax.f32 %v9513_v57, %v5261_v4  ;;  %v5347_v50 = vmax.f32 %v9514_v60, %v5314_v6 }
 0x307   :  { %v5263_v1 = vpop.f32.mrf.mxu0  ;;  %v5316_v52 = vpop.f32.mrf.mxu1 }
 0x308   :  { %v5433_v22 = vadd.f32 %v9050_v24, %v5345_v35  ;;  %v5346_v9 = vmax.f32 %v9515_v43, %v5263_v1  ;;  %v5435_v27 = vadd.f32 %v9050_v24, %v5347_v50  ;;  %v5348_v55 = vmax.f32 %v9516_v58, %v5316_v52  ;;  %v9526_v35 = vld [vmem:[#allocation20_spill] sm:$0xff]  ;;  %v9527_v43 = vld [vmem:[#allocation65_spill] sm:$0xff] }
 0x309   :  { %v5265_v46 = vpop.f32.mrf.mxu0  ;;  %v5318_v48 = vpop.f32.mrf.mxu1 }
 0x30a   :  { %v5434_v63 = vadd.f32 %v9050_v24, %v5346_v9  ;;  %v5361_v2 = vmax.f32 %v9517_v28, %v5265_v46  ;;  %v5436_v45 = vadd.f32 %v9050_v24, %v5348_v55  ;;  %v5363_v14 = vmax.f32 %v9518_v40, %v5318_v48  ;;  %v9528_v55 = vld [vmem:[#allocation21_spill] sm:$0xff] }
 0x30b   :  { %v5267_v3 = vpop.f32.mrf.mxu0  ;;  %v5497_v33 = vmax.f32 %v5433_v22, 0.0  ;;  %v5320_v51 = vpop.f32.mrf.mxu1  ;;  %v5499_v26 = vmax.f32 %v5435_v27, 0.0 }
 0x30c   :  { %v5498_v21 = vmax.f32 %v5434_v63, 0.0  ;;  %v5449_v56 = vadd.f32 %v9070_v18, %v5361_v2  ;;  %v5362_v31 = vmax.f32 %v9519_v62, %v5267_v3  ;;  %v5500_v59 = vmax.f32 %v5436_v45, 0.0 }
 0x30d   :  { %v5451_v39 = vadd.f32 %v9070_v18, %v5363_v14  ;;  %v5364_v12 = vmax.f32 %v9520_v42, %v5320_v51  ;;  %v5271_v20 = vpop.f32.mrf.mxu0  ;;  %v5324_v15 = vpop.f32.mrf.mxu1 }
 0x30e   :  { %v6459_v5 = vpack.c.bf16 %v5498_v21, %v5497_v33  ;;  %v5450_v24 = vadd.f32 %v9070_v18, %v5362_v31  ;;  %v5377_v11 = vmax.f32 %v9521_v54, %v5271_v20  ;;  %v6460_v53 = vpack.c.bf16 %v5500_v59, %v5499_v26 }
 0x30f   :  { %v5452_v7 = vadd.f32 %v9070_v18, %v5364_v12  ;;  %v5379_v13 = vmax.f32 %v9522_v47, %v5324_v15  ;;  %v5273_v17 = vpop.f32.mrf.mxu0  ;;  %v5513_v29 = vmax.f32 %v5449_v56, 0.0  ;;  %v5326_v34 = vpop.f32.mrf.mxu1  ;;  %v5515_v41 = vmax.f32 %v5451_v39, 0.0 }
 0x310   :  { %5747 = vst [vmem:[%s9304_s6 + $0x30] sm:$0xff] %v6459_v5  ;;  %v5514_v16 = vmax.f32 %v5450_v24, 0.0  ;;  %v5465_v61 = vadd.f32 %v9082_v30, %v5377_v11  ;;  %v5378_v44 = vmax.f32 %v9523_v0, %v5273_v17  ;;  %5748 = vst [vmem:[%s9304_s6 + $0x38] sm:$0xff] %v6460_v53  ;;  %v5380_v23 = vmax.f32 %v9524_v36, %v5326_v34 }
 0x311   :  { %v5516_v18 = vmax.f32 %v5452_v7, 0.0  ;;  %v5467_v10 = vadd.f32 %v9082_v30, %v5379_v13  ;;  %v5275_v8 = vpop.f32.mrf.mxu0  ;;  %v5328_v37 = vpop.f32.mrf.mxu1 }
 0x312   :  { %v6467_v19 = vpack.c.bf16 %v5514_v16, %v5513_v29  ;;  %v5466_v38 = vadd.f32 %v9082_v30, %v5378_v44  ;;  %v5393_v25 = vmax.f32 %v9525_v32, %v5275_v8  ;;  %v5468_v57 = vadd.f32 %v9082_v30, %v5380_v23 }
 0x313   :  { %v6468_v4 = vpack.c.bf16 %v5516_v18, %v5515_v41  ;;  %v5395_v6 = vmax.f32 %v9526_v35, %v5328_v37  ;;  %v5277_v60 = vpop.f32.mrf.mxu0  ;;  %v5529_v50 = vmax.f32 %v5465_v61, 0.0  ;;  %v5330_v52 = vpop.f32.mrf.mxu1  ;;  %v5531_v27 = vmax.f32 %v5467_v10, 0.0 }
 0x314   :  { %5755 = vst [vmem:[%s9304_s6 + $0x70] sm:$0xff] %v6467_v19  ;;  %v5530_v1 = vmax.f32 %v5466_v38, 0.0  ;;  %v5481_v22 = vadd.f32 %v9100_v49, %v5393_v25  ;;  %v5394_v9 = vmax.f32 %v9527_v43, %v5277_v60  ;;  %v5532_v30 = vmax.f32 %v5468_v57, 0.0 }
 0x315   :  { %5756 = vst [vmem:[%s9304_s6 + $0x78] sm:$0xff] %v6468_v4  ;;  %v5483_v58 = vadd.f32 %v9100_v49, %v5395_v6  ;;  %v5396_v46 = vmax.f32 %v9528_v55, %v5330_v52 }
 0x316   :  { %v6475_v63 = vpack.c.bf16 %v5530_v1, %v5529_v50  ;;  %v5482_v28 = vadd.f32 %v9100_v49, %v5394_v9  ;;  %v6476_v2 = vpack.c.bf16 %v5532_v30, %v5531_v27  ;;  %v5545_v45 = vmax.f32 %v5481_v22, 0.0 }
 0x317   :  { %v5484_v48 = vadd.f32 %v9100_v49, %v5396_v46  ;;  %v5547_v14 = vmax.f32 %v5483_v58, 0.0 }
 0x318   :  { %5763 = vst [vmem:[%s9304_s6 + $0xb0] sm:$0xff] %v6475_v63  ;;  %v5546_v40 = vmax.f32 %v5482_v28, 0.0  ;;  %5764 = vst [vmem:[%s9304_s6 + $0xb8] sm:$0xff] %v6476_v2 }
 0x319   :  { %v5548_v3 = vmax.f32 %v5484_v48, 0.0 }
 0x31a   :  { %v6483_v33 = vpack.c.bf16 %v5546_v40, %v5545_v45 }
 0x31b   :  { %v6484_v21 = vpack.c.bf16 %v5548_v3, %v5547_v14 }
 0x31c   :  { %5771 = vst [vmem:[%s9304_s6 + $0xf0] sm:$0xff] %v6483_v33 }
 0x31d   :  { %5772 = vst [vmem:[%s9304_s6 + $0xf8] sm:$0xff] %v6484_v21 }

// kernel: fedavg_cnn2_light_forward.5
= control target key start
LH: loop header
LB: loop body
LE: loop exit
PB: predicated region body
PF: predicated region fallthrough
CT: control target
= control target key end

     0   :  { %10 = vsyncpa [#allocation4], 0  ;;  %s8158_s18 = smov 0   ;;  %s8861_s0 = inlined_call_operand.vmem [shape: bf16[2,32768], index: 0, kind: input, shape index: {}]   ;;  %s8862_s1 = inlined_call_operand.vmem [shape: bf16[32768,128], index: 1, kind: input, shape index: {}]   ;;  %s8863_s2 = inlined_call_operand.vmem [shape: f32[1,128], index: 2, kind: input, shape index: {}]   ;;  %s8864_s3 = inlined_call_operand.vmem [shape: bf16[128,10], index: 3, kind: input, shape index: {}]   ;;  %s8865_s4 = inlined_call_operand.vmem [shape: f32[1,10], index: 4, kind: input, shape index: {}]   ;;  %s8866_s5 = inlined_call_operand.hbm [shape: f32[2,10], index: 5, kind: output, shape index: {}]  }
   0x1 LB: > { %s8164_s19 = sadd.s32 4294967295, %s8121_s18   ;;  %p6275_p0 = scmp.ge.s32.totalorder %s8121_s18, 1  ;;  %s8121_s18 = sphi %s8158_s18, %s16_s18  }
   0x2   : > { %p194_p1 = scmp.lt.s32.totalorder %s8121_s18, 5 }
   0x4   : > { %p195_p2 = pnand %p6275_p0, %p194_p1 }
   0x5   : > { %s6276_s20 = sshll.u32 (!%p195_p2), %s8164_s19, 6  ;;  %s6277_s21 = sshll.u32 (!%p195_p2), %s8164_s19, 10 }
   0x6   : > { %198 = sbr.rel (%p195_p2) target bundleno = 985 (0x3d9), region = 40  ;;  %p222_p3 = scmp.lt.s32.totalorder (!%p195_p2), %s6276_s20, 255 }
   0x7   : > { %p227_p4 = scmp.lt.s32.totalorder (!%p195_p2), %s6277_s21, 4095  ;;  %p6279_p5 = scmp.ne.s32.totalorder (!%p195_p2), %s8164_s19, 0 }
   0xb   : > { %s8868_s20 = smov (!%p222_p3, %s6276_s20), 255  ;;  %s8870_s21 = smov (!%p227_p4, %s6277_s21), 4095 }
   0xc   : > { %s8173_s24 = scalar_lea.vmem %s8861_s0, %s8868_s20  ;;  %s6278_s25 = sshll.u32 %s8870_s21, 2 }
   0xd   : > { %s8178_s28 = scalar_lea.vmem %s8862_s1, %s6278_s25  ;;  %236 = sbr.rel (%p6279_p5) target bundleno = 20 (0x14), region = 44 }
  0x12   : > { %v8123_v0 = vmov 0.0  }
  0x13   : > { %237 = vst [vmem:[#allocation2] sm:$0x3] %v8123_v0 }
  0x14 PF: > { %v7559_v1 = vld [vmem:[%s8178_s28 + $0x78] sm:$0xff]   ;;  %v7563_v5 = vld [vmem:[%s8178_s28 + $0x70] sm:$0xff]   ;;  %v7567_v9 = vld [vmem:[%s8178_s28 + $0x68] sm:$0xff]   ;;  %v1283_v29 = vlaneseq  ;;  %v8124_v37 = vmov 1966171168   ;;  %p6792_p6 = scmp.ne.s32.totalorder %s8164_s19, 3 }
  0x15   : > { %v7560_v2 = vld [vmem:[%s8178_s28 + $0xf8] sm:$0xff]   ;;  %6807 = vmatprep.subr.bf16.mxu0 %v7559_v1  ;;  %v7564_v6 = vld [vmem:[%s8178_s28 + $0xf0] sm:$0xff]   ;;  %v7568_v10 = vld [vmem:[%s8178_s28 + $0xe8] sm:$0xff]   ;;  %v1281_v38 = vunpack.c.l.s4 %v8124_v37 }
  0x16   : > { %v7561_v3 = vld [vmem:[%s8178_s28 + $0x38] sm:$0xff]   ;;  %6829 = vmatprep.subr.bf16.mxu1 %v7560_v2  ;;  %v7565_v7 = vld [vmem:[%s8178_s28 + $0x30] sm:$0xff]   ;;  %v7569_v11 = vld [vmem:[%s8178_s28 + $0x28] sm:$0xff]   ;;  %v1284_v34 = vshrl.u32 %v1283_v29, 7 }
  0x17   : > { %v7562_v4 = vld [vmem:[%s8178_s28 + $0xb8] sm:$0xff]   ;;  %6808 = vmatpush3.bf16.msra.mxu0 %v7561_v3  ;;  %v7566_v8 = vld [vmem:[%s8178_s28 + $0xb0] sm:$0xff]   ;;  %v7570_v12 = vld [vmem:[%s8178_s28 + $0xa8] sm:$0xff]   ;;  %v1282_v41 = vunpack.c.0.s8 %v1281_v38 }
  0x18   : > { %6830 = vmatpush3.bf16.msra.mxu1 %v7562_v4  ;;  %6809 = vmatprep.subr.bf16.mxu0 %v7563_v5  ;;  %v7571_v13 = vld [vmem:[%s8178_s28 + $0x60] sm:$0xff]   ;;  %v7575_v17 = vld [vmem:[%s8178_s28 + $0x58] sm:$0xff]   ;;  %v7579_v21 = vld [vmem:[%s8178_s28 + $0x50] sm:$0xff]  }
  0x19   : > { %6831 = vmatprep.subr.bf16.mxu1 %v7564_v6  ;;  %v7572_v14 = vld [vmem:[%s8178_s28 + $0xe0] sm:$0xff]   ;;  %v7576_v18 = vld [vmem:[%s8178_s28 + $0xd8] sm:$0xff]   ;;  %v7580_v22 = vld [vmem:[%s8178_s28 + $0xd0] sm:$0xff]   ;;  %v8216_v42 = vsub.s32 %v1282_v41, %v1284_v34 }
  0x1a   : > { %v7573_v15 = vld [vmem:[%s8178_s28 + $0x20] sm:$0xff]   ;;  %v7577_v19 = vld [vmem:[%s8178_s28 + $0x18] sm:$0xff]   ;;  %v7581_v23 = vld [vmem:[%s8178_s28 + $0x10] sm:$0xff]  }
  0x1b   : > { %6810 = vmatpush3.bf16.msra.mxu0 %v7565_v7  ;;  %v7574_v16 = vld [vmem:[%s8178_s28 + $0xa0] sm:$0xff]   ;;  %v7578_v20 = vld [vmem:[%s8178_s28 + $0x98] sm:$0xff]   ;;  %v7582_v24 = vld [vmem:[%s8178_s28 + $0x90] sm:$0xff]  }
  0x1c   : > { %6832 = vmatpush3.bf16.msra.mxu1 %v7566_v8  ;;  %6811 = vmatprep.subr.bf16.mxu0 %v7567_v9  ;;  %v7583_v25 = vld [vmem:[%s8178_s28 + $0x48] sm:$0xff]   ;;  %v7587_v30 = vld [vmem:[%s8178_s28 + $0x40] sm:$0xff]   ;;  %v7592_v36 = vld [vmem:[%s8178_s28 + $0x178] sm:$0xff]  }
  0x1d   : > { %6833 = vmatprep.subr.bf16.mxu1 %v7568_v10  ;;  %v7584_v26 = vld [vmem:[%s8178_s28 + $0xc8] sm:$0xff]   ;;  %v7588_v31 = vld [vmem:[%s8178_s28 + $0xc0] sm:$0xff]   ;;  %v7593_v39 = vld [vmem:[%s8178_s28 + $0x1f8] sm:$0xff]  }
  0x1e   : > { %v7585_v27 = vld [vmem:[%s8178_s28 + $0x8] sm:$0xff]   ;;  %v7589_v32 = vld [vmem:[%s8178_s28] sm:$0xff]   ;;  %v7594_v48 = vld [vmem:[%s8178_s28 + $0x138] sm:$0xff]  }
  0x1f   : > { %6812 = vmatpush3.bf16.msra.mxu0 %v7569_v11  ;;  %v7586_v28 = vld [vmem:[%s8178_s28 + $0x88] sm:$0xff]   ;;  %v7590_v33 = vld [vmem:[%s8178_s28 + $0x80] sm:$0xff]   ;;  %v7595_v50 = vld [vmem:[%s8178_s28 + $0x1b8] sm:$0xff]  }
  0x20   : > { %6834 = vmatpush3.bf16.msra.mxu1 %v7570_v12  ;;  %6813 = vmatprep.subr.bf16.mxu0 %v7571_v13  ;;  %v239_v35 = vld [vmem:[%s8173_s24] sm:$0xff]  ;;  %v7596_v53 = vld [vmem:[%s8178_s28 + $0x170] sm:$0xff]   ;;  %v7600_v59 = vld [vmem:[%s8178_s28 + $0x168] sm:$0xff]  }
  0x21   : > { %6835 = vmatprep.subr.bf16.mxu1 %v7572_v14  ;;  %v1279_v40 = vcombine.high %v239_v35, %v239_v35  ;;  %v1286_v43 = vrot.slane %v239_v35, %v8216_v42  ;;  %v7597_v55 = vld [vmem:[%s8178_s28 + $0x1f0] sm:$0xff]   ;;  %v7601_v60 = vld [vmem:[%s8178_s28 + $0x1e8] sm:$0xff]   ;;  %v7604_v63 = vld [vmem:[%s8178_s28 + $0x160] sm:$0xff]  }
  0x22   : > { %v7598_v56 = vld [vmem:[%s8178_s28 + $0x130] sm:$0xff]   ;;  %v7602_v61 = vld [vmem:[%s8178_s28 + $0x128] sm:$0xff]   ;;  %v7605_v0 = vld [vmem:[%s8178_s28 + $0x1e0] sm:$0xff]  }
  0x23   : > { %6814 = vmatpush3.bf16.msra.mxu0 %v7573_v15  ;;  %v8220_v44 = vrot.slane %v1279_v40, %v8216_v42  ;;  %v1294_v45 = vcombine.high %v1286_v43, %v1286_v43  ;;  %v1302_v46 = vrot.slane %v1286_v43, %v8216_v42  ;;  %v7599_v58 = vld [vmem:[%s8178_s28 + $0x1b0] sm:$0xff]   ;;  %v7603_v62 = vld [vmem:[%s8178_s28 + $0x1a8] sm:$0xff]   ;;  %v7606_v1 = vld [vmem:[%s8178_s28 + $0x120] sm:$0xff]  }
  0x24   : > { %6836 = vmatpush3.bf16.msra.mxu1 %v7574_v16  ;;  %6815 = vmatprep.subr.bf16.mxu0 %v7575_v17  ;;  %v7607_v2 = vld [vmem:[%s8178_s28 + $0x1a0] sm:$0xff]   ;;  %v7608_v3 = vld [vmem:[%s8178_s28 + $0x158] sm:$0xff]   ;;  %v7612_v7 = vld [vmem:[%s8178_s28 + $0x150] sm:$0xff]  }
  0x25   : > { %6837 = vmatprep.subr.bf16.mxu1 %v7576_v18  ;;  %v1295_v47 = vcombine.high %v8220_v44, %v8220_v44  ;;  %v1316_v49 = vrot.slane %v1294_v45, %v8216_v42  ;;  %v1324_v52 = vcombine.high %v1302_v46, %v1302_v46  ;;  %v7609_v4 = vld [vmem:[%s8178_s28 + $0x1d8] sm:$0xff]   ;;  %v7613_v8 = vld [vmem:[%s8178_s28 + $0x1d0] sm:$0xff]   ;;  %v7616_v11 = vld [vmem:[%s8178_s28 + $0x148] sm:$0xff]  }
  0x26   : > { %v7610_v5 = vld [vmem:[%s8178_s28 + $0x118] sm:$0xff]   ;;  %v7614_v9 = vld [vmem:[%s8178_s28 + $0x110] sm:$0xff]   ;;  %v7617_v12 = vld [vmem:[%s8178_s28 + $0x1c8] sm:$0xff]  }
  0x27   : > { %6816 = vmatpush3.bf16.msra.mxu0 %v7577_v19  ;;  %v1323_v51 = vrot.slane %v1295_v47, %v8216_v42  ;;  %4839 = vmatprep.mubr.bf16.mxu0 %v1316_v49  ;;  %v1326_v54 = vcombine.high %v1316_v49, %v1316_v49  ;;  %v7611_v6 = vld [vmem:[%s8178_s28 + $0x198] sm:$0xff]   ;;  %v7615_v10 = vld [vmem:[%s8178_s28 + $0x190] sm:$0xff]   ;;  %v7618_v13 = vld [vmem:[%s8178_s28 + $0x108] sm:$0xff]   ;;  %v1309_v19 = vrot.slane %v8220_v44, %v8216_v42 }
  0x28   : > { %6838 = vmatpush3.bf16.msra.mxu1 %v7578_v20  ;;  %6817 = vmatprep.subr.bf16.mxu0 %v7579_v21  ;;  %v7619_v14 = vld [vmem:[%s8178_s28 + $0x188] sm:$0xff]   ;;  %v7620_v15 = vld [vmem:[%s8178_s28 + $0x140] sm:$0xff]   ;;  %v7624_v20 = vld [vmem:[%s8178_s28 + $0x278] sm:$0xff]  }
  0x29   : > { %6839 = vmatprep.subr.bf16.mxu1 %v7580_v22  ;;  %v1327_v57 = vcombine.high %v1323_v51, %v1323_v51  ;;  %4879 = vmatprep.mubr.bf16.mxu1 %v1326_v54  ;;  %v7621_v16 = vld [vmem:[%s8178_s28 + $0x1c0] sm:$0xff]   ;;  %v7625_v21 = vld [vmem:[%s8178_s28 + $0x2f8] sm:$0xff]   ;;  %v7632_v29 = vld [vmem:[%s8178_s28 + $0x268] sm:$0xff]  }
  0x2a   : > { %v7622_v17 = vld [vmem:[%s8178_s28 + $0x100] sm:$0xff]   ;;  %v7626_v22 = vld [vmem:[%s8178_s28 + $0x238] sm:$0xff]   ;;  %v7644_v41 = vld [vmem:[%s8178_s28 + $0x250] sm:$0xff]  }
  0x2b   : > { %6818 = vmatpush3.bf16.msra.mxu0 %v7581_v23  ;;  %v7623_v18 = vld [vmem:[%s8178_s28 + $0x180] sm:$0xff]   ;;  %v7627_v23 = vld [vmem:[%s8178_s28 + $0x2b8] sm:$0xff]   ;;  %v7645_v43 = vld [vmem:[%s8178_s28 + $0x2d0] sm:$0xff]  }
  0x2c   : > { %6840 = vmatpush3.bf16.msra.mxu1 %v7582_v24  ;;  %6819 = vmatprep.subr.bf16.mxu0 %v7583_v25  ;;  %v1325_v24 = vcombine.high %v1309_v19, %v1309_v19  ;;  %v7628_v25 = vld [vmem:[%s8178_s28 + $0x270] sm:$0xff]   ;;  %v7637_v34 = vld [vmem:[%s8178_s28 + $0x2e0] sm:$0xff]   ;;  %v7640_v37 = vld [vmem:[%s8178_s28 + $0x258] sm:$0xff]  }
  0x2d   : > { %6841 = vmatprep.subr.bf16.mxu1 %v7584_v26  ;;  %v7629_v26 = vld [vmem:[%s8178_s28 + $0x2f0] sm:$0xff]   ;;  %v7638_v35 = vld [vmem:[%s8178_s28 + $0x220] sm:$0xff]   ;;  %v7641_v38 = vld [vmem:[%s8178_s28 + $0x2d8] sm:$0xff]  }
  0x2e   : > { %v7643_v40 = vld [vmem:[%s8178_s28 + $0x298] sm:$0xff]   ;;  %v7646_v44 = vld [vmem:[%s8178_s28 + $0x210] sm:$0xff]   ;;  %v240_v47 = vld [vmem:[%s8173_s24 + $0x8] sm:$0xff] }
  0x2f   : > { %6820 = vmatpush3.bf16.msra.mxu0 %v7585_v27  ;;  %v7630_v27 = vld [vmem:[%s8178_s28 + $0x230] sm:$0xff]   ;;  %v1335_v49 = vrot.slane %v240_v47, %v8216_v42 }
  0x30   : > { %6842 = vmatpush3.bf16.msra.mxu1 %v7586_v28  ;;  %6821 = vmatprep.subr.bf16.mxu0 %v7587_v30  ;;  %v7631_v28 = vld [vmem:[%s8178_s28 + $0x2b0] sm:$0xff]   ;;  %v7633_v30 = vld [vmem:[%s8178_s28 + $0x2e8] sm:$0xff]  }
  0x31   : > { %6843 = vmatprep.subr.bf16.mxu1 %v7588_v31  ;;  %v7634_v31 = vld [vmem:[%s8178_s28 + $0x228] sm:$0xff]   ;;  %v7647_v45 = vld [vmem:[%s8178_s28 + $0x290] sm:$0xff]  }
  0x33   : > { %6822 = vmatpush3.bf16.msra.mxu0 %v7589_v32  ;;  %v7635_v32 = vld [vmem:[%s8178_s28 + $0x2a8] sm:$0xff]  }
  0x34   : > { %6844 = vmatpush3.bf16.msra.mxu1 %v7590_v33  ;;  %6851 = vmatprep.subr.bf16.mxu0 %v7592_v36  ;;  %v7636_v33 = vld [vmem:[%s8178_s28 + $0x260] sm:$0xff]  }
  0x35   : > { %6873 = vmatprep.subr.bf16.mxu1 %v7593_v39  ;;  %v7639_v36 = vld [vmem:[%s8178_s28 + $0x2a0] sm:$0xff]   ;;  %v7642_v39 = vld [vmem:[%s8178_s28 + $0x218] sm:$0xff]  }
  0x36   : > { %4840 = vmatmul.mubr.bf16.vlgmr.msra.gmra.mxu0 %v1302_v46  ;;  %v7648_v46 = vld [vmem:[%s8178_s28 + $0x248] sm:$0xff]  }
  0x37   : > { %6852 = vmatpush3.bf16.msra.mxu0 %v7594_v48  ;;  %4880 = vmatmul.mubr.bf16.vlgmr.msra.gmra.mxu1 %v1324_v52  ;;  %v7649_v48 = vld [vmem:[%s8178_s28 + $0x2c8] sm:$0xff]  }
  0x38   : > { %6853 = vmatprep.subr.bf16.mxu0 %v7596_v53  ;;  %6874 = vmatpush3.bf16.msra.mxu1 %v7595_v50  ;;  %v1328_v50 = vcombine.high %v240_v47, %v240_v47  ;;  %v7651_v52 = vld [vmem:[%s8178_s28 + $0x288] sm:$0xff]   ;;  %v1343_v53 = vcombine.high %v1335_v49, %v1335_v49 }
  0x39   : > { %4919 = vmatprep.mubr.bf16.mxu0 %v1323_v51  ;;  %6875 = vmatprep.subr.bf16.mxu1 %v7597_v55  ;;  %v7650_v51 = vld [vmem:[%s8178_s28 + $0x208] sm:$0xff]   ;;  %v7652_v55 = vld [vmem:[%s8178_s28 + $0x240] sm:$0xff]  }
  0x3a   : > { %4959 = vmatprep.mubr.bf16.mxu1 %v1327_v57  ;;  %v8290_v54 = vrot.slane %v1328_v50, %v8216_v42  ;;  %v1365_v57 = vrot.slane %v1343_v53, %v8216_v42  ;;  %v7699_v47 = vld [vmem:[%s8178_s28 + $0x428] sm:$0xff]   ;;  %v7702_v50 = vld [vmem:[%s8178_s28 + $0x4e0] sm:$0xff]   ;;  %v7705_v53 = vld [vmem:[%s8178_s28 + $0x458] sm:$0xff]  }
  0x3b   : > { %6854 = vmatpush3.bf16.msra.mxu0 %v7598_v56  ;;  %v7653_v56 = vld [vmem:[%s8178_s28 + $0x2c0] sm:$0xff]  }
  0x3c   : > { %6855 = vmatprep.subr.bf16.mxu0 %v7600_v59  ;;  %6876 = vmatpush3.bf16.msra.mxu1 %v7599_v58  ;;  %v1344_v58 = vcombine.high %v8290_v54, %v8290_v54  ;;  %v7654_v59 = vld [vmem:[%s8178_s28 + $0x200] sm:$0xff]  }
  0x3d   : > { %6877 = vmatprep.subr.bf16.mxu1 %v7601_v60  ;;  %v7655_v60 = vld [vmem:[%s8178_s28 + $0x280] sm:$0xff]  }
  0x3f   : > { %6856 = vmatpush3.bf16.msra.mxu0 %v7602_v61  ;;  %v1375_v61 = vcombine.high %v1365_v57, %v1365_v57 }
  0x40   : > { %6857 = vmatprep.subr.bf16.mxu0 %v7604_v63  ;;  %6878 = vmatpush3.bf16.msra.mxu1 %v7603_v62  ;;  %v1351_v62 = vrot.slane %v1335_v49, %v8216_v42  ;;  %v7656_v63 = vld [vmem:[%s8178_s28 + $0x378] sm:$0xff]   ;;  %v7701_v49 = vld [vmem:[%s8178_s28 + $0x460] sm:$0xff]  }
  0x41   : > { %6879 = vmatprep.subr.bf16.mxu1 %v7605_v0  ;;  %v7657_v0 = vld [vmem:[%s8178_s28 + $0x3f8] sm:$0xff]  }
  0x43   : > { %6858 = vmatpush3.bf16.msra.mxu0 %v7606_v1  ;;  %v1372_v1 = vrot.slane %v1344_v58, %v8216_v42  ;;  %v7710_v58 = vld [vmem:[%s8178_s28 + $0x4d0] sm:$0xff]  }
  0x44   : > { %6859 = vmatprep.subr.bf16.mxu0 %v7608_v3  ;;  %6880 = vmatpush3.bf16.msra.mxu1 %v7607_v2  ;;  %v7658_v2 = vld [vmem:[%s8178_s28 + $0x338] sm:$0xff]  }
  0x45   : > { %6881 = vmatprep.subr.bf16.mxu1 %v7609_v4  ;;  %v7659_v3 = vld [vmem:[%s8178_s28 + $0x3b8] sm:$0xff]   ;;  %v1373_v4 = vcombine.high %v1351_v62, %v1351_v62 }
  0x47   : > { %6860 = vmatpush3.bf16.msra.mxu0 %v7610_v5  ;;  %v7660_v5 = vld [vmem:[%s8178_s28 + $0x370] sm:$0xff]  }
  0x48   : > { %6861 = vmatprep.subr.bf16.mxu0 %v7612_v7  ;;  %6882 = vmatpush3.bf16.msra.mxu1 %v7611_v6  ;;  %v7661_v6 = vld [vmem:[%s8178_s28 + $0x3f0] sm:$0xff]   ;;  %v1376_v7 = vcombine.high %v1372_v1, %v1372_v1 }
  0x49   : > { %6883 = vmatprep.subr.bf16.mxu1 %v7613_v8  ;;  %v7662_v8 = vld [vmem:[%s8178_s28 + $0x330] sm:$0xff]  }
  0x4b   : > { %6862 = vmatpush3.bf16.msra.mxu0 %v7614_v9  ;;  %v7663_v9 = vld [vmem:[%s8178_s28 + $0x3b0] sm:$0xff]  }
  0x4c   : > { %6863 = vmatprep.subr.bf16.mxu0 %v7616_v11  ;;  %6884 = vmatpush3.bf16.msra.mxu1 %v7615_v10  ;;  %v7664_v10 = vld [vmem:[%s8178_s28 + $0x368] sm:$0xff]  }
  0x4d   : > { %6885 = vmatprep.subr.bf16.mxu1 %v7617_v12  ;;  %v7665_v11 = vld [vmem:[%s8178_s28 + $0x3e8] sm:$0xff]  }
  0x4e   : > { %v7666_v12 = vld [vmem:[%s8178_s28 + $0x328] sm:$0xff]  }
  0x4f   : > { %6864 = vmatpush3.bf16.msra.mxu0 %v7618_v13  ;;  %v7667_v13 = vld [vmem:[%s8178_s28 + $0x3a8] sm:$0xff]  }
  0x50   : > { %6865 = vmatprep.subr.bf16.mxu0 %v7620_v15  ;;  %6886 = vmatpush3.bf16.msra.mxu1 %v7619_v14  ;;  %v7668_v14 = vld [vmem:[%s8178_s28 + $0x360] sm:$0xff]  }
  0x51   : > { %6887 = vmatprep.subr.bf16.mxu1 %v7621_v16  ;;  %v7669_v15 = vld [vmem:[%s8178_s28 + $0x3e0] sm:$0xff]  }
  0x52   : > { %v7670_v16 = vld [vmem:[%s8178_s28 + $0x320] sm:$0xff]  }
  0x53   : > { %6866 = vmatpush3.bf16.msra.mxu0 %v7622_v17  ;;  %v7671_v17 = vld [vmem:[%s8178_s28 + $0x3a0] sm:$0xff]  }
  0x54   : > { %6895 = vmatprep.subr.bf16.mxu0 %v7624_v20  ;;  %6888 = vmatpush3.bf16.msra.mxu1 %v7623_v18  ;;  %v7672_v18 = vld [vmem:[%s8178_s28 + $0x358] sm:$0xff]  }
  0x55   : > { %6917 = vmatprep.subr.bf16.mxu1 %v7625_v21  ;;  %v7674_v20 = vld [vmem:[%s8178_s28 + $0x318] sm:$0xff]  }
  0x56   : > { %4920 = vmatmul.mubr.bf16.vlgmr.msra.gmra.mxu0 %v1309_v19  ;;  %v7673_v19 = vld [vmem:[%s8178_s28 + $0x3d8] sm:$0xff]  }
  0x57   : > { %6896 = vmatpush3.bf16.msra.mxu0 %v7626_v22  ;;  %4960 = vmatmul.mubr.bf16.vlgmr.msra.gmra.mxu1 %v1325_v24  ;;  %v7675_v21 = vld [vmem:[%s8178_s28 + $0x398] sm:$0xff]   ;;  %v7676_v22 = vld [vmem:[%s8178_s28 + $0x350] sm:$0xff]  }
  0x58   : > { %6897 = vmatprep.subr.bf16.mxu0 %v7628_v25  ;;  %6918 = vmatpush3.bf16.msra.mxu1 %v7627_v23  ;;  %v7677_v23 = vld [vmem:[%s8178_s28 + $0x3d0] sm:$0xff]  }
  0x59   : > { %6919 = vmatprep.subr.bf16.mxu1 %v7629_v26  ;;  %4999 = vmatprep.mubr.bf16.mxu0 %v1365_v57  ;;  %v7678_v24 = vld [vmem:[%s8178_s28 + $0x310] sm:$0xff]   ;;  %v7680_v26 = vld [vmem:[%s8178_s28 + $0x348] sm:$0xff]  }
  0x5a   : > { %5039 = vmatprep.mubr.bf16.mxu1 %v1375_v61  ;;  %v7679_v25 = vld [vmem:[%s8178_s28 + $0x390] sm:$0xff]   ;;  %v7713_v61 = vld [vmem:[%s8178_s28 + $0x448] sm:$0xff]  }
  0x5b   : > { %6898 = vmatpush3.bf16.msra.mxu0 %v7630_v27  ;;  %v7681_v27 = vld [vmem:[%s8178_s28 + $0x3c8] sm:$0xff]   ;;  %v7709_v57 = vld [vmem:[%s8178_s28 + $0x450] sm:$0xff]  }
  0x5c   : > { %6899 = vmatprep.subr.bf16.mxu0 %v7632_v29  ;;  %6920 = vmatpush3.bf16.msra.mxu1 %v7631_v28  ;;  %v7682_v28 = vld [vmem:[%s8178_s28 + $0x308] sm:$0xff]  }
  0x5d   : > { %6921 = vmatprep.subr.bf16.mxu1 %v7633_v30  ;;  %v7683_v29 = vld [vmem:[%s8178_s28 + $0x388] sm:$0xff]   ;;  %v7684_v30 = vld [vmem:[%s8178_s28 + $0x340] sm:$0xff]  }
  0x5f   : > { %6900 = vmatpush3.bf16.msra.mxu0 %v7634_v31  ;;  %v7685_v31 = vld [vmem:[%s8178_s28 + $0x3c0] sm:$0xff]  }
  0x60   : > { %6901 = vmatprep.subr.bf16.mxu0 %v7636_v33  ;;  %6922 = vmatpush3.bf16.msra.mxu1 %v7635_v32  ;;  %v7686_v32 = vld [vmem:[%s8178_s28 + $0x300] sm:$0xff]  }
  0x61   : > { %6923 = vmatprep.subr.bf16.mxu1 %v7637_v34  ;;  %v7687_v33 = vld [vmem:[%s8178_s28 + $0x380] sm:$0xff]   ;;  %v1358_v34 = vrot.slane %v8290_v54, %v8216_v42  ;;  %v7706_v54 = vld [vmem:[%s8178_s28 + $0x4d8] sm:$0xff]  }
  0x63   : > { %6902 = vmatpush3.bf16.msra.mxu0 %v7638_v35  ;;  %v7689_v35 = vld [vmem:[%s8178_s28 + $0x478] sm:$0xff]  }
  0x64   : > { %6903 = vmatprep.subr.bf16.mxu0 %v7640_v37  ;;  %6924 = vmatpush3.bf16.msra.mxu1 %v7639_v36  ;;  %v7690_v36 = vld [vmem:[%s8178_s28 + $0x4f8] sm:$0xff]  }
  0x65   : > { %6925 = vmatprep.subr.bf16.mxu1 %v7641_v38  ;;  %v7691_v37 = vld [vmem:[%s8178_s28 + $0x438] sm:$0xff]  }
  0x66   : > { %v7692_v38 = vld [vmem:[%s8178_s28 + $0x4b8] sm:$0xff]  }
  0x67   : > { %6904 = vmatpush3.bf16.msra.mxu0 %v7642_v39  ;;  %v1374_v39 = vcombine.high %v1358_v34, %v1358_v34 }
  0x68   : > { %6905 = vmatprep.subr.bf16.mxu0 %v7644_v41  ;;  %6926 = vmatpush3.bf16.msra.mxu1 %v7643_v40  ;;  %v7693_v40 = vld [vmem:[%s8178_s28 + $0x470] sm:$0xff]  }
  0x69   : > { %6927 = vmatprep.subr.bf16.mxu1 %v7645_v43  ;;  %v7694_v41 = vld [vmem:[%s8178_s28 + $0x4f0] sm:$0xff]  }
  0x6a   : > { %v7695_v43 = vld [vmem:[%s8178_s28 + $0x430] sm:$0xff]  }
  0x6b   : > { %6906 = vmatpush3.bf16.msra.mxu0 %v7646_v44  ;;  %v7696_v44 = vld [vmem:[%s8178_s28 + $0x4b0] sm:$0xff]  }
  0x6c   : > { %6907 = vmatprep.subr.bf16.mxu0 %v7648_v46  ;;  %6928 = vmatpush3.bf16.msra.mxu1 %v7647_v45  ;;  %v7697_v45 = vld [vmem:[%s8178_s28 + $0x468] sm:$0xff]  }
  0x6d   : > { %6929 = vmatprep.subr.bf16.mxu1 %v7649_v48  ;;  %v7698_v46 = vld [vmem:[%s8178_s28 + $0x4e8] sm:$0xff]  }
  0x6e   : > { %v7700_v48 = vld [vmem:[%s8178_s28 + $0x4a8] sm:$0xff]  }
  0x6f   : > { %6908 = vmatpush3.bf16.msra.mxu0 %v7650_v51  ;;  %v7703_v51 = vld [vmem:[%s8178_s28 + $0x420] sm:$0xff]  }
  0x70   : > { %6909 = vmatprep.subr.bf16.mxu0 %v7652_v55  ;;  %6930 = vmatpush3.bf16.msra.mxu1 %v7651_v52  ;;  %v7704_v52 = vld [vmem:[%s8178_s28 + $0x4a0] sm:$0xff]   ;;  %v7707_v55 = vld [vmem:[%s8178_s28 + $0x418] sm:$0xff]  }
  0x71   : > { %6931 = vmatprep.subr.bf16.mxu1 %v7653_v56  ;;  %v7708_v56 = vld [vmem:[%s8178_s28 + $0x498] sm:$0xff]  }
  0x73   : > { %6910 = vmatpush3.bf16.msra.mxu0 %v7654_v59  ;;  %v7711_v59 = vld [vmem:[%s8178_s28 + $0x410] sm:$0xff]  }
  0x74   : > { %6939 = vmatprep.subr.bf16.mxu0 %v7656_v63  ;;  %6932 = vmatpush3.bf16.msra.mxu1 %v7655_v60  ;;  %v7712_v60 = vld [vmem:[%s8178_s28 + $0x490] sm:$0xff]   ;;  %v7714_v63 = vld [vmem:[%s8178_s28 + $0x4c8] sm:$0xff]  }
  0x75   : > { %6961 = vmatprep.subr.bf16.mxu1 %v7657_v0 }
  0x76   : > { %5000 = vmatmul.mubr.bf16.vlgmr.msra.gmra.mxu0 %v1351_v62  ;;  %v241_v62 = vld [vmem:[%s8173_s24 + $0x10] sm:$0xff] }
  0x77   : > { %6940 = vmatpush3.bf16.msra.mxu0 %v7658_v2  ;;  %5079 = vmatprep.mubr.bf16.mxu0 %v1372_v1  ;;  %v1384_v0 = vrot.slane %v241_v62, %v8216_v42  ;;  %v1377_v1 = vcombine.high %v241_v62, %v241_v62  ;;  %v7715_v2 = vld [vmem:[%s8178_s28 + $0x408] sm:$0xff]  }
  0x78   : > { %5040 = vmatmul.mubr.bf16.vlgmr.msra.gmra.mxu1 %v1373_v4  ;;  %6941 = vmatprep.subr.bf16.mxu0 %v7660_v5  ;;  %v7764_v62 = vld [vmem:[%s8178_s28 + $0x628] sm:$0xff]  }
  0x79   : > { %6962 = vmatpush3.bf16.msra.mxu1 %v7659_v3  ;;  %5119 = vmatprep.mubr.bf16.mxu1 %v1376_v7  ;;  %v7716_v3 = vld [vmem:[%s8178_s28 + $0x488] sm:$0xff]   ;;  %v1392_v4 = vcombine.high %v1384_v0, %v1384_v0  ;;  %v8366_v5 = vrot.slane %v1377_v1, %v8216_v42  ;;  %v7718_v7 = vld [vmem:[%s8178_s28 + $0x4c0] sm:$0xff]  }
  0x7a   : > { %6963 = vmatprep.subr.bf16.mxu1 %v7661_v6  ;;  %v7717_v6 = vld [vmem:[%s8178_s28 + $0x440] sm:$0xff]  }
  0x7b   : > { %6942 = vmatpush3.bf16.msra.mxu0 %v7662_v8  ;;  %v1414_v8 = vrot.slane %v1392_v4, %v8216_v42  ;;  %v7767_v1 = vld [vmem:[%s8178_s28 + $0x6e0] sm:$0xff]   ;;  %v7770_v4 = vld [vmem:[%s8178_s28 + $0x658] sm:$0xff]  }
  0x7c   : > { %6943 = vmatprep.subr.bf16.mxu0 %v7664_v10  ;;  %v7719_v10 = vld [vmem:[%s8178_s28 + $0x400] sm:$0xff]  }
  0x7d   : > { %6964 = vmatpush3.bf16.msra.mxu1 %v7663_v9  ;;  %v1393_v9 = vcombine.high %v8366_v5, %v8366_v5 }
  0x7e   : > { %6965 = vmatprep.subr.bf16.mxu1 %v7665_v11  ;;  %v7720_v11 = vld [vmem:[%s8178_s28 + $0x480] sm:$0xff]  }
  0x7f   : > { %6944 = vmatpush3.bf16.msra.mxu0 %v7666_v12  ;;  %v1424_v12 = vcombine.high %v1414_v8, %v1414_v8 }
  0x80   : > { %6945 = vmatprep.subr.bf16.mxu0 %v7668_v14  ;;  %v7721_v14 = vld [vmem:[%s8178_s28 + $0x578] sm:$0xff]  }
  0x81   : > { %6966 = vmatpush3.bf16.msra.mxu1 %v7667_v13  ;;  %v1400_v13 = vrot.slane %v1384_v0, %v8216_v42  ;;  %v7766_v0 = vld [vmem:[%s8178_s28 + $0x660] sm:$0xff]  }
  0x82   : > { %6967 = vmatprep.subr.bf16.mxu1 %v7669_v15  ;;  %v7722_v15 = vld [vmem:[%s8178_s28 + $0x5f8] sm:$0xff]  }
  0x83   : > { %6946 = vmatpush3.bf16.msra.mxu0 %v7670_v16  ;;  %v1421_v16 = vrot.slane %v1393_v9, %v8216_v42  ;;  %v7775_v9 = vld [vmem:[%s8178_s28 + $0x6d0] sm:$0xff]  }
  0x84   : > { %6947 = vmatprep.subr.bf16.mxu0 %v7672_v18  ;;  %v7724_v18 = vld [vmem:[%s8178_s28 + $0x5b8] sm:$0xff]  }
  0x85   : > { %6968 = vmatpush3.bf16.msra.mxu1 %v7671_v17  ;;  %v7723_v17 = vld [vmem:[%s8178_s28 + $0x538] sm:$0xff]  }
  0x86   : > { %6969 = vmatprep.subr.bf16.mxu1 %v7673_v19  ;;  %v1422_v19 = vcombine.high %v1400_v13, %v1400_v13 }
  0x87   : > { %6948 = vmatpush3.bf16.msra.mxu0 %v7674_v20  ;;  %v7725_v20 = vld [vmem:[%s8178_s28 + $0x570] sm:$0xff]  }
  0x88   : > { %6949 = vmatprep.subr.bf16.mxu0 %v7676_v22  ;;  %v1425_v22 = vcombine.high %v1421_v16, %v1421_v16 }
  0x89   : > { %6970 = vmatpush3.bf16.msra.mxu1 %v7675_v21  ;;  %v7726_v21 = vld [vmem:[%s8178_s28 + $0x5f0] sm:$0xff]  }
  0x8a   : > { %6971 = vmatprep.subr.bf16.mxu1 %v7677_v23  ;;  %v7727_v23 = vld [vmem:[%s8178_s28 + $0x530] sm:$0xff]  }
  0x8b   : > { %6950 = vmatpush3.bf16.msra.mxu0 %v7678_v24  ;;  %v7728_v24 = vld [vmem:[%s8178_s28 + $0x5b0] sm:$0xff]  }
  0x8c   : > { %6951 = vmatprep.subr.bf16.mxu0 %v7680_v26  ;;  %v7730_v26 = vld [vmem:[%s8178_s28 + $0x5e8] sm:$0xff]  }
  0x8d   : > { %6972 = vmatpush3.bf16.msra.mxu1 %v7679_v25  ;;  %v7729_v25 = vld [vmem:[%s8178_s28 + $0x568] sm:$0xff]  }
  0x8e   : > { %6973 = vmatprep.subr.bf16.mxu1 %v7681_v27  ;;  %v7731_v27 = vld [vmem:[%s8178_s28 + $0x528] sm:$0xff]  }
  0x8f   : > { %6952 = vmatpush3.bf16.msra.mxu0 %v7682_v28  ;;  %v7732_v28 = vld [vmem:[%s8178_s28 + $0x5a8] sm:$0xff]  }
  0x90   : > { %6953 = vmatprep.subr.bf16.mxu0 %v7684_v30  ;;  %v7734_v30 = vld [vmem:[%s8178_s28 + $0x5e0] sm:$0xff]  }
  0x91   : > { %6974 = vmatpush3.bf16.msra.mxu1 %v7683_v29  ;;  %v7733_v29 = vld [vmem:[%s8178_s28 + $0x560] sm:$0xff]  }
  0x92   : > { %6975 = vmatprep.subr.bf16.mxu1 %v7685_v31  ;;  %v7735_v31 = vld [vmem:[%s8178_s28 + $0x520] sm:$0xff]  }
  0x93   : > { %6954 = vmatpush3.bf16.msra.mxu0 %v7686_v32  ;;  %v7736_v32 = vld [vmem:[%s8178_s28 + $0x5a0] sm:$0xff]  }
  0x94   : > { %6983 = vmatprep.subr.bf16.mxu0 %v7689_v35  ;;  %v7739_v35 = vld [vmem:[%s8178_s28 + $0x518] sm:$0xff]  }
  0x95   : > { %6976 = vmatpush3.bf16.msra.mxu1 %v7687_v33  ;;  %v7737_v33 = vld [vmem:[%s8178_s28 + $0x558] sm:$0xff]  }
  0x96   : > { %5080 = vmatmul.mubr.bf16.vlgmr.msra.gmra.mxu0 %v1358_v34  ;;  %7005 = vmatprep.subr.bf16.mxu1 %v7690_v36  ;;  %v7738_v34 = vld [vmem:[%s8178_s28 + $0x5d8] sm:$0xff]  }
  0x97   : > { %6984 = vmatpush3.bf16.msra.mxu0 %v7691_v37  ;;  %5159 = vmatprep.mubr.bf16.mxu0 %v1414_v8  ;;  %v7740_v36 = vld [vmem:[%s8178_s28 + $0x598] sm:$0xff]   ;;  %v7741_v37 = vld [vmem:[%s8178_s28 + $0x550] sm:$0xff]  }
  0x98   : > { %5120 = vmatmul.mubr.bf16.vlgmr.msra.gmra.mxu1 %v1374_v39  ;;  %6985 = vmatprep.subr.bf16.mxu0 %v7693_v40  ;;  %v7743_v39 = vld [vmem:[%s8178_s28 + $0x510] sm:$0xff]  }
  0x99   : > { %7006 = vmatpush3.bf16.msra.mxu1 %v7692_v38  ;;  %5199 = vmatprep.mubr.bf16.mxu1 %v1424_v12  ;;  %v7742_v38 = vld [vmem:[%s8178_s28 + $0x5d0] sm:$0xff]   ;;  %v7778_v12 = vld [vmem:[%s8178_s28 + $0x648] sm:$0xff]  }
  0x9a   : > { %7007 = vmatprep.subr.bf16.mxu1 %v7694_v41  ;;  %v7744_v40 = vld [vmem:[%s8178_s28 + $0x590] sm:$0xff]   ;;  %v7745_v41 = vld [vmem:[%s8178_s28 + $0x548] sm:$0xff]  }
  0x9b   : > { %6986 = vmatpush3.bf16.msra.mxu0 %v7695_v43  ;;  %v7746_v43 = vld [vmem:[%s8178_s28 + $0x5c8] sm:$0xff]   ;;  %v7774_v8 = vld [vmem:[%s8178_s28 + $0x650] sm:$0xff]  }
  0x9c   : > { %6987 = vmatprep.subr.bf16.mxu0 %v7697_v45  ;;  %v7748_v45 = vld [vmem:[%s8178_s28 + $0x588] sm:$0xff]  }
  0x9d   : > { %7008 = vmatpush3.bf16.msra.mxu1 %v7696_v44  ;;  %v7747_v44 = vld [vmem:[%s8178_s28 + $0x508] sm:$0xff]  }
  0x9e   : > { %7009 = vmatprep.subr.bf16.mxu1 %v7698_v46  ;;  %v7749_v46 = vld [vmem:[%s8178_s28 + $0x540] sm:$0xff]  }
  0x9f   : > { %6988 = vmatpush3.bf16.msra.mxu0 %v7699_v47  ;;  %v7750_v47 = vld [vmem:[%s8178_s28 + $0x5c0] sm:$0xff]  }
  0xa0   : > { %6989 = vmatprep.subr.bf16.mxu0 %v7701_v49  ;;  %v7752_v49 = vld [vmem:[%s8178_s28 + $0x580] sm:$0xff]  }
  0xa1   : > { %7010 = vmatpush3.bf16.msra.mxu1 %v7700_v48  ;;  %v7751_v48 = vld [vmem:[%s8178_s28 + $0x500] sm:$0xff]  }
  0xa2   : > { %7011 = vmatprep.subr.bf16.mxu1 %v7702_v50  ;;  %v1407_v50 = vrot.slane %v8366_v5, %v8216_v42  ;;  %v7771_v5 = vld [vmem:[%s8178_s28 + $0x6d8] sm:$0xff]  }
  0xa3   : > { %6990 = vmatpush3.bf16.msra.mxu0 %v7703_v51  ;;  %v7754_v51 = vld [vmem:[%s8178_s28 + $0x678] sm:$0xff]  }
  0xa4   : > { %6991 = vmatprep.subr.bf16.mxu0 %v7705_v53  ;;  %v7756_v53 = vld [vmem:[%s8178_s28 + $0x638] sm:$0xff]  }
  0xa5   : > { %7012 = vmatpush3.bf16.msra.mxu1 %v7704_v52  ;;  %v7755_v52 = vld [vmem:[%s8178_s28 + $0x6f8] sm:$0xff]  }
  0xa6   : > { %7013 = vmatprep.subr.bf16.mxu1 %v7706_v54  ;;  %v7757_v54 = vld [vmem:[%s8178_s28 + $0x6b8] sm:$0xff]  }
  0xa7   : > { %6992 = vmatpush3.bf16.msra.mxu0 %v7707_v55  ;;  %v1423_v55 = vcombine.high %v1407_v50, %v1407_v50 }
  0xa8   : > { %6993 = vmatprep.subr.bf16.mxu0 %v7709_v57  ;;  %v7759_v57 = vld [vmem:[%s8178_s28 + $0x6f0] sm:$0xff]  }
  0xa9   : > { %7014 = vmatpush3.bf16.msra.mxu1 %v7708_v56  ;;  %v7758_v56 = vld [vmem:[%s8178_s28 + $0x670] sm:$0xff]  }
  0xaa   : > { %7015 = vmatprep.subr.bf16.mxu1 %v7710_v58  ;;  %v7760_v58 = vld [vmem:[%s8178_s28 + $0x630] sm:$0xff]  }
  0xab   : > { %6994 = vmatpush3.bf16.msra.mxu0 %v7711_v59  ;;  %v7761_v59 = vld [vmem:[%s8178_s28 + $0x6b0] sm:$0xff]  }
  0xac   : > { %6995 = vmatprep.subr.bf16.mxu0 %v7713_v61  ;;  %v7763_v61 = vld [vmem:[%s8178_s28 + $0x6e8] sm:$0xff]  }
  0xad   : > { %7016 = vmatpush3.bf16.msra.mxu1 %v7712_v60  ;;  %v7762_v60 = vld [vmem:[%s8178_s28 + $0x668] sm:$0xff]  }
  0xae   : > { %7017 = vmatprep.subr.bf16.mxu1 %v7714_v63  ;;  %v7765_v63 = vld [vmem:[%s8178_s28 + $0x6a8] sm:$0xff]  }
  0xaf   : > { %6996 = vmatpush3.bf16.msra.mxu0 %v7715_v2  ;;  %v7768_v2 = vld [vmem:[%s8178_s28 + $0x620] sm:$0xff]  }
  0xb0   : > { %6997 = vmatprep.subr.bf16.mxu0 %v7717_v6  ;;  %v7772_v6 = vld [vmem:[%s8178_s28 + $0x618] sm:$0xff]  }
  0xb1   : > { %7018 = vmatpush3.bf16.msra.mxu1 %v7716_v3  ;;  %v7769_v3 = vld [vmem:[%s8178_s28 + $0x6a0] sm:$0xff]  }
  0xb2   : > { %7019 = vmatprep.subr.bf16.mxu1 %v7718_v7  ;;  %v7773_v7 = vld [vmem:[%s8178_s28 + $0x698] sm:$0xff]  }
  0xb3   : > { %6998 = vmatpush3.bf16.msra.mxu0 %v7719_v10  ;;  %v7776_v10 = vld [vmem:[%s8178_s28 + $0x610] sm:$0xff]  }
  0xb4   : > { %7027 = vmatprep.subr.bf16.mxu0 %v7721_v14  ;;  %v242_v14 = vld [vmem:[%s8173_s24 + $0x18] sm:$0xff] }
  0xb5   : > { %7020 = vmatpush3.bf16.msra.mxu1 %v7720_v11  ;;  %v7777_v11 = vld [vmem:[%s8178_s28 + $0x690] sm:$0xff]  }
  0xb6   : > { %5160 = vmatmul.mubr.bf16.vlgmr.msra.gmra.mxu0 %v1400_v13  ;;  %7049 = vmatprep.subr.bf16.mxu1 %v7722_v15  ;;  %v7779_v13 = vld [vmem:[%s8178_s28 + $0x6c8] sm:$0xff]  }
  0xb7   : > { %7028 = vmatpush3.bf16.msra.mxu0 %v7723_v17  ;;  %5239 = vmatprep.mubr.bf16.mxu0 %v1421_v16  ;;  %v7780_v15 = vld [vmem:[%s8178_s28 + $0x608] sm:$0xff]   ;;  %v1433_v16 = vrot.slane %v242_v14, %v8216_v42  ;;  %v1426_v17 = vcombine.high %v242_v14, %v242_v14  ;;  %v7820_v14 = vld [vmem:[%s8178_s28 + $0x8f8] sm:$0xff]  }
  0xb8   : > { %5200 = vmatmul.mubr.bf16.vlgmr.msra.gmra.mxu1 %v1422_v19  ;;  %7029 = vmatprep.subr.bf16.mxu0 %v7725_v20  ;;  %v7782_v19 = vld [vmem:[%s8178_s28 + $0x640] sm:$0xff]  }
  0xb9   : > { %7050 = vmatpush3.bf16.msra.mxu1 %v7724_v18  ;;  %5279 = vmatprep.mubr.bf16.mxu1 %v1425_v22  ;;  %v7781_v18 = vld [vmem:[%s8178_s28 + $0x688] sm:$0xff]   ;;  %v1441_v20 = vcombine.high %v1433_v16, %v1433_v16  ;;  %v7783_v22 = vld [vmem:[%s8178_s28 + $0x6c0] sm:$0xff]  }
  0xba   : > { %7051 = vmatprep.subr.bf16.mxu1 %v7726_v21  ;;  %v8443_v21 = vrot.slane %v1426_v17, %v8216_v42 }
  0xbb   : > { %7030 = vmatpush3.bf16.msra.mxu0 %v7727_v23  ;;  %v7784_v23 = vld [vmem:[%s8178_s28 + $0x600] sm:$0xff]  }
  0xbc   : > { %7031 = vmatprep.subr.bf16.mxu0 %v7729_v25  ;;  %v1442_v25 = vcombine.high %v8443_v21, %v8443_v21 }
  0xbd   : > { %7052 = vmatpush3.bf16.msra.mxu1 %v7728_v24  ;;  %v1463_v24 = vrot.slane %v1441_v20, %v8216_v42 }
  0xbe   : > { %7053 = vmatprep.subr.bf16.mxu1 %v7730_v26  ;;  %v7785_v26 = vld [vmem:[%s8178_s28 + $0x680] sm:$0xff]  }
  0xbf   : > { %7032 = vmatpush3.bf16.msra.mxu0 %v7731_v27  ;;  %v1473_v27 = vcombine.high %v1463_v24, %v1463_v24 }
  0xc0   : > { %7033 = vmatprep.subr.bf16.mxu0 %v7733_v29  ;;  %v7786_v29 = vld [vmem:[%s8178_s28 + $0x778] sm:$0xff]  }
  0xc1   : > { %7054 = vmatpush3.bf16.msra.mxu1 %v7732_v28  ;;  %v1449_v28 = vrot.slane %v1433_v16, %v8216_v42  ;;  %v7822_v16 = vld [vmem:[%s8178_s28 + $0x8b8] sm:$0xff]  }
  0xc2   : > { %7055 = vmatprep.subr.bf16.mxu1 %v7734_v30  ;;  %v7787_v30 = vld [vmem:[%s8178_s28 + $0x7f8] sm:$0xff]  }
  0xc3   : > { %7034 = vmatpush3.bf16.msra.mxu0 %v7735_v31  ;;  %v1470_v31 = vrot.slane %v1442_v25, %v8216_v42  ;;  %v7827_v25 = vld [vmem:[%s8178_s28 + $0x868] sm:$0xff]  }
  0xc4   : > { %7035 = vmatprep.subr.bf16.mxu0 %v7737_v33  ;;  %v7789_v33 = vld [vmem:[%s8178_s28 + $0x7b8] sm:$0xff]  }
  0xc5   : > { %7056 = vmatpush3.bf16.msra.mxu1 %v7736_v32  ;;  %v7788_v32 = vld [vmem:[%s8178_s28 + $0x738] sm:$0xff]  }
  0xc6   : > { %7057 = vmatprep.subr.bf16.mxu1 %v7738_v34  ;;  %v1471_v34 = vcombine.high %v1449_v28, %v1449_v28 }
  0xc7   : > { %7036 = vmatpush3.bf16.msra.mxu0 %v7739_v35  ;;  %v7790_v35 = vld [vmem:[%s8178_s28 + $0x770] sm:$0xff]  }
  0xc8   : > { %7037 = vmatprep.subr.bf16.mxu0 %v7741_v37  ;;  %v1474_v37 = vcombine.high %v1470_v31, %v1470_v31 }
  0xc9   : > { %7058 = vmatpush3.bf16.msra.mxu1 %v7740_v36  ;;  %v7791_v36 = vld [vmem:[%s8178_s28 + $0x7f0] sm:$0xff]  }
  0xca   : > { %7059 = vmatprep.subr.bf16.mxu1 %v7742_v38 }
  0xcb   : > { %7038 = vmatpush3.bf16.msra.mxu0 %v7743_v39  ;;  %v7792_v39 = vld [vmem:[%s8178_s28 + $0x730] sm:$0xff]  }
  0xcc   : > { %7039 = vmatprep.subr.bf16.mxu0 %v7745_v41 }
  0xcd   : > { %7060 = vmatpush3.bf16.msra.mxu1 %v7744_v40  ;;  %v7793_v40 = vld [vmem:[%s8178_s28 + $0x7b0] sm:$0xff]  }
  0xce   : > { %7061 = vmatprep.subr.bf16.mxu1 %v7746_v43 }
  0xcf   : > { %7040 = vmatpush3.bf16.msra.mxu0 %v7747_v44  ;;  %v7794_v44 = vld [vmem:[%s8178_s28 + $0x768] sm:$0xff]  }
  0xd0   : > { %7041 = vmatprep.subr.bf16.mxu0 %v7749_v46  ;;  %v7795_v46 = vld [vmem:[%s8178_s28 + $0x7e8] sm:$0xff]  }
  0xd1   : > { %7062 = vmatpush3.bf16.msra.mxu1 %v7748_v45 }
  0xd2   : > { %7063 = vmatprep.subr.bf16.mxu1 %v7750_v47 }
  0xd3   : > { %7042 = vmatpush3.bf16.msra.mxu0 %v7751_v48 }
  0xd4   : > { %7071 = vmatprep.subr.bf16.mxu0 %v7754_v51  ;;  %v7797_v51 = vld [vmem:[%s8178_s28 + $0x7a8] sm:$0xff]  }
  0xd5   : > { %7064 = vmatpush3.bf16.msra.mxu1 %v7752_v49  ;;  %v7796_v49 = vld [vmem:[%s8178_s28 + $0x728] sm:$0xff]  }
  0xd6   : > { %5240 = vmatmul.mubr.bf16.vlgmr.msra.gmra.mxu0 %v1407_v50  ;;  %7093 = vmatprep.subr.bf16.mxu1 %v7755_v52 }
  0xd7   : > { %7072 = vmatpush3.bf16.msra.mxu0 %v7756_v53  ;;  %5319 = vmatprep.mubr.bf16.mxu0 %v1463_v24 }
  0xd8   : > { %5280 = vmatmul.mubr.bf16.vlgmr.msra.gmra.mxu1 %v1423_v55  ;;  %7073 = vmatprep.subr.bf16.mxu0 %v7758_v56  ;;  %v7799_v56 = vld [vmem:[%s8178_s28 + $0x7e0] sm:$0xff]  }
  0xd9   : > { %7094 = vmatpush3.bf16.msra.mxu1 %v7757_v54  ;;  %5359 = vmatprep.mubr.bf16.mxu1 %v1473_v27  ;;  %v7798_v54 = vld [vmem:[%s8178_s28 + $0x760] sm:$0xff]   ;;  %v7828_v27 = vld [vmem:[%s8178_s28 + $0x8e8] sm:$0xff]  }
  0xda   : > { %7095 = vmatprep.subr.bf16.mxu1 %v7759_v57 }
  0xdb   : > { %7074 = vmatpush3.bf16.msra.mxu0 %v7760_v58  ;;  %v7800_v58 = vld [vmem:[%s8178_s28 + $0x720] sm:$0xff]  }
  0xdc   : > { %7075 = vmatprep.subr.bf16.mxu0 %v7762_v60  ;;  %v7802_v60 = vld [vmem:[%s8178_s28 + $0x758] sm:$0xff]  }
  0xdd   : > { %7096 = vmatpush3.bf16.msra.mxu1 %v7761_v59  ;;  %v7801_v59 = vld [vmem:[%s8178_s28 + $0x7a0] sm:$0xff]  }
  0xde   : > { %7097 = vmatprep.subr.bf16.mxu1 %v7763_v61  ;;  %v7803_v61 = vld [vmem:[%s8178_s28 + $0x7d8] sm:$0xff]  }
  0xdf   : > { %7076 = vmatpush3.bf16.msra.mxu0 %v7764_v62  ;;  %v7804_v62 = vld [vmem:[%s8178_s28 + $0x718] sm:$0xff]  }
  0xe0   : > { %7077 = vmatprep.subr.bf16.mxu0 %v7766_v0  ;;  %v7806_v0 = vld [vmem:[%s8178_s28 + $0x750] sm:$0xff]  }
  0xe1   : > { %7098 = vmatpush3.bf16.msra.mxu1 %v7765_v63  ;;  %v7805_v63 = vld [vmem:[%s8178_s28 + $0x798] sm:$0xff]  }
  0xe2   : > { %7099 = vmatprep.subr.bf16.mxu1 %v7767_v1  ;;  %v7807_v1 = vld [vmem:[%s8178_s28 + $0x7d0] sm:$0xff]  }
  0xe3   : > { %7078 = vmatpush3.bf16.msra.mxu0 %v7768_v2  ;;  %v7808_v2 = vld [vmem:[%s8178_s28 + $0x710] sm:$0xff]  }
  0xe4   : > { %7079 = vmatprep.subr.bf16.mxu0 %v7770_v4  ;;  %v7810_v4 = vld [vmem:[%s8178_s28 + $0x748] sm:$0xff]  }
  0xe5   : > { %7100 = vmatpush3.bf16.msra.mxu1 %v7769_v3  ;;  %v7809_v3 = vld [vmem:[%s8178_s28 + $0x790] sm:$0xff]  }
  0xe6   : > { %7101 = vmatprep.subr.bf16.mxu1 %v7771_v5  ;;  %v7811_v5 = vld [vmem:[%s8178_s28 + $0x7c8] sm:$0xff]  }
  0xe7   : > { %7080 = vmatpush3.bf16.msra.mxu0 %v7772_v6  ;;  %v7812_v6 = vld [vmem:[%s8178_s28 + $0x708] sm:$0xff]  }
  0xe8   : > { %7081 = vmatprep.subr.bf16.mxu0 %v7774_v8  ;;  %v7814_v8 = vld [vmem:[%s8178_s28 + $0x740] sm:$0xff]  }
  0xe9   : > { %7102 = vmatpush3.bf16.msra.mxu1 %v7773_v7  ;;  %v7813_v7 = vld [vmem:[%s8178_s28 + $0x788] sm:$0xff]  }
  0xea   : > { %7103 = vmatprep.subr.bf16.mxu1 %v7775_v9  ;;  %v7815_v9 = vld [vmem:[%s8178_s28 + $0x7c0] sm:$0xff]  }
  0xeb   : > { %7082 = vmatpush3.bf16.msra.mxu0 %v7776_v10  ;;  %v7816_v10 = vld [vmem:[%s8178_s28 + $0x700] sm:$0xff]  }
  0xec   : > { %7083 = vmatprep.subr.bf16.mxu0 %v7778_v12  ;;  %v1456_v12 = vrot.slane %v8443_v21, %v8216_v42  ;;  %v7825_v21 = vld [vmem:[%s8178_s28 + $0x830] sm:$0xff]  }
  0xed   : > { %7104 = vmatpush3.bf16.msra.mxu1 %v7777_v11  ;;  %v7817_v11 = vld [vmem:[%s8178_s28 + $0x780] sm:$0xff]  }
  0xee   : > { %7105 = vmatprep.subr.bf16.mxu1 %v7779_v13  ;;  %v7819_v13 = vld [vmem:[%s8178_s28 + $0x878] sm:$0xff]   ;;  %v1472_v17 = vcombine.high %v1456_v12, %v1456_v12 }
  0xef   : > { %7084 = vmatpush3.bf16.msra.mxu0 %v7780_v15  ;;  %v7821_v15 = vld [vmem:[%s8178_s28 + $0x838] sm:$0xff]  }
  0xf0   : > { %7085 = vmatprep.subr.bf16.mxu0 %v7782_v19  ;;  %v7824_v19 = vld [vmem:[%s8178_s28 + $0x8f0] sm:$0xff]  }
  0xf1   : > { %7106 = vmatpush3.bf16.msra.mxu1 %v7781_v18  ;;  %v7823_v18 = vld [vmem:[%s8178_s28 + $0x870] sm:$0xff]  }
  0xf2   : > { %7107 = vmatprep.subr.bf16.mxu1 %v7783_v22  ;;  %v7826_v22 = vld [vmem:[%s8178_s28 + $0x8b0] sm:$0xff]  }
  0xf3   : > { %7086 = vmatpush3.bf16.msra.mxu0 %v7784_v23 }
  0xf4   : > { %7115 = vmatprep.subr.bf16.mxu0 %v7786_v29 }
  0xf5   : > { %7108 = vmatpush3.bf16.msra.mxu1 %v7785_v26 }
  0xf6   : > { %v6823_v38 = vpop.f32.mrf.mxu0  ;;  %5320 = vmatmul.mubr.bf16.vlgmr.msra.gmra.mxu0 %v1449_v28  ;;  %7137 = vmatprep.subr.bf16.mxu1 %v7787_v30  ;;  %v7829_v30 = vld [vmem:[%s8178_s28 + $0x828] sm:$0xff]  }
  0xf7   : > { %7116 = vmatpush3.bf16.msra.mxu0 %v7788_v32  ;;  %5399 = vmatprep.mubr.bf16.mxu0 %v1470_v31  ;;  %v6845_v41 = vpop.f32.mrf.mxu1 }
  0xf8   : > { %5360 = vmatmul.mubr.bf16.vlgmr.msra.gmra.mxu1 %v1471_v34  ;;  %v6824_v43 = vpop.f32.mrf.mxu0  ;;  %7117 = vmatprep.subr.bf16.mxu0 %v7790_v35 }
  0xf9   : > { %7138 = vmatpush3.bf16.msra.mxu1 %v7789_v33  ;;  %v6825_v45 = vadd.f32 %v6824_v43, %v6823_v38  ;;  %5439 = vmatprep.mubr.bf16.mxu1 %v1474_v37  ;;  %v6846_v47 = vpop.f32.mrf.mxu1  ;;  %v7830_v33 = vld [vmem:[%s8178_s28 + $0x8a8] sm:$0xff]   ;;  %v7832_v38 = vld [vmem:[%s8178_s28 + $0x8e0] sm:$0xff]   ;;  %v7835_v43 = vld [vmem:[%s8178_s28 + $0x858] sm:$0xff]  }
  0xfa   : > { %v6826_v48 = vpop.f32.mrf.mxu0  ;;  %7139 = vmatprep.subr.bf16.mxu1 %v7791_v36  ;;  %v6847_v50 = vadd.f32 %v6846_v47, %v6845_v41  ;;  %v7831_v36 = vld [vmem:[%s8178_s28 + $0x860] sm:$0xff]   ;;  %v7839_v47 = vld [vmem:[%s8178_s28 + $0x850] sm:$0xff]  }
  0xfb   : > { %7118 = vmatpush3.bf16.msra.mxu0 %v7792_v39  ;;  %v6848_v52 = vpop.f32.mrf.mxu1  ;;  %v7834_v41 = vld [vmem:[%s8178_s28 + $0x8a0] sm:$0xff]   ;;  %v7840_v48 = vld [vmem:[%s8178_s28 + $0x8d0] sm:$0xff]  }
  0xfc   : > { %v6827_v53 = vpop.f32.mrf.mxu0  ;;  %7119 = vmatprep.subr.bf16.mxu0 %v7794_v44  ;;  %v8466_v55 = vadd.f32 %v6847_v50, %v6825_v45  ;;  %v7836_v44 = vld [vmem:[%s8178_s28 + $0x8d8] sm:$0xff]   ;;  %v7842_v50 = vld [vmem:[%s8178_s28 + $0x890] sm:$0xff]   ;;  %v7844_v52 = vld [vmem:[%s8178_s28 + $0x8c8] sm:$0xff]  }
  0xfd   : > { %7140 = vmatpush3.bf16.msra.mxu1 %v7793_v40  ;;  %v6849_v57 = vpop.f32.mrf.mxu1  ;;  %v7833_v40 = vld [vmem:[%s8178_s28 + $0x820] sm:$0xff]   ;;  %v7837_v45 = vld [vmem:[%s8178_s28 + $0x818] sm:$0xff]  }
  0xfe   : > { %7141 = vmatprep.subr.bf16.mxu1 %v7795_v46  ;;  %v7838_v46 = vld [vmem:[%s8178_s28 + $0x898] sm:$0xff]   ;;  %v243_v53 = vld [vmem:[%s8173_s24 + $0x20] sm:$0xff]  ;;  %v7846_v57 = vld [vmem:[%s8178_s28 + $0x888] sm:$0xff]  }
  0xff   : > { %7120 = vmatpush3.bf16.msra.mxu0 %v7796_v49  ;;  %v7841_v49 = vld [vmem:[%s8178_s28 + $0x810] sm:$0xff]  }
 0x100   : > { %7121 = vmatprep.subr.bf16.mxu0 %v7798_v54  ;;  %v7845_v54 = vld [vmem:[%s8178_s28 + $0x808] sm:$0xff]  }
 0x101   : > { %7142 = vmatpush3.bf16.msra.mxu1 %v7797_v51  ;;  %v7843_v51 = vld [vmem:[%s8178_s28 + $0x848] sm:$0xff]  }
 0x102   : > { %7143 = vmatprep.subr.bf16.mxu1 %v7799_v56  ;;  %v1475_v56 = vcombine.high %v243_v53, %v243_v53 }
 0x103   : > { %7122 = vmatpush3.bf16.msra.mxu0 %v7800_v58  ;;  %v7847_v58 = vld [vmem:[%s8178_s28 + $0x840] sm:$0xff]  }
 0x104   : > { %7123 = vmatprep.subr.bf16.mxu0 %v7802_v60  ;;  %v8524_v60 = vrot.slane %v1475_v56, %v8216_v42  ;;  %v7887_v56 = vld [vmem:[%s8178_s28 + $0xab8] sm:$0xff]  }
 0x105   : > { %7144 = vmatpush3.bf16.msra.mxu1 %v7801_v59 }
 0x106   : > { %7145 = vmatprep.subr.bf16.mxu1 %v7803_v61  ;;  %v7848_v61 = vld [vmem:[%s8178_s28 + $0x8c0] sm:$0xff]  }
 0x107   : > { %7124 = vmatpush3.bf16.msra.mxu0 %v7804_v62  ;;  %v7849_v62 = vld [vmem:[%s8178_s28 + $0x800] sm:$0xff]  }
 0x108   : > { %7125 = vmatprep.subr.bf16.mxu0 %v7806_v0  ;;  %v1491_v0 = vcombine.high %v8524_v60, %v8524_v60 }
 0x109   : > { %7146 = vmatpush3.bf16.msra.mxu1 %v7805_v63 }
 0x10a   : > { %7147 = vmatprep.subr.bf16.mxu1 %v7807_v1  ;;  %v7850_v1 = vld [vmem:[%s8178_s28 + $0x880] sm:$0xff]  }
 0x10b   : > { %7126 = vmatpush3.bf16.msra.mxu0 %v7808_v2 }
 0x10c   : > { %7127 = vmatprep.subr.bf16.mxu0 %v7810_v4  ;;  %v7851_v4 = vld [vmem:[%s8178_s28 + $0x978] sm:$0xff]  }
 0x10d   : > { %7148 = vmatpush3.bf16.msra.mxu1 %v7809_v3 }
 0x10e   : > { %7149 = vmatprep.subr.bf16.mxu1 %v7811_v5  ;;  %v7852_v5 = vld [vmem:[%s8178_s28 + $0x9f8] sm:$0xff]  }
 0x10f   : > { %7128 = vmatpush3.bf16.msra.mxu0 %v7812_v6  ;;  %v1519_v6 = vrot.slane %v1491_v0, %v8216_v42 }
 0x110   : > { %7129 = vmatprep.subr.bf16.mxu0 %v7814_v8  ;;  %v7854_v8 = vld [vmem:[%s8178_s28 + $0x9b8] sm:$0xff]  }
 0x111   : > { %7150 = vmatpush3.bf16.msra.mxu1 %v7813_v7  ;;  %v7853_v7 = vld [vmem:[%s8178_s28 + $0x938] sm:$0xff]  }
 0x112   : > { %7151 = vmatprep.subr.bf16.mxu1 %v7815_v9 }
 0x113   : > { %7130 = vmatpush3.bf16.msra.mxu0 %v7816_v10  ;;  %v7855_v10 = vld [vmem:[%s8178_s28 + $0x970] sm:$0xff]  }
 0x114   : > { %7159 = vmatprep.subr.bf16.mxu0 %v7819_v13 }
 0x115   : > { %7152 = vmatpush3.bf16.msra.mxu1 %v7817_v11  ;;  %v7856_v11 = vld [vmem:[%s8178_s28 + $0x9f0] sm:$0xff]  }
 0x116   : > { %v6867_v20 = vpop.f32.mrf.mxu0  ;;  %5400 = vmatmul.mubr.bf16.vlgmr.msra.gmra.mxu0 %v1456_v12  ;;  %7181 = vmatprep.subr.bf16.mxu1 %v7820_v14  ;;  %v1523_v12 = vcombine.high %v1519_v6, %v1519_v6  ;;  %v7857_v14 = vld [vmem:[%s8178_s28 + $0x930] sm:$0xff]  }
 0x117   : > { %7160 = vmatpush3.bf16.msra.mxu0 %v7821_v15  ;;  %v6889_v23 = vpop.f32.mrf.mxu1  ;;  %v7858_v15 = vld [vmem:[%s8178_s28 + $0x9b0] sm:$0xff]  }
 0x118   : > { %5440 = vmatmul.mubr.bf16.vlgmr.msra.gmra.mxu1 %v1472_v17  ;;  %v6868_v24 = vpop.f32.mrf.mxu0  ;;  %7161 = vmatprep.subr.bf16.mxu0 %v7823_v18  ;;  %v7859_v18 = vld [vmem:[%s8178_s28 + $0x968] sm:$0xff]  }
 0x119   : > { %7182 = vmatpush3.bf16.msra.mxu1 %v7822_v16  ;;  %v6869_v26 = vadd.f32 %v6868_v24, %v6867_v20  ;;  %v6890_v28 = vpop.f32.mrf.mxu1  ;;  %v7860_v20 = vld [vmem:[%s8178_s28 + $0x9e8] sm:$0xff]  }
 0x11a   : > { %v6870_v29 = vpop.f32.mrf.mxu0  ;;  %7183 = vmatprep.subr.bf16.mxu1 %v7824_v19  ;;  %v6891_v32 = vadd.f32 %v6890_v28, %v6889_v23  ;;  %v7861_v23 = vld [vmem:[%s8178_s28 + $0x928] sm:$0xff]  }
 0x11b   : > { %v4922_v31 = vadd.f32 %v6869_v26, %v8466_v55  ;;  %7162 = vmatpush3.bf16.msra.mxu0 %v7825_v21  ;;  %v6892_v34 = vpop.f32.mrf.mxu1  ;;  %v1482_v55 = vrot.slane %v243_v53, %v8216_v42  ;;  %v7862_v26 = vld [vmem:[%s8178_s28 + $0x9a8] sm:$0xff]   ;;  %v7863_v29 = vld [vmem:[%s8178_s28 + $0x960] sm:$0xff]   ;;  %v7884_v53 = vld [vmem:[%s8178_s28 + $0xa78] sm:$0xff]  }
 0x11c   : > { %v6871_v35 = vpop.f32.mrf.mxu0  ;;  %7163 = vmatprep.subr.bf16.mxu0 %v7827_v25  ;;  %v7866_v34 = vld [vmem:[%s8178_s28 + $0x9a0] sm:$0xff]  }
 0x11d   : > { %v8503_v37 = vadd.f32 %v6891_v32, %v4922_v31  ;;  %7184 = vmatpush3.bf16.msra.mxu1 %v7826_v22  ;;  %v6893_v39 = vpop.f32.mrf.mxu1  ;;  %v1490_v59 = vcombine.high %v1482_v55, %v1482_v55  ;;  %v1498_v3 = vrot.slane %v1482_v55, %v8216_v42  ;;  %v7864_v31 = vld [vmem:[%s8178_s28 + $0x9e0] sm:$0xff]   ;;  %v7867_v35 = vld [vmem:[%s8178_s28 + $0x958] sm:$0xff]  }
 0x11e   : > { %7185 = vmatprep.subr.bf16.mxu1 %v7828_v27  ;;  %v7871_v39 = vld [vmem:[%s8178_s28 + $0x950] sm:$0xff]   ;;  %v7886_v55 = vld [vmem:[%s8178_s28 + $0xa38] sm:$0xff]  }
 0x11f   : > { %7164 = vmatpush3.bf16.msra.mxu0 %v7829_v30  ;;  %v1512_v63 = vrot.slane %v1490_v59, %v8216_v42  ;;  %v1520_v9 = vcombine.high %v1498_v3, %v1498_v3  ;;  %v7889_v59 = vld [vmem:[%s8178_s28 + $0xaf0] sm:$0xff]  }
 0x120   : > { %7165 = vmatprep.subr.bf16.mxu0 %v7831_v36  ;;  %v7868_v36 = vld [vmem:[%s8178_s28 + $0x9d8] sm:$0xff]  }
 0x121   : > { %7186 = vmatpush3.bf16.msra.mxu1 %v7830_v33  ;;  %5479 = vmatprep.mubr.bf16.mxu0 %v1512_v63  ;;  %v1522_v2 = vcombine.high %v1512_v63, %v1512_v63  ;;  %v7865_v33 = vld [vmem:[%s8178_s28 + $0x920] sm:$0xff]  }
 0x122   : > { %7187 = vmatprep.subr.bf16.mxu1 %v7832_v38  ;;  %v7870_v38 = vld [vmem:[%s8178_s28 + $0x998] sm:$0xff]  }
 0x123   : > { %7166 = vmatpush3.bf16.msra.mxu0 %v7833_v40  ;;  %5519 = vmatprep.mubr.bf16.mxu1 %v1522_v2  ;;  %v7872_v40 = vld [vmem:[%s8178_s28 + $0x9d0] sm:$0xff]  }
 0x124   : > { %7167 = vmatprep.subr.bf16.mxu0 %v7835_v43  ;;  %v7874_v43 = vld [vmem:[%s8178_s28 + $0x990] sm:$0xff]  }
 0x125   : > { %7188 = vmatpush3.bf16.msra.mxu1 %v7834_v41  ;;  %v7873_v41 = vld [vmem:[%s8178_s28 + $0x910] sm:$0xff]  }
 0x126   : > { %7189 = vmatprep.subr.bf16.mxu1 %v7836_v44  ;;  %v7875_v44 = vld [vmem:[%s8178_s28 + $0x948] sm:$0xff]  }
 0x127   : > { %7168 = vmatpush3.bf16.msra.mxu0 %v7837_v45  ;;  %v7876_v45 = vld [vmem:[%s8178_s28 + $0x9c8] sm:$0xff]  }
 0x128   : > { %7169 = vmatprep.subr.bf16.mxu0 %v7839_v47  ;;  %v7878_v47 = vld [vmem:[%s8178_s28 + $0x988] sm:$0xff]  }
 0x129   : > { %7190 = vmatpush3.bf16.msra.mxu1 %v7838_v46  ;;  %v7877_v46 = vld [vmem:[%s8178_s28 + $0x908] sm:$0xff]  }
 0x12a   : > { %7191 = vmatprep.subr.bf16.mxu1 %v7840_v48  ;;  %v7879_v48 = vld [vmem:[%s8178_s28 + $0x940] sm:$0xff]  }
 0x12b   : > { %7170 = vmatpush3.bf16.msra.mxu0 %v7841_v49  ;;  %v7880_v49 = vld [vmem:[%s8178_s28 + $0x9c0] sm:$0xff]  }
 0x12c   : > { %7171 = vmatprep.subr.bf16.mxu0 %v7843_v51  ;;  %v7882_v51 = vld [vmem:[%s8178_s28 + $0x980] sm:$0xff]  }
 0x12d   : > { %7192 = vmatpush3.bf16.msra.mxu1 %v7842_v50  ;;  %v7881_v50 = vld [vmem:[%s8178_s28 + $0x900] sm:$0xff]  }
 0x12e   : > { %7193 = vmatprep.subr.bf16.mxu1 %v7844_v52  ;;  %v1505_v52 = vrot.slane %v8524_v60, %v8216_v42  ;;  %v7890_v60 = vld [vmem:[%s8178_s28 + $0xa30] sm:$0xff]  }
 0x12f   : > { %7172 = vmatpush3.bf16.msra.mxu0 %v7845_v54  ;;  %v7885_v54 = vld [vmem:[%s8178_s28 + $0xaf8] sm:$0xff]  }
 0x130   : > { %7173 = vmatprep.subr.bf16.mxu0 %v7847_v58  ;;  %v7888_v58 = vld [vmem:[%s8178_s28 + $0xa70] sm:$0xff]  }
 0x131   : > { %7194 = vmatpush3.bf16.msra.mxu1 %v7846_v57  ;;  %v1521_v57 = vcombine.high %v1505_v52, %v1505_v52 }
 0x132   : > { %7195 = vmatprep.subr.bf16.mxu1 %v7848_v61 }
 0x133   : > { %7174 = vmatpush3.bf16.msra.mxu0 %v7849_v62  ;;  %v7891_v62 = vld [vmem:[%s8178_s28 + $0xab0] sm:$0xff]  }
 0x134   : > { %7203 = vmatprep.subr.bf16.mxu0 %v7851_v4 }
 0x135   : > { %7196 = vmatpush3.bf16.msra.mxu1 %v7850_v1  ;;  %v7892_v1 = vld [vmem:[%s8178_s28 + $0xa68] sm:$0xff]  }
 0x136   : > { %v6911_v13 = vpop.f32.mrf.mxu0  ;;  %5480 = vmatmul.mubr.bf16.vlgmr.msra.gmra.mxu0 %v1498_v3  ;;  %7225 = vmatprep.subr.bf16.mxu1 %v7852_v5  ;;  %v7893_v3 = vld [vmem:[%s8178_s28 + $0xae8] sm:$0xff]  }
 0x137   : > { %7204 = vmatpush3.bf16.msra.mxu0 %v7853_v7  ;;  %5559 = vmatprep.mubr.bf16.mxu0 %v1519_v6  ;;  %v7894_v6 = vld [vmem:[%s8178_s28 + $0xa28] sm:$0xff]  }
 0x138   : > { %v6933_v16 = vpop.f32.mrf.mxu1  ;;  %5520 = vmatmul.mubr.bf16.vlgmr.msra.gmra.mxu1 %v1520_v9  ;;  %v6912_v17 = vpop.f32.mrf.mxu0  ;;  %7205 = vmatprep.subr.bf16.mxu0 %v7855_v10  ;;  %v7895_v9 = vld [vmem:[%s8178_s28 + $0xaa8] sm:$0xff]  }
 0x139   : > { %7226 = vmatpush3.bf16.msra.mxu1 %v7854_v8  ;;  %v6913_v19 = vadd.f32 %v6912_v17, %v6911_v13  ;;  %5599 = vmatprep.mubr.bf16.mxu1 %v1523_v12  ;;  %v7896_v12 = vld [vmem:[%s8178_s28 + $0xa60] sm:$0xff]  }
 0x13a   : > { %v6934_v21 = vpop.f32.mrf.mxu1  ;;  %v6914_v22 = vpop.f32.mrf.mxu0  ;;  %7227 = vmatprep.subr.bf16.mxu1 %v7856_v11  ;;  %v7899_v17 = vld [vmem:[%s8178_s28 + $0xaa0] sm:$0xff]  }
 0x13b   : > { %v5002_v24 = vadd.f32 %v6913_v19, %v8503_v37  ;;  %v6935_v25 = vadd.f32 %v6934_v21, %v6933_v16  ;;  %7206 = vmatpush3.bf16.msra.mxu0 %v7857_v14  ;;  %v7869_v37 = vld [vmem:[%s8178_s28 + $0x918] sm:$0xff]   ;;  %v7897_v14 = vld [vmem:[%s8178_s28 + $0xae0] sm:$0xff]   ;;  %v7904_v22 = vld [vmem:[%s8178_s28 + $0xa50] sm:$0xff]  }
 0x13c   : > { %v6936_v27 = vpop.f32.mrf.mxu1  ;;  %v6915_v28 = vpop.f32.mrf.mxu0  ;;  %7207 = vmatprep.subr.bf16.mxu0 %v7859_v18  ;;  %v7898_v16 = vld [vmem:[%s8178_s28 + $0xa20] sm:$0xff]   ;;  %v7900_v18 = vld [vmem:[%s8178_s28 + $0xa58] sm:$0xff]  }
 0x13d   : > { %v8548_v30 = vadd.f32 %v6935_v25, %v5002_v24  ;;  %7228 = vmatpush3.bf16.msra.mxu1 %v7858_v15  ;;  %v7901_v19 = vld [vmem:[%s8178_s28 + $0xad8] sm:$0xff]   ;;  %v7906_v24 = vld [vmem:[%s8178_s28 + $0xa10] sm:$0xff]   ;;  %v7909_v27 = vld [vmem:[%s8178_s28 + $0xac8] sm:$0xff]  }
 0x13e   : > { %v6937_v32 = vpop.f32.mrf.mxu1  ;;  %7229 = vmatprep.subr.bf16.mxu1 %v7860_v20  ;;  %v7902_v20 = vld [vmem:[%s8178_s28 + $0xa18] sm:$0xff]   ;;  %v7907_v25 = vld [vmem:[%s8178_s28 + $0xa90] sm:$0xff]   ;;  %v244_v28 = vld [vmem:[%s8173_s24 + $0x28] sm:$0xff] }
 0x13f   : > { %7208 = vmatpush3.bf16.msra.mxu0 %v7861_v23  ;;  %v7903_v21 = vld [vmem:[%s8178_s28 + $0xa98] sm:$0xff]   ;;  %v7905_v23 = vld [vmem:[%s8178_s28 + $0xad0] sm:$0xff]   ;;  %v7911_v32 = vld [vmem:[%s8178_s28 + $0xa88] sm:$0xff]  }
 0x140   : > { %7209 = vmatprep.subr.bf16.mxu0 %v7863_v29  ;;  %v7910_v29 = vld [vmem:[%s8178_s28 + $0xa08] sm:$0xff]  }
 0x141   : > { %7230 = vmatpush3.bf16.msra.mxu1 %v7862_v26  ;;  %v7908_v26 = vld [vmem:[%s8178_s28 + $0xa48] sm:$0xff]  }
 0x142   : > { %7231 = vmatprep.subr.bf16.mxu1 %v7864_v31  ;;  %v1524_v31 = vcombine.high %v244_v28, %v244_v28 }
 0x143   : > { %7210 = vmatpush3.bf16.msra.mxu0 %v7865_v33  ;;  %v7912_v33 = vld [vmem:[%s8178_s28 + $0xa40] sm:$0xff]  }
 0x144   : > { %7211 = vmatprep.subr.bf16.mxu0 %v7867_v35  ;;  %v8606_v35 = vrot.slane %v1524_v31, %v8216_v42  ;;  %v7952_v31 = vld [vmem:[%s8178_s28 + $0xcb8] sm:$0xff]  }
 0x145   : > { %7232 = vmatpush3.bf16.msra.mxu1 %v7866_v34 }
 0x146   : > { %7233 = vmatprep.subr.bf16.mxu1 %v7868_v36  ;;  %v7913_v36 = vld [vmem:[%s8178_s28 + $0xac0] sm:$0xff]  }
 0x147   : > { %7212 = vmatpush3.bf16.msra.mxu0 %v7869_v37  ;;  %v7914_v37 = vld [vmem:[%s8178_s28 + $0xa00] sm:$0xff]  }
 0x148   : > { %7213 = vmatprep.subr.bf16.mxu0 %v7871_v39  ;;  %v1540_v39 = vcombine.high %v8606_v35, %v8606_v35 }
 0x149   : > { %7234 = vmatpush3.bf16.msra.mxu1 %v7870_v38 }
 0x14a   : > { %7235 = vmatprep.subr.bf16.mxu1 %v7872_v40  ;;  %v7915_v40 = vld [vmem:[%s8178_s28 + $0xa80] sm:$0xff]  }
 0x14b   : > { %7214 = vmatpush3.bf16.msra.mxu0 %v7873_v41 }
 0x14c   : > { %7215 = vmatprep.subr.bf16.mxu0 %v7875_v44  ;;  %v7916_v44 = vld [vmem:[%s8178_s28 + $0xb78] sm:$0xff]  }
 0x14d   : > { %7236 = vmatpush3.bf16.msra.mxu1 %v7874_v43 }
 0x14e   : > { %7237 = vmatprep.subr.bf16.mxu1 %v7876_v45  ;;  %v7917_v45 = vld [vmem:[%s8178_s28 + $0xbf8] sm:$0xff]  }
 0x14f   : > { %7216 = vmatpush3.bf16.msra.mxu0 %v7877_v46  ;;  %v1568_v46 = vrot.slane %v1540_v39, %v8216_v42 }
 0x150   : > { %7217 = vmatprep.subr.bf16.mxu0 %v7879_v48  ;;  %v7919_v48 = vld [vmem:[%s8178_s28 + $0xbb8] sm:$0xff]  }
 0x151   : > { %7238 = vmatpush3.bf16.msra.mxu1 %v7878_v47  ;;  %v7918_v47 = vld [vmem:[%s8178_s28 + $0xb38] sm:$0xff]  }
 0x152   : > { %7239 = vmatprep.subr.bf16.mxu1 %v7880_v49 }
 0x153   : > { %7218 = vmatpush3.bf16.msra.mxu0 %v7881_v50  ;;  %v7920_v50 = vld [vmem:[%s8178_s28 + $0xb70] sm:$0xff]  }
 0x154   : > { %7247 = vmatprep.subr.bf16.mxu0 %v7884_v53 }
 0x155   : > { %7240 = vmatpush3.bf16.msra.mxu1 %v7882_v51  ;;  %v7921_v51 = vld [vmem:[%s8178_s28 + $0xbf0] sm:$0xff]  }
 0x156   : > { %v6955_v61 = vpop.f32.mrf.mxu0  ;;  %5560 = vmatmul.mubr.bf16.vlgmr.msra.gmra.mxu0 %v1505_v52  ;;  %7269 = vmatprep.subr.bf16.mxu1 %v7885_v54  ;;  %v1572_v52 = vcombine.high %v1568_v46, %v1568_v46  ;;  %v7922_v54 = vld [vmem:[%s8178_s28 + $0xb30] sm:$0xff]  }
 0x157   : > { %7248 = vmatpush3.bf16.msra.mxu0 %v7886_v55  ;;  %v7923_v55 = vld [vmem:[%s8178_s28 + $0xbb0] sm:$0xff]  }
 0x158   : > { %v6977_v63 = vpop.f32.mrf.mxu1  ;;  %5600 = vmatmul.mubr.bf16.vlgmr.msra.gmra.mxu1 %v1521_v57  ;;  %v6956_v0 = vpop.f32.mrf.mxu0  ;;  %7249 = vmatprep.subr.bf16.mxu0 %v7888_v58  ;;  %v7924_v58 = vld [vmem:[%s8178_s28 + $0xb68] sm:$0xff]  }
 0x159   : > { %7270 = vmatpush3.bf16.msra.mxu1 %v7887_v56  ;;  %v6957_v2 = vadd.f32 %v6956_v0, %v6955_v61  ;;  %v7925_v61 = vld [vmem:[%s8178_s28 + $0xbe8] sm:$0xff]  }
 0x15a   : > { %v6978_v4 = vpop.f32.mrf.mxu1  ;;  %v6958_v5 = vpop.f32.mrf.mxu0  ;;  %7271 = vmatprep.subr.bf16.mxu1 %v7889_v59 }
 0x15b   : > { %v5082_v7 = vadd.f32 %v6957_v2, %v8548_v30  ;;  %v6979_v8 = vadd.f32 %v6978_v4, %v6977_v63  ;;  %7250 = vmatpush3.bf16.msra.mxu0 %v7890_v60  ;;  %v1531_v30 = vrot.slane %v244_v28, %v8216_v42  ;;  %v7926_v63 = vld [vmem:[%s8178_s28 + $0xb28] sm:$0xff]   ;;  %v7928_v5 = vld [vmem:[%s8178_s28 + $0xb60] sm:$0xff]   ;;  %v7949_v28 = vld [vmem:[%s8178_s28 + $0xc78] sm:$0xff]  }
 0x15c   : > { %v6980_v10 = vpop.f32.mrf.mxu1  ;;  %v6959_v11 = vpop.f32.mrf.mxu0  ;;  %7251 = vmatprep.subr.bf16.mxu0 %v7892_v1  ;;  %v7927_v2 = vld [vmem:[%s8178_s28 + $0xba8] sm:$0xff]  }
 0x15d   : > { %v8585_v13 = vadd.f32 %v6979_v8, %v5082_v7  ;;  %7272 = vmatpush3.bf16.msra.mxu1 %v7891_v62  ;;  %v1539_v34 = vcombine.high %v1531_v30, %v1531_v30  ;;  %v1547_v43 = vrot.slane %v1531_v30, %v8216_v42  ;;  %v7929_v7 = vld [vmem:[%s8178_s28 + $0xbe0] sm:$0xff]   ;;  %v7932_v11 = vld [vmem:[%s8178_s28 + $0xb58] sm:$0xff]  }
 0x15e   : > { %v6981_v15 = vpop.f32.mrf.mxu1  ;;  %7273 = vmatprep.subr.bf16.mxu1 %v7893_v3  ;;  %v7931_v10 = vld [vmem:[%s8178_s28 + $0xba0] sm:$0xff]   ;;  %v7951_v30 = vld [vmem:[%s8178_s28 + $0xc38] sm:$0xff]  }
 0x15f   : > { %7252 = vmatpush3.bf16.msra.mxu0 %v7894_v6  ;;  %v1561_v38 = vrot.slane %v1539_v34, %v8216_v42  ;;  %v1569_v49 = vcombine.high %v1547_v43, %v1547_v43  ;;  %v7936_v15 = vld [vmem:[%s8178_s28 + $0xb50] sm:$0xff]  }
 0x160   : > { %7253 = vmatprep.subr.bf16.mxu0 %v7896_v12  ;;  %v7933_v12 = vld [vmem:[%s8178_s28 + $0xbd8] sm:$0xff]   ;;  %v7954_v34 = vld [vmem:[%s8178_s28 + $0xcf0] sm:$0xff]  }
 0x161   : > { %7274 = vmatpush3.bf16.msra.mxu1 %v7895_v9  ;;  %5639 = vmatprep.mubr.bf16.mxu0 %v1561_v38  ;;  %v1571_v41 = vcombine.high %v1561_v38, %v1561_v38  ;;  %v7930_v9 = vld [vmem:[%s8178_s28 + $0xb20] sm:$0xff]  }
 0x162   : > { %7275 = vmatprep.subr.bf16.mxu1 %v7897_v14  ;;  %v7935_v14 = vld [vmem:[%s8178_s28 + $0xb98] sm:$0xff]  }
 0x163   : > { %7254 = vmatpush3.bf16.msra.mxu0 %v7898_v16  ;;  %5679 = vmatprep.mubr.bf16.mxu1 %v1571_v41  ;;  %v7937_v16 = vld [vmem:[%s8178_s28 + $0xbd0] sm:$0xff]  }
 0x164   : > { %7255 = vmatprep.subr.bf16.mxu0 %v7900_v18  ;;  %v7939_v18 = vld [vmem:[%s8178_s28 + $0xb90] sm:$0xff]  }
 0x165   : > { %7276 = vmatpush3.bf16.msra.mxu1 %v7899_v17  ;;  %v7938_v17 = vld [vmem:[%s8178_s28 + $0xb10] sm:$0xff]  }
 0x166   : > { %7277 = vmatprep.subr.bf16.mxu1 %v7901_v19  ;;  %v7940_v19 = vld [vmem:[%s8178_s28 + $0xb48] sm:$0xff]  }
 0x167   : > { %7256 = vmatpush3.bf16.msra.mxu0 %v7902_v20  ;;  %v7941_v20 = vld [vmem:[%s8178_s28 + $0xbc8] sm:$0xff]  }
 0x168   : > { %7257 = vmatprep.subr.bf16.mxu0 %v7904_v22  ;;  %v7943_v22 = vld [vmem:[%s8178_s28 + $0xb88] sm:$0xff]  }
 0x169   : > { %7278 = vmatpush3.bf16.msra.mxu1 %v7903_v21  ;;  %v7942_v21 = vld [vmem:[%s8178_s28 + $0xb08] sm:$0xff]  }
 0x16a   : > { %7279 = vmatprep.subr.bf16.mxu1 %v7905_v23  ;;  %v7944_v23 = vld [vmem:[%s8178_s28 + $0xb40] sm:$0xff]  }
 0x16b   : > { %7258 = vmatpush3.bf16.msra.mxu0 %v7906_v24  ;;  %v7945_v24 = vld [vmem:[%s8178_s28 + $0xbc0] sm:$0xff]  }
 0x16c   : > { %7259 = vmatprep.subr.bf16.mxu0 %v7908_v26  ;;  %v7947_v26 = vld [vmem:[%s8178_s28 + $0xb80] sm:$0xff]  }
 0x16d   : > { %7280 = vmatpush3.bf16.msra.mxu1 %v7907_v25  ;;  %v7946_v25 = vld [vmem:[%s8178_s28 + $0xb00] sm:$0xff]  }
 0x16e   : > { %7281 = vmatprep.subr.bf16.mxu1 %v7909_v27  ;;  %v1554_v27 = vrot.slane %v8606_v35, %v8216_v42  ;;  %v7955_v35 = vld [vmem:[%s8178_s28 + $0xc30] sm:$0xff]  }
 0x16f   : > { %7260 = vmatpush3.bf16.msra.mxu0 %v7910_v29  ;;  %v7950_v29 = vld [vmem:[%s8178_s28 + $0xcf8] sm:$0xff]  }
 0x170   : > { %7261 = vmatprep.subr.bf16.mxu0 %v7912_v33  ;;  %v7953_v33 = vld [vmem:[%s8178_s28 + $0xc70] sm:$0xff]  }
 0x171   : > { %7282 = vmatpush3.bf16.msra.mxu1 %v7911_v32  ;;  %v1570_v32 = vcombine.high %v1554_v27, %v1554_v27 }
 0x172   : > { %7283 = vmatprep.subr.bf16.mxu1 %v7913_v36 }
 0x173   : > { %7262 = vmatpush3.bf16.msra.mxu0 %v7914_v37  ;;  %v7956_v37 = vld [vmem:[%s8178_s28 + $0xcb0] sm:$0xff]  }
 0x174   : > { %7291 = vmatprep.subr.bf16.mxu0 %v7916_v44 }
 0x175   : > { %7284 = vmatpush3.bf16.msra.mxu1 %v7915_v40  ;;  %v7957_v40 = vld [vmem:[%s8178_s28 + $0xc68] sm:$0xff]  }
 0x176   : > { %v6999_v53 = vpop.f32.mrf.mxu0  ;;  %5640 = vmatmul.mubr.bf16.vlgmr.msra.gmra.mxu0 %v1547_v43  ;;  %7313 = vmatprep.subr.bf16.mxu1 %v7917_v45  ;;  %v7958_v43 = vld [vmem:[%s8178_s28 + $0xce8] sm:$0xff]  }
 0x177   : > { %7292 = vmatpush3.bf16.msra.mxu0 %v7918_v47  ;;  %5719 = vmatprep.mubr.bf16.mxu0 %v1568_v46  ;;  %v7959_v46 = vld [vmem:[%s8178_s28 + $0xc28] sm:$0xff]  }
 0x178   : > { %v7021_v56 = vpop.f32.mrf.mxu1  ;;  %5680 = vmatmul.mubr.bf16.vlgmr.msra.gmra.mxu1 %v1569_v49  ;;  %v7000_v57 = vpop.f32.mrf.mxu0  ;;  %7293 = vmatprep.subr.bf16.mxu0 %v7920_v50  ;;  %v7960_v49 = vld [vmem:[%s8178_s28 + $0xca8] sm:$0xff]  }
 0x179   : > { %7314 = vmatpush3.bf16.msra.mxu1 %v7919_v48  ;;  %v7001_v59 = vadd.f32 %v7000_v57, %v6999_v53  ;;  %5759 = vmatprep.mubr.bf16.mxu1 %v1572_v52  ;;  %v7961_v52 = vld [vmem:[%s8178_s28 + $0xc60] sm:$0xff]  }
 0x17a   : > { %v7022_v60 = vpop.f32.mrf.mxu1  ;;  %v7002_v62 = vpop.f32.mrf.mxu0  ;;  %7315 = vmatprep.subr.bf16.mxu1 %v7921_v51  ;;  %v7964_v57 = vld [vmem:[%s8178_s28 + $0xca0] sm:$0xff]  }
 0x17b   : > { %v5162_v0 = vadd.f32 %v7001_v59, %v8585_v13  ;;  %v7023_v1 = vadd.f32 %v7022_v60, %v7021_v56  ;;  %7294 = vmatpush3.bf16.msra.mxu0 %v7922_v54  ;;  %v7934_v13 = vld [vmem:[%s8178_s28 + $0xb18] sm:$0xff]   ;;  %v7962_v54 = vld [vmem:[%s8178_s28 + $0xce0] sm:$0xff]   ;;  %v7969_v62 = vld [vmem:[%s8178_s28 + $0xc50] sm:$0xff]  }
 0x17c   : > { %v7024_v3 = vpop.f32.mrf.mxu1  ;;  %v7003_v4 = vpop.f32.mrf.mxu0  ;;  %7295 = vmatprep.subr.bf16.mxu0 %v7924_v58  ;;  %v7963_v56 = vld [vmem:[%s8178_s28 + $0xc20] sm:$0xff]   ;;  %v7965_v58 = vld [vmem:[%s8178_s28 + $0xc58] sm:$0xff]  }
 0x17d   : > { %v8630_v6 = vadd.f32 %v7023_v1, %v5162_v0  ;;  %7316 = vmatpush3.bf16.msra.mxu1 %v7923_v55  ;;  %v7966_v59 = vld [vmem:[%s8178_s28 + $0xcd8] sm:$0xff]   ;;  %v7971_v0 = vld [vmem:[%s8178_s28 + $0xc10] sm:$0xff]   ;;  %v7974_v3 = vld [vmem:[%s8178_s28 + $0xcc8] sm:$0xff]  }
 0x17e   : > { %v7025_v8 = vpop.f32.mrf.mxu1  ;;  %7317 = vmatprep.subr.bf16.mxu1 %v7925_v61  ;;  %v7967_v61 = vld [vmem:[%s8178_s28 + $0xc18] sm:$0xff]   ;;  %v7972_v1 = vld [vmem:[%s8178_s28 + $0xc90] sm:$0xff]  }
 0x17f   : > { %7296 = vmatpush3.bf16.msra.mxu0 %v7926_v63  ;;  %v7968_v60 = vld [vmem:[%s8178_s28 + $0xc98] sm:$0xff]   ;;  %v7970_v63 = vld [vmem:[%s8178_s28 + $0xcd0] sm:$0xff]   ;;  %v7977_v8 = vld [vmem:[%s8178_s28 + $0xc40] sm:$0xff]  }
 0x180   : > { %7297 = vmatprep.subr.bf16.mxu0 %v7928_v5  ;;  %v245_v4 = vld [vmem:[%s8173_s24 + $0x30] sm:$0xff]  ;;  %v7975_v5 = vld [vmem:[%s8178_s28 + $0xc08] sm:$0xff]  }
 0x181   : > { %7318 = vmatpush3.bf16.msra.mxu1 %v7927_v2  ;;  %v7973_v2 = vld [vmem:[%s8178_s28 + $0xc48] sm:$0xff]  }
 0x182   : > { %7319 = vmatprep.subr.bf16.mxu1 %v7929_v7  ;;  %v1573_v7 = vcombine.high %v245_v4, %v245_v4 }
 0x183   : > { %7298 = vmatpush3.bf16.msra.mxu0 %v7930_v9  ;;  %v7976_v9 = vld [vmem:[%s8178_s28 + $0xc88] sm:$0xff]  }
 0x184   : > { %7299 = vmatprep.subr.bf16.mxu0 %v7932_v11  ;;  %v8688_v11 = vrot.slane %v1573_v7, %v8216_v42 }
 0x185   : > { %7320 = vmatpush3.bf16.msra.mxu1 %v7931_v10 }
 0x186   : > { %7321 = vmatprep.subr.bf16.mxu1 %v7933_v12  ;;  %v7978_v12 = vld [vmem:[%s8178_s28 + $0xcc0] sm:$0xff]  }
 0x187   : > { %7300 = vmatpush3.bf16.msra.mxu0 %v7934_v13  ;;  %v7979_v13 = vld [vmem:[%s8178_s28 + $0xc00] sm:$0xff]  }
 0x188   : > { %7301 = vmatprep.subr.bf16.mxu0 %v7936_v15  ;;  %v1589_v15 = vcombine.high %v8688_v11, %v8688_v11 }
 0x189   : > { %7322 = vmatpush3.bf16.msra.mxu1 %v7935_v14 }
 0x18a   : > { %7323 = vmatprep.subr.bf16.mxu1 %v7937_v16 }
 0x18b   : > { %7302 = vmatpush3.bf16.msra.mxu0 %v7938_v17  ;;  %v7981_v17 = vld [vmem:[%s8178_s28 + $0xd78] sm:$0xff]  }
 0x18c   : > { %7303 = vmatprep.subr.bf16.mxu0 %v7940_v19 }
 0x18d   : > { %7324 = vmatpush3.bf16.msra.mxu1 %v7939_v18  ;;  %v7980_v18 = vld [vmem:[%s8178_s28 + $0xc80] sm:$0xff]  }
 0x18e   : > { %7325 = vmatprep.subr.bf16.mxu1 %v7941_v20  ;;  %v1617_v20 = vrot.slane %v1589_v15, %v8216_v42  ;;  %v8022_v15 = vld [vmem:[%s8178_s28 + $0xe68] sm:$0xff]  }
 0x18f   : > { %7304 = vmatpush3.bf16.msra.mxu0 %v7942_v21  ;;  %v7982_v21 = vld [vmem:[%s8178_s28 + $0xdf8] sm:$0xff]  }
 0x190   : > { %7305 = vmatprep.subr.bf16.mxu0 %v7944_v23 }
 0x191   : > { %7326 = vmatpush3.bf16.msra.mxu1 %v7943_v22  ;;  %v7983_v22 = vld [vmem:[%s8178_s28 + $0xd38] sm:$0xff]  }
 0x192   : > { %7327 = vmatprep.subr.bf16.mxu1 %v7945_v24  ;;  %v7985_v24 = vld [vmem:[%s8178_s28 + $0xd70] sm:$0xff]  }
 0x193   : > { %7306 = vmatpush3.bf16.msra.mxu0 %v7946_v25  ;;  %v7984_v25 = vld [vmem:[%s8178_s28 + $0xdb8] sm:$0xff]  }
 0x194   : > { %7335 = vmatprep.subr.bf16.mxu0 %v7949_v28  ;;  %v7986_v28 = vld [vmem:[%s8178_s28 + $0xdf0] sm:$0xff]  }
 0x195   : > { %7328 = vmatpush3.bf16.msra.mxu1 %v7947_v26  ;;  %v1621_v26 = vcombine.high %v1617_v20, %v1617_v20 }
 0x196   : > { %v7043_v36 = vpop.f32.mrf.mxu0  ;;  %5720 = vmatmul.mubr.bf16.vlgmr.msra.gmra.mxu0 %v1554_v27  ;;  %7357 = vmatprep.subr.bf16.mxu1 %v7950_v29  ;;  %v7987_v29 = vld [vmem:[%s8178_s28 + $0xd30] sm:$0xff]  }
 0x197   : > { %7336 = vmatpush3.bf16.msra.mxu0 %v7951_v30 }
 0x198   : > { %v7065_v38 = vpop.f32.mrf.mxu1  ;;  %5760 = vmatmul.mubr.bf16.vlgmr.msra.gmra.mxu1 %v1570_v32  ;;  %v7044_v39 = vpop.f32.mrf.mxu0  ;;  %7337 = vmatprep.subr.bf16.mxu0 %v7953_v33  ;;  %v7989_v32 = vld [vmem:[%s8178_s28 + $0xd68] sm:$0xff]  }
 0x199   : > { %7358 = vmatpush3.bf16.msra.mxu1 %v7952_v31  ;;  %v7045_v41 = vadd.f32 %v7044_v39, %v7043_v36 }
 0x19a   : > { %v7066_v44 = vpop.f32.mrf.mxu1  ;;  %v7046_v45 = vpop.f32.mrf.mxu0  ;;  %7359 = vmatprep.subr.bf16.mxu1 %v7954_v34  ;;  %v7988_v34 = vld [vmem:[%s8178_s28 + $0xdb0] sm:$0xff]  }
 0x19b   : > { %v5242_v47 = vadd.f32 %v7045_v41, %v8630_v6  ;;  %v7067_v48 = vadd.f32 %v7066_v44, %v7065_v38  ;;  %7338 = vmatpush3.bf16.msra.mxu0 %v7955_v35  ;;  %v1580_v6 = vrot.slane %v245_v4, %v8216_v42  ;;  %v7993_v44 = vld [vmem:[%s8178_s28 + $0xd60] sm:$0xff]  }
 0x19c   : > { %v7068_v50 = vpop.f32.mrf.mxu1  ;;  %v7047_v51 = vpop.f32.mrf.mxu0  ;;  %7339 = vmatprep.subr.bf16.mxu0 %v7957_v40  ;;  %v7991_v40 = vld [vmem:[%s8178_s28 + $0xd28] sm:$0xff]   ;;  %v8012_v4 = vld [vmem:[%s8178_s28 + $0xd80] sm:$0xff]  }
 0x19d   : > { %v8667_v53 = vadd.f32 %v7067_v48, %v5242_v47  ;;  %7360 = vmatpush3.bf16.msra.mxu1 %v7956_v37  ;;  %v1588_v10 = vcombine.high %v1580_v6, %v1580_v6  ;;  %v1596_v16 = vrot.slane %v1580_v6, %v8216_v42  ;;  %v7990_v37 = vld [vmem:[%s8178_s28 + $0xde8] sm:$0xff]   ;;  %v7994_v48 = vld [vmem:[%s8178_s28 + $0xde0] sm:$0xff]   ;;  %v7997_v50 = vld [vmem:[%s8178_s28 + $0xd58] sm:$0xff]  }
 0x19e   : > { %v7069_v55 = vpop.f32.mrf.mxu1  ;;  %7361 = vmatprep.subr.bf16.mxu1 %v7958_v43  ;;  %v7996_v51 = vld [vmem:[%s8178_s28 + $0xda0] sm:$0xff]   ;;  %v8016_v6 = vld [vmem:[%s8178_s28 + $0xe38] sm:$0xff]  }
 0x19f   : > { %7340 = vmatpush3.bf16.msra.mxu0 %v7959_v46  ;;  %v1610_v14 = vrot.slane %v1588_v10, %v8216_v42  ;;  %v1618_v23 = vcombine.high %v1596_v16, %v1596_v16  ;;  %v7992_v46 = vld [vmem:[%s8178_s28 + $0xda8] sm:$0xff]   ;;  %v8000_v55 = vld [vmem:[%s8178_s28 + $0xd98] sm:$0xff]  }
 0x1a0   : > { %7341 = vmatprep.subr.bf16.mxu0 %v7961_v52  ;;  %v7998_v52 = vld [vmem:[%s8178_s28 + $0xdd8] sm:$0xff]  }
 0x1a1   : > { %7362 = vmatpush3.bf16.msra.mxu1 %v7960_v49  ;;  %5799 = vmatprep.mubr.bf16.mxu0 %v1610_v14  ;;  %v1620_v19 = vcombine.high %v1610_v14, %v1610_v14  ;;  %v7995_v49 = vld [vmem:[%s8178_s28 + $0xd20] sm:$0xff]  }
 0x1a2   : > { %7363 = vmatprep.subr.bf16.mxu1 %v7962_v54  ;;  %v8001_v54 = vld [vmem:[%s8178_s28 + $0xd50] sm:$0xff]  }
 0x1a3   : > { %7342 = vmatpush3.bf16.msra.mxu0 %v7963_v56  ;;  %5839 = vmatprep.mubr.bf16.mxu1 %v1620_v19  ;;  %v8002_v56 = vld [vmem:[%s8178_s28 + $0xdd0] sm:$0xff]  }
 0x1a4   : > { %7343 = vmatprep.subr.bf16.mxu0 %v7965_v58  ;;  %v8005_v58 = vld [vmem:[%s8178_s28 + $0xd48] sm:$0xff]  }
 0x1a5   : > { %7364 = vmatpush3.bf16.msra.mxu1 %v7964_v57  ;;  %v8003_v57 = vld [vmem:[%s8178_s28 + $0xd10] sm:$0xff]  }
 0x1a6   : > { %7365 = vmatprep.subr.bf16.mxu1 %v7966_v59  ;;  %v8004_v59 = vld [vmem:[%s8178_s28 + $0xd90] sm:$0xff]  }
 0x1a7   : > { %7344 = vmatpush3.bf16.msra.mxu0 %v7967_v61  ;;  %v8006_v61 = vld [vmem:[%s8178_s28 + $0xdc8] sm:$0xff]  }
 0x1a8   : > { %7345 = vmatprep.subr.bf16.mxu0 %v7969_v62  ;;  %v8009_v62 = vld [vmem:[%s8178_s28 + $0xd40] sm:$0xff]  }
 0x1a9   : > { %7366 = vmatpush3.bf16.msra.mxu1 %v7968_v60  ;;  %v8007_v60 = vld [vmem:[%s8178_s28 + $0xd08] sm:$0xff]  }
 0x1aa   : > { %7367 = vmatprep.subr.bf16.mxu1 %v7970_v63  ;;  %v8008_v63 = vld [vmem:[%s8178_s28 + $0xd88] sm:$0xff]  }
 0x1ab   : > { %7346 = vmatpush3.bf16.msra.mxu0 %v7971_v0  ;;  %v8010_v0 = vld [vmem:[%s8178_s28 + $0xdc0] sm:$0xff]  }
 0x1ac   : > { %7347 = vmatprep.subr.bf16.mxu0 %v7973_v2  ;;  %v1603_v2 = vrot.slane %v8688_v11, %v8216_v42  ;;  %v8019_v11 = vld [vmem:[%s8178_s28 + $0xef0] sm:$0xff]  }
 0x1ad   : > { %7368 = vmatpush3.bf16.msra.mxu1 %v7972_v1  ;;  %v8011_v1 = vld [vmem:[%s8178_s28 + $0xd00] sm:$0xff]  }
 0x1ae   : > { %7369 = vmatprep.subr.bf16.mxu1 %v7974_v3  ;;  %v8014_v3 = vld [vmem:[%s8178_s28 + $0xe78] sm:$0xff]   ;;  %v1619_v7 = vcombine.high %v1603_v2, %v1603_v2 }
 0x1af   : > { %7348 = vmatpush3.bf16.msra.mxu0 %v7975_v5  ;;  %v8015_v5 = vld [vmem:[%s8178_s28 + $0xef8] sm:$0xff]  }
 0x1b0   : > { %7349 = vmatprep.subr.bf16.mxu0 %v7977_v8  ;;  %v8018_v8 = vld [vmem:[%s8178_s28 + $0xe70] sm:$0xff]  }
 0x1b1   : > { %7370 = vmatpush3.bf16.msra.mxu1 %v7976_v9  ;;  %v8017_v9 = vld [vmem:[%s8178_s28 + $0xeb8] sm:$0xff]  }
 0x1b2   : > { %7371 = vmatprep.subr.bf16.mxu1 %v7978_v12  ;;  %v8020_v12 = vld [vmem:[%s8178_s28 + $0xe30] sm:$0xff]  }
 0x1b3   : > { %7350 = vmatpush3.bf16.msra.mxu0 %v7979_v13 }
 0x1b4   : > { %7379 = vmatprep.subr.bf16.mxu0 %v7981_v17  ;;  %v8021_v17 = vld [vmem:[%s8178_s28 + $0xeb0] sm:$0xff]  }
 0x1b5   : > { %7372 = vmatpush3.bf16.msra.mxu1 %v7980_v18 }
 0x1b6   : > { %v7087_v27 = vpop.f32.mrf.mxu0  ;;  %5800 = vmatmul.mubr.bf16.vlgmr.msra.gmra.mxu0 %v1596_v16  ;;  %7401 = vmatprep.subr.bf16.mxu1 %v7982_v21 }
 0x1b7   : > { %7380 = vmatpush3.bf16.msra.mxu0 %v7983_v22  ;;  %5879 = vmatprep.mubr.bf16.mxu0 %v1617_v20  ;;  %v8023_v20 = vld [vmem:[%s8178_s28 + $0xee8] sm:$0xff]  }
 0x1b8   : > { %v7109_v30 = vpop.f32.mrf.mxu1  ;;  %5840 = vmatmul.mubr.bf16.vlgmr.msra.gmra.mxu1 %v1618_v23  ;;  %v7088_v31 = vpop.f32.mrf.mxu0  ;;  %7381 = vmatprep.subr.bf16.mxu0 %v7985_v24  ;;  %v8024_v23 = vld [vmem:[%s8178_s28 + $0xe28] sm:$0xff]  }
 0x1b9   : > { %7402 = vmatpush3.bf16.msra.mxu1 %v7984_v25  ;;  %v7089_v33 = vadd.f32 %v7088_v31, %v7087_v27  ;;  %5919 = vmatprep.mubr.bf16.mxu1 %v1621_v26  ;;  %v8026_v26 = vld [vmem:[%s8178_s28 + $0xe60] sm:$0xff]  }
 0x1ba   : > { %v7110_v36 = vpop.f32.mrf.mxu1  ;;  %v7090_v35 = vpop.f32.mrf.mxu0  ;;  %7403 = vmatprep.subr.bf16.mxu1 %v7986_v28  ;;  %v8025_v28 = vld [vmem:[%s8178_s28 + $0xea8] sm:$0xff]   ;;  %v8028_v31 = vld [vmem:[%s8178_s28 + $0xe20] sm:$0xff]  }
 0x1bb   : > { %v5322_v38 = vadd.f32 %v7089_v33, %v8667_v53  ;;  %v7111_v39 = vadd.f32 %v7110_v36, %v7109_v30  ;;  %7382 = vmatpush3.bf16.msra.mxu0 %v7987_v29  ;;  %v7999_v53 = vld [vmem:[%s8178_s28 + $0xd18] sm:$0xff]   ;;  %v8027_v30 = vld [vmem:[%s8178_s28 + $0xee0] sm:$0xff]   ;;  %v8034_v35 = vld [vmem:[%s8178_s28 + $0xe50] sm:$0xff]  }
 0x1bc   : > { %v7112_v41 = vpop.f32.mrf.mxu1  ;;  %v7091_v43 = vpop.f32.mrf.mxu0  ;;  %7383 = vmatprep.subr.bf16.mxu0 %v7989_v32  ;;  %v8030_v32 = vld [vmem:[%s8178_s28 + $0xe58] sm:$0xff]   ;;  %v8029_v33 = vld [vmem:[%s8178_s28 + $0xea0] sm:$0xff]  }
 0x1bd   : > { %v8711_v45 = vadd.f32 %v7111_v39, %v5322_v38  ;;  %7404 = vmatpush3.bf16.msra.mxu1 %v7988_v34  ;;  %v8031_v34 = vld [vmem:[%s8178_s28 + $0xed8] sm:$0xff]   ;;  %v8035_v38 = vld [vmem:[%s8178_s28 + $0xed0] sm:$0xff]   ;;  %v8039_v43 = vld [vmem:[%s8178_s28 + $0xec8] sm:$0xff]  }
 0x1be   : > { %v7113_v47 = vpop.f32.mrf.mxu1  ;;  %7405 = vmatprep.subr.bf16.mxu1 %v7990_v37  ;;  %v8032_v36 = vld [vmem:[%s8178_s28 + $0xe18] sm:$0xff]   ;;  %v8036_v39 = vld [vmem:[%s8178_s28 + $0xe10] sm:$0xff]  }
 0x1bf   : > { %7384 = vmatpush3.bf16.msra.mxu0 %v7991_v40  ;;  %v8033_v37 = vld [vmem:[%s8178_s28 + $0xe98] sm:$0xff]   ;;  %v8038_v40 = vld [vmem:[%s8178_s28 + $0xe48] sm:$0xff]   ;;  %v8037_v41 = vld [vmem:[%s8178_s28 + $0xe90] sm:$0xff]  }
 0x1c0   : > { %7385 = vmatprep.subr.bf16.mxu0 %v7993_v44  ;;  %v246_v44 = vld [vmem:[%s8173_s24 + $0x38] sm:$0xff] }
 0x1c1   : > { %7406 = vmatpush3.bf16.msra.mxu1 %v7992_v46  ;;  %v1629_v46 = vrot.slane %v246_v44, %v8216_v42  ;;  %v1622_v47 = vcombine.high %v246_v44, %v246_v44 }
 0x1c2   : > { %7407 = vmatprep.subr.bf16.mxu1 %v7994_v48  ;;  %v8042_v48 = vld [vmem:[%s8178_s28 + $0xe40] sm:$0xff]  }
 0x1c3   : > { %7386 = vmatpush3.bf16.msra.mxu0 %v7995_v49  ;;  %v8041_v49 = vld [vmem:[%s8178_s28 + $0xe88] sm:$0xff]  }
 0x1c4   : > { %7387 = vmatprep.subr.bf16.mxu0 %v7997_v50  ;;  %v1637_v50 = vcombine.high %v1629_v46, %v1629_v46 }
 0x1c5   : > { %7408 = vmatpush3.bf16.msra.mxu1 %v7996_v51  ;;  %v8770_v51 = vrot.slane %v1622_v47, %v8216_v42 }
 0x1c6   : > { %7409 = vmatprep.subr.bf16.mxu1 %v7998_v52  ;;  %v8043_v52 = vld [vmem:[%s8178_s28 + $0xec0] sm:$0xff]  }
 0x1c7   : > { %7388 = vmatpush3.bf16.msra.mxu0 %v7999_v53  ;;  %v8044_v53 = vld [vmem:[%s8178_s28 + $0xe00] sm:$0xff]  }
 0x1c8   : > { %7389 = vmatprep.subr.bf16.mxu0 %v8001_v54  ;;  %v1659_v54 = vrot.slane %v1637_v50, %v8216_v42 }
 0x1c9   : > { %7410 = vmatpush3.bf16.msra.mxu1 %v8000_v55  ;;  %v1638_v55 = vcombine.high %v8770_v51, %v8770_v51 }
 0x1ca   : > { %7411 = vmatprep.subr.bf16.mxu1 %v8002_v56  ;;  %v1645_v56 = vrot.slane %v1629_v46, %v8216_v42 }
 0x1cb   : > { %7390 = vmatpush3.bf16.msra.mxu0 %v8003_v57  ;;  %v8046_v57 = vld [vmem:[%s8178_s28 + $0xf78] sm:$0xff]  }
 0x1cc   : > { %7391 = vmatprep.subr.bf16.mxu0 %v8005_v58  ;;  %v8045_v58 = vld [vmem:[%s8178_s28 + $0xe80] sm:$0xff]  }
 0x1cd   : > { %7412 = vmatpush3.bf16.msra.mxu1 %v8004_v59  ;;  %v1669_v59 = vcombine.high %v1659_v54, %v1659_v54 }
 0x1ce   : > { %7413 = vmatprep.subr.bf16.mxu1 %v8006_v61  ;;  %v1666_v61 = vrot.slane %v1638_v55, %v8216_v42 }
 0x1cf   : > { %7392 = vmatpush3.bf16.msra.mxu0 %v8007_v60  ;;  %v8047_v60 = vld [vmem:[%s8178_s28 + $0xff8] sm:$0xff]  }
 0x1d0   : > { %7393 = vmatprep.subr.bf16.mxu0 %v8009_v62  ;;  %v8048_v62 = vld [vmem:[%s8178_s28 + $0xf38] sm:$0xff]  }
 0x1d1   : > { %7414 = vmatpush3.bf16.msra.mxu1 %v8008_v63  ;;  %v1667_v63 = vcombine.high %v1645_v56, %v1645_v56 }
 0x1d2   : > { %7415 = vmatprep.subr.bf16.mxu1 %v8010_v0  ;;  %v8050_v0 = vld [vmem:[%s8178_s28 + $0xf70] sm:$0xff]  }
 0x1d3   : > { %7394 = vmatpush3.bf16.msra.mxu0 %v8011_v1  ;;  %v8049_v1 = vld [vmem:[%s8178_s28 + $0xfb8] sm:$0xff]  }
 0x1d4   : > { %7423 = vmatprep.subr.bf16.mxu0 %v8014_v3 }
 0x1d5   : > { %7416 = vmatpush3.bf16.msra.mxu1 %v8012_v4  ;;  %v8051_v4 = vld [vmem:[%s8178_s28 + $0xff0] sm:$0xff]  }
 0x1d6   : > { %v7131_v10 = vpop.f32.mrf.mxu0  ;;  %5880 = vmatmul.mubr.bf16.vlgmr.msra.gmra.mxu0 %v1603_v2  ;;  %7445 = vmatprep.subr.bf16.mxu1 %v8015_v5  ;;  %v1670_v2 = vcombine.high %v1666_v61, %v1666_v61  ;;  %v8052_v5 = vld [vmem:[%s8178_s28 + $0xf30] sm:$0xff]  }
 0x1d7   : > { %7424 = vmatpush3.bf16.msra.mxu0 %v8016_v6  ;;  %5959 = vmatprep.mubr.bf16.mxu0 %v1659_v54 }
 0x1d8   : > { %v7153_v13 = vpop.f32.mrf.mxu1  ;;  %5920 = vmatmul.mubr.bf16.vlgmr.msra.gmra.mxu1 %v1619_v7  ;;  %v7132_v14 = vpop.f32.mrf.mxu0  ;;  %7425 = vmatprep.subr.bf16.mxu0 %v8018_v8  ;;  %v8054_v8 = vld [vmem:[%s8178_s28 + $0xf68] sm:$0xff]  }
 0x1d9   : > { %7446 = vmatpush3.bf16.msra.mxu1 %v8017_v9  ;;  %v7133_v16 = vadd.f32 %v7132_v14, %v7131_v10  ;;  %5999 = vmatprep.mubr.bf16.mxu1 %v1669_v59  ;;  %v8053_v10 = vld [vmem:[%s8178_s28 + $0xfb0] sm:$0xff]  }
 0x1da   : > { %v7154_v18 = vpop.f32.mrf.mxu1  ;;  %v7134_v19 = vpop.f32.mrf.mxu0  ;;  %7447 = vmatprep.subr.bf16.mxu1 %v8019_v11 }
 0x1db   : > { %v5402_v21 = vadd.f32 %v7133_v16, %v8711_v45  ;;  %v7155_v22 = vadd.f32 %v7154_v18, %v7153_v13  ;;  %7426 = vmatpush3.bf16.msra.mxu0 %v8020_v12  ;;  %v8040_v45 = vld [vmem:[%s8178_s28 + $0xe08] sm:$0xff]   ;;  %v8058_v19 = vld [vmem:[%s8178_s28 + $0xf60] sm:$0xff]  }
 0x1dc   : > { %v7156_v24 = vpop.f32.mrf.mxu1  ;;  %v7135_v25 = vpop.f32.mrf.mxu0  ;;  %7427 = vmatprep.subr.bf16.mxu0 %v8022_v15  ;;  %v8055_v13 = vld [vmem:[%s8178_s28 + $0xfe8] sm:$0xff]  }
 0x1dd   : > { %v8748_v27 = vadd.f32 %v7155_v22, %v5402_v21  ;;  %7448 = vmatpush3.bf16.msra.mxu1 %v8021_v17  ;;  %v8056_v16 = vld [vmem:[%s8178_s28 + $0xf28] sm:$0xff]   ;;  %v8060_v24 = vld [vmem:[%s8178_s28 + $0xf20] sm:$0xff]   ;;  %v8062_v25 = vld [vmem:[%s8178_s28 + $0xf58] sm:$0xff]  }
 0x1de   : > { %v7157_v29 = vpop.f32.mrf.mxu1  ;;  %7449 = vmatprep.subr.bf16.mxu1 %v8023_v20  ;;  %v8057_v21 = vld [vmem:[%s8178_s28 + $0xfa8] sm:$0xff]  }
 0x1df   : > { %7428 = vmatpush3.bf16.msra.mxu0 %v8024_v23  ;;  %v8059_v23 = vld [vmem:[%s8178_s28 + $0xfe0] sm:$0xff]   ;;  %v8066_v29 = vld [vmem:[%s8178_s28 + $0xf50] sm:$0xff]  }
 0x1e0   : > { %7429 = vmatprep.subr.bf16.mxu0 %v8026_v26  ;;  %v8061_v26 = vld [vmem:[%s8178_s28 + $0xfa0] sm:$0xff]  }
 0x1e1   : > { %7450 = vmatpush3.bf16.msra.mxu1 %v8025_v28  ;;  %v8064_v28 = vld [vmem:[%s8178_s28 + $0xf18] sm:$0xff]  }
 0x1e2   : > { %7451 = vmatprep.subr.bf16.mxu1 %v8027_v30  ;;  %v8065_v30 = vld [vmem:[%s8178_s28 + $0xf98] sm:$0xff]  }
 0x1e3   : > { %7430 = vmatpush3.bf16.msra.mxu0 %v8028_v31  ;;  %v8067_v31 = vld [vmem:[%s8178_s28 + $0xfd0] sm:$0xff]  }
 0x1e4   : > { %7431 = vmatprep.subr.bf16.mxu0 %v8030_v32  ;;  %v8068_v32 = vld [vmem:[%s8178_s28 + $0xf10] sm:$0xff]  }
 0x1e5   : > { %7452 = vmatpush3.bf16.msra.mxu1 %v8029_v33  ;;  %v8070_v33 = vld [vmem:[%s8178_s28 + $0xf48] sm:$0xff]  }
 0x1e6   : > { %7453 = vmatprep.subr.bf16.mxu1 %v8031_v34  ;;  %v8069_v34 = vld [vmem:[%s8178_s28 + $0xf90] sm:$0xff]  }
 0x1e7   : > { %7432 = vmatpush3.bf16.msra.mxu0 %v8032_v36  ;;  %v8071_v36 = vld [vmem:[%s8178_s28 + $0xfc8] sm:$0xff]  }
 0x1e8   : > { %7433 = vmatprep.subr.bf16.mxu0 %v8034_v35  ;;  %v8072_v35 = vld [vmem:[%s8178_s28 + $0xf08] sm:$0xff]  }
 0x1e9   : > { %7454 = vmatpush3.bf16.msra.mxu1 %v8033_v37  ;;  %v8074_v37 = vld [vmem:[%s8178_s28 + $0xf40] sm:$0xff]  }
 0x1ea   : > { %7455 = vmatprep.subr.bf16.mxu1 %v8035_v38  ;;  %v8073_v38 = vld [vmem:[%s8178_s28 + $0xf88] sm:$0xff]  }
 0x1eb   : > { %7434 = vmatpush3.bf16.msra.mxu0 %v8036_v39  ;;  %v8075_v39 = vld [vmem:[%s8178_s28 + $0xfc0] sm:$0xff]  }
 0x1ec   : > { %7435 = vmatprep.subr.bf16.mxu0 %v8038_v40  ;;  %v8076_v40 = vld [vmem:[%s8178_s28 + $0xf00] sm:$0xff]  }
 0x1ed   : > { %7456 = vmatpush3.bf16.msra.mxu1 %v8037_v41  ;;  %v1652_v41 = vrot.slane %v8770_v51, %v8216_v42 }
 0x1ee   : > { %7457 = vmatprep.subr.bf16.mxu1 %v8039_v43  ;;  %v8077_v43 = vld [vmem:[%s8178_s28 + $0xf80] sm:$0xff]  }
 0x1ef   : > { %7436 = vmatpush3.bf16.msra.mxu0 %v8040_v45  ;;  %v1668_v44 = vcombine.high %v1652_v41, %v1652_v41 }
 0x1f0   : > { %7437 = vmatprep.subr.bf16.mxu0 %v8042_v48 }
 0x1f1   : > { %7458 = vmatpush3.bf16.msra.mxu1 %v8041_v49 }
 0x1f2   : > { %7459 = vmatprep.subr.bf16.mxu1 %v8043_v52 }
 0x1f3   : > { %7438 = vmatpush3.bf16.msra.mxu0 %v8044_v53 }
 0x1f4   : > { %7467 = vmatprep.subr.bf16.mxu0 %v8046_v57 }
 0x1f5   : > { %7460 = vmatpush3.bf16.msra.mxu1 %v8045_v58 }
 0x1f6   : > { %v7175_v3 = vpop.f32.mrf.mxu0  ;;  %5960 = vmatmul.mubr.bf16.vlgmr.msra.gmra.mxu0 %v1645_v56  ;;  %7489 = vmatprep.subr.bf16.mxu1 %v8047_v60 }
 0x1f7   : > { %7468 = vmatpush3.bf16.msra.mxu0 %v8048_v62  ;;  %6039 = vmatprep.mubr.bf16.mxu0 %v1666_v61 }
 0x1f8   : > { %v7197_v6 = vpop.f32.mrf.mxu1  ;;  %6000 = vmatmul.mubr.bf16.vlgmr.msra.gmra.mxu1 %v1667_v63  ;;  %v7176_v7 = vpop.f32.mrf.mxu0  ;;  %7469 = vmatprep.subr.bf16.mxu0 %v8050_v0 }
 0x1f9   : > { %7490 = vmatpush3.bf16.msra.mxu1 %v8049_v1  ;;  %v7177_v9 = vadd.f32 %v7176_v7, %v7175_v3  ;;  %6079 = vmatprep.mubr.bf16.mxu1 %v1670_v2 }
 0x1fa   : > { %v7198_v11 = vpop.f32.mrf.mxu1  ;;  %v7178_v12 = vpop.f32.mrf.mxu0  ;;  %7491 = vmatprep.subr.bf16.mxu1 %v8051_v4 }
 0x1fb   : > { %v5482_v14 = vadd.f32 %v7177_v9, %v8748_v27  ;;  %v7199_v15 = vadd.f32 %v7198_v11, %v7197_v6  ;;  %7470 = vmatpush3.bf16.msra.mxu0 %v8052_v5  ;;  %v8063_v27 = vld [vmem:[%s8178_s28 + $0xfd8] sm:$0xff]  }
 0x1fc   : > { %v7200_v17 = vpop.f32.mrf.mxu1  ;;  %v7179_v18 = vpop.f32.mrf.mxu0  ;;  %7471 = vmatprep.subr.bf16.mxu0 %v8054_v8 }
 0x1fd   : > { %v5522_v20 = vadd.f32 %v7199_v15, %v5482_v14  ;;  %7492 = vmatpush3.bf16.msra.mxu1 %v8053_v10 }
 0x1fe   : > { %v7201_v22 = vpop.f32.mrf.mxu1  ;;  %7493 = vmatprep.subr.bf16.mxu1 %v8055_v13 }
 0x1ff   : > { %7472 = vmatpush3.bf16.msra.mxu0 %v8056_v16 }
 0x200   : > { %7473 = vmatprep.subr.bf16.mxu0 %v8058_v19 }
 0x201   : > { %7494 = vmatpush3.bf16.msra.mxu1 %v8057_v21 }
 0x202   : > { %7495 = vmatprep.subr.bf16.mxu1 %v8059_v23 }
 0x203   : > { %7474 = vmatpush3.bf16.msra.mxu0 %v8060_v24 }
 0x204   : > { %7475 = vmatprep.subr.bf16.mxu0 %v8062_v25 }
 0x205   : > { %7496 = vmatpush3.bf16.msra.mxu1 %v8061_v26 }
 0x206   : > { %7497 = vmatprep.subr.bf16.mxu1 %v8063_v27 }
 0x207   : > { %7476 = vmatpush3.bf16.msra.mxu0 %v8064_v28 }
 0x208   : > { %7477 = vmatprep.subr.bf16.mxu0 %v8066_v29 }
 0x209   : > { %7498 = vmatpush3.bf16.msra.mxu1 %v8065_v30 }
 0x20a   : > { %7499 = vmatprep.subr.bf16.mxu1 %v8067_v31 }
 0x20b   : > { %7478 = vmatpush3.bf16.msra.mxu0 %v8068_v32 }
 0x20c   : > { %7479 = vmatprep.subr.bf16.mxu0 %v8070_v33 }
 0x20d   : > { %7500 = vmatpush3.bf16.msra.mxu1 %v8069_v34 }
 0x20e   : > { %7501 = vmatprep.subr.bf16.mxu1 %v8071_v36 }
 0x20f   : > { %7480 = vmatpush3.bf16.msra.mxu0 %v8072_v35 }
 0x210   : > { %7481 = vmatprep.subr.bf16.mxu0 %v8074_v37 }
 0x211   : > { %7502 = vmatpush3.bf16.msra.mxu1 %v8073_v38 }
 0x212   : > { %7503 = vmatprep.subr.bf16.mxu1 %v8075_v39 }
 0x213   : > { %7482 = vmatpush3.bf16.msra.mxu0 %v8076_v40 }
 0x215   : > { %7504 = vmatpush3.bf16.msra.mxu1 %v8077_v43 }
 0x216   : > { %v7219_v45 = vpop.f32.mrf.mxu0  ;;  %6040 = vmatmul.mubr.bf16.vlgmr.msra.gmra.mxu0 %v1652_v41 }
 0x218   : > { %v7241_v46 = vpop.f32.mrf.mxu1  ;;  %6080 = vmatmul.mubr.bf16.vlgmr.msra.gmra.mxu1 %v1668_v44  ;;  %v7220_v47 = vpop.f32.mrf.mxu0 }
 0x219   : > { %v7221_v48 = vadd.f32 %v7220_v47, %v7219_v45 }
 0x21a   : > { %v7242_v49 = vpop.f32.mrf.mxu1  ;;  %v7222_v50 = vpop.f32.mrf.mxu0 }
 0x21b   : > { %v5562_v52 = vadd.f32 %v7221_v48, %v5522_v20  ;;  %v7243_v53 = vadd.f32 %v7242_v49, %v7241_v46 }
 0x21c   : > { %v7244_v54 = vpop.f32.mrf.mxu1  ;;  %v7223_v55 = vpop.f32.mrf.mxu0 }
 0x21d   : > { %v5602_v56 = vadd.f32 %v7243_v53, %v5562_v52 }
 0x21e   : > { %v7245_v42 = vpop.f32.mrf.mxu1 }
 0x236   : > { %v7263_v51 = vpop.f32.mrf.mxu0 }
 0x238   : > { %v7285_v57 = vpop.f32.mrf.mxu1  ;;  %v7264_v58 = vpop.f32.mrf.mxu0 }
 0x239   : > { %v7265_v59 = vadd.f32 %v7264_v58, %v7263_v51 }
 0x23a   : > { %v7286_v61 = vpop.f32.mrf.mxu1  ;;  %v7266_v60 = vpop.f32.mrf.mxu0 }
 0x23b   : > { %v5642_v62 = vadd.f32 %v7265_v59, %v5602_v56  ;;  %v7287_v63 = vadd.f32 %v7286_v61, %v7285_v57  ;;  %v238_v61 = vld [vmem:[#allocation2] sm:$0x3] }
 0x23c   : > { %v7288_v0 = vpop.f32.mrf.mxu1  ;;  %v7267_v1 = vpop.f32.mrf.mxu0 }
 0x23d   : > { %v5682_v2 = vadd.f32 %v7287_v63, %v5642_v62 }
 0x23e   : > { %v7289_v3 = vpop.f32.mrf.mxu1 }
 0x256   : > { %v7307_v4 = vpop.f32.mrf.mxu0 }
 0x258   : > { %v7329_v5 = vpop.f32.mrf.mxu1  ;;  %v7308_v6 = vpop.f32.mrf.mxu0 }
 0x259   : > { %v7309_v7 = vadd.f32 %v7308_v6, %v7307_v4 }
 0x25a   : > { %v7330_v8 = vpop.f32.mrf.mxu1  ;;  %v7310_v9 = vpop.f32.mrf.mxu0 }
 0x25b   : > { %v5722_v10 = vadd.f32 %v7309_v7, %v5682_v2  ;;  %v7331_v11 = vadd.f32 %v7330_v8, %v7329_v5 }
 0x25c   : > { %v7332_v12 = vpop.f32.mrf.mxu1  ;;  %v7311_v13 = vpop.f32.mrf.mxu0 }
 0x25d   : > { %v5762_v14 = vadd.f32 %v7331_v11, %v5722_v10 }
 0x25e   : > { %v7333_v15 = vpop.f32.mrf.mxu1 }
 0x276   : > { %v7351_v16 = vpop.f32.mrf.mxu0 }
 0x278   : > { %v7373_v17 = vpop.f32.mrf.mxu1  ;;  %v7352_v18 = vpop.f32.mrf.mxu0 }
 0x279   : > { %v7353_v19 = vadd.f32 %v7352_v18, %v7351_v16 }
 0x27a   : > { %v7374_v20 = vpop.f32.mrf.mxu1  ;;  %v7354_v21 = vpop.f32.mrf.mxu0 }
 0x27b   : > { %v5802_v22 = vadd.f32 %v7353_v19, %v5762_v14  ;;  %v7375_v23 = vadd.f32 %v7374_v20, %v7373_v17 }
 0x27c   : > { %v7376_v24 = vpop.f32.mrf.mxu1  ;;  %v7355_v25 = vpop.f32.mrf.mxu0 }
 0x27d   : > { %v5842_v26 = vadd.f32 %v7375_v23, %v5802_v22 }
 0x27e   : > { %v7377_v27 = vpop.f32.mrf.mxu1 }
 0x296   : > { %v7395_v28 = vpop.f32.mrf.mxu0 }
 0x298   : > { %v7417_v29 = vpop.f32.mrf.mxu1  ;;  %v7396_v30 = vpop.f32.mrf.mxu0 }
 0x299   : > { %v7397_v45 = vadd.f32 %v7396_v30, %v7395_v28 }
 0x29a   : > { %v7418_v31 = vpop.f32.mrf.mxu1  ;;  %v7398_v32 = vpop.f32.mrf.mxu0 }
 0x29b   : > { %v5882_v46 = vadd.f32 %v7397_v45, %v5842_v26  ;;  %v7419_v47 = vadd.f32 %v7418_v31, %v7417_v29 }
 0x29c   : > { %v7420_v33 = vpop.f32.mrf.mxu1  ;;  %v7399_v34 = vpop.f32.mrf.mxu0 }
 0x29d   : > { %v5922_v49 = vadd.f32 %v7419_v47, %v5882_v46 }
 0x29e   : > { %v7421_v36 = vpop.f32.mrf.mxu1 }
 0x2b6   : > { %v7439_v35 = vpop.f32.mrf.mxu0 }
 0x2b8   : > { %v7461_v37 = vpop.f32.mrf.mxu1  ;;  %v7440_v38 = vpop.f32.mrf.mxu0 }
 0x2b9   : > { %v7441_v48 = vadd.f32 %v7440_v38, %v7439_v35 }
 0x2ba   : > { %v7462_v39 = vpop.f32.mrf.mxu1  ;;  %v7442_v40 = vpop.f32.mrf.mxu0 }
 0x2bb   : > { %v5962_v50 = vadd.f32 %v7441_v48, %v5922_v49  ;;  %v7463_v52 = vadd.f32 %v7462_v39, %v7461_v37 }
 0x2bc   : > { %v7464_v41 = vpop.f32.mrf.mxu1  ;;  %v7443_v43 = vpop.f32.mrf.mxu0 }
 0x2bd   : > { %v6002_v56 = vadd.f32 %v7463_v52, %v5962_v50 }
 0x2be   : > { %v7465_v44 = vpop.f32.mrf.mxu1 }
 0x2d6   : > { %v7483_v53 = vpop.f32.mrf.mxu0 }
 0x2d8   : > { %v7505_v54 = vpop.f32.mrf.mxu1  ;;  %v7484_v55 = vpop.f32.mrf.mxu0 }
 0x2d9   : > { %v7485_v42 = vadd.f32 %v7484_v55, %v7483_v53 }
 0x2da   : > { %v7506_v51 = vpop.f32.mrf.mxu1  ;;  %v7486_v57 = vpop.f32.mrf.mxu0 }
 0x2db   : > { %v6042_v58 = vadd.f32 %v7485_v42, %v6002_v56  ;;  %v7507_v59 = vadd.f32 %v7506_v51, %v7505_v54 }
 0x2dc   : > { %v7508_v60 = vpop.f32.mrf.mxu1  ;;  %v7487_v62 = vpop.f32.mrf.mxu0 }
 0x2dd   : > { %v6082_v63 = vadd.f32 %v7507_v59, %v6042_v58  ;;  %6092 = sbr.rel (%p6792_p6) target bundleno = 970 (0x3ca), region = 48 }
 0x2de   : > { %v7509_v0 = vpop.f32.mrf.mxu1 }
 0x2df   : > { %v6087_v1 = vadd.f32 %v6082_v63, %v238_v61 }
 0x2e1   : > { %6088 = vst [vmem:[#allocation2] sm:$0x3] %v6087_v1 }
 0x2e2   : > { %v8079_v2 = vld [vmem:[%s8864_s3 + $0x38] sm:$0xff]   ;;  %v8125_v3 = vmov 0.0   ;;  %v8080_v4 = vld [vmem:[%s8864_s3 + $0x30] sm:$0xff]   ;;  %vm8126_vm0 = vmmov 0   ;;  %v8081_v5 = vld [vmem:[%s8864_s3 + $0x28] sm:$0xff]   ;;  %vm6215_vm1 = vcmask 74752  }
 0x2e3   : > { %7520 = vmatprep.subr.bf16.mxu0 %v8125_v3  ;;  %7536 = vmatprep.mubr.msk.bf16.mxu0 %vm8126_vm0, %v8125_v3  ;;  %v8082_v6 = vld [vmem:[%s8864_s3 + $0x20] sm:$0xff]   ;;  %v8083_v7 = vld [vmem:[%s8864_s3 + $0x18] sm:$0xff]   ;;  %v8084_v8 = vld [vmem:[%s8864_s3 + $0x10] sm:$0xff]  }
 0x2e4   : > { %7521 = vmatpush3.bf16.msra.mxu0 %v8079_v2  ;;  %v6793_v10 = vld [vmem:[%s8863_s2] ss:$0 sm:$0xff]  ;;  %v8085_v12 = vld [vmem:[%s8864_s3 + $0x8] sm:$0xff]  }
 0x2e5   : > { %7522 = vmatprep.subr.bf16.mxu0 %v8125_v3  ;;  %v8086_v14 = vld [vmem:[%s8864_s3] sm:$0xff]  }
 0x2e6   : > { %v6794_v16 = vld [vmem:[%s8865_s4] ss:$0 sm:$0xff] }
 0x2e8   : > { %7523 = vmatpush3.bf16.msra.mxu0 %v8080_v4  ;;  %v6093_v9 = vld [vmem:[#allocation2] sm:$0x3] }
 0x2e9   : > { %7524 = vmatprep.subr.bf16.mxu0 %v8125_v3  ;;  %v6101_v11 = vadd.f32 %v6793_v10, %v6093_v9 }
 0x2eb   : > { %v6102_v13 = vmax.f32 %v6101_v11, 0.0 }
 0x2ec   : > { %7525 = vmatpush3.bf16.msra.mxu0 %v8081_v5 }
 0x2ed   : > { %7526 = vmatprep.subr.bf16.mxu0 %v8125_v3  ;;  %v6103_v15 = vpack.c.bf16 %v6102_v13, %v6102_v13 }
 0x2f0   : > { %7527 = vmatpush3.bf16.msra.mxu0 %v8082_v6 }
 0x2f1   : > { %7528 = vmatprep.subr.bf16.mxu0 %v8125_v3 }
 0x2f4   : > { %7529 = vmatpush3.bf16.msra.mxu0 %v8083_v7 }
 0x2f5   : > { %7530 = vmatprep.subr.bf16.mxu0 %v8125_v3 }
 0x2f8   : > { %7531 = vmatpush3.bf16.msra.mxu0 %v8084_v8 }
 0x2f9   : > { %7532 = vmatprep.subr.bf16.mxu0 %v8125_v3 }
 0x2fc   : > { %7533 = vmatpush3.bf16.msra.mxu0 %v8085_v12 }
 0x2fd   : > { %7534 = vmatprep.subr.bf16.mxu0 %v8125_v3 }
 0x300   : > { %7535 = vmatpush3.bf16.msra.mxu0 %v8086_v14 }
 0x303   : > { %7537 = vmatmul.mubr.bf16.vlgmr.msra.gmra.mxu0 %v6103_v15 }
 0x3c3   : > { %v6209_v17 = vpop.f32.mrf.mxu0 }
 0x3c4   : > { %v6210_v18 = vadd.f32 %v6794_v16, %v6209_v17 }
 0x3c5   : > { %v7538_v19 = vpop.f32.mrf.mxu0 }
 0x3c6   : > { %6216 = vst.msk [vmem:[#allocation3] sm:$0x3] %vm6215_vm1, %v6210_v18 }
 0x3c7   : > { %v6212_v20 = vpop.f32.mrf.mxu0 }
 0x3c9   : > { %v7539_v21 = vpop.f32.mrf.mxu0 }
 0x3ca PF: > { %p7544_p7 = scmp.eq.s32.totalorder %s8164_s19, 3  ;;  %s8127_s26 = smov [#allocation3]  }
 0x3cb   : > { %s6224_s27 = sshll.u32 %s8127_s26, 4  ;;  %s6225_s27 = int_to_ptr.vmem [resolvable:$true] %s6224_s27 }
 0x3cc   : > { %s8087_s28 = scalar_lea.vmem %s6225_s27, 32  ;;  %p8094_p11 = scmp.lt.s32.totalorder %s6225_s27, %s6225_s27 }
 0x3cd   : > { %p8088_p8 = scmp.ne.s32.totalorder %s6225_s27, %s8087_s28  ;;  %p8095_p12 = scmp.lt.s32.totalorder %s8087_s28, %s8087_s28 }
 0x3cf   : > { %p8089_p9 = pnand %p8088_p8, %p7544_p7  ;;  %p8096_p13 = por %p8095_p12, %p8094_p11 }
 0x3d1   : > { %p8090_p10 = pneg %p8089_p9 }
 0x3d3   : > { %p8097_p0 = pnand %p8096_p13, %p8090_p10 }
 0x3d5   : > { %8100 = shalt.err (!%p8097_p0)
}
 0x3d6   : > { %7541 = dma.vmem_to_hbm [thread:$0]  (%p7544_p7), %s6225_s27, 32, %s8866_s5, [#allocation4]  }
 0x3d7   : > { %8116 = dma.done.wait (%p7544_p7), [#allocation4], 32  }
 0x3d8   : > { %8118 = vsyncadd (%p7544_p7), [#allocation4], 4294967264 }
 0x3d9 PF: > { %s16_s18 = sadd.s32 1, %s8121_s18  }
 0x3da   : > { %p13_p1 = scmp.ge.s32.totalorder %s16_s18, 6  }
 0x3dc   :  { %15 = sbr.rel (!%p13_p1) target bundleno = 1 (0x1), region = 78 }
 0x3e1   :  { %6237 = vsyncpa [#allocation4], 1 }
 0x3e2   :  { %6239 = vsyncpa [#allocation4 + $0x1], 1 }

</bundles_post_ra>
